<compile_context>
chip_gen: v7x
topology: tpu7x:2x2x1
jax: 0.10.0
libtpu: 0.0.40
codegen_flags: <defaults>
</compile_context>

<pallas_src>
import math

import jax
import jax.numpy as jnp
from jax.experimental import pallas as pl
from jax.experimental.pallas import tpu as pltpu

# ----------------------------- config ---------------------------------------
VOCAB = 32
D_MODEL = 32
NHEAD = 4
D_HEAD = D_MODEL // NHEAD
NUM_ENC_LAYERS = 2
NUM_DEC_LAYERS = 2
DIM_FF = 64
MAX_SEQ = 16
S_SRC = 8
S_TGT = 8
BATCH = 2
LN_EPS = 1e-5
NEG_INF = -1e9


# ----------------------- in-kernel math helpers ------------------------------

def _layer_norm(y, g, b):
    mu = jnp.mean(y, axis=-1, keepdims=True)
    d = y - mu
    var = jnp.mean(d * d, axis=-1, keepdims=True)
    return d * jax.lax.rsqrt(var + LN_EPS) * g + b


def _softmax_rows(s):
    s = s - jnp.max(s, axis=-1, keepdims=True)
    p = jnp.exp(s)
    return p * pl.reciprocal(jnp.sum(p, axis=-1, keepdims=True), approx=False)


def _mha_core(q, k, v, mask, wo, bo):
    """Multi-head attention on flattened (B*S, D) activations.

    `mask` is a (Nq, Nkv) additive mask that already contains the block-diagonal
    batch isolation plus any user mask, so no per-batch loop is needed.
    The output projection is folded into the head loop (no concat relayout).
    """
    scale = 1.0 / math.sqrt(D_HEAD)
    acc = None
    for h in range(NHEAD):  # statically unrolled, static lane/sublane slices
        sl = slice(h * D_HEAD, (h + 1) * D_HEAD)
        s = jnp.dot(q[:, sl], k[:, sl].T, preferred_element_type=jnp.float32)
        s = s * scale + mask
        p = _softmax_rows(s)
        ctx = jnp.dot(p, v[:, sl], preferred_element_type=jnp.float32)      # (Nq, dh)
        contrib = jnp.dot(ctx, wo[sl, :], preferred_element_type=jnp.float32)  # (Nq, D)
        acc = contrib if acc is None else acc + contrib
    return acc + bo


def _self_attention(x, mask, w_qkv, b_qkv, wo, bo):
    qkv = jnp.dot(x, w_qkv, preferred_element_type=jnp.float32) + b_qkv     # (N, 3D)
    q = qkv[:, :D_MODEL]
    k = qkv[:, D_MODEL:2 * D_MODEL]
    v = qkv[:, 2 * D_MODEL:]
    return _mha_core(q, k, v, mask, wo, bo)


def _cross_attention(x, mem, mask, w_qkv, b_qkv, wo, bo):
    q = jnp.dot(x, w_qkv[:, :D_MODEL], preferred_element_type=jnp.float32) + b_qkv[:, :D_MODEL]
    kv = jnp.dot(mem, w_qkv[:, D_MODEL:], preferred_element_type=jnp.float32) + b_qkv[:, D_MODEL:]
    k = kv[:, :D_MODEL]
    v = kv[:, D_MODEL:]
    return _mha_core(q, k, v, mask, wo, bo)


def _ffn(x, w1, b1, w2, b2):
    h = jnp.dot(x, w1, preferred_element_type=jnp.float32) + b1
    h = jnp.maximum(h, 0.0)
    return jnp.dot(h, w2, preferred_element_type=jnp.float32) + b2


def _embed_tokens(tok_col, table, pe_tiled):
    """One-hot-matmul embedding lookup + sqrt(D) scale + positional encoding."""
    n = tok_col.shape[0]
    iota = jax.lax.broadcasted_iota(jnp.int32, (n, VOCAB), 1)
    onehot = (tok_col == iota).astype(jnp.float32)                          # (N, V)
    x = jnp.dot(onehot, table, preferred_element_type=jnp.float32) * math.sqrt(D_MODEL)
    return x + pe_tiled


# ----------------------------- fused kernel ----------------------------------

def _make_kernel(treedef, n_weights):
    def kernel(*refs):
        (src_ref, tgt_ref, pe_src_ref, pe_tgt_ref,
         m_src_ref, m_tgt_ref, m_mem_ref) = refs[:7]
        w_refs = refs[7:7 + n_weights]
        o_ref = refs[7 + n_weights]

        # Load every weight once (all VMEM-resident, tiny).
        p = jax.tree_util.tree_map(
            lambda r: r[...], jax.tree_util.tree_unflatten(treedef, list(w_refs)))

        m_src = m_src_ref[...]
        m_tgt = m_tgt_ref[...]
        m_mem = m_mem_ref[...]

        # ---------------- encoder ----------------
        x = _embed_tokens(src_ref[...], p["emb_enc"], pe_src_ref[...])      # (B*Ssrc, D)
        for layer in p["enc"]:
            a = _self_attention(x, m_src, layer["w_qkv"], layer["b_qkv"],
                                layer["wo"], layer["bo"])
            x = _layer_norm(a + x, layer["ln1_g"], layer["ln1_b"])
            f = _ffn(x, layer["w1"], layer["b1"], layer["w2"], layer["b2"])
            x = _layer_norm(f + x, layer["ln2_g"], layer["ln2_b"])
        memory = x

        # ---------------- decoder ----------------
        y = _embed_tokens(tgt_ref[...], p["emb_dec"], pe_tgt_ref[...])      # (B*Stgt, D)
        for layer in p["dec"]:
            a = _self_attention(y, m_tgt, layer["sa_w_qkv"], layer["sa_b_qkv"],
                                layer["sa_wo"], layer["sa_bo"])
            y = _layer_norm(a + y, layer["ln1_g"], layer["ln1_b"])
            c = _cross_attention(y, memory, m_mem, layer["ca_w_qkv"], layer["ca_b_qkv"],
                                 layer["ca_wo"], layer["ca_bo"])
            y = _layer_norm(c + y, layer["ln2_g"], layer["ln2_b"])
            f = _ffn(y, layer["w1"], layer["b1"], layer["w2"], layer["b2"])
            y = _layer_norm(f + y, layer["ln3_g"], layer["ln3_b"])

        # ---------------- final projection (fused) ----------------
        o_ref[...] = jnp.dot(y, p["out_w"], preferred_element_type=jnp.float32) + p["out_b"]

    return kernel


# --------------------------- host-side glue ----------------------------------

def _batch_block_mask(user_mask, B, Sq, Skv):
    """Combine the user additive mask with a block-diagonal batch-isolation mask
    so attention on the flattened (B*S, D) layout never crosses batch elements."""
    m = jnp.full((B * Sq, B * Skv), NEG_INF, jnp.float32)
    um = user_mask.astype(jnp.float32)
    for b in range(B):
        m = m.at[b * Sq:(b + 1) * Sq, b * Skv:(b + 1) * Skv].set(um)
    return m


def sinusoidal_pe(max_len, d_model):
    pos = jnp.arange(max_len, dtype=jnp.float32)[:, None]
    i = jnp.arange(0, d_model, 2, dtype=jnp.float32)[None, :]
    angle = pos / jnp.power(10000.0, i / d_model)
    pe = jnp.zeros((max_len, d_model), jnp.float32)
    pe = pe.at[:, 0::2].set(jnp.sin(angle))
    pe = pe.at[:, 1::2].set(jnp.cos(angle))
    return pe


@jax.jit
def base_transformer_forward(src, tgt, params, src_mask, tgt_mask, memory_mask):
    B, Ssrc = src.shape
    _, Stgt = tgt.shape

    pe = sinusoidal_pe(MAX_SEQ, D_MODEL)
    pe_src = jnp.tile(pe[:Ssrc], (B, 1))           # (B*Ssrc, D)
    pe_tgt = jnp.tile(pe[:Stgt], (B, 1))           # (B*Stgt, D)

    m_src = _batch_block_mask(src_mask, B, Ssrc, Ssrc)
    m_tgt = _batch_block_mask(tgt_mask, B, Stgt, Stgt)
    m_mem = _batch_block_mask(memory_mask, B, Stgt, Ssrc)

    src_col = src.reshape(B * Ssrc, 1).astype(jnp.int32)
    tgt_col = tgt.reshape(B * Stgt, 1).astype(jnp.int32)

    leaves, treedef = jax.tree_util.tree_flatten(params)
    kernel = _make_kernel(treedef, len(leaves))

    # Single fused pallas_call: no grid, every operand is a full VMEM-resident
    # block (default BlockSpec).  Total footprint << 1 MB, well under the
    # explicit VMEM budget (valid even on v7x's 64 MiB VMEM).
    logits_flat = pl.pallas_call(
        kernel,
        out_shape=jax.ShapeDtypeStruct((B * Stgt, VOCAB), jnp.float32),
        compiler_params=pltpu.CompilerParams(vmem_limit_bytes=32 * 1024 * 1024),
    )(src_col, tgt_col, pe_src, pe_tgt, m_src, m_tgt, m_mem, *leaves)

    return logits_flat.reshape(B, Stgt, VOCAB)


# --------------------------- parameter init ----------------------------------

def _rand(key, shape, scale=0.02):
    return jax.random.normal(key, shape, jnp.float32) * scale


def _attn_params(key, prefix=""):
    kq, kk, kv, ko, kb, kbo = jax.random.split(key, 6)
    w_qkv = jnp.concatenate([_rand(kq, (D_MODEL, D_MODEL)),
                             _rand(kk, (D_MODEL, D_MODEL)),
                             _rand(kv, (D_MODEL, D_MODEL))], axis=1)        # (D, 3D)
    b_qkv = _rand(kb, (1, 3 * D_MODEL))
    wo = _rand(ko, (D_MODEL, D_MODEL))
    bo = _rand(kbo, (1, D_MODEL))
    return {prefix + "w_qkv": w_qkv, prefix + "b_qkv": b_qkv,
            prefix + "wo": wo, prefix + "bo": bo}


def _ffn_params(key):
    k1, k2, k3, k4 = jax.random.split(key, 4)
    return {"w1": _rand(k1, (D_MODEL, DIM_FF)), "b1": _rand(k2, (1, DIM_FF)),
            "w2": _rand(k3, (DIM_FF, D_MODEL)), "b2": _rand(k4, (1, D_MODEL))}


def _ln_params(name):
    return {name + "_g": jnp.ones((1, D_MODEL), jnp.float32),
            name + "_b": jnp.zeros((1, D_MODEL), jnp.float32)}


def init_params(key):
    keys = jax.random.split(key, 8)
    params = {
        "emb_enc": _rand(keys[0], (VOCAB, D_MODEL)),
        "emb_dec": _rand(keys[1], (VOCAB, D_MODEL)),
        "out_w": _rand(keys[4], (D_MODEL, VOCAB)),
        "out_b": _rand(keys[5], (1, VOCAB)),
    }

    enc_layers = []
    for i in range(NUM_ENC_LAYERS):
        k = jax.random.fold_in(keys[2], i)
        ka, kf = jax.random.split(k)
        layer = {}
        layer.update(_attn_params(ka))
        layer.update(_ffn_params(kf))
        layer.update(_ln_params("ln1"))
        layer.update(_ln_params("ln2"))
        enc_layers.append(layer)
    params["enc"] = enc_layers

    dec_layers = []
    for i in range(NUM_DEC_LAYERS):
        k = jax.random.fold_in(keys[3], i)
        ks, kc, kf = jax.random.split(k, 3)
        layer = {}
        layer.update(_attn_params(ks, prefix="sa_"))
        layer.update(_attn_params(kc, prefix="ca_"))
        layer.update(_ffn_params(kf))
        layer.update(_ln_params("ln1"))
        layer.update(_ln_params("ln2"))
        layer.update(_ln_params("ln3"))
        dec_layers.append(layer)
    params["dec"] = dec_layers

    return params


# ------------------------------- main -----------------------------------------

if __name__ == "__main__":
    key = jax.random.PRNGKey(0)
    kp, ks, kt = jax.random.split(key, 3)

    params = init_params(kp)

    src = jax.random.randint(ks, (BATCH, S_SRC), 0, VOCAB, dtype=jnp.int32)
    tgt = jax.random.randint(kt, (BATCH, S_TGT), 0, VOCAB, dtype=jnp.int32)

    # additive float masks (0 = attend, -1e9 = masked)
    src_mask = jnp.zeros((S_SRC, S_SRC), jnp.float32)
    tgt_mask = jnp.triu(jnp.full((S_TGT, S_TGT), NEG_INF, jnp.float32), k=1)
    memory_mask = jnp.zeros((S_TGT, S_SRC), jnp.float32)

    logits = base_transformer_forward(src, tgt, params, src_mask, tgt_mask, memory_mask)
    logits = jax.block_until_ready(logits)

    assert logits.shape == (BATCH, S_TGT, VOCAB)
    assert logits.dtype == jnp.float32
    assert bool(jnp.all(jnp.isfinite(logits)))
    print("KERNEL_OK")
</pallas_src>

<mosaic_0001>
module attributes {stable_mosaic.version = 11 : i64} {
  func.func @kernel(%arg0: memref<16x1xi32, #tpu.memory_space<vmem>>, %arg1: memref<16x1xi32, #tpu.memory_space<vmem>>, %arg2: memref<16x32xf32, #tpu.memory_space<vmem>>, %arg3: memref<16x32xf32, #tpu.memory_space<vmem>>, %arg4: memref<16x16xf32, #tpu.memory_space<vmem>>, %arg5: memref<16x16xf32, #tpu.memory_space<vmem>>, %arg6: memref<16x16xf32, #tpu.memory_space<vmem>>, %arg7: memref<1x64xf32, #tpu.memory_space<vmem>>, %arg8: memref<1x32xf32, #tpu.memory_space<vmem>>, %arg9: memref<1x96xf32, #tpu.memory_space<vmem>>, %arg10: memref<1x32xf32, #tpu.memory_space<vmem>>, %arg11: memref<32x96xf32, #tpu.memory_space<vmem>>, %arg12: memref<32x32xf32, #tpu.memory_space<vmem>>, %arg13: memref<1x32xf32, #tpu.memory_space<vmem>>, %arg14: memref<1x32xf32, #tpu.memory_space<vmem>>, %arg15: memref<1x32xf32, #tpu.memory_space<vmem>>, %arg16: memref<1x32xf32, #tpu.memory_space<vmem>>, %arg17: memref<1x32xf32, #tpu.memory_space<vmem>>, %arg18: memref<1x32xf32, #tpu.memory_space<vmem>>, %arg19: memref<1x96xf32, #tpu.memory_space<vmem>>, %arg20: memref<1x32xf32, #tpu.memory_space<vmem>>, %arg21: memref<32x96xf32, #tpu.memory_space<vmem>>, %arg22: memref<32x32xf32, #tpu.memory_space<vmem>>, %arg23: memref<32x64xf32, #tpu.memory_space<vmem>>, %arg24: memref<64x32xf32, #tpu.memory_space<vmem>>, %arg25: memref<1x64xf32, #tpu.memory_space<vmem>>, %arg26: memref<1x32xf32, #tpu.memory_space<vmem>>, %arg27: memref<1x96xf32, #tpu.memory_space<vmem>>, %arg28: memref<1x32xf32, #tpu.memory_space<vmem>>, %arg29: memref<32x96xf32, #tpu.memory_space<vmem>>, %arg30: memref<32x32xf32, #tpu.memory_space<vmem>>, %arg31: memref<1x32xf32, #tpu.memory_space<vmem>>, %arg32: memref<1x32xf32, #tpu.memory_space<vmem>>, %arg33: memref<1x32xf32, #tpu.memory_space<vmem>>, %arg34: memref<1x32xf32, #tpu.memory_space<vmem>>, %arg35: memref<1x32xf32, #tpu.memory_space<vmem>>, %arg36: memref<1x32xf32, #tpu.memory_space<vmem>>, %arg37: memref<1x96xf32, #tpu.memory_space<vmem>>, %arg38: memref<1x32xf32, #tpu.memory_space<vmem>>, %arg39: memref<32x96xf32, #tpu.memory_space<vmem>>, %arg40: memref<32x32xf32, #tpu.memory_space<vmem>>, %arg41: memref<32x64xf32, #tpu.memory_space<vmem>>, %arg42: memref<64x32xf32, #tpu.memory_space<vmem>>, %arg43: memref<32x32xf32, #tpu.memory_space<vmem>>, %arg44: memref<32x32xf32, #tpu.memory_space<vmem>>, %arg45: memref<1x64xf32, #tpu.memory_space<vmem>>, %arg46: memref<1x32xf32, #tpu.memory_space<vmem>>, %arg47: memref<1x96xf32, #tpu.memory_space<vmem>>, %arg48: memref<1x32xf32, #tpu.memory_space<vmem>>, %arg49: memref<1x32xf32, #tpu.memory_space<vmem>>, %arg50: memref<1x32xf32, #tpu.memory_space<vmem>>, %arg51: memref<1x32xf32, #tpu.memory_space<vmem>>, %arg52: memref<1x32xf32, #tpu.memory_space<vmem>>, %arg53: memref<32x64xf32, #tpu.memory_space<vmem>>, %arg54: memref<64x32xf32, #tpu.memory_space<vmem>>, %arg55: memref<32x96xf32, #tpu.memory_space<vmem>>, %arg56: memref<32x32xf32, #tpu.memory_space<vmem>>, %arg57: memref<1x64xf32, #tpu.memory_space<vmem>>, %arg58: memref<1x32xf32, #tpu.memory_space<vmem>>, %arg59: memref<1x96xf32, #tpu.memory_space<vmem>>, %arg60: memref<1x32xf32, #tpu.memory_space<vmem>>, %arg61: memref<1x32xf32, #tpu.memory_space<vmem>>, %arg62: memref<1x32xf32, #tpu.memory_space<vmem>>, %arg63: memref<1x32xf32, #tpu.memory_space<vmem>>, %arg64: memref<1x32xf32, #tpu.memory_space<vmem>>, %arg65: memref<32x64xf32, #tpu.memory_space<vmem>>, %arg66: memref<64x32xf32, #tpu.memory_space<vmem>>, %arg67: memref<32x96xf32, #tpu.memory_space<vmem>>, %arg68: memref<32x32xf32, #tpu.memory_space<vmem>>, %arg69: memref<1x32xf32, #tpu.memory_space<vmem>>, %arg70: memref<32x32xf32, #tpu.memory_space<vmem>>, %arg71: memref<16x32xf32, #tpu.memory_space<vmem>>) attributes {dimension_semantics = [], scalar_prefetch = 0 : i64, scratch_operands = 0 : i64, tpu.core_type = #tpu.core_type<tc>} {
    %c0 = arith.constant 0 : index
    %c0_0 = arith.constant 0 : index
    %0 = vector.load %arg7[%c0, %c0_0] : memref<1x64xf32, #tpu.memory_space<vmem>>, vector<1x64xf32>
    %c0_1 = arith.constant 0 : index
    %c0_2 = arith.constant 0 : index
    %1 = vector.load %arg8[%c0_1, %c0_2] : memref<1x32xf32, #tpu.memory_space<vmem>>, vector<1x32xf32>
    %c0_3 = arith.constant 0 : index
    %c0_4 = arith.constant 0 : index
    %2 = vector.load %arg9[%c0_3, %c0_4] : memref<1x96xf32, #tpu.memory_space<vmem>>, vector<1x96xf32>
    %c0_5 = arith.constant 0 : index
    %c0_6 = arith.constant 0 : index
    %3 = vector.load %arg10[%c0_5, %c0_6] : memref<1x32xf32, #tpu.memory_space<vmem>>, vector<1x32xf32>
    %c0_7 = arith.constant 0 : index
    %c0_8 = arith.constant 0 : index
    %4 = vector.load %arg11[%c0_7, %c0_8] : memref<32x96xf32, #tpu.memory_space<vmem>>, vector<32x96xf32>
    %c0_9 = arith.constant 0 : index
    %c0_10 = arith.constant 0 : index
    %5 = vector.load %arg12[%c0_9, %c0_10] : memref<32x32xf32, #tpu.memory_space<vmem>>, vector<32x32xf32>
    %c0_11 = arith.constant 0 : index
    %c0_12 = arith.constant 0 : index
    %6 = vector.load %arg13[%c0_11, %c0_12] : memref<1x32xf32, #tpu.memory_space<vmem>>, vector<1x32xf32>
    %c0_13 = arith.constant 0 : index
    %c0_14 = arith.constant 0 : index
    %7 = vector.load %arg14[%c0_13, %c0_14] : memref<1x32xf32, #tpu.memory_space<vmem>>, vector<1x32xf32>
    %c0_15 = arith.constant 0 : index
    %c0_16 = arith.constant 0 : index
    %8 = vector.load %arg15[%c0_15, %c0_16] : memref<1x32xf32, #tpu.memory_space<vmem>>, vector<1x32xf32>
    %c0_17 = arith.constant 0 : index
    %c0_18 = arith.constant 0 : index
    %9 = vector.load %arg16[%c0_17, %c0_18] : memref<1x32xf32, #tpu.memory_space<vmem>>, vector<1x32xf32>
    %c0_19 = arith.constant 0 : index
    %c0_20 = arith.constant 0 : index
    %10 = vector.load %arg17[%c0_19, %c0_20] : memref<1x32xf32, #tpu.memory_space<vmem>>, vector<1x32xf32>
    %c0_21 = arith.constant 0 : index
    %c0_22 = arith.constant 0 : index
    %11 = vector.load %arg18[%c0_21, %c0_22] : memref<1x32xf32, #tpu.memory_space<vmem>>, vector<1x32xf32>
    %c0_23 = arith.constant 0 : index
    %c0_24 = arith.constant 0 : index
    %12 = vector.load %arg19[%c0_23, %c0_24] : memref<1x96xf32, #tpu.memory_space<vmem>>, vector<1x96xf32>
    %c0_25 = arith.constant 0 : index
    %c0_26 = arith.constant 0 : index
    %13 = vector.load %arg20[%c0_25, %c0_26] : memref<1x32xf32, #tpu.memory_space<vmem>>, vector<1x32xf32>
    %c0_27 = arith.constant 0 : index
    %c0_28 = arith.constant 0 : index
    %14 = vector.load %arg21[%c0_27, %c0_28] : memref<32x96xf32, #tpu.memory_space<vmem>>, vector<32x96xf32>
    %c0_29 = arith.constant 0 : index
    %c0_30 = arith.constant 0 : index
    %15 = vector.load %arg22[%c0_29, %c0_30] : memref<32x32xf32, #tpu.memory_space<vmem>>, vector<32x32xf32>
    %c0_31 = arith.constant 0 : index
    %c0_32 = arith.constant 0 : index
    %16 = vector.load %arg23[%c0_31, %c0_32] : memref<32x64xf32, #tpu.memory_space<vmem>>, vector<32x64xf32>
    %c0_33 = arith.constant 0 : index
    %c0_34 = arith.constant 0 : index
    %17 = vector.load %arg24[%c0_33, %c0_34] : memref<64x32xf32, #tpu.memory_space<vmem>>, vector<64x32xf32>
    %c0_35 = arith.constant 0 : index
    %c0_36 = arith.constant 0 : index
    %18 = vector.load %arg25[%c0_35, %c0_36] : memref<1x64xf32, #tpu.memory_space<vmem>>, vector<1x64xf32>
    %c0_37 = arith.constant 0 : index
    %c0_38 = arith.constant 0 : index
    %19 = vector.load %arg26[%c0_37, %c0_38] : memref<1x32xf32, #tpu.memory_space<vmem>>, vector<1x32xf32>
    %c0_39 = arith.constant 0 : index
    %c0_40 = arith.constant 0 : index
    %20 = vector.load %arg27[%c0_39, %c0_40] : memref<1x96xf32, #tpu.memory_space<vmem>>, vector<1x96xf32>
    %c0_41 = arith.constant 0 : index
    %c0_42 = arith.constant 0 : index
    %21 = vector.load %arg28[%c0_41, %c0_42] : memref<1x32xf32, #tpu.memory_space<vmem>>, vector<1x32xf32>
    %c0_43 = arith.constant 0 : index
    %c0_44 = arith.constant 0 : index
    %22 = vector.load %arg29[%c0_43, %c0_44] : memref<32x96xf32, #tpu.memory_space<vmem>>, vector<32x96xf32>
    %c0_45 = arith.constant 0 : index
    %c0_46 = arith.constant 0 : index
    %23 = vector.load %arg30[%c0_45, %c0_46] : memref<32x32xf32, #tpu.memory_space<vmem>>, vector<32x32xf32>
    %c0_47 = arith.constant 0 : index
    %c0_48 = arith.constant 0 : index
    %24 = vector.load %arg31[%c0_47, %c0_48] : memref<1x32xf32, #tpu.memory_space<vmem>>, vector<1x32xf32>
    %c0_49 = arith.constant 0 : index
    %c0_50 = arith.constant 0 : index
    %25 = vector.load %arg32[%c0_49, %c0_50] : memref<1x32xf32, #tpu.memory_space<vmem>>, vector<1x32xf32>
    %c0_51 = arith.constant 0 : index
    %c0_52 = arith.constant 0 : index
    %26 = vector.load %arg33[%c0_51, %c0_52] : memref<1x32xf32, #tpu.memory_space<vmem>>, vector<1x32xf32>
    %c0_53 = arith.constant 0 : index
    %c0_54 = arith.constant 0 : index
    %27 = vector.load %arg34[%c0_53, %c0_54] : memref<1x32xf32, #tpu.memory_space<vmem>>, vector<1x32xf32>
    %c0_55 = arith.constant 0 : index
    %c0_56 = arith.constant 0 : index
    %28 = vector.load %arg35[%c0_55, %c0_56] : memref<1x32xf32, #tpu.memory_space<vmem>>, vector<1x32xf32>
    %c0_57 = arith.constant 0 : index
    %c0_58 = arith.constant 0 : index
    %29 = vector.load %arg36[%c0_57, %c0_58] : memref<1x32xf32, #tpu.memory_space<vmem>>, vector<1x32xf32>
    %c0_59 = arith.constant 0 : index
    %c0_60 = arith.constant 0 : index
    %30 = vector.load %arg37[%c0_59, %c0_60] : memref<1x96xf32, #tpu.memory_space<vmem>>, vector<1x96xf32>
    %c0_61 = arith.constant 0 : index
    %c0_62 = arith.constant 0 : index
    %31 = vector.load %arg38[%c0_61, %c0_62] : memref<1x32xf32, #tpu.memory_space<vmem>>, vector<1x32xf32>
    %c0_63 = arith.constant 0 : index
    %c0_64 = arith.constant 0 : index
    %32 = vector.load %arg39[%c0_63, %c0_64] : memref<32x96xf32, #tpu.memory_space<vmem>>, vector<32x96xf32>
    %c0_65 = arith.constant 0 : index
    %c0_66 = arith.constant 0 : index
    %33 = vector.load %arg40[%c0_65, %c0_66] : memref<32x32xf32, #tpu.memory_space<vmem>>, vector<32x32xf32>
    %c0_67 = arith.constant 0 : index
    %c0_68 = arith.constant 0 : index
    %34 = vector.load %arg41[%c0_67, %c0_68] : memref<32x64xf32, #tpu.memory_space<vmem>>, vector<32x64xf32>
    %c0_69 = arith.constant 0 : index
    %c0_70 = arith.constant 0 : index
    %35 = vector.load %arg42[%c0_69, %c0_70] : memref<64x32xf32, #tpu.memory_space<vmem>>, vector<64x32xf32>
    %c0_71 = arith.constant 0 : index
    %c0_72 = arith.constant 0 : index
    %36 = vector.load %arg43[%c0_71, %c0_72] : memref<32x32xf32, #tpu.memory_space<vmem>>, vector<32x32xf32>
    %c0_73 = arith.constant 0 : index
    %c0_74 = arith.constant 0 : index
    %37 = vector.load %arg44[%c0_73, %c0_74] : memref<32x32xf32, #tpu.memory_space<vmem>>, vector<32x32xf32>
    %c0_75 = arith.constant 0 : index
    %c0_76 = arith.constant 0 : index
    %38 = vector.load %arg45[%c0_75, %c0_76] : memref<1x64xf32, #tpu.memory_space<vmem>>, vector<1x64xf32>
    %c0_77 = arith.constant 0 : index
    %c0_78 = arith.constant 0 : index
    %39 = vector.load %arg46[%c0_77, %c0_78] : memref<1x32xf32, #tpu.memory_space<vmem>>, vector<1x32xf32>
    %c0_79 = arith.constant 0 : index
    %c0_80 = arith.constant 0 : index
    %40 = vector.load %arg47[%c0_79, %c0_80] : memref<1x96xf32, #tpu.memory_space<vmem>>, vector<1x96xf32>
    %c0_81 = arith.constant 0 : index
    %c0_82 = arith.constant 0 : index
    %41 = vector.load %arg48[%c0_81, %c0_82] : memref<1x32xf32, #tpu.memory_space<vmem>>, vector<1x32xf32>
    %c0_83 = arith.constant 0 : index
    %c0_84 = arith.constant 0 : index
    %42 = vector.load %arg49[%c0_83, %c0_84] : memref<1x32xf32, #tpu.memory_space<vmem>>, vector<1x32xf32>
    %c0_85 = arith.constant 0 : index
    %c0_86 = arith.constant 0 : index
    %43 = vector.load %arg50[%c0_85, %c0_86] : memref<1x32xf32, #tpu.memory_space<vmem>>, vector<1x32xf32>
    %c0_87 = arith.constant 0 : index
    %c0_88 = arith.constant 0 : index
    %44 = vector.load %arg51[%c0_87, %c0_88] : memref<1x32xf32, #tpu.memory_space<vmem>>, vector<1x32xf32>
    %c0_89 = arith.constant 0 : index
    %c0_90 = arith.constant 0 : index
    %45 = vector.load %arg52[%c0_89, %c0_90] : memref<1x32xf32, #tpu.memory_space<vmem>>, vector<1x32xf32>
    %c0_91 = arith.constant 0 : index
    %c0_92 = arith.constant 0 : index
    %46 = vector.load %arg53[%c0_91, %c0_92] : memref<32x64xf32, #tpu.memory_space<vmem>>, vector<32x64xf32>
    %c0_93 = arith.constant 0 : index
    %c0_94 = arith.constant 0 : index
    %47 = vector.load %arg54[%c0_93, %c0_94] : memref<64x32xf32, #tpu.memory_space<vmem>>, vector<64x32xf32>
    %c0_95 = arith.constant 0 : index
    %c0_96 = arith.constant 0 : index
    %48 = vector.load %arg55[%c0_95, %c0_96] : memref<32x96xf32, #tpu.memory_space<vmem>>, vector<32x96xf32>
    %c0_97 = arith.constant 0 : index
    %c0_98 = arith.constant 0 : index
    %49 = vector.load %arg56[%c0_97, %c0_98] : memref<32x32xf32, #tpu.memory_space<vmem>>, vector<32x32xf32>
    %c0_99 = arith.constant 0 : index
    %c0_100 = arith.constant 0 : index
    %50 = vector.load %arg57[%c0_99, %c0_100] : memref<1x64xf32, #tpu.memory_space<vmem>>, vector<1x64xf32>
    %c0_101 = arith.constant 0 : index
    %c0_102 = arith.constant 0 : index
    %51 = vector.load %arg58[%c0_101, %c0_102] : memref<1x32xf32, #tpu.memory_space<vmem>>, vector<1x32xf32>
    %c0_103 = arith.constant 0 : index
    %c0_104 = arith.constant 0 : index
    %52 = vector.load %arg59[%c0_103, %c0_104] : memref<1x96xf32, #tpu.memory_space<vmem>>, vector<1x96xf32>
    %c0_105 = arith.constant 0 : index
    %c0_106 = arith.constant 0 : index
    %53 = vector.load %arg60[%c0_105, %c0_106] : memref<1x32xf32, #tpu.memory_space<vmem>>, vector<1x32xf32>
    %c0_107 = arith.constant 0 : index
    %c0_108 = arith.constant 0 : index
    %54 = vector.load %arg61[%c0_107, %c0_108] : memref<1x32xf32, #tpu.memory_space<vmem>>, vector<1x32xf32>
    %c0_109 = arith.constant 0 : index
    %c0_110 = arith.constant 0 : index
    %55 = vector.load %arg62[%c0_109, %c0_110] : memref<1x32xf32, #tpu.memory_space<vmem>>, vector<1x32xf32>
    %c0_111 = arith.constant 0 : index
    %c0_112 = arith.constant 0 : index
    %56 = vector.load %arg63[%c0_111, %c0_112] : memref<1x32xf32, #tpu.memory_space<vmem>>, vector<1x32xf32>
    %c0_113 = arith.constant 0 : index
    %c0_114 = arith.constant 0 : index
    %57 = vector.load %arg64[%c0_113, %c0_114] : memref<1x32xf32, #tpu.memory_space<vmem>>, vector<1x32xf32>
    %c0_115 = arith.constant 0 : index
    %c0_116 = arith.constant 0 : index
    %58 = vector.load %arg65[%c0_115, %c0_116] : memref<32x64xf32, #tpu.memory_space<vmem>>, vector<32x64xf32>
    %c0_117 = arith.constant 0 : index
    %c0_118 = arith.constant 0 : index
    %59 = vector.load %arg66[%c0_117, %c0_118] : memref<64x32xf32, #tpu.memory_space<vmem>>, vector<64x32xf32>
    %c0_119 = arith.constant 0 : index
    %c0_120 = arith.constant 0 : index
    %60 = vector.load %arg67[%c0_119, %c0_120] : memref<32x96xf32, #tpu.memory_space<vmem>>, vector<32x96xf32>
    %c0_121 = arith.constant 0 : index
    %c0_122 = arith.constant 0 : index
    %61 = vector.load %arg68[%c0_121, %c0_122] : memref<32x32xf32, #tpu.memory_space<vmem>>, vector<32x32xf32>
    %c0_123 = arith.constant 0 : index
    %c0_124 = arith.constant 0 : index
    %62 = vector.load %arg69[%c0_123, %c0_124] : memref<1x32xf32, #tpu.memory_space<vmem>>, vector<1x32xf32>
    %c0_125 = arith.constant 0 : index
    %c0_126 = arith.constant 0 : index
    %63 = vector.load %arg70[%c0_125, %c0_126] : memref<32x32xf32, #tpu.memory_space<vmem>>, vector<32x32xf32>
    %c0_127 = arith.constant 0 : index
    %c0_128 = arith.constant 0 : index
    %64 = vector.load %arg4[%c0_127, %c0_128] : memref<16x16xf32, #tpu.memory_space<vmem>>, vector<16x16xf32>
    %c0_129 = arith.constant 0 : index
    %c0_130 = arith.constant 0 : index
    %65 = vector.load %arg5[%c0_129, %c0_130] : memref<16x16xf32, #tpu.memory_space<vmem>>, vector<16x16xf32>
    %c0_131 = arith.constant 0 : index
    %c0_132 = arith.constant 0 : index
    %66 = vector.load %arg6[%c0_131, %c0_132] : memref<16x16xf32, #tpu.memory_space<vmem>>, vector<16x16xf32>
    %c0_133 = arith.constant 0 : index
    %c0_134 = arith.constant 0 : index
    %67 = vector.load %arg0[%c0_133, %c0_134] : memref<16x1xi32, #tpu.memory_space<vmem>>, vector<16x1xi32>
    %c0_135 = arith.constant 0 : index
    %c0_136 = arith.constant 0 : index
    %68 = vector.load %arg2[%c0_135, %c0_136] : memref<16x32xf32, #tpu.memory_space<vmem>>, vector<16x32xf32>
    %69 = tpu.iota {dimensions = array<i32: 1>} : vector<16x32xi32>
    %70 = vector.broadcast %67 : vector<16x1xi32> to vector<16x32xi32>
    %71 = arith.cmpi eq, %70, %69 : vector<16x32xi32>
    %72 = arith.extui %71 : vector<16x32xi1> to vector<16x32xi32>
    %73 = arith.sitofp %72 : vector<16x32xi32> to vector<16x32xf32>
    %cst = arith.constant dense<0.000000e+00> : vector<16x32xf32>
    %74 = tpu.matmul %73, %37, %cst {dimension_numbers = #tpu.dot_dimension_numbers<[1], [0], [0], [1], [0, 0, 1, 1], [], []>} : vector<16x32xf32>, vector<32x32xf32>, vector<16x32xf32> -> vector<16x32xf32>
    %cst_137 = arith.constant 5.65685415 : f32
    %75 = vector.broadcast %cst_137 : f32 to vector<16x32xf32>
    %76 = arith.mulf %74, %75 : vector<16x32xf32>
    %77 = arith.addf %76, %68 : vector<16x32xf32>
    %cst_138 = arith.constant dense<0.000000e+00> : vector<16x96xf32>
    %78 = tpu.matmul %77, %48, %cst_138 {dimension_numbers = #tpu.dot_dimension_numbers<[1], [0], [0], [1], [0, 0, 1, 1], [], []>} : vector<16x32xf32>, vector<32x96xf32>, vector<16x96xf32> -> vector<16x96xf32>
    %79 = vector.broadcast %40 : vector<1x96xf32> to vector<16x96xf32>
    %80 = arith.addf %78, %79 : vector<16x96xf32>
    %81 = vector.extract_strided_slice %80 {offsets = [0, 0], sizes = [16, 32], strides = [1, 1]} : vector<16x96xf32> to vector<16x32xf32>
    %82 = vector.extract_strided_slice %80 {offsets = [0, 32], sizes = [16, 32], strides = [1, 1]} : vector<16x96xf32> to vector<16x32xf32>
    %83 = vector.extract_strided_slice %80 {offsets = [0, 64], sizes = [16, 32], strides = [1, 1]} : vector<16x96xf32> to vector<16x32xf32>
    %84 = vector.extract_strided_slice %81 {offsets = [0, 0], sizes = [16, 8], strides = [1, 1]} : vector<16x32xf32> to vector<16x8xf32>
    %85 = vector.extract_strided_slice %82 {offsets = [0, 0], sizes = [16, 8], strides = [1, 1]} : vector<16x32xf32> to vector<16x8xf32>
    %86 = tpu.transpose %85, [1, 0] : vector<16x8xf32> -> vector<8x16xf32>
    %cst_139 = arith.constant dense<0.000000e+00> : vector<16x16xf32>
    %87 = tpu.matmul %84, %86, %cst_139 {dimension_numbers = #tpu.dot_dimension_numbers<[1], [0], [0], [1], [0, 0, 1, 1], [], []>} : vector<16x8xf32>, vector<8x16xf32>, vector<16x16xf32> -> vector<16x16xf32>
    %cst_140 = arith.constant 0.353553385 : f32
    %88 = vector.broadcast %cst_140 : f32 to vector<16x16xf32>
    %89 = arith.mulf %87, %88 : vector<16x16xf32>
    %90 = arith.addf %89, %64 : vector<16x16xf32>
    %cst_141 = arith.constant dense<0xFF800000> : vector<16xf32>
    %91 = vector.multi_reduction <maximumf>, %90, %cst_141 [1] : vector<16x16xf32> to vector<16xf32>
    %92 = vector.shape_cast %91 : vector<16xf32> to vector<16x1xf32>
    %93 = vector.broadcast %92 : vector<16x1xf32> to vector<16x16xf32>
    %94 = arith.subf %90, %93 : vector<16x16xf32>
    %95 = math.exp %94 : vector<16x16xf32>
    %cst_142 = arith.constant dense<0.000000e+00> : vector<16xf32>
    %96 = vector.multi_reduction <add>, %95, %cst_142 [1] : vector<16x16xf32> to vector<16xf32>
    %97 = vector.shape_cast %96 : vector<16xf32> to vector<16x1xf32>
    %98 = tpu.reciprocal %97 : vector<16x1xf32> -> vector<16x1xf32>
    %99 = vector.broadcast %98 : vector<16x1xf32> to vector<16x16xf32>
    %100 = arith.mulf %95, %99 : vector<16x16xf32>
    %101 = vector.extract_strided_slice %83 {offsets = [0, 0], sizes = [16, 8], strides = [1, 1]} : vector<16x32xf32> to vector<16x8xf32>
    %cst_143 = arith.constant dense<0.000000e+00> : vector<16x8xf32>
    %102 = tpu.matmul %100, %101, %cst_143 {dimension_numbers = #tpu.dot_dimension_numbers<[1], [0], [0], [1], [0, 0, 1, 1], [], []>} : vector<16x16xf32>, vector<16x8xf32>, vector<16x8xf32> -> vector<16x8xf32>
    %103 = vector.extract_strided_slice %49 {offsets = [0, 0], sizes = [8, 32], strides = [1, 1]} : vector<32x32xf32> to vector<8x32xf32>
    %cst_144 = arith.constant dense<0.000000e+00> : vector<16x32xf32>
    %104 = tpu.matmul %102, %103, %cst_144 {dimension_numbers = #tpu.dot_dimension_numbers<[1], [0], [0], [1], [0, 0, 1, 1], [], []>} : vector<16x8xf32>, vector<8x32xf32>, vector<16x32xf32> -> vector<16x32xf32>
    %105 = vector.extract_strided_slice %81 {offsets = [0, 8], sizes = [16, 8], strides = [1, 1]} : vector<16x32xf32> to vector<16x8xf32>
    %106 = vector.extract_strided_slice %82 {offsets = [0, 8], sizes = [16, 8], strides = [1, 1]} : vector<16x32xf32> to vector<16x8xf32>
    %107 = tpu.transpose %106, [1, 0] : vector<16x8xf32> -> vector<8x16xf32>
    %cst_145 = arith.constant dense<0.000000e+00> : vector<16x16xf32>
    %108 = tpu.matmul %105, %107, %cst_145 {dimension_numbers = #tpu.dot_dimension_numbers<[1], [0], [0], [1], [0, 0, 1, 1], [], []>} : vector<16x8xf32>, vector<8x16xf32>, vector<16x16xf32> -> vector<16x16xf32>
    %cst_146 = arith.constant 0.353553385 : f32
    %109 = vector.broadcast %cst_146 : f32 to vector<16x16xf32>
    %110 = arith.mulf %108, %109 : vector<16x16xf32>
    %111 = arith.addf %110, %64 : vector<16x16xf32>
    %cst_147 = arith.constant dense<0xFF800000> : vector<16xf32>
    %112 = vector.multi_reduction <maximumf>, %111, %cst_147 [1] : vector<16x16xf32> to vector<16xf32>
    %113 = vector.shape_cast %112 : vector<16xf32> to vector<16x1xf32>
    %114 = vector.broadcast %113 : vector<16x1xf32> to vector<16x16xf32>
    %115 = arith.subf %111, %114 : vector<16x16xf32>
    %116 = math.exp %115 : vector<16x16xf32>
    %cst_148 = arith.constant dense<0.000000e+00> : vector<16xf32>
    %117 = vector.multi_reduction <add>, %116, %cst_148 [1] : vector<16x16xf32> to vector<16xf32>
    %118 = vector.shape_cast %117 : vector<16xf32> to vector<16x1xf32>
    %119 = tpu.reciprocal %118 : vector<16x1xf32> -> vector<16x1xf32>
    %120 = vector.broadcast %119 : vector<16x1xf32> to vector<16x16xf32>
    %121 = arith.mulf %116, %120 : vector<16x16xf32>
    %122 = vector.extract_strided_slice %83 {offsets = [0, 8], sizes = [16, 8], strides = [1, 1]} : vector<16x32xf32> to vector<16x8xf32>
    %cst_149 = arith.constant dense<0.000000e+00> : vector<16x8xf32>
    %123 = tpu.matmul %121, %122, %cst_149 {dimension_numbers = #tpu.dot_dimension_numbers<[1], [0], [0], [1], [0, 0, 1, 1], [], []>} : vector<16x16xf32>, vector<16x8xf32>, vector<16x8xf32> -> vector<16x8xf32>
    %124 = vector.extract_strided_slice %49 {offsets = [8, 0], sizes = [8, 32], strides = [1, 1]} : vector<32x32xf32> to vector<8x32xf32>
    %cst_150 = arith.constant dense<0.000000e+00> : vector<16x32xf32>
    %125 = tpu.matmul %123, %124, %cst_150 {dimension_numbers = #tpu.dot_dimension_numbers<[1], [0], [0], [1], [0, 0, 1, 1], [], []>} : vector<16x8xf32>, vector<8x32xf32>, vector<16x32xf32> -> vector<16x32xf32>
    %126 = arith.addf %104, %125 : vector<16x32xf32>
    %127 = vector.extract_strided_slice %81 {offsets = [0, 16], sizes = [16, 8], strides = [1, 1]} : vector<16x32xf32> to vector<16x8xf32>
    %128 = vector.extract_strided_slice %82 {offsets = [0, 16], sizes = [16, 8], strides = [1, 1]} : vector<16x32xf32> to vector<16x8xf32>
    %129 = tpu.transpose %128, [1, 0] : vector<16x8xf32> -> vector<8x16xf32>
    %cst_151 = arith.constant dense<0.000000e+00> : vector<16x16xf32>
    %130 = tpu.matmul %127, %129, %cst_151 {dimension_numbers = #tpu.dot_dimension_numbers<[1], [0], [0], [1], [0, 0, 1, 1], [], []>} : vector<16x8xf32>, vector<8x16xf32>, vector<16x16xf32> -> vector<16x16xf32>
    %cst_152 = arith.constant 0.353553385 : f32
    %131 = vector.broadcast %cst_152 : f32 to vector<16x16xf32>
    %132 = arith.mulf %130, %131 : vector<16x16xf32>
    %133 = arith.addf %132, %64 : vector<16x16xf32>
    %cst_153 = arith.constant dense<0xFF800000> : vector<16xf32>
    %134 = vector.multi_reduction <maximumf>, %133, %cst_153 [1] : vector<16x16xf32> to vector<16xf32>
    %135 = vector.shape_cast %134 : vector<16xf32> to vector<16x1xf32>
    %136 = vector.broadcast %135 : vector<16x1xf32> to vector<16x16xf32>
    %137 = arith.subf %133, %136 : vector<16x16xf32>
    %138 = math.exp %137 : vector<16x16xf32>
    %cst_154 = arith.constant dense<0.000000e+00> : vector<16xf32>
    %139 = vector.multi_reduction <add>, %138, %cst_154 [1] : vector<16x16xf32> to vector<16xf32>
    %140 = vector.shape_cast %139 : vector<16xf32> to vector<16x1xf32>
    %141 = tpu.reciprocal %140 : vector<16x1xf32> -> vector<16x1xf32>
    %142 = vector.broadcast %141 : vector<16x1xf32> to vector<16x16xf32>
    %143 = arith.mulf %138, %142 : vector<16x16xf32>
    %144 = vector.extract_strided_slice %83 {offsets = [0, 16], sizes = [16, 8], strides = [1, 1]} : vector<16x32xf32> to vector<16x8xf32>
    %cst_155 = arith.constant dense<0.000000e+00> : vector<16x8xf32>
    %145 = tpu.matmul %143, %144, %cst_155 {dimension_numbers = #tpu.dot_dimension_numbers<[1], [0], [0], [1], [0, 0, 1, 1], [], []>} : vector<16x16xf32>, vector<16x8xf32>, vector<16x8xf32> -> vector<16x8xf32>
    %146 = vector.extract_strided_slice %49 {offsets = [16, 0], sizes = [8, 32], strides = [1, 1]} : vector<32x32xf32> to vector<8x32xf32>
    %cst_156 = arith.constant dense<0.000000e+00> : vector<16x32xf32>
    %147 = tpu.matmul %145, %146, %cst_156 {dimension_numbers = #tpu.dot_dimension_numbers<[1], [0], [0], [1], [0, 0, 1, 1], [], []>} : vector<16x8xf32>, vector<8x32xf32>, vector<16x32xf32> -> vector<16x32xf32>
    %148 = arith.addf %126, %147 : vector<16x32xf32>
    %149 = vector.extract_strided_slice %81 {offsets = [0, 24], sizes = [16, 8], strides = [1, 1]} : vector<16x32xf32> to vector<16x8xf32>
    %150 = vector.extract_strided_slice %82 {offsets = [0, 24], sizes = [16, 8], strides = [1, 1]} : vector<16x32xf32> to vector<16x8xf32>
    %151 = tpu.transpose %150, [1, 0] : vector<16x8xf32> -> vector<8x16xf32>
    %cst_157 = arith.constant dense<0.000000e+00> : vector<16x16xf32>
    %152 = tpu.matmul %149, %151, %cst_157 {dimension_numbers = #tpu.dot_dimension_numbers<[1], [0], [0], [1], [0, 0, 1, 1], [], []>} : vector<16x8xf32>, vector<8x16xf32>, vector<16x16xf32> -> vector<16x16xf32>
    %cst_158 = arith.constant 0.353553385 : f32
    %153 = vector.broadcast %cst_158 : f32 to vector<16x16xf32>
    %154 = arith.mulf %152, %153 : vector<16x16xf32>
    %155 = arith.addf %154, %64 : vector<16x16xf32>
    %cst_159 = arith.constant dense<0xFF800000> : vector<16xf32>
    %156 = vector.multi_reduction <maximumf>, %155, %cst_159 [1] : vector<16x16xf32> to vector<16xf32>
    %157 = vector.shape_cast %156 : vector<16xf32> to vector<16x1xf32>
    %158 = vector.broadcast %157 : vector<16x1xf32> to vector<16x16xf32>
    %159 = arith.subf %155, %158 : vector<16x16xf32>
    %160 = math.exp %159 : vector<16x16xf32>
    %cst_160 = arith.constant dense<0.000000e+00> : vector<16xf32>
    %161 = vector.multi_reduction <add>, %160, %cst_160 [1] : vector<16x16xf32> to vector<16xf32>
    %162 = vector.shape_cast %161 : vector<16xf32> to vector<16x1xf32>
    %163 = tpu.reciprocal %162 : vector<16x1xf32> -> vector<16x1xf32>
    %164 = vector.broadcast %163 : vector<16x1xf32> to vector<16x16xf32>
    %165 = arith.mulf %160, %164 : vector<16x16xf32>
    %166 = vector.extract_strided_slice %83 {offsets = [0, 24], sizes = [16, 8], strides = [1, 1]} : vector<16x32xf32> to vector<16x8xf32>
    %cst_161 = arith.constant dense<0.000000e+00> : vector<16x8xf32>
    %167 = tpu.matmul %165, %166, %cst_161 {dimension_numbers = #tpu.dot_dimension_numbers<[1], [0], [0], [1], [0, 0, 1, 1], [], []>} : vector<16x16xf32>, vector<16x8xf32>, vector<16x8xf32> -> vector<16x8xf32>
    %168 = vector.extract_strided_slice %49 {offsets = [24, 0], sizes = [8, 32], strides = [1, 1]} : vector<32x32xf32> to vector<8x32xf32>
    %cst_162 = arith.constant dense<0.000000e+00> : vector<16x32xf32>
    %169 = tpu.matmul %167, %168, %cst_162 {dimension_numbers = #tpu.dot_dimension_numbers<[1], [0], [0], [1], [0, 0, 1, 1], [], []>} : vector<16x8xf32>, vector<8x32xf32>, vector<16x32xf32> -> vector<16x32xf32>
    %170 = arith.addf %148, %169 : vector<16x32xf32>
    %171 = vector.broadcast %41 : vector<1x32xf32> to vector<16x32xf32>
    %172 = arith.addf %170, %171 : vector<16x32xf32>
    %173 = arith.addf %172, %77 : vector<16x32xf32>
    %cst_163 = arith.constant dense<0.000000e+00> : vector<16xf32>
    %174 = vector.multi_reduction <add>, %173, %cst_163 [1] : vector<16x32xf32> to vector<16xf32>
    %175 = vector.shape_cast %174 : vector<16xf32> to vector<16x1xf32>
    %cst_164 = arith.constant 3.200000e+01 : f32
    %176 = vector.broadcast %cst_164 : f32 to vector<16x1xf32>
    %177 = arith.divf %175, %176 : vector<16x1xf32>
    %178 = vector.broadcast %177 : vector<16x1xf32> to vector<16x32xf32>
    %179 = arith.subf %173, %178 : vector<16x32xf32>
    %180 = arith.mulf %179, %179 : vector<16x32xf32>
    %cst_165 = arith.constant dense<0.000000e+00> : vector<16xf32>
    %181 = vector.multi_reduction <add>, %180, %cst_165 [1] : vector<16x32xf32> to vector<16xf32>
    %182 = vector.shape_cast %181 : vector<16xf32> to vector<16x1xf32>
    %cst_166 = arith.constant 3.200000e+01 : f32
    %183 = vector.broadcast %cst_166 : f32 to vector<16x1xf32>
    %184 = arith.divf %182, %183 : vector<16x1xf32>
    %cst_167 = arith.constant 9.99999974E-6 : f32
    %185 = vector.broadcast %cst_167 : f32 to vector<16x1xf32>
    %186 = arith.addf %184, %185 : vector<16x1xf32>
    %187 = math.rsqrt %186 : vector<16x1xf32>
    %188 = vector.broadcast %187 : vector<16x1xf32> to vector<16x32xf32>
    %189 = arith.mulf %179, %188 : vector<16x32xf32>
    %190 = vector.broadcast %43 : vector<1x32xf32> to vector<16x32xf32>
    %191 = arith.mulf %189, %190 : vector<16x32xf32>
    %192 = vector.broadcast %42 : vector<1x32xf32> to vector<16x32xf32>
    %193 = arith.addf %191, %192 : vector<16x32xf32>
    %cst_168 = arith.constant dense<0.000000e+00> : vector<16x64xf32>
    %194 = tpu.matmul %193, %46, %cst_168 {dimension_numbers = #tpu.dot_dimension_numbers<[1], [0], [0], [1], [0, 0, 1, 1], [], []>} : vector<16x32xf32>, vector<32x64xf32>, vector<16x64xf32> -> vector<16x64xf32>
    %195 = vector.broadcast %38 : vector<1x64xf32> to vector<16x64xf32>
    %196 = arith.addf %194, %195 : vector<16x64xf32>
    %cst_169 = arith.constant 0.000000e+00 : f32
    %197 = vector.broadcast %cst_169 : f32 to vector<16x64xf32>
    %198 = arith.maximumf %196, %197 : vector<16x64xf32>
    %cst_170 = arith.constant dense<0.000000e+00> : vector<16x32xf32>
    %199 = tpu.matmul %198, %47, %cst_170 {dimension_numbers = #tpu.dot_dimension_numbers<[1], [0], [0], [1], [0, 0, 1, 1], [], []>} : vector<16x64xf32>, vector<64x32xf32>, vector<16x32xf32> -> vector<16x32xf32>
    %200 = vector.broadcast %39 : vector<1x32xf32> to vector<16x32xf32>
    %201 = arith.addf %199, %200 : vector<16x32xf32>
    %202 = arith.addf %201, %193 : vector<16x32xf32>
    %cst_171 = arith.constant dense<0.000000e+00> : vector<16xf32>
    %203 = vector.multi_reduction <add>, %202, %cst_171 [1] : vector<16x32xf32> to vector<16xf32>
    %204 = vector.shape_cast %203 : vector<16xf32> to vector<16x1xf32>
    %cst_172 = arith.constant 3.200000e+01 : f32
    %205 = vector.broadcast %cst_172 : f32 to vector<16x1xf32>
    %206 = arith.divf %204, %205 : vector<16x1xf32>
    %207 = vector.broadcast %206 : vector<16x1xf32> to vector<16x32xf32>
    %208 = arith.subf %202, %207 : vector<16x32xf32>
    %209 = arith.mulf %208, %208 : vector<16x32xf32>
    %cst_173 = arith.constant dense<0.000000e+00> : vector<16xf32>
    %210 = vector.multi_reduction <add>, %209, %cst_173 [1] : vector<16x32xf32> to vector<16xf32>
    %211 = vector.shape_cast %210 : vector<16xf32> to vector<16x1xf32>
    %cst_174 = arith.constant 3.200000e+01 : f32
    %212 = vector.broadcast %cst_174 : f32 to vector<16x1xf32>
    %213 = arith.divf %211, %212 : vector<16x1xf32>
    %cst_175 = arith.constant 9.99999974E-6 : f32
    %214 = vector.broadcast %cst_175 : f32 to vector<16x1xf32>
    %215 = arith.addf %213, %214 : vector<16x1xf32>
    %216 = math.rsqrt %215 : vector<16x1xf32>
    %217 = vector.broadcast %216 : vector<16x1xf32> to vector<16x32xf32>
    %218 = arith.mulf %208, %217 : vector<16x32xf32>
    %219 = vector.broadcast %45 : vector<1x32xf32> to vector<16x32xf32>
    %220 = arith.mulf %218, %219 : vector<16x32xf32>
    %221 = vector.broadcast %44 : vector<1x32xf32> to vector<16x32xf32>
    %222 = arith.addf %220, %221 : vector<16x32xf32>
    %cst_176 = arith.constant dense<0.000000e+00> : vector<16x96xf32>
    %223 = tpu.matmul %222, %60, %cst_176 {dimension_numbers = #tpu.dot_dimension_numbers<[1], [0], [0], [1], [0, 0, 1, 1], [], []>} : vector<16x32xf32>, vector<32x96xf32>, vector<16x96xf32> -> vector<16x96xf32>
    %224 = vector.broadcast %52 : vector<1x96xf32> to vector<16x96xf32>
    %225 = arith.addf %223, %224 : vector<16x96xf32>
    %226 = vector.extract_strided_slice %225 {offsets = [0, 0], sizes = [16, 32], strides = [1, 1]} : vector<16x96xf32> to vector<16x32xf32>
    %227 = vector.extract_strided_slice %225 {offsets = [0, 32], sizes = [16, 32], strides = [1, 1]} : vector<16x96xf32> to vector<16x32xf32>
    %228 = vector.extract_strided_slice %225 {offsets = [0, 64], sizes = [16, 32], strides = [1, 1]} : vector<16x96xf32> to vector<16x32xf32>
    %229 = vector.extract_strided_slice %226 {offsets = [0, 0], sizes = [16, 8], strides = [1, 1]} : vector<16x32xf32> to vector<16x8xf32>
    %230 = vector.extract_strided_slice %227 {offsets = [0, 0], sizes = [16, 8], strides = [1, 1]} : vector<16x32xf32> to vector<16x8xf32>
    %231 = tpu.transpose %230, [1, 0] : vector<16x8xf32> -> vector<8x16xf32>
    %cst_177 = arith.constant dense<0.000000e+00> : vector<16x16xf32>
    %232 = tpu.matmul %229, %231, %cst_177 {dimension_numbers = #tpu.dot_dimension_numbers<[1], [0], [0], [1], [0, 0, 1, 1], [], []>} : vector<16x8xf32>, vector<8x16xf32>, vector<16x16xf32> -> vector<16x16xf32>
    %cst_178 = arith.constant 0.353553385 : f32
    %233 = vector.broadcast %cst_178 : f32 to vector<16x16xf32>
    %234 = arith.mulf %232, %233 : vector<16x16xf32>
    %235 = arith.addf %234, %64 : vector<16x16xf32>
    %cst_179 = arith.constant dense<0xFF800000> : vector<16xf32>
    %236 = vector.multi_reduction <maximumf>, %235, %cst_179 [1] : vector<16x16xf32> to vector<16xf32>
    %237 = vector.shape_cast %236 : vector<16xf32> to vector<16x1xf32>
    %238 = vector.broadcast %237 : vector<16x1xf32> to vector<16x16xf32>
    %239 = arith.subf %235, %238 : vector<16x16xf32>
    %240 = math.exp %239 : vector<16x16xf32>
    %cst_180 = arith.constant dense<0.000000e+00> : vector<16xf32>
    %241 = vector.multi_reduction <add>, %240, %cst_180 [1] : vector<16x16xf32> to vector<16xf32>
    %242 = vector.shape_cast %241 : vector<16xf32> to vector<16x1xf32>
    %243 = tpu.reciprocal %242 : vector<16x1xf32> -> vector<16x1xf32>
    %244 = vector.broadcast %243 : vector<16x1xf32> to vector<16x16xf32>
    %245 = arith.mulf %240, %244 : vector<16x16xf32>
    %246 = vector.extract_strided_slice %228 {offsets = [0, 0], sizes = [16, 8], strides = [1, 1]} : vector<16x32xf32> to vector<16x8xf32>
    %cst_181 = arith.constant dense<0.000000e+00> : vector<16x8xf32>
    %247 = tpu.matmul %245, %246, %cst_181 {dimension_numbers = #tpu.dot_dimension_numbers<[1], [0], [0], [1], [0, 0, 1, 1], [], []>} : vector<16x16xf32>, vector<16x8xf32>, vector<16x8xf32> -> vector<16x8xf32>
    %248 = vector.extract_strided_slice %61 {offsets = [0, 0], sizes = [8, 32], strides = [1, 1]} : vector<32x32xf32> to vector<8x32xf32>
    %cst_182 = arith.constant dense<0.000000e+00> : vector<16x32xf32>
    %249 = tpu.matmul %247, %248, %cst_182 {dimension_numbers = #tpu.dot_dimension_numbers<[1], [0], [0], [1], [0, 0, 1, 1], [], []>} : vector<16x8xf32>, vector<8x32xf32>, vector<16x32xf32> -> vector<16x32xf32>
    %250 = vector.extract_strided_slice %226 {offsets = [0, 8], sizes = [16, 8], strides = [1, 1]} : vector<16x32xf32> to vector<16x8xf32>
    %251 = vector.extract_strided_slice %227 {offsets = [0, 8], sizes = [16, 8], strides = [1, 1]} : vector<16x32xf32> to vector<16x8xf32>
    %252 = tpu.transpose %251, [1, 0] : vector<16x8xf32> -> vector<8x16xf32>
    %cst_183 = arith.constant dense<0.000000e+00> : vector<16x16xf32>
    %253 = tpu.matmul %250, %252, %cst_183 {dimension_numbers = #tpu.dot_dimension_numbers<[1], [0], [0], [1], [0, 0, 1, 1], [], []>} : vector<16x8xf32>, vector<8x16xf32>, vector<16x16xf32> -> vector<16x16xf32>
    %cst_184 = arith.constant 0.353553385 : f32
    %254 = vector.broadcast %cst_184 : f32 to vector<16x16xf32>
    %255 = arith.mulf %253, %254 : vector<16x16xf32>
    %256 = arith.addf %255, %64 : vector<16x16xf32>
    %cst_185 = arith.constant dense<0xFF800000> : vector<16xf32>
    %257 = vector.multi_reduction <maximumf>, %256, %cst_185 [1] : vector<16x16xf32> to vector<16xf32>
    %258 = vector.shape_cast %257 : vector<16xf32> to vector<16x1xf32>
    %259 = vector.broadcast %258 : vector<16x1xf32> to vector<16x16xf32>
    %260 = arith.subf %256, %259 : vector<16x16xf32>
    %261 = math.exp %260 : vector<16x16xf32>
    %cst_186 = arith.constant dense<0.000000e+00> : vector<16xf32>
    %262 = vector.multi_reduction <add>, %261, %cst_186 [1] : vector<16x16xf32> to vector<16xf32>
    %263 = vector.shape_cast %262 : vector<16xf32> to vector<16x1xf32>
    %264 = tpu.reciprocal %263 : vector<16x1xf32> -> vector<16x1xf32>
    %265 = vector.broadcast %264 : vector<16x1xf32> to vector<16x16xf32>
    %266 = arith.mulf %261, %265 : vector<16x16xf32>
    %267 = vector.extract_strided_slice %228 {offsets = [0, 8], sizes = [16, 8], strides = [1, 1]} : vector<16x32xf32> to vector<16x8xf32>
    %cst_187 = arith.constant dense<0.000000e+00> : vector<16x8xf32>
    %268 = tpu.matmul %266, %267, %cst_187 {dimension_numbers = #tpu.dot_dimension_numbers<[1], [0], [0], [1], [0, 0, 1, 1], [], []>} : vector<16x16xf32>, vector<16x8xf32>, vector<16x8xf32> -> vector<16x8xf32>
    %269 = vector.extract_strided_slice %61 {offsets = [8, 0], sizes = [8, 32], strides = [1, 1]} : vector<32x32xf32> to vector<8x32xf32>
    %cst_188 = arith.constant dense<0.000000e+00> : vector<16x32xf32>
    %270 = tpu.matmul %268, %269, %cst_188 {dimension_numbers = #tpu.dot_dimension_numbers<[1], [0], [0], [1], [0, 0, 1, 1], [], []>} : vector<16x8xf32>, vector<8x32xf32>, vector<16x32xf32> -> vector<16x32xf32>
    %271 = arith.addf %249, %270 : vector<16x32xf32>
    %272 = vector.extract_strided_slice %226 {offsets = [0, 16], sizes = [16, 8], strides = [1, 1]} : vector<16x32xf32> to vector<16x8xf32>
    %273 = vector.extract_strided_slice %227 {offsets = [0, 16], sizes = [16, 8], strides = [1, 1]} : vector<16x32xf32> to vector<16x8xf32>
    %274 = tpu.transpose %273, [1, 0] : vector<16x8xf32> -> vector<8x16xf32>
    %cst_189 = arith.constant dense<0.000000e+00> : vector<16x16xf32>
    %275 = tpu.matmul %272, %274, %cst_189 {dimension_numbers = #tpu.dot_dimension_numbers<[1], [0], [0], [1], [0, 0, 1, 1], [], []>} : vector<16x8xf32>, vector<8x16xf32>, vector<16x16xf32> -> vector<16x16xf32>
    %cst_190 = arith.constant 0.353553385 : f32
    %276 = vector.broadcast %cst_190 : f32 to vector<16x16xf32>
    %277 = arith.mulf %275, %276 : vector<16x16xf32>
    %278 = arith.addf %277, %64 : vector<16x16xf32>
    %cst_191 = arith.constant dense<0xFF800000> : vector<16xf32>
    %279 = vector.multi_reduction <maximumf>, %278, %cst_191 [1] : vector<16x16xf32> to vector<16xf32>
    %280 = vector.shape_cast %279 : vector<16xf32> to vector<16x1xf32>
    %281 = vector.broadcast %280 : vector<16x1xf32> to vector<16x16xf32>
    %282 = arith.subf %278, %281 : vector<16x16xf32>
    %283 = math.exp %282 : vector<16x16xf32>
    %cst_192 = arith.constant dense<0.000000e+00> : vector<16xf32>
    %284 = vector.multi_reduction <add>, %283, %cst_192 [1] : vector<16x16xf32> to vector<16xf32>
    %285 = vector.shape_cast %284 : vector<16xf32> to vector<16x1xf32>
    %286 = tpu.reciprocal %285 : vector<16x1xf32> -> vector<16x1xf32>
    %287 = vector.broadcast %286 : vector<16x1xf32> to vector<16x16xf32>
    %288 = arith.mulf %283, %287 : vector<16x16xf32>
    %289 = vector.extract_strided_slice %228 {offsets = [0, 16], sizes = [16, 8], strides = [1, 1]} : vector<16x32xf32> to vector<16x8xf32>
    %cst_193 = arith.constant dense<0.000000e+00> : vector<16x8xf32>
    %290 = tpu.matmul %288, %289, %cst_193 {dimension_numbers = #tpu.dot_dimension_numbers<[1], [0], [0], [1], [0, 0, 1, 1], [], []>} : vector<16x16xf32>, vector<16x8xf32>, vector<16x8xf32> -> vector<16x8xf32>
    %291 = vector.extract_strided_slice %61 {offsets = [16, 0], sizes = [8, 32], strides = [1, 1]} : vector<32x32xf32> to vector<8x32xf32>
    %cst_194 = arith.constant dense<0.000000e+00> : vector<16x32xf32>
    %292 = tpu.matmul %290, %291, %cst_194 {dimension_numbers = #tpu.dot_dimension_numbers<[1], [0], [0], [1], [0, 0, 1, 1], [], []>} : vector<16x8xf32>, vector<8x32xf32>, vector<16x32xf32> -> vector<16x32xf32>
    %293 = arith.addf %271, %292 : vector<16x32xf32>
    %294 = vector.extract_strided_slice %226 {offsets = [0, 24], sizes = [16, 8], strides = [1, 1]} : vector<16x32xf32> to vector<16x8xf32>
    %295 = vector.extract_strided_slice %227 {offsets = [0, 24], sizes = [16, 8], strides = [1, 1]} : vector<16x32xf32> to vector<16x8xf32>
    %296 = tpu.transpose %295, [1, 0] : vector<16x8xf32> -> vector<8x16xf32>
    %cst_195 = arith.constant dense<0.000000e+00> : vector<16x16xf32>
    %297 = tpu.matmul %294, %296, %cst_195 {dimension_numbers = #tpu.dot_dimension_numbers<[1], [0], [0], [1], [0, 0, 1, 1], [], []>} : vector<16x8xf32>, vector<8x16xf32>, vector<16x16xf32> -> vector<16x16xf32>
    %cst_196 = arith.constant 0.353553385 : f32
    %298 = vector.broadcast %cst_196 : f32 to vector<16x16xf32>
    %299 = arith.mulf %297, %298 : vector<16x16xf32>
    %300 = arith.addf %299, %64 : vector<16x16xf32>
    %cst_197 = arith.constant dense<0xFF800000> : vector<16xf32>
    %301 = vector.multi_reduction <maximumf>, %300, %cst_197 [1] : vector<16x16xf32> to vector<16xf32>
    %302 = vector.shape_cast %301 : vector<16xf32> to vector<16x1xf32>
    %303 = vector.broadcast %302 : vector<16x1xf32> to vector<16x16xf32>
    %304 = arith.subf %300, %303 : vector<16x16xf32>
    %305 = math.exp %304 : vector<16x16xf32>
    %cst_198 = arith.constant dense<0.000000e+00> : vector<16xf32>
    %306 = vector.multi_reduction <add>, %305, %cst_198 [1] : vector<16x16xf32> to vector<16xf32>
    %307 = vector.shape_cast %306 : vector<16xf32> to vector<16x1xf32>
    %308 = tpu.reciprocal %307 : vector<16x1xf32> -> vector<16x1xf32>
    %309 = vector.broadcast %308 : vector<16x1xf32> to vector<16x16xf32>
    %310 = arith.mulf %305, %309 : vector<16x16xf32>
    %311 = vector.extract_strided_slice %228 {offsets = [0, 24], sizes = [16, 8], strides = [1, 1]} : vector<16x32xf32> to vector<16x8xf32>
    %cst_199 = arith.constant dense<0.000000e+00> : vector<16x8xf32>
    %312 = tpu.matmul %310, %311, %cst_199 {dimension_numbers = #tpu.dot_dimension_numbers<[1], [0], [0], [1], [0, 0, 1, 1], [], []>} : vector<16x16xf32>, vector<16x8xf32>, vector<16x8xf32> -> vector<16x8xf32>
    %313 = vector.extract_strided_slice %61 {offsets = [24, 0], sizes = [8, 32], strides = [1, 1]} : vector<32x32xf32> to vector<8x32xf32>
    %cst_200 = arith.constant dense<0.000000e+00> : vector<16x32xf32>
    %314 = tpu.matmul %312, %313, %cst_200 {dimension_numbers = #tpu.dot_dimension_numbers<[1], [0], [0], [1], [0, 0, 1, 1], [], []>} : vector<16x8xf32>, vector<8x32xf32>, vector<16x32xf32> -> vector<16x32xf32>
    %315 = arith.addf %293, %314 : vector<16x32xf32>
    %316 = vector.broadcast %53 : vector<1x32xf32> to vector<16x32xf32>
    %317 = arith.addf %315, %316 : vector<16x32xf32>
    %318 = arith.addf %317, %222 : vector<16x32xf32>
    %cst_201 = arith.constant dense<0.000000e+00> : vector<16xf32>
    %319 = vector.multi_reduction <add>, %318, %cst_201 [1] : vector<16x32xf32> to vector<16xf32>
    %320 = vector.shape_cast %319 : vector<16xf32> to vector<16x1xf32>
    %cst_202 = arith.constant 3.200000e+01 : f32
    %321 = vector.broadcast %cst_202 : f32 to vector<16x1xf32>
    %322 = arith.divf %320, %321 : vector<16x1xf32>
    %323 = vector.broadcast %322 : vector<16x1xf32> to vector<16x32xf32>
    %324 = arith.subf %318, %323 : vector<16x32xf32>
    %325 = arith.mulf %324, %324 : vector<16x32xf32>
    %cst_203 = arith.constant dense<0.000000e+00> : vector<16xf32>
    %326 = vector.multi_reduction <add>, %325, %cst_203 [1] : vector<16x32xf32> to vector<16xf32>
    %327 = vector.shape_cast %326 : vector<16xf32> to vector<16x1xf32>
    %cst_204 = arith.constant 3.200000e+01 : f32
    %328 = vector.broadcast %cst_204 : f32 to vector<16x1xf32>
    %329 = arith.divf %327, %328 : vector<16x1xf32>
    %cst_205 = arith.constant 9.99999974E-6 : f32
    %330 = vector.broadcast %cst_205 : f32 to vector<16x1xf32>
    %331 = arith.addf %329, %330 : vector<16x1xf32>
    %332 = math.rsqrt %331 : vector<16x1xf32>
    %333 = vector.broadcast %332 : vector<16x1xf32> to vector<16x32xf32>
    %334 = arith.mulf %324, %333 : vector<16x32xf32>
    %335 = vector.broadcast %55 : vector<1x32xf32> to vector<16x32xf32>
    %336 = arith.mulf %334, %335 : vector<16x32xf32>
    %337 = vector.broadcast %54 : vector<1x32xf32> to vector<16x32xf32>
    %338 = arith.addf %336, %337 : vector<16x32xf32>
    %cst_206 = arith.constant dense<0.000000e+00> : vector<16x64xf32>
    %339 = tpu.matmul %338, %58, %cst_206 {dimension_numbers = #tpu.dot_dimension_numbers<[1], [0], [0], [1], [0, 0, 1, 1], [], []>} : vector<16x32xf32>, vector<32x64xf32>, vector<16x64xf32> -> vector<16x64xf32>
    %340 = vector.broadcast %50 : vector<1x64xf32> to vector<16x64xf32>
    %341 = arith.addf %339, %340 : vector<16x64xf32>
    %cst_207 = arith.constant 0.000000e+00 : f32
    %342 = vector.broadcast %cst_207 : f32 to vector<16x64xf32>
    %343 = arith.maximumf %341, %342 : vector<16x64xf32>
    %cst_208 = arith.constant dense<0.000000e+00> : vector<16x32xf32>
    %344 = tpu.matmul %343, %59, %cst_208 {dimension_numbers = #tpu.dot_dimension_numbers<[1], [0], [0], [1], [0, 0, 1, 1], [], []>} : vector<16x64xf32>, vector<64x32xf32>, vector<16x32xf32> -> vector<16x32xf32>
    %345 = vector.broadcast %51 : vector<1x32xf32> to vector<16x32xf32>
    %346 = arith.addf %344, %345 : vector<16x32xf32>
    %347 = arith.addf %346, %338 : vector<16x32xf32>
    %cst_209 = arith.constant dense<0.000000e+00> : vector<16xf32>
    %348 = vector.multi_reduction <add>, %347, %cst_209 [1] : vector<16x32xf32> to vector<16xf32>
    %349 = vector.shape_cast %348 : vector<16xf32> to vector<16x1xf32>
    %cst_210 = arith.constant 3.200000e+01 : f32
    %350 = vector.broadcast %cst_210 : f32 to vector<16x1xf32>
    %351 = arith.divf %349, %350 : vector<16x1xf32>
    %352 = vector.broadcast %351 : vector<16x1xf32> to vector<16x32xf32>
    %353 = arith.subf %347, %352 : vector<16x32xf32>
    %354 = arith.mulf %353, %353 : vector<16x32xf32>
    %cst_211 = arith.constant dense<0.000000e+00> : vector<16xf32>
    %355 = vector.multi_reduction <add>, %354, %cst_211 [1] : vector<16x32xf32> to vector<16xf32>
    %356 = vector.shape_cast %355 : vector<16xf32> to vector<16x1xf32>
    %cst_212 = arith.constant 3.200000e+01 : f32
    %357 = vector.broadcast %cst_212 : f32 to vector<16x1xf32>
    %358 = arith.divf %356, %357 : vector<16x1xf32>
    %cst_213 = arith.constant 9.99999974E-6 : f32
    %359 = vector.broadcast %cst_213 : f32 to vector<16x1xf32>
    %360 = arith.addf %358, %359 : vector<16x1xf32>
    %361 = math.rsqrt %360 : vector<16x1xf32>
    %362 = vector.broadcast %361 : vector<16x1xf32> to vector<16x32xf32>
    %363 = arith.mulf %353, %362 : vector<16x32xf32>
    %364 = vector.broadcast %57 : vector<1x32xf32> to vector<16x32xf32>
    %365 = arith.mulf %363, %364 : vector<16x32xf32>
    %366 = vector.broadcast %56 : vector<1x32xf32> to vector<16x32xf32>
    %367 = arith.addf %365, %366 : vector<16x32xf32>
    %c0_214 = arith.constant 0 : index
    %c0_215 = arith.constant 0 : index
    %368 = vector.load %arg1[%c0_214, %c0_215] : memref<16x1xi32, #tpu.memory_space<vmem>>, vector<16x1xi32>
    %c0_216 = arith.constant 0 : index
    %c0_217 = arith.constant 0 : index
    %369 = vector.load %arg3[%c0_216, %c0_217] : memref<16x32xf32, #tpu.memory_space<vmem>>, vector<16x32xf32>
    %370 = tpu.iota {dimensions = array<i32: 1>} : vector<16x32xi32>
    %371 = vector.broadcast %368 : vector<16x1xi32> to vector<16x32xi32>
    %372 = arith.cmpi eq, %371, %370 : vector<16x32xi32>
    %373 = arith.extui %372 : vector<16x32xi1> to vector<16x32xi32>
    %374 = arith.sitofp %373 : vector<16x32xi32> to vector<16x32xf32>
    %cst_218 = arith.constant dense<0.000000e+00> : vector<16x32xf32>
    %375 = tpu.matmul %374, %36, %cst_218 {dimension_numbers = #tpu.dot_dimension_numbers<[1], [0], [0], [1], [0, 0, 1, 1], [], []>} : vector<16x32xf32>, vector<32x32xf32>, vector<16x32xf32> -> vector<16x32xf32>
    %cst_219 = arith.constant 5.65685415 : f32
    %376 = vector.broadcast %cst_219 : f32 to vector<16x32xf32>
    %377 = arith.mulf %375, %376 : vector<16x32xf32>
    %378 = arith.addf %377, %369 : vector<16x32xf32>
    %cst_220 = arith.constant dense<0.000000e+00> : vector<16x96xf32>
    %379 = tpu.matmul %378, %14, %cst_220 {dimension_numbers = #tpu.dot_dimension_numbers<[1], [0], [0], [1], [0, 0, 1, 1], [], []>} : vector<16x32xf32>, vector<32x96xf32>, vector<16x96xf32> -> vector<16x96xf32>
    %380 = vector.broadcast %12 : vector<1x96xf32> to vector<16x96xf32>
    %381 = arith.addf %379, %380 : vector<16x96xf32>
    %382 = vector.extract_strided_slice %381 {offsets = [0, 0], sizes = [16, 32], strides = [1, 1]} : vector<16x96xf32> to vector<16x32xf32>
    %383 = vector.extract_strided_slice %381 {offsets = [0, 32], sizes = [16, 32], strides = [1, 1]} : vector<16x96xf32> to vector<16x32xf32>
    %384 = vector.extract_strided_slice %381 {offsets = [0, 64], sizes = [16, 32], strides = [1, 1]} : vector<16x96xf32> to vector<16x32xf32>
    %385 = vector.extract_strided_slice %382 {offsets = [0, 0], sizes = [16, 8], strides = [1, 1]} : vector<16x32xf32> to vector<16x8xf32>
    %386 = vector.extract_strided_slice %383 {offsets = [0, 0], sizes = [16, 8], strides = [1, 1]} : vector<16x32xf32> to vector<16x8xf32>
    %387 = tpu.transpose %386, [1, 0] : vector<16x8xf32> -> vector<8x16xf32>
    %cst_221 = arith.constant dense<0.000000e+00> : vector<16x16xf32>
    %388 = tpu.matmul %385, %387, %cst_221 {dimension_numbers = #tpu.dot_dimension_numbers<[1], [0], [0], [1], [0, 0, 1, 1], [], []>} : vector<16x8xf32>, vector<8x16xf32>, vector<16x16xf32> -> vector<16x16xf32>
    %cst_222 = arith.constant 0.353553385 : f32
    %389 = vector.broadcast %cst_222 : f32 to vector<16x16xf32>
    %390 = arith.mulf %388, %389 : vector<16x16xf32>
    %391 = arith.addf %390, %65 : vector<16x16xf32>
    %cst_223 = arith.constant dense<0xFF800000> : vector<16xf32>
    %392 = vector.multi_reduction <maximumf>, %391, %cst_223 [1] : vector<16x16xf32> to vector<16xf32>
    %393 = vector.shape_cast %392 : vector<16xf32> to vector<16x1xf32>
    %394 = vector.broadcast %393 : vector<16x1xf32> to vector<16x16xf32>
    %395 = arith.subf %391, %394 : vector<16x16xf32>
    %396 = math.exp %395 : vector<16x16xf32>
    %cst_224 = arith.constant dense<0.000000e+00> : vector<16xf32>
    %397 = vector.multi_reduction <add>, %396, %cst_224 [1] : vector<16x16xf32> to vector<16xf32>
    %398 = vector.shape_cast %397 : vector<16xf32> to vector<16x1xf32>
    %399 = tpu.reciprocal %398 : vector<16x1xf32> -> vector<16x1xf32>
    %400 = vector.broadcast %399 : vector<16x1xf32> to vector<16x16xf32>
    %401 = arith.mulf %396, %400 : vector<16x16xf32>
    %402 = vector.extract_strided_slice %384 {offsets = [0, 0], sizes = [16, 8], strides = [1, 1]} : vector<16x32xf32> to vector<16x8xf32>
    %cst_225 = arith.constant dense<0.000000e+00> : vector<16x8xf32>
    %403 = tpu.matmul %401, %402, %cst_225 {dimension_numbers = #tpu.dot_dimension_numbers<[1], [0], [0], [1], [0, 0, 1, 1], [], []>} : vector<16x16xf32>, vector<16x8xf32>, vector<16x8xf32> -> vector<16x8xf32>
    %404 = vector.extract_strided_slice %15 {offsets = [0, 0], sizes = [8, 32], strides = [1, 1]} : vector<32x32xf32> to vector<8x32xf32>
    %cst_226 = arith.constant dense<0.000000e+00> : vector<16x32xf32>
    %405 = tpu.matmul %403, %404, %cst_226 {dimension_numbers = #tpu.dot_dimension_numbers<[1], [0], [0], [1], [0, 0, 1, 1], [], []>} : vector<16x8xf32>, vector<8x32xf32>, vector<16x32xf32> -> vector<16x32xf32>
    %406 = vector.extract_strided_slice %382 {offsets = [0, 8], sizes = [16, 8], strides = [1, 1]} : vector<16x32xf32> to vector<16x8xf32>
    %407 = vector.extract_strided_slice %383 {offsets = [0, 8], sizes = [16, 8], strides = [1, 1]} : vector<16x32xf32> to vector<16x8xf32>
    %408 = tpu.transpose %407, [1, 0] : vector<16x8xf32> -> vector<8x16xf32>
    %cst_227 = arith.constant dense<0.000000e+00> : vector<16x16xf32>
    %409 = tpu.matmul %406, %408, %cst_227 {dimension_numbers = #tpu.dot_dimension_numbers<[1], [0], [0], [1], [0, 0, 1, 1], [], []>} : vector<16x8xf32>, vector<8x16xf32>, vector<16x16xf32> -> vector<16x16xf32>
    %cst_228 = arith.constant 0.353553385 : f32
    %410 = vector.broadcast %cst_228 : f32 to vector<16x16xf32>
    %411 = arith.mulf %409, %410 : vector<16x16xf32>
    %412 = arith.addf %411, %65 : vector<16x16xf32>
    %cst_229 = arith.constant dense<0xFF800000> : vector<16xf32>
    %413 = vector.multi_reduction <maximumf>, %412, %cst_229 [1] : vector<16x16xf32> to vector<16xf32>
    %414 = vector.shape_cast %413 : vector<16xf32> to vector<16x1xf32>
    %415 = vector.broadcast %414 : vector<16x1xf32> to vector<16x16xf32>
    %416 = arith.subf %412, %415 : vector<16x16xf32>
    %417 = math.exp %416 : vector<16x16xf32>
    %cst_230 = arith.constant dense<0.000000e+00> : vector<16xf32>
    %418 = vector.multi_reduction <add>, %417, %cst_230 [1] : vector<16x16xf32> to vector<16xf32>
    %419 = vector.shape_cast %418 : vector<16xf32> to vector<16x1xf32>
    %420 = tpu.reciprocal %419 : vector<16x1xf32> -> vector<16x1xf32>
    %421 = vector.broadcast %420 : vector<16x1xf32> to vector<16x16xf32>
    %422 = arith.mulf %417, %421 : vector<16x16xf32>
    %423 = vector.extract_strided_slice %384 {offsets = [0, 8], sizes = [16, 8], strides = [1, 1]} : vector<16x32xf32> to vector<16x8xf32>
    %cst_231 = arith.constant dense<0.000000e+00> : vector<16x8xf32>
    %424 = tpu.matmul %422, %423, %cst_231 {dimension_numbers = #tpu.dot_dimension_numbers<[1], [0], [0], [1], [0, 0, 1, 1], [], []>} : vector<16x16xf32>, vector<16x8xf32>, vector<16x8xf32> -> vector<16x8xf32>
    %425 = vector.extract_strided_slice %15 {offsets = [8, 0], sizes = [8, 32], strides = [1, 1]} : vector<32x32xf32> to vector<8x32xf32>
    %cst_232 = arith.constant dense<0.000000e+00> : vector<16x32xf32>
    %426 = tpu.matmul %424, %425, %cst_232 {dimension_numbers = #tpu.dot_dimension_numbers<[1], [0], [0], [1], [0, 0, 1, 1], [], []>} : vector<16x8xf32>, vector<8x32xf32>, vector<16x32xf32> -> vector<16x32xf32>
    %427 = arith.addf %405, %426 : vector<16x32xf32>
    %428 = vector.extract_strided_slice %382 {offsets = [0, 16], sizes = [16, 8], strides = [1, 1]} : vector<16x32xf32> to vector<16x8xf32>
    %429 = vector.extract_strided_slice %383 {offsets = [0, 16], sizes = [16, 8], strides = [1, 1]} : vector<16x32xf32> to vector<16x8xf32>
    %430 = tpu.transpose %429, [1, 0] : vector<16x8xf32> -> vector<8x16xf32>
    %cst_233 = arith.constant dense<0.000000e+00> : vector<16x16xf32>
    %431 = tpu.matmul %428, %430, %cst_233 {dimension_numbers = #tpu.dot_dimension_numbers<[1], [0], [0], [1], [0, 0, 1, 1], [], []>} : vector<16x8xf32>, vector<8x16xf32>, vector<16x16xf32> -> vector<16x16xf32>
    %cst_234 = arith.constant 0.353553385 : f32
    %432 = vector.broadcast %cst_234 : f32 to vector<16x16xf32>
    %433 = arith.mulf %431, %432 : vector<16x16xf32>
    %434 = arith.addf %433, %65 : vector<16x16xf32>
    %cst_235 = arith.constant dense<0xFF800000> : vector<16xf32>
    %435 = vector.multi_reduction <maximumf>, %434, %cst_235 [1] : vector<16x16xf32> to vector<16xf32>
    %436 = vector.shape_cast %435 : vector<16xf32> to vector<16x1xf32>
    %437 = vector.broadcast %436 : vector<16x1xf32> to vector<16x16xf32>
    %438 = arith.subf %434, %437 : vector<16x16xf32>
    %439 = math.exp %438 : vector<16x16xf32>
    %cst_236 = arith.constant dense<0.000000e+00> : vector<16xf32>
    %440 = vector.multi_reduction <add>, %439, %cst_236 [1] : vector<16x16xf32> to vector<16xf32>
    %441 = vector.shape_cast %440 : vector<16xf32> to vector<16x1xf32>
    %442 = tpu.reciprocal %441 : vector<16x1xf32> -> vector<16x1xf32>
    %443 = vector.broadcast %442 : vector<16x1xf32> to vector<16x16xf32>
    %444 = arith.mulf %439, %443 : vector<16x16xf32>
    %445 = vector.extract_strided_slice %384 {offsets = [0, 16], sizes = [16, 8], strides = [1, 1]} : vector<16x32xf32> to vector<16x8xf32>
    %cst_237 = arith.constant dense<0.000000e+00> : vector<16x8xf32>
    %446 = tpu.matmul %444, %445, %cst_237 {dimension_numbers = #tpu.dot_dimension_numbers<[1], [0], [0], [1], [0, 0, 1, 1], [], []>} : vector<16x16xf32>, vector<16x8xf32>, vector<16x8xf32> -> vector<16x8xf32>
    %447 = vector.extract_strided_slice %15 {offsets = [16, 0], sizes = [8, 32], strides = [1, 1]} : vector<32x32xf32> to vector<8x32xf32>
    %cst_238 = arith.constant dense<0.000000e+00> : vector<16x32xf32>
    %448 = tpu.matmul %446, %447, %cst_238 {dimension_numbers = #tpu.dot_dimension_numbers<[1], [0], [0], [1], [0, 0, 1, 1], [], []>} : vector<16x8xf32>, vector<8x32xf32>, vector<16x32xf32> -> vector<16x32xf32>
    %449 = arith.addf %427, %448 : vector<16x32xf32>
    %450 = vector.extract_strided_slice %382 {offsets = [0, 24], sizes = [16, 8], strides = [1, 1]} : vector<16x32xf32> to vector<16x8xf32>
    %451 = vector.extract_strided_slice %383 {offsets = [0, 24], sizes = [16, 8], strides = [1, 1]} : vector<16x32xf32> to vector<16x8xf32>
    %452 = tpu.transpose %451, [1, 0] : vector<16x8xf32> -> vector<8x16xf32>
    %cst_239 = arith.constant dense<0.000000e+00> : vector<16x16xf32>
    %453 = tpu.matmul %450, %452, %cst_239 {dimension_numbers = #tpu.dot_dimension_numbers<[1], [0], [0], [1], [0, 0, 1, 1], [], []>} : vector<16x8xf32>, vector<8x16xf32>, vector<16x16xf32> -> vector<16x16xf32>
    %cst_240 = arith.constant 0.353553385 : f32
    %454 = vector.broadcast %cst_240 : f32 to vector<16x16xf32>
    %455 = arith.mulf %453, %454 : vector<16x16xf32>
    %456 = arith.addf %455, %65 : vector<16x16xf32>
    %cst_241 = arith.constant dense<0xFF800000> : vector<16xf32>
    %457 = vector.multi_reduction <maximumf>, %456, %cst_241 [1] : vector<16x16xf32> to vector<16xf32>
    %458 = vector.shape_cast %457 : vector<16xf32> to vector<16x1xf32>
    %459 = vector.broadcast %458 : vector<16x1xf32> to vector<16x16xf32>
    %460 = arith.subf %456, %459 : vector<16x16xf32>
    %461 = math.exp %460 : vector<16x16xf32>
    %cst_242 = arith.constant dense<0.000000e+00> : vector<16xf32>
    %462 = vector.multi_reduction <add>, %461, %cst_242 [1] : vector<16x16xf32> to vector<16xf32>
    %463 = vector.shape_cast %462 : vector<16xf32> to vector<16x1xf32>
    %464 = tpu.reciprocal %463 : vector<16x1xf32> -> vector<16x1xf32>
    %465 = vector.broadcast %464 : vector<16x1xf32> to vector<16x16xf32>
    %466 = arith.mulf %461, %465 : vector<16x16xf32>
    %467 = vector.extract_strided_slice %384 {offsets = [0, 24], sizes = [16, 8], strides = [1, 1]} : vector<16x32xf32> to vector<16x8xf32>
    %cst_243 = arith.constant dense<0.000000e+00> : vector<16x8xf32>
    %468 = tpu.matmul %466, %467, %cst_243 {dimension_numbers = #tpu.dot_dimension_numbers<[1], [0], [0], [1], [0, 0, 1, 1], [], []>} : vector<16x16xf32>, vector<16x8xf32>, vector<16x8xf32> -> vector<16x8xf32>
    %469 = vector.extract_strided_slice %15 {offsets = [24, 0], sizes = [8, 32], strides = [1, 1]} : vector<32x32xf32> to vector<8x32xf32>
    %cst_244 = arith.constant dense<0.000000e+00> : vector<16x32xf32>
    %470 = tpu.matmul %468, %469, %cst_244 {dimension_numbers = #tpu.dot_dimension_numbers<[1], [0], [0], [1], [0, 0, 1, 1], [], []>} : vector<16x8xf32>, vector<8x32xf32>, vector<16x32xf32> -> vector<16x32xf32>
    %471 = arith.addf %449, %470 : vector<16x32xf32>
    %472 = vector.broadcast %13 : vector<1x32xf32> to vector<16x32xf32>
    %473 = arith.addf %471, %472 : vector<16x32xf32>
    %474 = arith.addf %473, %378 : vector<16x32xf32>
    %cst_245 = arith.constant dense<0.000000e+00> : vector<16xf32>
    %475 = vector.multi_reduction <add>, %474, %cst_245 [1] : vector<16x32xf32> to vector<16xf32>
    %476 = vector.shape_cast %475 : vector<16xf32> to vector<16x1xf32>
    %cst_246 = arith.constant 3.200000e+01 : f32
    %477 = vector.broadcast %cst_246 : f32 to vector<16x1xf32>
    %478 = arith.divf %476, %477 : vector<16x1xf32>
    %479 = vector.broadcast %478 : vector<16x1xf32> to vector<16x32xf32>
    %480 = arith.subf %474, %479 : vector<16x32xf32>
    %481 = arith.mulf %480, %480 : vector<16x32xf32>
    %cst_247 = arith.constant dense<0.000000e+00> : vector<16xf32>
    %482 = vector.multi_reduction <add>, %481, %cst_247 [1] : vector<16x32xf32> to vector<16xf32>
    %483 = vector.shape_cast %482 : vector<16xf32> to vector<16x1xf32>
    %cst_248 = arith.constant 3.200000e+01 : f32
    %484 = vector.broadcast %cst_248 : f32 to vector<16x1xf32>
    %485 = arith.divf %483, %484 : vector<16x1xf32>
    %cst_249 = arith.constant 9.99999974E-6 : f32
    %486 = vector.broadcast %cst_249 : f32 to vector<16x1xf32>
    %487 = arith.addf %485, %486 : vector<16x1xf32>
    %488 = math.rsqrt %487 : vector<16x1xf32>
    %489 = vector.broadcast %488 : vector<16x1xf32> to vector<16x32xf32>
    %490 = arith.mulf %480, %489 : vector<16x32xf32>
    %491 = vector.broadcast %7 : vector<1x32xf32> to vector<16x32xf32>
    %492 = arith.mulf %490, %491 : vector<16x32xf32>
    %493 = vector.broadcast %6 : vector<1x32xf32> to vector<16x32xf32>
    %494 = arith.addf %492, %493 : vector<16x32xf32>
    %495 = vector.extract_strided_slice %4 {offsets = [0, 0], sizes = [32, 32], strides = [1, 1]} : vector<32x96xf32> to vector<32x32xf32>
    %cst_250 = arith.constant dense<0.000000e+00> : vector<16x32xf32>
    %496 = tpu.matmul %494, %495, %cst_250 {dimension_numbers = #tpu.dot_dimension_numbers<[1], [0], [0], [1], [0, 0, 1, 1], [], []>} : vector<16x32xf32>, vector<32x32xf32>, vector<16x32xf32> -> vector<16x32xf32>
    %497 = vector.extract_strided_slice %2 {offsets = [0, 0], sizes = [1, 32], strides = [1, 1]} : vector<1x96xf32> to vector<1x32xf32>
    %498 = vector.broadcast %497 : vector<1x32xf32> to vector<16x32xf32>
    %499 = arith.addf %496, %498 : vector<16x32xf32>
    %500 = vector.extract_strided_slice %4 {offsets = [0, 32], sizes = [32, 64], strides = [1, 1]} : vector<32x96xf32> to vector<32x64xf32>
    %cst_251 = arith.constant dense<0.000000e+00> : vector<16x64xf32>
    %501 = tpu.matmul %367, %500, %cst_251 {dimension_numbers = #tpu.dot_dimension_numbers<[1], [0], [0], [1], [0, 0, 1, 1], [], []>} : vector<16x32xf32>, vector<32x64xf32>, vector<16x64xf32> -> vector<16x64xf32>
    %502 = vector.extract_strided_slice %2 {offsets = [0, 32], sizes = [1, 64], strides = [1, 1]} : vector<1x96xf32> to vector<1x64xf32>
    %503 = vector.broadcast %502 : vector<1x64xf32> to vector<16x64xf32>
    %504 = arith.addf %501, %503 : vector<16x64xf32>
    %505 = vector.extract_strided_slice %504 {offsets = [0, 0], sizes = [16, 32], strides = [1, 1]} : vector<16x64xf32> to vector<16x32xf32>
    %506 = vector.extract_strided_slice %504 {offsets = [0, 32], sizes = [16, 32], strides = [1, 1]} : vector<16x64xf32> to vector<16x32xf32>
    %507 = vector.extract_strided_slice %499 {offsets = [0, 0], sizes = [16, 8], strides = [1, 1]} : vector<16x32xf32> to vector<16x8xf32>
    %508 = vector.extract_strided_slice %505 {offsets = [0, 0], sizes = [16, 8], strides = [1, 1]} : vector<16x32xf32> to vector<16x8xf32>
    %509 = tpu.transpose %508, [1, 0] : vector<16x8xf32> -> vector<8x16xf32>
    %cst_252 = arith.constant dense<0.000000e+00> : vector<16x16xf32>
    %510 = tpu.matmul %507, %509, %cst_252 {dimension_numbers = #tpu.dot_dimension_numbers<[1], [0], [0], [1], [0, 0, 1, 1], [], []>} : vector<16x8xf32>, vector<8x16xf32>, vector<16x16xf32> -> vector<16x16xf32>
    %cst_253 = arith.constant 0.353553385 : f32
    %511 = vector.broadcast %cst_253 : f32 to vector<16x16xf32>
    %512 = arith.mulf %510, %511 : vector<16x16xf32>
    %513 = arith.addf %512, %66 : vector<16x16xf32>
    %cst_254 = arith.constant dense<0xFF800000> : vector<16xf32>
    %514 = vector.multi_reduction <maximumf>, %513, %cst_254 [1] : vector<16x16xf32> to vector<16xf32>
    %515 = vector.shape_cast %514 : vector<16xf32> to vector<16x1xf32>
    %516 = vector.broadcast %515 : vector<16x1xf32> to vector<16x16xf32>
    %517 = arith.subf %513, %516 : vector<16x16xf32>
    %518 = math.exp %517 : vector<16x16xf32>
    %cst_255 = arith.constant dense<0.000000e+00> : vector<16xf32>
    %519 = vector.multi_reduction <add>, %518, %cst_255 [1] : vector<16x16xf32> to vector<16xf32>
    %520 = vector.shape_cast %519 : vector<16xf32> to vector<16x1xf32>
    %521 = tpu.reciprocal %520 : vector<16x1xf32> -> vector<16x1xf32>
    %522 = vector.broadcast %521 : vector<16x1xf32> to vector<16x16xf32>
    %523 = arith.mulf %518, %522 : vector<16x16xf32>
    %524 = vector.extract_strided_slice %506 {offsets = [0, 0], sizes = [16, 8], strides = [1, 1]} : vector<16x32xf32> to vector<16x8xf32>
    %cst_256 = arith.constant dense<0.000000e+00> : vector<16x8xf32>
    %525 = tpu.matmul %523, %524, %cst_256 {dimension_numbers = #tpu.dot_dimension_numbers<[1], [0], [0], [1], [0, 0, 1, 1], [], []>} : vector<16x16xf32>, vector<16x8xf32>, vector<16x8xf32> -> vector<16x8xf32>
    %526 = vector.extract_strided_slice %5 {offsets = [0, 0], sizes = [8, 32], strides = [1, 1]} : vector<32x32xf32> to vector<8x32xf32>
    %cst_257 = arith.constant dense<0.000000e+00> : vector<16x32xf32>
    %527 = tpu.matmul %525, %526, %cst_257 {dimension_numbers = #tpu.dot_dimension_numbers<[1], [0], [0], [1], [0, 0, 1, 1], [], []>} : vector<16x8xf32>, vector<8x32xf32>, vector<16x32xf32> -> vector<16x32xf32>
    %528 = vector.extract_strided_slice %499 {offsets = [0, 8], sizes = [16, 8], strides = [1, 1]} : vector<16x32xf32> to vector<16x8xf32>
    %529 = vector.extract_strided_slice %505 {offsets = [0, 8], sizes = [16, 8], strides = [1, 1]} : vector<16x32xf32> to vector<16x8xf32>
    %530 = tpu.transpose %529, [1, 0] : vector<16x8xf32> -> vector<8x16xf32>
    %cst_258 = arith.constant dense<0.000000e+00> : vector<16x16xf32>
    %531 = tpu.matmul %528, %530, %cst_258 {dimension_numbers = #tpu.dot_dimension_numbers<[1], [0], [0], [1], [0, 0, 1, 1], [], []>} : vector<16x8xf32>, vector<8x16xf32>, vector<16x16xf32> -> vector<16x16xf32>
    %cst_259 = arith.constant 0.353553385 : f32
    %532 = vector.broadcast %cst_259 : f32 to vector<16x16xf32>
    %533 = arith.mulf %531, %532 : vector<16x16xf32>
    %534 = arith.addf %533, %66 : vector<16x16xf32>
    %cst_260 = arith.constant dense<0xFF800000> : vector<16xf32>
    %535 = vector.multi_reduction <maximumf>, %534, %cst_260 [1] : vector<16x16xf32> to vector<16xf32>
    %536 = vector.shape_cast %535 : vector<16xf32> to vector<16x1xf32>
    %537 = vector.broadcast %536 : vector<16x1xf32> to vector<16x16xf32>
    %538 = arith.subf %534, %537 : vector<16x16xf32>
    %539 = math.exp %538 : vector<16x16xf32>
    %cst_261 = arith.constant dense<0.000000e+00> : vector<16xf32>
    %540 = vector.multi_reduction <add>, %539, %cst_261 [1] : vector<16x16xf32> to vector<16xf32>
    %541 = vector.shape_cast %540 : vector<16xf32> to vector<16x1xf32>
    %542 = tpu.reciprocal %541 : vector<16x1xf32> -> vector<16x1xf32>
    %543 = vector.broadcast %542 : vector<16x1xf32> to vector<16x16xf32>
    %544 = arith.mulf %539, %543 : vector<16x16xf32>
    %545 = vector.extract_strided_slice %506 {offsets = [0, 8], sizes = [16, 8], strides = [1, 1]} : vector<16x32xf32> to vector<16x8xf32>
    %cst_262 = arith.constant dense<0.000000e+00> : vector<16x8xf32>
    %546 = tpu.matmul %544, %545, %cst_262 {dimension_numbers = #tpu.dot_dimension_numbers<[1], [0], [0], [1], [0, 0, 1, 1], [], []>} : vector<16x16xf32>, vector<16x8xf32>, vector<16x8xf32> -> vector<16x8xf32>
    %547 = vector.extract_strided_slice %5 {offsets = [8, 0], sizes = [8, 32], strides = [1, 1]} : vector<32x32xf32> to vector<8x32xf32>
    %cst_263 = arith.constant dense<0.000000e+00> : vector<16x32xf32>
    %548 = tpu.matmul %546, %547, %cst_263 {dimension_numbers = #tpu.dot_dimension_numbers<[1], [0], [0], [1], [0, 0, 1, 1], [], []>} : vector<16x8xf32>, vector<8x32xf32>, vector<16x32xf32> -> vector<16x32xf32>
    %549 = arith.addf %527, %548 : vector<16x32xf32>
    %550 = vector.extract_strided_slice %499 {offsets = [0, 16], sizes = [16, 8], strides = [1, 1]} : vector<16x32xf32> to vector<16x8xf32>
    %551 = vector.extract_strided_slice %505 {offsets = [0, 16], sizes = [16, 8], strides = [1, 1]} : vector<16x32xf32> to vector<16x8xf32>
    %552 = tpu.transpose %551, [1, 0] : vector<16x8xf32> -> vector<8x16xf32>
    %cst_264 = arith.constant dense<0.000000e+00> : vector<16x16xf32>
    %553 = tpu.matmul %550, %552, %cst_264 {dimension_numbers = #tpu.dot_dimension_numbers<[1], [0], [0], [1], [0, 0, 1, 1], [], []>} : vector<16x8xf32>, vector<8x16xf32>, vector<16x16xf32> -> vector<16x16xf32>
    %cst_265 = arith.constant 0.353553385 : f32
    %554 = vector.broadcast %cst_265 : f32 to vector<16x16xf32>
    %555 = arith.mulf %553, %554 : vector<16x16xf32>
    %556 = arith.addf %555, %66 : vector<16x16xf32>
    %cst_266 = arith.constant dense<0xFF800000> : vector<16xf32>
    %557 = vector.multi_reduction <maximumf>, %556, %cst_266 [1] : vector<16x16xf32> to vector<16xf32>
    %558 = vector.shape_cast %557 : vector<16xf32> to vector<16x1xf32>
    %559 = vector.broadcast %558 : vector<16x1xf32> to vector<16x16xf32>
    %560 = arith.subf %556, %559 : vector<16x16xf32>
    %561 = math.exp %560 : vector<16x16xf32>
    %cst_267 = arith.constant dense<0.000000e+00> : vector<16xf32>
    %562 = vector.multi_reduction <add>, %561, %cst_267 [1] : vector<16x16xf32> to vector<16xf32>
    %563 = vector.shape_cast %562 : vector<16xf32> to vector<16x1xf32>
    %564 = tpu.reciprocal %563 : vector<16x1xf32> -> vector<16x1xf32>
    %565 = vector.broadcast %564 : vector<16x1xf32> to vector<16x16xf32>
    %566 = arith.mulf %561, %565 : vector<16x16xf32>
    %567 = vector.extract_strided_slice %506 {offsets = [0, 16], sizes = [16, 8], strides = [1, 1]} : vector<16x32xf32> to vector<16x8xf32>
    %cst_268 = arith.constant dense<0.000000e+00> : vector<16x8xf32>
    %568 = tpu.matmul %566, %567, %cst_268 {dimension_numbers = #tpu.dot_dimension_numbers<[1], [0], [0], [1], [0, 0, 1, 1], [], []>} : vector<16x16xf32>, vector<16x8xf32>, vector<16x8xf32> -> vector<16x8xf32>
    %569 = vector.extract_strided_slice %5 {offsets = [16, 0], sizes = [8, 32], strides = [1, 1]} : vector<32x32xf32> to vector<8x32xf32>
    %cst_269 = arith.constant dense<0.000000e+00> : vector<16x32xf32>
    %570 = tpu.matmul %568, %569, %cst_269 {dimension_numbers = #tpu.dot_dimension_numbers<[1], [0], [0], [1], [0, 0, 1, 1], [], []>} : vector<16x8xf32>, vector<8x32xf32>, vector<16x32xf32> -> vector<16x32xf32>
    %571 = arith.addf %549, %570 : vector<16x32xf32>
    %572 = vector.extract_strided_slice %499 {offsets = [0, 24], sizes = [16, 8], strides = [1, 1]} : vector<16x32xf32> to vector<16x8xf32>
    %573 = vector.extract_strided_slice %505 {offsets = [0, 24], sizes = [16, 8], strides = [1, 1]} : vector<16x32xf32> to vector<16x8xf32>
    %574 = tpu.transpose %573, [1, 0] : vector<16x8xf32> -> vector<8x16xf32>
    %cst_270 = arith.constant dense<0.000000e+00> : vector<16x16xf32>
    %575 = tpu.matmul %572, %574, %cst_270 {dimension_numbers = #tpu.dot_dimension_numbers<[1], [0], [0], [1], [0, 0, 1, 1], [], []>} : vector<16x8xf32>, vector<8x16xf32>, vector<16x16xf32> -> vector<16x16xf32>
    %cst_271 = arith.constant 0.353553385 : f32
    %576 = vector.broadcast %cst_271 : f32 to vector<16x16xf32>
    %577 = arith.mulf %575, %576 : vector<16x16xf32>
    %578 = arith.addf %577, %66 : vector<16x16xf32>
    %cst_272 = arith.constant dense<0xFF800000> : vector<16xf32>
    %579 = vector.multi_reduction <maximumf>, %578, %cst_272 [1] : vector<16x16xf32> to vector<16xf32>
    %580 = vector.shape_cast %579 : vector<16xf32> to vector<16x1xf32>
    %581 = vector.broadcast %580 : vector<16x1xf32> to vector<16x16xf32>
    %582 = arith.subf %578, %581 : vector<16x16xf32>
    %583 = math.exp %582 : vector<16x16xf32>
    %cst_273 = arith.constant dense<0.000000e+00> : vector<16xf32>
    %584 = vector.multi_reduction <add>, %583, %cst_273 [1] : vector<16x16xf32> to vector<16xf32>
    %585 = vector.shape_cast %584 : vector<16xf32> to vector<16x1xf32>
    %586 = tpu.reciprocal %585 : vector<16x1xf32> -> vector<16x1xf32>
    %587 = vector.broadcast %586 : vector<16x1xf32> to vector<16x16xf32>
    %588 = arith.mulf %583, %587 : vector<16x16xf32>
    %589 = vector.extract_strided_slice %506 {offsets = [0, 24], sizes = [16, 8], strides = [1, 1]} : vector<16x32xf32> to vector<16x8xf32>
    %cst_274 = arith.constant dense<0.000000e+00> : vector<16x8xf32>
    %590 = tpu.matmul %588, %589, %cst_274 {dimension_numbers = #tpu.dot_dimension_numbers<[1], [0], [0], [1], [0, 0, 1, 1], [], []>} : vector<16x16xf32>, vector<16x8xf32>, vector<16x8xf32> -> vector<16x8xf32>
    %591 = vector.extract_strided_slice %5 {offsets = [24, 0], sizes = [8, 32], strides = [1, 1]} : vector<32x32xf32> to vector<8x32xf32>
    %cst_275 = arith.constant dense<0.000000e+00> : vector<16x32xf32>
    %592 = tpu.matmul %590, %591, %cst_275 {dimension_numbers = #tpu.dot_dimension_numbers<[1], [0], [0], [1], [0, 0, 1, 1], [], []>} : vector<16x8xf32>, vector<8x32xf32>, vector<16x32xf32> -> vector<16x32xf32>
    %593 = arith.addf %571, %592 : vector<16x32xf32>
    %594 = vector.broadcast %3 : vector<1x32xf32> to vector<16x32xf32>
    %595 = arith.addf %593, %594 : vector<16x32xf32>
    %596 = arith.addf %595, %494 : vector<16x32xf32>
    %cst_276 = arith.constant dense<0.000000e+00> : vector<16xf32>
    %597 = vector.multi_reduction <add>, %596, %cst_276 [1] : vector<16x32xf32> to vector<16xf32>
    %598 = vector.shape_cast %597 : vector<16xf32> to vector<16x1xf32>
    %cst_277 = arith.constant 3.200000e+01 : f32
    %599 = vector.broadcast %cst_277 : f32 to vector<16x1xf32>
    %600 = arith.divf %598, %599 : vector<16x1xf32>
    %601 = vector.broadcast %600 : vector<16x1xf32> to vector<16x32xf32>
    %602 = arith.subf %596, %601 : vector<16x32xf32>
    %603 = arith.mulf %602, %602 : vector<16x32xf32>
    %cst_278 = arith.constant dense<0.000000e+00> : vector<16xf32>
    %604 = vector.multi_reduction <add>, %603, %cst_278 [1] : vector<16x32xf32> to vector<16xf32>
    %605 = vector.shape_cast %604 : vector<16xf32> to vector<16x1xf32>
    %cst_279 = arith.constant 3.200000e+01 : f32
    %606 = vector.broadcast %cst_279 : f32 to vector<16x1xf32>
    %607 = arith.divf %605, %606 : vector<16x1xf32>
    %cst_280 = arith.constant 9.99999974E-6 : f32
    %608 = vector.broadcast %cst_280 : f32 to vector<16x1xf32>
    %609 = arith.addf %607, %608 : vector<16x1xf32>
    %610 = math.rsqrt %609 : vector<16x1xf32>
    %611 = vector.broadcast %610 : vector<16x1xf32> to vector<16x32xf32>
    %612 = arith.mulf %602, %611 : vector<16x32xf32>
    %613 = vector.broadcast %9 : vector<1x32xf32> to vector<16x32xf32>
    %614 = arith.mulf %612, %613 : vector<16x32xf32>
    %615 = vector.broadcast %8 : vector<1x32xf32> to vector<16x32xf32>
    %616 = arith.addf %614, %615 : vector<16x32xf32>
    %cst_281 = arith.constant dense<0.000000e+00> : vector<16x64xf32>
    %617 = tpu.matmul %616, %16, %cst_281 {dimension_numbers = #tpu.dot_dimension_numbers<[1], [0], [0], [1], [0, 0, 1, 1], [], []>} : vector<16x32xf32>, vector<32x64xf32>, vector<16x64xf32> -> vector<16x64xf32>
    %618 = vector.broadcast %0 : vector<1x64xf32> to vector<16x64xf32>
    %619 = arith.addf %617, %618 : vector<16x64xf32>
    %cst_282 = arith.constant 0.000000e+00 : f32
    %620 = vector.broadcast %cst_282 : f32 to vector<16x64xf32>
    %621 = arith.maximumf %619, %620 : vector<16x64xf32>
    %cst_283 = arith.constant dense<0.000000e+00> : vector<16x32xf32>
    %622 = tpu.matmul %621, %17, %cst_283 {dimension_numbers = #tpu.dot_dimension_numbers<[1], [0], [0], [1], [0, 0, 1, 1], [], []>} : vector<16x64xf32>, vector<64x32xf32>, vector<16x32xf32> -> vector<16x32xf32>
    %623 = vector.broadcast %1 : vector<1x32xf32> to vector<16x32xf32>
    %624 = arith.addf %622, %623 : vector<16x32xf32>
    %625 = arith.addf %624, %616 : vector<16x32xf32>
    %cst_284 = arith.constant dense<0.000000e+00> : vector<16xf32>
    %626 = vector.multi_reduction <add>, %625, %cst_284 [1] : vector<16x32xf32> to vector<16xf32>
    %627 = vector.shape_cast %626 : vector<16xf32> to vector<16x1xf32>
    %cst_285 = arith.constant 3.200000e+01 : f32
    %628 = vector.broadcast %cst_285 : f32 to vector<16x1xf32>
    %629 = arith.divf %627, %628 : vector<16x1xf32>
    %630 = vector.broadcast %629 : vector<16x1xf32> to vector<16x32xf32>
    %631 = arith.subf %625, %630 : vector<16x32xf32>
    %632 = arith.mulf %631, %631 : vector<16x32xf32>
    %cst_286 = arith.constant dense<0.000000e+00> : vector<16xf32>
    %633 = vector.multi_reduction <add>, %632, %cst_286 [1] : vector<16x32xf32> to vector<16xf32>
    %634 = vector.shape_cast %633 : vector<16xf32> to vector<16x1xf32>
    %cst_287 = arith.constant 3.200000e+01 : f32
    %635 = vector.broadcast %cst_287 : f32 to vector<16x1xf32>
    %636 = arith.divf %634, %635 : vector<16x1xf32>
    %cst_288 = arith.constant 9.99999974E-6 : f32
    %637 = vector.broadcast %cst_288 : f32 to vector<16x1xf32>
    %638 = arith.addf %636, %637 : vector<16x1xf32>
    %639 = math.rsqrt %638 : vector<16x1xf32>
    %640 = vector.broadcast %639 : vector<16x1xf32> to vector<16x32xf32>
    %641 = arith.mulf %631, %640 : vector<16x32xf32>
    %642 = vector.broadcast %11 : vector<1x32xf32> to vector<16x32xf32>
    %643 = arith.mulf %641, %642 : vector<16x32xf32>
    %644 = vector.broadcast %10 : vector<1x32xf32> to vector<16x32xf32>
    %645 = arith.addf %643, %644 : vector<16x32xf32>
    %cst_289 = arith.constant dense<0.000000e+00> : vector<16x96xf32>
    %646 = tpu.matmul %645, %32, %cst_289 {dimension_numbers = #tpu.dot_dimension_numbers<[1], [0], [0], [1], [0, 0, 1, 1], [], []>} : vector<16x32xf32>, vector<32x96xf32>, vector<16x96xf32> -> vector<16x96xf32>
    %647 = vector.broadcast %30 : vector<1x96xf32> to vector<16x96xf32>
    %648 = arith.addf %646, %647 : vector<16x96xf32>
    %649 = vector.extract_strided_slice %648 {offsets = [0, 0], sizes = [16, 32], strides = [1, 1]} : vector<16x96xf32> to vector<16x32xf32>
    %650 = vector.extract_strided_slice %648 {offsets = [0, 32], sizes = [16, 32], strides = [1, 1]} : vector<16x96xf32> to vector<16x32xf32>
    %651 = vector.extract_strided_slice %648 {offsets = [0, 64], sizes = [16, 32], strides = [1, 1]} : vector<16x96xf32> to vector<16x32xf32>
    %652 = vector.extract_strided_slice %649 {offsets = [0, 0], sizes = [16, 8], strides = [1, 1]} : vector<16x32xf32> to vector<16x8xf32>
    %653 = vector.extract_strided_slice %650 {offsets = [0, 0], sizes = [16, 8], strides = [1, 1]} : vector<16x32xf32> to vector<16x8xf32>
    %654 = tpu.transpose %653, [1, 0] : vector<16x8xf32> -> vector<8x16xf32>
    %cst_290 = arith.constant dense<0.000000e+00> : vector<16x16xf32>
    %655 = tpu.matmul %652, %654, %cst_290 {dimension_numbers = #tpu.dot_dimension_numbers<[1], [0], [0], [1], [0, 0, 1, 1], [], []>} : vector<16x8xf32>, vector<8x16xf32>, vector<16x16xf32> -> vector<16x16xf32>
    %cst_291 = arith.constant 0.353553385 : f32
    %656 = vector.broadcast %cst_291 : f32 to vector<16x16xf32>
    %657 = arith.mulf %655, %656 : vector<16x16xf32>
    %658 = arith.addf %657, %65 : vector<16x16xf32>
    %cst_292 = arith.constant dense<0xFF800000> : vector<16xf32>
    %659 = vector.multi_reduction <maximumf>, %658, %cst_292 [1] : vector<16x16xf32> to vector<16xf32>
    %660 = vector.shape_cast %659 : vector<16xf32> to vector<16x1xf32>
    %661 = vector.broadcast %660 : vector<16x1xf32> to vector<16x16xf32>
    %662 = arith.subf %658, %661 : vector<16x16xf32>
    %663 = math.exp %662 : vector<16x16xf32>
    %cst_293 = arith.constant dense<0.000000e+00> : vector<16xf32>
    %664 = vector.multi_reduction <add>, %663, %cst_293 [1] : vector<16x16xf32> to vector<16xf32>
    %665 = vector.shape_cast %664 : vector<16xf32> to vector<16x1xf32>
    %666 = tpu.reciprocal %665 : vector<16x1xf32> -> vector<16x1xf32>
    %667 = vector.broadcast %666 : vector<16x1xf32> to vector<16x16xf32>
    %668 = arith.mulf %663, %667 : vector<16x16xf32>
    %669 = vector.extract_strided_slice %651 {offsets = [0, 0], sizes = [16, 8], strides = [1, 1]} : vector<16x32xf32> to vector<16x8xf32>
    %cst_294 = arith.constant dense<0.000000e+00> : vector<16x8xf32>
    %670 = tpu.matmul %668, %669, %cst_294 {dimension_numbers = #tpu.dot_dimension_numbers<[1], [0], [0], [1], [0, 0, 1, 1], [], []>} : vector<16x16xf32>, vector<16x8xf32>, vector<16x8xf32> -> vector<16x8xf32>
    %671 = vector.extract_strided_slice %33 {offsets = [0, 0], sizes = [8, 32], strides = [1, 1]} : vector<32x32xf32> to vector<8x32xf32>
    %cst_295 = arith.constant dense<0.000000e+00> : vector<16x32xf32>
    %672 = tpu.matmul %670, %671, %cst_295 {dimension_numbers = #tpu.dot_dimension_numbers<[1], [0], [0], [1], [0, 0, 1, 1], [], []>} : vector<16x8xf32>, vector<8x32xf32>, vector<16x32xf32> -> vector<16x32xf32>
    %673 = vector.extract_strided_slice %649 {offsets = [0, 8], sizes = [16, 8], strides = [1, 1]} : vector<16x32xf32> to vector<16x8xf32>
    %674 = vector.extract_strided_slice %650 {offsets = [0, 8], sizes = [16, 8], strides = [1, 1]} : vector<16x32xf32> to vector<16x8xf32>
    %675 = tpu.transpose %674, [1, 0] : vector<16x8xf32> -> vector<8x16xf32>
    %cst_296 = arith.constant dense<0.000000e+00> : vector<16x16xf32>
    %676 = tpu.matmul %673, %675, %cst_296 {dimension_numbers = #tpu.dot_dimension_numbers<[1], [0], [0], [1], [0, 0, 1, 1], [], []>} : vector<16x8xf32>, vector<8x16xf32>, vector<16x16xf32> -> vector<16x16xf32>
    %cst_297 = arith.constant 0.353553385 : f32
    %677 = vector.broadcast %cst_297 : f32 to vector<16x16xf32>
    %678 = arith.mulf %676, %677 : vector<16x16xf32>
    %679 = arith.addf %678, %65 : vector<16x16xf32>
    %cst_298 = arith.constant dense<0xFF800000> : vector<16xf32>
    %680 = vector.multi_reduction <maximumf>, %679, %cst_298 [1] : vector<16x16xf32> to vector<16xf32>
    %681 = vector.shape_cast %680 : vector<16xf32> to vector<16x1xf32>
    %682 = vector.broadcast %681 : vector<16x1xf32> to vector<16x16xf32>
    %683 = arith.subf %679, %682 : vector<16x16xf32>
    %684 = math.exp %683 : vector<16x16xf32>
    %cst_299 = arith.constant dense<0.000000e+00> : vector<16xf32>
    %685 = vector.multi_reduction <add>, %684, %cst_299 [1] : vector<16x16xf32> to vector<16xf32>
    %686 = vector.shape_cast %685 : vector<16xf32> to vector<16x1xf32>
    %687 = tpu.reciprocal %686 : vector<16x1xf32> -> vector<16x1xf32>
    %688 = vector.broadcast %687 : vector<16x1xf32> to vector<16x16xf32>
    %689 = arith.mulf %684, %688 : vector<16x16xf32>
    %690 = vector.extract_strided_slice %651 {offsets = [0, 8], sizes = [16, 8], strides = [1, 1]} : vector<16x32xf32> to vector<16x8xf32>
    %cst_300 = arith.constant dense<0.000000e+00> : vector<16x8xf32>
    %691 = tpu.matmul %689, %690, %cst_300 {dimension_numbers = #tpu.dot_dimension_numbers<[1], [0], [0], [1], [0, 0, 1, 1], [], []>} : vector<16x16xf32>, vector<16x8xf32>, vector<16x8xf32> -> vector<16x8xf32>
    %692 = vector.extract_strided_slice %33 {offsets = [8, 0], sizes = [8, 32], strides = [1, 1]} : vector<32x32xf32> to vector<8x32xf32>
    %cst_301 = arith.constant dense<0.000000e+00> : vector<16x32xf32>
    %693 = tpu.matmul %691, %692, %cst_301 {dimension_numbers = #tpu.dot_dimension_numbers<[1], [0], [0], [1], [0, 0, 1, 1], [], []>} : vector<16x8xf32>, vector<8x32xf32>, vector<16x32xf32> -> vector<16x32xf32>
    %694 = arith.addf %672, %693 : vector<16x32xf32>
    %695 = vector.extract_strided_slice %649 {offsets = [0, 16], sizes = [16, 8], strides = [1, 1]} : vector<16x32xf32> to vector<16x8xf32>
    %696 = vector.extract_strided_slice %650 {offsets = [0, 16], sizes = [16, 8], strides = [1, 1]} : vector<16x32xf32> to vector<16x8xf32>
    %697 = tpu.transpose %696, [1, 0] : vector<16x8xf32> -> vector<8x16xf32>
    %cst_302 = arith.constant dense<0.000000e+00> : vector<16x16xf32>
    %698 = tpu.matmul %695, %697, %cst_302 {dimension_numbers = #tpu.dot_dimension_numbers<[1], [0], [0], [1], [0, 0, 1, 1], [], []>} : vector<16x8xf32>, vector<8x16xf32>, vector<16x16xf32> -> vector<16x16xf32>
    %cst_303 = arith.constant 0.353553385 : f32
    %699 = vector.broadcast %cst_303 : f32 to vector<16x16xf32>
    %700 = arith.mulf %698, %699 : vector<16x16xf32>
    %701 = arith.addf %700, %65 : vector<16x16xf32>
    %cst_304 = arith.constant dense<0xFF800000> : vector<16xf32>
    %702 = vector.multi_reduction <maximumf>, %701, %cst_304 [1] : vector<16x16xf32> to vector<16xf32>
    %703 = vector.shape_cast %702 : vector<16xf32> to vector<16x1xf32>
    %704 = vector.broadcast %703 : vector<16x1xf32> to vector<16x16xf32>
    %705 = arith.subf %701, %704 : vector<16x16xf32>
    %706 = math.exp %705 : vector<16x16xf32>
    %cst_305 = arith.constant dense<0.000000e+00> : vector<16xf32>
    %707 = vector.multi_reduction <add>, %706, %cst_305 [1] : vector<16x16xf32> to vector<16xf32>
    %708 = vector.shape_cast %707 : vector<16xf32> to vector<16x1xf32>
    %709 = tpu.reciprocal %708 : vector<16x1xf32> -> vector<16x1xf32>
    %710 = vector.broadcast %709 : vector<16x1xf32> to vector<16x16xf32>
    %711 = arith.mulf %706, %710 : vector<16x16xf32>
    %712 = vector.extract_strided_slice %651 {offsets = [0, 16], sizes = [16, 8], strides = [1, 1]} : vector<16x32xf32> to vector<16x8xf32>
    %cst_306 = arith.constant dense<0.000000e+00> : vector<16x8xf32>
    %713 = tpu.matmul %711, %712, %cst_306 {dimension_numbers = #tpu.dot_dimension_numbers<[1], [0], [0], [1], [0, 0, 1, 1], [], []>} : vector<16x16xf32>, vector<16x8xf32>, vector<16x8xf32> -> vector<16x8xf32>
    %714 = vector.extract_strided_slice %33 {offsets = [16, 0], sizes = [8, 32], strides = [1, 1]} : vector<32x32xf32> to vector<8x32xf32>
    %cst_307 = arith.constant dense<0.000000e+00> : vector<16x32xf32>
    %715 = tpu.matmul %713, %714, %cst_307 {dimension_numbers = #tpu.dot_dimension_numbers<[1], [0], [0], [1], [0, 0, 1, 1], [], []>} : vector<16x8xf32>, vector<8x32xf32>, vector<16x32xf32> -> vector<16x32xf32>
    %716 = arith.addf %694, %715 : vector<16x32xf32>
    %717 = vector.extract_strided_slice %649 {offsets = [0, 24], sizes = [16, 8], strides = [1, 1]} : vector<16x32xf32> to vector<16x8xf32>
    %718 = vector.extract_strided_slice %650 {offsets = [0, 24], sizes = [16, 8], strides = [1, 1]} : vector<16x32xf32> to vector<16x8xf32>
    %719 = tpu.transpose %718, [1, 0] : vector<16x8xf32> -> vector<8x16xf32>
    %cst_308 = arith.constant dense<0.000000e+00> : vector<16x16xf32>
    %720 = tpu.matmul %717, %719, %cst_308 {dimension_numbers = #tpu.dot_dimension_numbers<[1], [0], [0], [1], [0, 0, 1, 1], [], []>} : vector<16x8xf32>, vector<8x16xf32>, vector<16x16xf32> -> vector<16x16xf32>
    %cst_309 = arith.constant 0.353553385 : f32
    %721 = vector.broadcast %cst_309 : f32 to vector<16x16xf32>
    %722 = arith.mulf %720, %721 : vector<16x16xf32>
    %723 = arith.addf %722, %65 : vector<16x16xf32>
    %cst_310 = arith.constant dense<0xFF800000> : vector<16xf32>
    %724 = vector.multi_reduction <maximumf>, %723, %cst_310 [1] : vector<16x16xf32> to vector<16xf32>
    %725 = vector.shape_cast %724 : vector<16xf32> to vector<16x1xf32>
    %726 = vector.broadcast %725 : vector<16x1xf32> to vector<16x16xf32>
    %727 = arith.subf %723, %726 : vector<16x16xf32>
    %728 = math.exp %727 : vector<16x16xf32>
    %cst_311 = arith.constant dense<0.000000e+00> : vector<16xf32>
    %729 = vector.multi_reduction <add>, %728, %cst_311 [1] : vector<16x16xf32> to vector<16xf32>
    %730 = vector.shape_cast %729 : vector<16xf32> to vector<16x1xf32>
    %731 = tpu.reciprocal %730 : vector<16x1xf32> -> vector<16x1xf32>
    %732 = vector.broadcast %731 : vector<16x1xf32> to vector<16x16xf32>
    %733 = arith.mulf %728, %732 : vector<16x16xf32>
    %734 = vector.extract_strided_slice %651 {offsets = [0, 24], sizes = [16, 8], strides = [1, 1]} : vector<16x32xf32> to vector<16x8xf32>
    %cst_312 = arith.constant dense<0.000000e+00> : vector<16x8xf32>
    %735 = tpu.matmul %733, %734, %cst_312 {dimension_numbers = #tpu.dot_dimension_numbers<[1], [0], [0], [1], [0, 0, 1, 1], [], []>} : vector<16x16xf32>, vector<16x8xf32>, vector<16x8xf32> -> vector<16x8xf32>
    %736 = vector.extract_strided_slice %33 {offsets = [24, 0], sizes = [8, 32], strides = [1, 1]} : vector<32x32xf32> to vector<8x32xf32>
    %cst_313 = arith.constant dense<0.000000e+00> : vector<16x32xf32>
    %737 = tpu.matmul %735, %736, %cst_313 {dimension_numbers = #tpu.dot_dimension_numbers<[1], [0], [0], [1], [0, 0, 1, 1], [], []>} : vector<16x8xf32>, vector<8x32xf32>, vector<16x32xf32> -> vector<16x32xf32>
    %738 = arith.addf %716, %737 : vector<16x32xf32>
    %739 = vector.broadcast %31 : vector<1x32xf32> to vector<16x32xf32>
    %740 = arith.addf %738, %739 : vector<16x32xf32>
    %741 = arith.addf %740, %645 : vector<16x32xf32>
    %cst_314 = arith.constant dense<0.000000e+00> : vector<16xf32>
    %742 = vector.multi_reduction <add>, %741, %cst_314 [1] : vector<16x32xf32> to vector<16xf32>
    %743 = vector.shape_cast %742 : vector<16xf32> to vector<16x1xf32>
    %cst_315 = arith.constant 3.200000e+01 : f32
    %744 = vector.broadcast %cst_315 : f32 to vector<16x1xf32>
    %745 = arith.divf %743, %744 : vector<16x1xf32>
    %746 = vector.broadcast %745 : vector<16x1xf32> to vector<16x32xf32>
    %747 = arith.subf %741, %746 : vector<16x32xf32>
    %748 = arith.mulf %747, %747 : vector<16x32xf32>
    %cst_316 = arith.constant dense<0.000000e+00> : vector<16xf32>
    %749 = vector.multi_reduction <add>, %748, %cst_316 [1] : vector<16x32xf32> to vector<16xf32>
    %750 = vector.shape_cast %749 : vector<16xf32> to vector<16x1xf32>
    %cst_317 = arith.constant 3.200000e+01 : f32
    %751 = vector.broadcast %cst_317 : f32 to vector<16x1xf32>
    %752 = arith.divf %750, %751 : vector<16x1xf32>
    %cst_318 = arith.constant 9.99999974E-6 : f32
    %753 = vector.broadcast %cst_318 : f32 to vector<16x1xf32>
    %754 = arith.addf %752, %753 : vector<16x1xf32>
    %755 = math.rsqrt %754 : vector<16x1xf32>
    %756 = vector.broadcast %755 : vector<16x1xf32> to vector<16x32xf32>
    %757 = arith.mulf %747, %756 : vector<16x32xf32>
    %758 = vector.broadcast %25 : vector<1x32xf32> to vector<16x32xf32>
    %759 = arith.mulf %757, %758 : vector<16x32xf32>
    %760 = vector.broadcast %24 : vector<1x32xf32> to vector<16x32xf32>
    %761 = arith.addf %759, %760 : vector<16x32xf32>
    %762 = vector.extract_strided_slice %22 {offsets = [0, 0], sizes = [32, 32], strides = [1, 1]} : vector<32x96xf32> to vector<32x32xf32>
    %cst_319 = arith.constant dense<0.000000e+00> : vector<16x32xf32>
    %763 = tpu.matmul %761, %762, %cst_319 {dimension_numbers = #tpu.dot_dimension_numbers<[1], [0], [0], [1], [0, 0, 1, 1], [], []>} : vector<16x32xf32>, vector<32x32xf32>, vector<16x32xf32> -> vector<16x32xf32>
    %764 = vector.extract_strided_slice %20 {offsets = [0, 0], sizes = [1, 32], strides = [1, 1]} : vector<1x96xf32> to vector<1x32xf32>
    %765 = vector.broadcast %764 : vector<1x32xf32> to vector<16x32xf32>
    %766 = arith.addf %763, %765 : vector<16x32xf32>
    %767 = vector.extract_strided_slice %22 {offsets = [0, 32], sizes = [32, 64], strides = [1, 1]} : vector<32x96xf32> to vector<32x64xf32>
    %cst_320 = arith.constant dense<0.000000e+00> : vector<16x64xf32>
    %768 = tpu.matmul %367, %767, %cst_320 {dimension_numbers = #tpu.dot_dimension_numbers<[1], [0], [0], [1], [0, 0, 1, 1], [], []>} : vector<16x32xf32>, vector<32x64xf32>, vector<16x64xf32> -> vector<16x64xf32>
    %769 = vector.extract_strided_slice %20 {offsets = [0, 32], sizes = [1, 64], strides = [1, 1]} : vector<1x96xf32> to vector<1x64xf32>
    %770 = vector.broadcast %769 : vector<1x64xf32> to vector<16x64xf32>
    %771 = arith.addf %768, %770 : vector<16x64xf32>
    %772 = vector.extract_strided_slice %771 {offsets = [0, 0], sizes = [16, 32], strides = [1, 1]} : vector<16x64xf32> to vector<16x32xf32>
    %773 = vector.extract_strided_slice %771 {offsets = [0, 32], sizes = [16, 32], strides = [1, 1]} : vector<16x64xf32> to vector<16x32xf32>
    %774 = vector.extract_strided_slice %766 {offsets = [0, 0], sizes = [16, 8], strides = [1, 1]} : vector<16x32xf32> to vector<16x8xf32>
    %775 = vector.extract_strided_slice %772 {offsets = [0, 0], sizes = [16, 8], strides = [1, 1]} : vector<16x32xf32> to vector<16x8xf32>
    %776 = tpu.transpose %775, [1, 0] : vector<16x8xf32> -> vector<8x16xf32>
    %cst_321 = arith.constant dense<0.000000e+00> : vector<16x16xf32>
    %777 = tpu.matmul %774, %776, %cst_321 {dimension_numbers = #tpu.dot_dimension_numbers<[1], [0], [0], [1], [0, 0, 1, 1], [], []>} : vector<16x8xf32>, vector<8x16xf32>, vector<16x16xf32> -> vector<16x16xf32>
    %cst_322 = arith.constant 0.353553385 : f32
    %778 = vector.broadcast %cst_322 : f32 to vector<16x16xf32>
    %779 = arith.mulf %777, %778 : vector<16x16xf32>
    %780 = arith.addf %779, %66 : vector<16x16xf32>
    %cst_323 = arith.constant dense<0xFF800000> : vector<16xf32>
    %781 = vector.multi_reduction <maximumf>, %780, %cst_323 [1] : vector<16x16xf32> to vector<16xf32>
    %782 = vector.shape_cast %781 : vector<16xf32> to vector<16x1xf32>
    %783 = vector.broadcast %782 : vector<16x1xf32> to vector<16x16xf32>
    %784 = arith.subf %780, %783 : vector<16x16xf32>
    %785 = math.exp %784 : vector<16x16xf32>
    %cst_324 = arith.constant dense<0.000000e+00> : vector<16xf32>
    %786 = vector.multi_reduction <add>, %785, %cst_324 [1] : vector<16x16xf32> to vector<16xf32>
    %787 = vector.shape_cast %786 : vector<16xf32> to vector<16x1xf32>
    %788 = tpu.reciprocal %787 : vector<16x1xf32> -> vector<16x1xf32>
    %789 = vector.broadcast %788 : vector<16x1xf32> to vector<16x16xf32>
    %790 = arith.mulf %785, %789 : vector<16x16xf32>
    %791 = vector.extract_strided_slice %773 {offsets = [0, 0], sizes = [16, 8], strides = [1, 1]} : vector<16x32xf32> to vector<16x8xf32>
    %cst_325 = arith.constant dense<0.000000e+00> : vector<16x8xf32>
    %792 = tpu.matmul %790, %791, %cst_325 {dimension_numbers = #tpu.dot_dimension_numbers<[1], [0], [0], [1], [0, 0, 1, 1], [], []>} : vector<16x16xf32>, vector<16x8xf32>, vector<16x8xf32> -> vector<16x8xf32>
    %793 = vector.extract_strided_slice %23 {offsets = [0, 0], sizes = [8, 32], strides = [1, 1]} : vector<32x32xf32> to vector<8x32xf32>
    %cst_326 = arith.constant dense<0.000000e+00> : vector<16x32xf32>
    %794 = tpu.matmul %792, %793, %cst_326 {dimension_numbers = #tpu.dot_dimension_numbers<[1], [0], [0], [1], [0, 0, 1, 1], [], []>} : vector<16x8xf32>, vector<8x32xf32>, vector<16x32xf32> -> vector<16x32xf32>
    %795 = vector.extract_strided_slice %766 {offsets = [0, 8], sizes = [16, 8], strides = [1, 1]} : vector<16x32xf32> to vector<16x8xf32>
    %796 = vector.extract_strided_slice %772 {offsets = [0, 8], sizes = [16, 8], strides = [1, 1]} : vector<16x32xf32> to vector<16x8xf32>
    %797 = tpu.transpose %796, [1, 0] : vector<16x8xf32> -> vector<8x16xf32>
    %cst_327 = arith.constant dense<0.000000e+00> : vector<16x16xf32>
    %798 = tpu.matmul %795, %797, %cst_327 {dimension_numbers = #tpu.dot_dimension_numbers<[1], [0], [0], [1], [0, 0, 1, 1], [], []>} : vector<16x8xf32>, vector<8x16xf32>, vector<16x16xf32> -> vector<16x16xf32>
    %cst_328 = arith.constant 0.353553385 : f32
    %799 = vector.broadcast %cst_328 : f32 to vector<16x16xf32>
    %800 = arith.mulf %798, %799 : vector<16x16xf32>
    %801 = arith.addf %800, %66 : vector<16x16xf32>
    %cst_329 = arith.constant dense<0xFF800000> : vector<16xf32>
    %802 = vector.multi_reduction <maximumf>, %801, %cst_329 [1] : vector<16x16xf32> to vector<16xf32>
    %803 = vector.shape_cast %802 : vector<16xf32> to vector<16x1xf32>
    %804 = vector.broadcast %803 : vector<16x1xf32> to vector<16x16xf32>
    %805 = arith.subf %801, %804 : vector<16x16xf32>
    %806 = math.exp %805 : vector<16x16xf32>
    %cst_330 = arith.constant dense<0.000000e+00> : vector<16xf32>
    %807 = vector.multi_reduction <add>, %806, %cst_330 [1] : vector<16x16xf32> to vector<16xf32>
    %808 = vector.shape_cast %807 : vector<16xf32> to vector<16x1xf32>
    %809 = tpu.reciprocal %808 : vector<16x1xf32> -> vector<16x1xf32>
    %810 = vector.broadcast %809 : vector<16x1xf32> to vector<16x16xf32>
    %811 = arith.mulf %806, %810 : vector<16x16xf32>
    %812 = vector.extract_strided_slice %773 {offsets = [0, 8], sizes = [16, 8], strides = [1, 1]} : vector<16x32xf32> to vector<16x8xf32>
    %cst_331 = arith.constant dense<0.000000e+00> : vector<16x8xf32>
    %813 = tpu.matmul %811, %812, %cst_331 {dimension_numbers = #tpu.dot_dimension_numbers<[1], [0], [0], [1], [0, 0, 1, 1], [], []>} : vector<16x16xf32>, vector<16x8xf32>, vector<16x8xf32> -> vector<16x8xf32>
    %814 = vector.extract_strided_slice %23 {offsets = [8, 0], sizes = [8, 32], strides = [1, 1]} : vector<32x32xf32> to vector<8x32xf32>
    %cst_332 = arith.constant dense<0.000000e+00> : vector<16x32xf32>
    %815 = tpu.matmul %813, %814, %cst_332 {dimension_numbers = #tpu.dot_dimension_numbers<[1], [0], [0], [1], [0, 0, 1, 1], [], []>} : vector<16x8xf32>, vector<8x32xf32>, vector<16x32xf32> -> vector<16x32xf32>
    %816 = arith.addf %794, %815 : vector<16x32xf32>
    %817 = vector.extract_strided_slice %766 {offsets = [0, 16], sizes = [16, 8], strides = [1, 1]} : vector<16x32xf32> to vector<16x8xf32>
    %818 = vector.extract_strided_slice %772 {offsets = [0, 16], sizes = [16, 8], strides = [1, 1]} : vector<16x32xf32> to vector<16x8xf32>
    %819 = tpu.transpose %818, [1, 0] : vector<16x8xf32> -> vector<8x16xf32>
    %cst_333 = arith.constant dense<0.000000e+00> : vector<16x16xf32>
    %820 = tpu.matmul %817, %819, %cst_333 {dimension_numbers = #tpu.dot_dimension_numbers<[1], [0], [0], [1], [0, 0, 1, 1], [], []>} : vector<16x8xf32>, vector<8x16xf32>, vector<16x16xf32> -> vector<16x16xf32>
    %cst_334 = arith.constant 0.353553385 : f32
    %821 = vector.broadcast %cst_334 : f32 to vector<16x16xf32>
    %822 = arith.mulf %820, %821 : vector<16x16xf32>
    %823 = arith.addf %822, %66 : vector<16x16xf32>
    %cst_335 = arith.constant dense<0xFF800000> : vector<16xf32>
    %824 = vector.multi_reduction <maximumf>, %823, %cst_335 [1] : vector<16x16xf32> to vector<16xf32>
    %825 = vector.shape_cast %824 : vector<16xf32> to vector<16x1xf32>
    %826 = vector.broadcast %825 : vector<16x1xf32> to vector<16x16xf32>
    %827 = arith.subf %823, %826 : vector<16x16xf32>
    %828 = math.exp %827 : vector<16x16xf32>
    %cst_336 = arith.constant dense<0.000000e+00> : vector<16xf32>
    %829 = vector.multi_reduction <add>, %828, %cst_336 [1] : vector<16x16xf32> to vector<16xf32>
    %830 = vector.shape_cast %829 : vector<16xf32> to vector<16x1xf32>
    %831 = tpu.reciprocal %830 : vector<16x1xf32> -> vector<16x1xf32>
    %832 = vector.broadcast %831 : vector<16x1xf32> to vector<16x16xf32>
    %833 = arith.mulf %828, %832 : vector<16x16xf32>
    %834 = vector.extract_strided_slice %773 {offsets = [0, 16], sizes = [16, 8], strides = [1, 1]} : vector<16x32xf32> to vector<16x8xf32>
    %cst_337 = arith.constant dense<0.000000e+00> : vector<16x8xf32>
    %835 = tpu.matmul %833, %834, %cst_337 {dimension_numbers = #tpu.dot_dimension_numbers<[1], [0], [0], [1], [0, 0, 1, 1], [], []>} : vector<16x16xf32>, vector<16x8xf32>, vector<16x8xf32> -> vector<16x8xf32>
    %836 = vector.extract_strided_slice %23 {offsets = [16, 0], sizes = [8, 32], strides = [1, 1]} : vector<32x32xf32> to vector<8x32xf32>
    %cst_338 = arith.constant dense<0.000000e+00> : vector<16x32xf32>
    %837 = tpu.matmul %835, %836, %cst_338 {dimension_numbers = #tpu.dot_dimension_numbers<[1], [0], [0], [1], [0, 0, 1, 1], [], []>} : vector<16x8xf32>, vector<8x32xf32>, vector<16x32xf32> -> vector<16x32xf32>
    %838 = arith.addf %816, %837 : vector<16x32xf32>
    %839 = vector.extract_strided_slice %766 {offsets = [0, 24], sizes = [16, 8], strides = [1, 1]} : vector<16x32xf32> to vector<16x8xf32>
    %840 = vector.extract_strided_slice %772 {offsets = [0, 24], sizes = [16, 8], strides = [1, 1]} : vector<16x32xf32> to vector<16x8xf32>
    %841 = tpu.transpose %840, [1, 0] : vector<16x8xf32> -> vector<8x16xf32>
    %cst_339 = arith.constant dense<0.000000e+00> : vector<16x16xf32>
    %842 = tpu.matmul %839, %841, %cst_339 {dimension_numbers = #tpu.dot_dimension_numbers<[1], [0], [0], [1], [0, 0, 1, 1], [], []>} : vector<16x8xf32>, vector<8x16xf32>, vector<16x16xf32> -> vector<16x16xf32>
    %cst_340 = arith.constant 0.353553385 : f32
    %843 = vector.broadcast %cst_340 : f32 to vector<16x16xf32>
    %844 = arith.mulf %842, %843 : vector<16x16xf32>
    %845 = arith.addf %844, %66 : vector<16x16xf32>
    %cst_341 = arith.constant dense<0xFF800000> : vector<16xf32>
    %846 = vector.multi_reduction <maximumf>, %845, %cst_341 [1] : vector<16x16xf32> to vector<16xf32>
    %847 = vector.shape_cast %846 : vector<16xf32> to vector<16x1xf32>
    %848 = vector.broadcast %847 : vector<16x1xf32> to vector<16x16xf32>
    %849 = arith.subf %845, %848 : vector<16x16xf32>
    %850 = math.exp %849 : vector<16x16xf32>
    %cst_342 = arith.constant dense<0.000000e+00> : vector<16xf32>
    %851 = vector.multi_reduction <add>, %850, %cst_342 [1] : vector<16x16xf32> to vector<16xf32>
    %852 = vector.shape_cast %851 : vector<16xf32> to vector<16x1xf32>
    %853 = tpu.reciprocal %852 : vector<16x1xf32> -> vector<16x1xf32>
    %854 = vector.broadcast %853 : vector<16x1xf32> to vector<16x16xf32>
    %855 = arith.mulf %850, %854 : vector<16x16xf32>
    %856 = vector.extract_strided_slice %773 {offsets = [0, 24], sizes = [16, 8], strides = [1, 1]} : vector<16x32xf32> to vector<16x8xf32>
    %cst_343 = arith.constant dense<0.000000e+00> : vector<16x8xf32>
    %857 = tpu.matmul %855, %856, %cst_343 {dimension_numbers = #tpu.dot_dimension_numbers<[1], [0], [0], [1], [0, 0, 1, 1], [], []>} : vector<16x16xf32>, vector<16x8xf32>, vector<16x8xf32> -> vector<16x8xf32>
    %858 = vector.extract_strided_slice %23 {offsets = [24, 0], sizes = [8, 32], strides = [1, 1]} : vector<32x32xf32> to vector<8x32xf32>
    %cst_344 = arith.constant dense<0.000000e+00> : vector<16x32xf32>
    %859 = tpu.matmul %857, %858, %cst_344 {dimension_numbers = #tpu.dot_dimension_numbers<[1], [0], [0], [1], [0, 0, 1, 1], [], []>} : vector<16x8xf32>, vector<8x32xf32>, vector<16x32xf32> -> vector<16x32xf32>
    %860 = arith.addf %838, %859 : vector<16x32xf32>
    %861 = vector.broadcast %21 : vector<1x32xf32> to vector<16x32xf32>
    %862 = arith.addf %860, %861 : vector<16x32xf32>
    %863 = arith.addf %862, %761 : vector<16x32xf32>
    %cst_345 = arith.constant dense<0.000000e+00> : vector<16xf32>
    %864 = vector.multi_reduction <add>, %863, %cst_345 [1] : vector<16x32xf32> to vector<16xf32>
    %865 = vector.shape_cast %864 : vector<16xf32> to vector<16x1xf32>
    %cst_346 = arith.constant 3.200000e+01 : f32
    %866 = vector.broadcast %cst_346 : f32 to vector<16x1xf32>
    %867 = arith.divf %865, %866 : vector<16x1xf32>
    %868 = vector.broadcast %867 : vector<16x1xf32> to vector<16x32xf32>
    %869 = arith.subf %863, %868 : vector<16x32xf32>
    %870 = arith.mulf %869, %869 : vector<16x32xf32>
    %cst_347 = arith.constant dense<0.000000e+00> : vector<16xf32>
    %871 = vector.multi_reduction <add>, %870, %cst_347 [1] : vector<16x32xf32> to vector<16xf32>
    %872 = vector.shape_cast %871 : vector<16xf32> to vector<16x1xf32>
    %cst_348 = arith.constant 3.200000e+01 : f32
    %873 = vector.broadcast %cst_348 : f32 to vector<16x1xf32>
    %874 = arith.divf %872, %873 : vector<16x1xf32>
    %cst_349 = arith.constant 9.99999974E-6 : f32
    %875 = vector.broadcast %cst_349 : f32 to vector<16x1xf32>
    %876 = arith.addf %874, %875 : vector<16x1xf32>
    %877 = math.rsqrt %876 : vector<16x1xf32>
    %878 = vector.broadcast %877 : vector<16x1xf32> to vector<16x32xf32>
    %879 = arith.mulf %869, %878 : vector<16x32xf32>
    %880 = vector.broadcast %27 : vector<1x32xf32> to vector<16x32xf32>
    %881 = arith.mulf %879, %880 : vector<16x32xf32>
    %882 = vector.broadcast %26 : vector<1x32xf32> to vector<16x32xf32>
    %883 = arith.addf %881, %882 : vector<16x32xf32>
    %cst_350 = arith.constant dense<0.000000e+00> : vector<16x64xf32>
    %884 = tpu.matmul %883, %34, %cst_350 {dimension_numbers = #tpu.dot_dimension_numbers<[1], [0], [0], [1], [0, 0, 1, 1], [], []>} : vector<16x32xf32>, vector<32x64xf32>, vector<16x64xf32> -> vector<16x64xf32>
    %885 = vector.broadcast %18 : vector<1x64xf32> to vector<16x64xf32>
    %886 = arith.addf %884, %885 : vector<16x64xf32>
    %cst_351 = arith.constant 0.000000e+00 : f32
    %887 = vector.broadcast %cst_351 : f32 to vector<16x64xf32>
    %888 = arith.maximumf %886, %887 : vector<16x64xf32>
    %cst_352 = arith.constant dense<0.000000e+00> : vector<16x32xf32>
    %889 = tpu.matmul %888, %35, %cst_352 {dimension_numbers = #tpu.dot_dimension_numbers<[1], [0], [0], [1], [0, 0, 1, 1], [], []>} : vector<16x64xf32>, vector<64x32xf32>, vector<16x32xf32> -> vector<16x32xf32>
    %890 = vector.broadcast %19 : vector<1x32xf32> to vector<16x32xf32>
    %891 = arith.addf %889, %890 : vector<16x32xf32>
    %892 = arith.addf %891, %883 : vector<16x32xf32>
    %cst_353 = arith.constant dense<0.000000e+00> : vector<16xf32>
    %893 = vector.multi_reduction <add>, %892, %cst_353 [1] : vector<16x32xf32> to vector<16xf32>
    %894 = vector.shape_cast %893 : vector<16xf32> to vector<16x1xf32>
    %cst_354 = arith.constant 3.200000e+01 : f32
    %895 = vector.broadcast %cst_354 : f32 to vector<16x1xf32>
    %896 = arith.divf %894, %895 : vector<16x1xf32>
    %897 = vector.broadcast %896 : vector<16x1xf32> to vector<16x32xf32>
    %898 = arith.subf %892, %897 : vector<16x32xf32>
    %899 = arith.mulf %898, %898 : vector<16x32xf32>
    %cst_355 = arith.constant dense<0.000000e+00> : vector<16xf32>
    %900 = vector.multi_reduction <add>, %899, %cst_355 [1] : vector<16x32xf32> to vector<16xf32>
    %901 = vector.shape_cast %900 : vector<16xf32> to vector<16x1xf32>
    %cst_356 = arith.constant 3.200000e+01 : f32
    %902 = vector.broadcast %cst_356 : f32 to vector<16x1xf32>
    %903 = arith.divf %901, %902 : vector<16x1xf32>
    %cst_357 = arith.constant 9.99999974E-6 : f32
    %904 = vector.broadcast %cst_357 : f32 to vector<16x1xf32>
    %905 = arith.addf %903, %904 : vector<16x1xf32>
    %906 = math.rsqrt %905 : vector<16x1xf32>
    %907 = vector.broadcast %906 : vector<16x1xf32> to vector<16x32xf32>
    %908 = arith.mulf %898, %907 : vector<16x32xf32>
    %909 = vector.broadcast %29 : vector<1x32xf32> to vector<16x32xf32>
    %910 = arith.mulf %908, %909 : vector<16x32xf32>
    %911 = vector.broadcast %28 : vector<1x32xf32> to vector<16x32xf32>
    %912 = arith.addf %910, %911 : vector<16x32xf32>
    %cst_358 = arith.constant dense<0.000000e+00> : vector<16x32xf32>
    %913 = tpu.matmul %912, %63, %cst_358 {dimension_numbers = #tpu.dot_dimension_numbers<[1], [0], [0], [1], [0, 0, 1, 1], [], []>} : vector<16x32xf32>, vector<32x32xf32>, vector<16x32xf32> -> vector<16x32xf32>
    %914 = vector.broadcast %62 : vector<1x32xf32> to vector<16x32xf32>
    %915 = arith.addf %913, %914 : vector<16x32xf32>
    %c0_359 = arith.constant 0 : index
    %c0_360 = arith.constant 0 : index
    %916 = vector.load %arg71[%c0_359, %c0_360] : memref<16x32xf32, #tpu.memory_space<vmem>>, vector<16x32xf32>
    tpu.vector_store %arg71[%c0_359, %c0_360], %915 {strides = array<i32>} : memref<16x32xf32, #tpu.memory_space<vmem>>, vector<16x32xf32>,
    return
  }
}

</mosaic_0001>

<bundles_post_ra>
// kernel: base_transformer_forward.1
= control target key start
LH: loop header
LB: loop body
LE: loop exit
PB: predicated region body
PF: predicated region fallthrough
CT: control target
= control target key end

     0   :  { %s12988_s6 = smov 1   ;;  %s12989_s10 = smov 2   ;;  %s14545_s0 = inlined_call_operand.smem [shape: u32[72], index: -1, kind: input, shape index: {}] }
   0x1   :  { %s13110_s5 = sld [smem:[%s14545_s0]]   ;;  %s12990_s14 = smov 3  }
   0x2   :  { %s13115_s9 = sld [smem:[%s14545_s0 + %s12988_s6]]   ;;  %s12991_s18 = smov 4  }
   0x3   :  { %s13120_s13 = sld [smem:[%s14545_s0 + %s12989_s10]]   ;;  %s12992_s22 = smov 5  }
   0x4   :  { %s13125_s17 = sld [smem:[%s14545_s0 + %s12990_s14]]   ;;  %s12993_s26 = smov 6  }
   0x5   :  { %s13130_s21 = sld [smem:[%s14545_s0 + %s12991_s18]]   ;;  %s12994_s30 = smov 7  }
   0x6   :  { %s13135_s25 = sld [smem:[%s14545_s0 + %s12992_s22]]   ;;  %s12995_s4 = smov 8  }
   0x7   :  { %14586 = sst [smem:[#allocation60_spill]] %s13110_s5  ;;  %s12996_s10 = smov 9  }
   0x8   :  { %14587 = sst [smem:[#allocation61_spill]] %s13115_s9  ;;  %s12997_s15 = smov 10  }
   0x9   :  { %14588 = sst [smem:[#allocation62_spill]] %s13120_s13  ;;  %s12998_s20 = smov 11  }
   0xa   :  { %14589 = sst [smem:[#allocation63_spill]] %s13125_s17  ;;  %s13000_s1 = smov 13  }
   0xb   :  { %14590 = sst [smem:[#allocation64_spill]] %s13130_s21  ;;  %s13001_s7 = smov 14  }
   0xc   :  { %14591 = sst [smem:[#allocation65_spill]] %s13135_s25  ;;  %s13003_s22 = smov 16  }
   0xd   :  { %s13140_s29 = sld [smem:[%s14545_s0 + %s12993_s26]]   ;;  %s12999_s26 = smov 12  }
   0xe   :  { %s13145_s3 = sld [smem:[%s14545_s0 + %s12994_s30]]   ;;  %s13004_s28 = smov 17  }
   0xf   :  { %s13150_s8 = sld [smem:[%s14545_s0 + %s12995_s4]]  }
  0x10   :  { %s13155_s14 = sld [smem:[%s14545_s0 + %s12996_s10]]  }
  0x11   :  { %s13160_s19 = sld [smem:[%s14545_s0 + %s12997_s15]]   ;;  %s13002_s15 = smov 15  }
  0x12   :  { %s13165_s24 = sld [smem:[%s14545_s0 + %s12998_s20]]  }
  0x13   :  { %14592 = sst [smem:[#allocation66_spill]] %s13140_s29 }
  0x14   :  { %s13170_s30 = sld [smem:[%s14545_s0 + %s12999_s26]]  }
  0x15   :  { %s13175_s6 = sld [smem:[%s14545_s0 + %s13000_s1]]  }
  0x16   :  { %14593 = sst [smem:[#allocation67_spill]] %s13155_s14 }
  0x17   :  { %s13180_s12 = sld [smem:[%s14545_s0 + %s13001_s7]]   ;;  %s13005_s7 = smov 18  }
  0x18   :  { %14594 = sst [smem:[#allocation68_spill]] %s13165_s24 }
  0x19   :  { %s13185_s20 = sld [smem:[%s14545_s0 + %s13002_s15]]   ;;  %s13006_s15 = smov 19  }
  0x1a   :  { %14595 = sst [smem:[#allocation69_spill]] %s13170_s30 }
  0x1b   :  { %14596 = sst [smem:[#allocation70_spill]] %s13175_s6 }
  0x1c   :  { %s13190_s27 = sld [smem:[%s14545_s0 + %s13003_s22]]   ;;  %s13007_s22 = smov 20  }
  0x1d   :  { %s13195_s4 = sld [smem:[%s14545_s0 + %s13004_s28]]   ;;  %s13008_s28 = smov 21  }
  0x1e   :  { %s13200_s30 = sld [smem:[%s14545_s0 + %s13005_s7]]   ;;  %s13009_s7 = smov 22  }
  0x1f   :  { %14597 = sst [smem:[#allocation71_spill]] %s13185_s20 }
  0x20   :  { %s13205_s29 = sld [smem:[%s14545_s0 + %s13006_s15]]   ;;  %s13010_s15 = smov 23  }
  0x21   :  { %s13210_s24 = sld [smem:[%s14545_s0 + %s13007_s22]]   ;;  %s13011_s22 = smov 24  }
  0x22   :  { %s13215_s25 = sld [smem:[%s14545_s0 + %s13008_s28]]   ;;  %s13012_s28 = smov 25  }
  0x23   :  { %14598 = sst [smem:[#allocation72_spill]] %s13195_s4 }
  0x24   :  { %s13220_s17 = sld [smem:[%s14545_s0 + %s13009_s7]]   ;;  %s13013_s7 = smov 26  }
  0x25   :  { %s13225_s9 = sld [smem:[%s14545_s0 + %s13010_s15]]   ;;  %s13014_s15 = smov 27  }
  0x26   :  { %14599 = sst [smem:[#allocation73_spill]] %s13205_s29 }
  0x27   :  { %14600 = sst [smem:[#allocation74_spill]] %s13210_s24 }
  0x28   :  { %14601 = sst [smem:[#allocation75_spill]] %s13215_s25 }
  0x29   :  { %s13230_s24 = sld [smem:[%s14545_s0 + %s13011_s22]]   ;;  %s13015_s22 = smov 28  }
  0x2a   :  { %14602 = sst [smem:[#allocation76_spill]] %s13220_s17 }
  0x2b   :  { %14603 = sst [smem:[#allocation77_spill]] %s13225_s9 }
  0x2c   :  { %s13235_s25 = sld [smem:[%s14545_s0 + %s13012_s28]]   ;;  %s13016_s28 = smov 29  }
  0x2d   :  { %s13240_s17 = sld [smem:[%s14545_s0 + %s13013_s7]]   ;;  %s13017_s7 = smov 30  }
  0x2e   :  { %s13245_s9 = sld [smem:[%s14545_s0 + %s13014_s15]]   ;;  %s13018_s15 = smov 31  }
  0x2f   :  { %14604 = sst [smem:[#allocation78_spill]] %s13230_s24 }
  0x30   :  { %s13250_s24 = sld [smem:[%s14545_s0 + %s13015_s22]]   ;;  %s13019_s22 = smov 32  }
  0x32   :  { %14605 = sst [smem:[#allocation79_spill]] %s13235_s25 }
  0x33   :  { %14606 = sst [smem:[#allocation80_spill]] %s13240_s17 }
  0x34   :  { %14607 = sst [smem:[#allocation81_spill]] %s13245_s9 }
  0x35   :  { %s13255_s25 = sld [smem:[%s14545_s0 + %s13016_s28]]   ;;  %s13020_s28 = smov 33  }
  0x36   :  { %14608 = sst [smem:[#allocation82_spill]] %s13250_s24 }
  0x37   :  { %s13260_s17 = sld [smem:[%s14545_s0 + %s13017_s7]]   ;;  %s13021_s7 = smov 34  }
  0x38   :  { %s13265_s9 = sld [smem:[%s14545_s0 + %s13018_s15]]   ;;  %s13022_s15 = smov 35  }
  0x39   :  { %s13270_s24 = sld [smem:[%s14545_s0 + %s13019_s22]]   ;;  %s13023_s22 = smov 36  }
  0x3b   :  { %14609 = sst [smem:[#allocation83_spill]] %s13255_s25 }
  0x3c   :  { %s13275_s25 = sld [smem:[%s14545_s0 + %s13020_s28]]   ;;  %s13024_s28 = smov 37  }
  0x3d   :  { %14610 = sst [smem:[#allocation84_spill]] %s13260_s17 }
  0x3e   :  { %14611 = sst [smem:[#allocation85_spill]] %s13265_s9 }
  0x3f   :  { %14612 = sst [smem:[#allocation86_spill]] %s13270_s24 }
  0x40   :  { %s13280_s17 = sld [smem:[%s14545_s0 + %s13021_s7]]   ;;  %s13025_s7 = smov 38  }
  0x41   :  { %s13285_s9 = sld [smem:[%s14545_s0 + %s13022_s15]]   ;;  %s13026_s15 = smov 39  }
  0x42   :  { %14613 = sst [smem:[#allocation87_spill]] %s13275_s25 }
  0x43   :  { %s13290_s24 = sld [smem:[%s14545_s0 + %s13023_s22]]   ;;  %s13027_s22 = smov 40  }
  0x44   :  { %s13295_s25 = sld [smem:[%s14545_s0 + %s13024_s28]]   ;;  %s13028_s28 = smov 41  }
  0x46   :  { %14614 = sst [smem:[#allocation88_spill]] %s13280_s17 }
  0x47   :  { %14615 = sst [smem:[#allocation89_spill]] %s13285_s9 }
  0x48   :  { %s13300_s17 = sld [smem:[%s14545_s0 + %s13025_s7]]   ;;  %s13029_s7 = smov 42  }
  0x49   :  { %14616 = sst [smem:[#allocation90_spill]] %s13290_s24 }
  0x4a   :  { %14617 = sst [smem:[#allocation91_spill]] %s13295_s25 }
  0x4b   :  { %s13305_s9 = sld [smem:[%s14545_s0 + %s13026_s15]]   ;;  %s13030_s15 = smov 43  }
  0x4c   :  { %s13310_s24 = sld [smem:[%s14545_s0 + %s13027_s22]]   ;;  %s13031_s22 = smov 44  }
  0x4d   :  { %s13315_s25 = sld [smem:[%s14545_s0 + %s13028_s28]]   ;;  %s13032_s28 = smov 45  }
  0x4e   :  { %14618 = sst [smem:[#allocation92_spill]] %s13300_s17 }
  0x4f   :  { %s13320_s17 = sld [smem:[%s14545_s0 + %s13029_s7]]   ;;  %s13033_s7 = smov 46  }
  0x51   :  { %14619 = sst [smem:[#allocation93_spill]] %s13305_s9 }
  0x52   :  { %14620 = sst [smem:[#allocation94_spill]] %s13310_s24 }
  0x53   :  { %14621 = sst [smem:[#allocation95_spill]] %s13315_s25 }
  0x54   :  { %s13325_s9 = sld [smem:[%s14545_s0 + %s13030_s15]]   ;;  %s13034_s15 = smov 47  }
  0x55   :  { %14622 = sst [smem:[#allocation96_spill]] %s13320_s17 }
  0x56   :  { %s13330_s24 = sld [smem:[%s14545_s0 + %s13031_s22]]   ;;  %s13035_s22 = smov 48  }
  0x57   :  { %s13335_s25 = sld [smem:[%s14545_s0 + %s13032_s28]]   ;;  %s13036_s28 = smov 49  }
  0x58   :  { %s13340_s17 = sld [smem:[%s14545_s0 + %s13033_s7]]   ;;  %s13037_s7 = smov 50  }
  0x59   :  { %s13350_s21 = sld [smem:[%s14545_s0 + %s13035_s22]]   ;;  %s13039_s22 = smov 52  }
  0x5a   :  { %14623 = sst [smem:[#allocation97_spill]] %s13325_s9 }
  0x5b   :  { %s13345_s9 = sld [smem:[%s14545_s0 + %s13034_s15]]   ;;  %s13038_s15 = smov 51  }
  0x5c   :  { %14624 = sst [smem:[#allocation98_spill]] %s13330_s24 }
  0x5d   :  { %14625 = sst [smem:[#allocation99_spill]] %s13335_s25 }
  0x5e   :  { %s13355_s25 = sld [smem:[%s14545_s0 + %s13036_s28]]   ;;  %s13040_s28 = smov 53  }
  0x5f   :  { %s13360_s13 = sld [smem:[%s14545_s0 + %s13037_s7]]   ;;  %s13041_s7 = smov 54  }
  0x60   :  { %s13365_s24 = sld [smem:[%s14545_s0 + %s13038_s15]]   ;;  %s13042_s15 = smov 55  }
  0x61   :  { %14626 = sst [smem:[#allocation100_spill]] %s13345_s9 }
  0x62   :  { %s13370_s5 = sld [smem:[%s14545_s0 + %s13039_s22]]   ;;  %s13043_s22 = smov 56  }
  0x63   :  { %s13380_s9 = sld [smem:[%s14545_s0 + %s13041_s7]]   ;;  %s13045_s7 = smov 58  }
  0x64   :  { %14627 = sst [smem:[#allocation101_spill]] %s13355_s25 }
  0x65   :  { %s13375_s25 = sld [smem:[%s14545_s0 + %s13040_s28]]   ;;  %s13044_s28 = smov 57  }
  0x66   :  { %14628 = sst [smem:[#allocation102_spill]] %s13365_s24 }
  0x67   :  { %s13385_s24 = sld [smem:[%s14545_s0 + %s13042_s15]]   ;;  %s13046_s15 = smov 59  }
  0x68   :  { %s13390_s29 = sld [smem:[%s14545_s0 + %s13043_s22]]   ;;  %s13047_s22 = smov 60  }
  0x69   :  { %14630 = sst [smem:[#allocation104_spill]] %s13380_s9 }
  0x6a   :  { %s13400_s9 = sld [smem:[%s14545_s0 + %s13045_s7]]   ;;  %s13049_s7 = smov 62  }
  0x6b   :  { %14629 = sst [smem:[#allocation103_spill]] %s13375_s25 }
  0x6c   :  { %s13395_s25 = sld [smem:[%s14545_s0 + %s13044_s28]]   ;;  %s13048_s28 = smov 61  }
  0x6d   :  { %14631 = sst [smem:[#allocation105_spill]] %s13385_s24 }
  0x6e   :  { %14632 = sst [smem:[#allocation106_spill]] %s13390_s29 }
  0x6f   :  { %s13405_s24 = sld [smem:[%s14545_s0 + %s13046_s15]]   ;;  %s13050_s15 = smov 63  }
  0x70   :  { %s13410_s29 = sld [smem:[%s14545_s0 + %s13047_s22]]   ;;  %s13051_s22 = smov 64  }
  0x71   :  { %s13420_s4 = sld [smem:[%s14545_s0 + %s13049_s7]]   ;;  %s13053_s7 = smov 66  }
  0x72   :  { %14633 = sst [smem:[#allocation107_spill]] %s13395_s25 }
  0x73   :  { %s13415_s25 = sld [smem:[%s14545_s0 + %s13048_s28]]   ;;  %s13052_s28 = smov 65  }
  0x74   :  { %s13430_s20 = sld [smem:[%s14545_s0 + %s13051_s22]]   ;;  %s13055_s22 = smov 68  }
  0x75   :  { %14634 = sst [smem:[#allocation108_spill]] %s13405_s24 }
  0x76   :  { %s13425_s24 = sld [smem:[%s14545_s0 + %s13050_s15]]   ;;  %s13054_s15 = smov 67  }
  0x77   :  { %s13440_s6 = sld [smem:[%s14545_s0 + %s13053_s7]]   ;;  %s13057_s7 = smov 70  }
  0x78   :  { %s13450_s14 = sld [smem:[%s14545_s0 + %s13055_s22]]  }
  0x79   :  { %14635 = sst [smem:[#allocation109_spill]] %s13415_s25 }
  0x7a   :  { %s13435_s25 = sld [smem:[%s14545_s0 + %s13052_s28]]   ;;  %s13056_s28 = smov 69  }
  0x7c   :  { %14636 = sst [smem:[#allocation110_spill]] %s13425_s24 }
  0x7d   :  { %14638 = sst [smem:[#allocation112_spill]] %s13440_s6 }
  0x7e   :  { %s13445_s24 = sld [smem:[%s14545_s0 + %s13054_s15]]   ;;  %s13058_s15 = smov 71  }
  0x7f   :  { %s13460_s6 = sld [smem:[%s14545_s0 + %s13057_s7]]  }
  0x80   :  { %14637 = sst [smem:[#allocation111_spill]] %s13435_s25 }
  0x81   :  { %s13455_s25 = sld [smem:[%s14545_s0 + %s13056_s28]]  }
  0x84   :  { %14639 = sst [smem:[#allocation113_spill]] %s13445_s24 }
  0x85   :  { %s13465_s24 = sld [smem:[%s14545_s0 + %s13058_s15]]  }
  0x86   :  { %148 = vsyncpa [#allocation3], 0 }
  0x87   :  { %149 = vsyncpa [#allocation6], 0 }
  0x88   :  { %150 = vsyncpa [#allocation9], 0 }
  0x89   :  { %151 = vsyncpa [#allocation12], 0 }
  0x8a   :  { %152 = vsyncpa [#allocation15], 0 }
  0x8b   :  { %153 = vsyncpa [#allocation18], 0 }
  0x8c   :  { %154 = vsyncpa [#allocation21], 0 }
  0x8d   :  { %155 = vsyncpa [#allocation24], 0 }
  0x8e   :  { %156 = vsyncpa [#allocation27], 0 }
  0x8f   :  { %157 = vsyncpa [#allocation30], 0 }
  0x90   :  { %158 = vsyncpa [#allocation33], 0 }
  0x91   :  { %159 = vsyncpa [#allocation36], 0 }
  0x92   :  { %160 = vsyncpa [#allocation39], 0 }
  0x93   :  { %161 = vsyncpa [#allocation42], 0 }
  0x94   :  { %162 = vsyncpa [#allocation4], 0  ;;  %s13059_s0 = smov [#allocation5]   ;;  %s13060_s23 = smov [#allocation8]  }
  0x95   :  { %s193_s22 = sshll.u32 %s13059_s0, 4  ;;  %s213_s26 = sshll.u32 %s13060_s23, 4  ;;  %s194_s22 = int_to_ptr.vmem [resolvable:$true] %s193_s22  ;;  %s214_s26 = int_to_ptr.vmem [resolvable:$true] %s213_s26 }
  0x96   :  { %s12342_s28 = scalar_lea.hbm %s13150_s8, 16 }
  0x97   :  { %p12343_p0 = scmp.ne.s32.totalorder %s13150_s8, %s12342_s28  ;;  %p12346_p1 = scmp.lt.u32.totalorder %s12342_s28, %s13150_s8 }
  0x99   :  { %p12348_p2 = pnand %p12346_p1, %p12343_p0 }
  0x9b   :  { %12351 = shalt.err (!%p12348_p2)
}
  0x9c   :  { %s12352_s1 = scalar_lea.vmem %s194_s22, 16  ;;  %s12356_s2 = scalar_lea.vmem %s194_s22, 32 }
  0x9d   :  { %p12353_p3 = scmp.ne.s32.totalorder %s194_s22, %s12352_s1  ;;  %p12357_p4 = scmp.lt.s32.totalorder %s194_s22, %s194_s22 }
  0x9e   :  { %p12358_p5 = scmp.lt.s32.totalorder %s12356_s2, %s12352_s1 }
  0xa0   :  { %p12359_p6 = por %p12358_p5, %p12357_p4 }
  0xa2   :  { %p12360_p7 = pnand %p12359_p6, %p12353_p3 }
  0xa4   :  { %12363 = shalt.err (!%p12360_p7)
}
  0xa5   :  { %196 = dma.hbm_to_vmem [thread:$0]  %s13150_s8, 16, %s194_s22, [#allocation6]  }
  0xa6   :  { %s12364_s7 = scalar_lea.hbm %s13160_s19, 16 }
  0xa7   :  { %p12365_p8 = scmp.ne.s32.totalorder %s13160_s19, %s12364_s7  ;;  %p12368_p9 = scmp.lt.u32.totalorder %s12364_s7, %s13160_s19 }
  0xa9   :  { %p12370_p10 = pnand %p12368_p9, %p12365_p8 }
  0xab   :  { %12373 = shalt.err (!%p12370_p10)
}
  0xac   :  { %s12374_s10 = scalar_lea.vmem %s214_s26, 16  ;;  %s12378_s11 = scalar_lea.vmem %s214_s26, 32 }
  0xad   :  { %p12375_p11 = scmp.ne.s32.totalorder %s214_s26, %s12374_s10  ;;  %p12379_p12 = scmp.lt.s32.totalorder %s214_s26, %s214_s26 }
  0xae   :  { %p12380_p13 = scmp.lt.s32.totalorder %s12378_s11, %s12374_s10 }
  0xb0   :  { %p12381_p0 = por %p12380_p13, %p12379_p12 }
  0xb2   :  { %p12382_p1 = pnand %p12381_p0, %p12375_p11 }
  0xb4   :  { %12385 = shalt.err (!%p12382_p1)
}
  0xb5   :  { %216 = dma.hbm_to_vmem [thread:$0]  %s13160_s19, 16, %s214_s26, [#allocation9]  }
  0xb6   :  { %s13061_s15 = smov [#allocation11]   ;;  %s13062_s16 = smov [#allocation14]  }
  0xb7   :  { %s237_s8 = sshll.u32 %s13061_s15, 4  ;;  %s257_s18 = sshll.u32 %s13062_s16, 4  ;;  %s238_s8 = int_to_ptr.vmem [resolvable:$true] %s237_s8  ;;  %s258_s18 = int_to_ptr.vmem [resolvable:$true] %s257_s18 }
  0xb8   :  { %s12386_s0 = scalar_lea.hbm %s13180_s12, 16 }
  0xb9   :  { %p12387_p2 = scmp.ne.s32.totalorder %s13180_s12, %s12386_s0  ;;  %p12390_p3 = scmp.lt.u32.totalorder %s12386_s0, %s13180_s12 }
  0xbb   :  { %p12392_p4 = pnand %p12390_p3, %p12387_p2 }
  0xbd   :  { %12395 = shalt.err (!%p12392_p4)
}
  0xbe   :  { %s12396_s22 = scalar_lea.vmem %s238_s8, 16  ;;  %s12400_s23 = scalar_lea.vmem %s238_s8, 32 }
  0xbf   :  { %p12397_p5 = scmp.ne.s32.totalorder %s238_s8, %s12396_s22  ;;  %p12401_p6 = scmp.lt.s32.totalorder %s238_s8, %s238_s8 }
  0xc0   :  { %p12402_p7 = scmp.lt.s32.totalorder %s12400_s23, %s12396_s22 }
  0xc2   :  { %p12403_p8 = por %p12402_p7, %p12401_p6 }
  0xc4   :  { %p12404_p9 = pnand %p12403_p8, %p12397_p5 }
  0xc6   :  { %12407 = shalt.err (!%p12404_p9)
}
  0xc7   :  { %240 = dma.hbm_to_vmem [thread:$0]  %s13180_s12, 16, %s238_s8, [#allocation12]  }
  0xc8   :  { %s12408_s19 = scalar_lea.hbm %s13190_s27, 16 }
  0xc9   :  { %p12409_p10 = scmp.ne.s32.totalorder %s13190_s27, %s12408_s19  ;;  %p12412_p11 = scmp.lt.u32.totalorder %s12408_s19, %s13190_s27 }
  0xcb   :  { %p12414_p12 = pnand %p12412_p11, %p12409_p10 }
  0xcd   :  { %12417 = shalt.err (!%p12414_p12)
}
  0xce   :  { %s12418_s26 = scalar_lea.vmem %s258_s18, 16  ;;  %s12422_s28 = scalar_lea.vmem %s258_s18, 32 }
  0xcf   :  { %p12419_p13 = scmp.ne.s32.totalorder %s258_s18, %s12418_s26  ;;  %p12423_p0 = scmp.lt.s32.totalorder %s258_s18, %s258_s18 }
  0xd0   :  { %p12424_p1 = scmp.lt.s32.totalorder %s12422_s28, %s12418_s26 }
  0xd2   :  { %p12425_p2 = por %p12424_p1, %p12423_p0 }
  0xd4   :  { %p12426_p3 = pnand %p12425_p2, %p12419_p13 }
  0xd6   :  { %12429 = shalt.err (!%p12426_p3)
}
  0xd7   :  { %260 = dma.hbm_to_vmem [thread:$0]  %s13190_s27, 16, %s258_s18, [#allocation15]  }
  0xd8   :  { %s13063_s1 = smov [#allocation17]   ;;  %s13064_s2 = smov [#allocation20]  }
  0xd9   :  { %s277_s12 = sshll.u32 %s13063_s1, 4  ;;  %s349_s7 = sshll.u32 %s13064_s2, 4  ;;  %s278_s12 = int_to_ptr.vmem [resolvable:$true] %s277_s12  ;;  %s350_s7 = int_to_ptr.vmem [resolvable:$true] %s349_s7 }
  0xda   :  { %s12430_s10 = scalar_lea.hbm %s13200_s30, 16 }
  0xdb   :  { %p12431_p4 = scmp.ne.s32.totalorder %s13200_s30, %s12430_s10  ;;  %p12434_p5 = scmp.lt.u32.totalorder %s12430_s10, %s13200_s30 }
  0xdd   :  { %p12436_p6 = pnand %p12434_p5, %p12431_p4 }
  0xdf   :  { %12439 = shalt.err (!%p12436_p6)
}
  0xe0   :  { %s12440_s11 = scalar_lea.vmem %s278_s12, 16  ;;  %s12444_s15 = scalar_lea.vmem %s278_s12, 32 }
  0xe1   :  { %p12441_p7 = scmp.ne.s32.totalorder %s278_s12, %s12440_s11  ;;  %p12445_p8 = scmp.lt.s32.totalorder %s278_s12, %s278_s12 }
  0xe2   :  { %p12446_p9 = scmp.lt.s32.totalorder %s12444_s15, %s12440_s11 }
  0xe4   :  { %p12447_p10 = por %p12446_p9, %p12445_p8 }
  0xe6   :  { %p12448_p11 = pnand %p12447_p10, %p12441_p7 }
  0xe8   :  { %12451 = shalt.err (!%p12448_p11)
}
  0xe9   :  { %280 = dma.hbm_to_vmem [thread:$0]  %s13200_s30, 16, %s278_s12, [#allocation18]  }
  0xea   :  { %s12452_s27 = scalar_lea.hbm %s13340_s17, 16 }
  0xeb   :  { %p12453_p12 = scmp.ne.s32.totalorder %s13340_s17, %s12452_s27  ;;  %p12456_p13 = scmp.lt.u32.totalorder %s12452_s27, %s13340_s17 }
  0xed   :  { %p12458_p0 = pnand %p12456_p13, %p12453_p12 }
  0xef   :  { %12461 = shalt.err (!%p12458_p0)
}
  0xf0   :  { %s12462_s8 = scalar_lea.vmem %s350_s7, 16  ;;  %s12466_s16 = scalar_lea.vmem %s350_s7, 32 }
  0xf1   :  { %p12463_p1 = scmp.ne.s32.totalorder %s350_s7, %s12462_s8  ;;  %p12467_p2 = scmp.lt.s32.totalorder %s350_s7, %s350_s7 }
  0xf2   :  { %p12468_p3 = scmp.lt.s32.totalorder %s12466_s16, %s12462_s8 }
  0xf4   :  { %p12469_p4 = por %p12468_p3, %p12467_p2 }
  0xf6   :  { %p12470_p5 = pnand %p12469_p4, %p12463_p1 }
  0xf8   :  { %12473 = shalt.err (!%p12470_p5)
}
  0xf9   :  { %352 = dma.hbm_to_vmem [thread:$0]  %s13340_s17, 16, %s350_s7, [#allocation21]  }
  0xfa   :  { %s13065_s18 = smov [#allocation23]   ;;  %s13066_s0 = smov [#allocation26]  }
  0xfb   :  { %s369_s30 = sshll.u32 %s13065_s18, 4  ;;  %s389_s22 = sshll.u32 %s13066_s0, 4  ;;  %s370_s30 = int_to_ptr.vmem [resolvable:$true] %s369_s30  ;;  %s390_s22 = int_to_ptr.vmem [resolvable:$true] %s389_s22 }
  0xfc   :  { %s12474_s23 = scalar_lea.hbm %s13350_s21, 16 }
  0xfd   :  { %p12475_p6 = scmp.ne.s32.totalorder %s13350_s21, %s12474_s23  ;;  %p12478_p7 = scmp.lt.u32.totalorder %s12474_s23, %s13350_s21 }
  0xff   :  { %p12480_p8 = pnand %p12478_p7, %p12475_p6 }
 0x101   :  { %12483 = shalt.err (!%p12480_p8)
}
 0x102   :  { %s12484_s19 = scalar_lea.vmem %s370_s30, 16  ;;  %s12488_s26 = scalar_lea.vmem %s370_s30, 32 }
 0x103   :  { %p12485_p9 = scmp.ne.s32.totalorder %s370_s30, %s12484_s19  ;;  %p12489_p10 = scmp.lt.s32.totalorder %s370_s30, %s370_s30 }
 0x104   :  { %p12490_p11 = scmp.lt.s32.totalorder %s12488_s26, %s12484_s19 }
 0x106   :  { %p12491_p12 = por %p12490_p11, %p12489_p10 }
 0x108   :  { %p12492_p13 = pnand %p12491_p12, %p12485_p9 }
 0x10a   :  { %12495 = shalt.err (!%p12492_p13)
}
 0x10b   :  { %372 = dma.hbm_to_vmem [thread:$0]  %s13350_s21, 16, %s370_s30, [#allocation24]  }
 0x10c   :  { %s12496_s17 = scalar_lea.hbm %s13360_s13, 16 }
 0x10d   :  { %p12497_p0 = scmp.ne.s32.totalorder %s13360_s13, %s12496_s17  ;;  %p12500_p1 = scmp.lt.u32.totalorder %s12496_s17, %s13360_s13 }
 0x10f   :  { %p12502_p2 = pnand %p12500_p1, %p12497_p0 }
 0x111   :  { %12505 = shalt.err (!%p12502_p2)
}
 0x112   :  { %s12506_s28 = scalar_lea.vmem %s390_s22, 16  ;;  %s12510_s1 = scalar_lea.vmem %s390_s22, 32 }
 0x113   :  { %p12507_p3 = scmp.ne.s32.totalorder %s390_s22, %s12506_s28  ;;  %p12511_p4 = scmp.lt.s32.totalorder %s390_s22, %s390_s22 }
 0x114   :  { %p12512_p5 = scmp.lt.s32.totalorder %s12510_s1, %s12506_s28 }
 0x116   :  { %p12513_p6 = por %p12512_p5, %p12511_p4 }
 0x118   :  { %p12514_p7 = pnand %p12513_p6, %p12507_p3 }
 0x11a   :  { %12517 = shalt.err (!%p12514_p7)
}
 0x11b   :  { %392 = dma.hbm_to_vmem [thread:$0]  %s13360_s13, 16, %s390_s22, [#allocation27]  }
 0x11c   :  { %s13067_s12 = smov [#allocation29]   ;;  %s13068_s2 = smov [#allocation32]  }
 0x11d   :  { %s409_s21 = sshll.u32 %s13067_s12, 4  ;;  %s437_s7 = sshll.u32 %s13068_s2, 4  ;;  %s410_s21 = int_to_ptr.vmem [resolvable:$true] %s409_s21  ;;  %s438_s7 = int_to_ptr.vmem [resolvable:$true] %s437_s7 }
 0x11e   :  { %s12518_s10 = scalar_lea.hbm %s13370_s5, 16 }
 0x11f   :  { %p12519_p8 = scmp.ne.s32.totalorder %s13370_s5, %s12518_s10  ;;  %p12522_p9 = scmp.lt.u32.totalorder %s12518_s10, %s13370_s5 }
 0x121   :  { %p12524_p10 = pnand %p12522_p9, %p12519_p8 }
 0x123   :  { %12527 = shalt.err (!%p12524_p10)
}
 0x124   :  { %s12528_s11 = scalar_lea.vmem %s410_s21, 16  ;;  %s12532_s15 = scalar_lea.vmem %s410_s21, 32 }
 0x125   :  { %p12529_p11 = scmp.ne.s32.totalorder %s410_s21, %s12528_s11  ;;  %p12533_p12 = scmp.lt.s32.totalorder %s410_s21, %s410_s21 }
 0x126   :  { %p12534_p13 = scmp.lt.s32.totalorder %s12532_s15, %s12528_s11 }
 0x128   :  { %p12535_p0 = por %p12534_p13, %p12533_p12 }
 0x12a   :  { %p12536_p1 = pnand %p12535_p0, %p12529_p11 }
 0x12c   :  { %12539 = shalt.err (!%p12536_p1)
}
 0x12d   :  { %412 = dma.hbm_to_vmem [thread:$0]  %s13370_s5, 16, %s410_s21, [#allocation30]  }
 0x12e   :  { %s12540_s13 = scalar_lea.hbm %s13400_s9, 16 }
 0x12f   :  { %p12541_p2 = scmp.ne.s32.totalorder %s13400_s9, %s12540_s13  ;;  %p12544_p3 = scmp.lt.u32.totalorder %s12540_s13, %s13400_s9 }
 0x131   :  { %p12546_p4 = pnand %p12544_p3, %p12541_p2 }
 0x133   :  { %12549 = shalt.err (!%p12546_p4)
}
 0x134   :  { %s12550_s27 = scalar_lea.vmem %s438_s7, 16  ;;  %s12554_s8 = scalar_lea.vmem %s438_s7, 32 }
 0x135   :  { %p12551_p5 = scmp.ne.s32.totalorder %s438_s7, %s12550_s27  ;;  %p12555_p6 = scmp.lt.s32.totalorder %s438_s7, %s438_s7 }
 0x136   :  { %p12556_p7 = scmp.lt.s32.totalorder %s12554_s8, %s12550_s27 }
 0x138   :  { %p12557_p8 = por %p12556_p7, %p12555_p6 }
 0x13a   :  { %p12558_p9 = pnand %p12557_p8, %p12551_p5 }
 0x13c   :  { %12561 = shalt.err (!%p12558_p9)
}
 0x13d   :  { %440 = dma.hbm_to_vmem [thread:$0]  %s13400_s9, 16, %s438_s7, [#allocation33]  }
 0x13e   :  { %s13069_s16 = smov [#allocation35]   ;;  %s13070_s18 = smov [#allocation38]  }
 0x13f   :  { %s457_s5 = sshll.u32 %s13069_s16, 4  ;;  %s477_s30 = sshll.u32 %s13070_s18, 4  ;;  %s458_s5 = int_to_ptr.vmem [resolvable:$true] %s457_s5  ;;  %s478_s30 = int_to_ptr.vmem [resolvable:$true] %s477_s30 }
 0x140   :  { %s12562_s0 = scalar_lea.hbm %s13410_s29, 16 }
 0x141   :  { %p12563_p10 = scmp.ne.s32.totalorder %s13410_s29, %s12562_s0  ;;  %p12566_p11 = scmp.lt.u32.totalorder %s12562_s0, %s13410_s29 }
 0x143   :  { %p12568_p12 = pnand %p12566_p11, %p12563_p10 }
 0x145   :  { %12571 = shalt.err (!%p12568_p12)
}
 0x146   :  { %s12572_s22 = scalar_lea.vmem %s458_s5, 16  ;;  %s12576_s23 = scalar_lea.vmem %s458_s5, 32 }
 0x147   :  { %p12573_p13 = scmp.ne.s32.totalorder %s458_s5, %s12572_s22  ;;  %p12577_p0 = scmp.lt.s32.totalorder %s458_s5, %s458_s5 }
 0x148   :  { %p12578_p1 = scmp.lt.s32.totalorder %s12576_s23, %s12572_s22 }
 0x14a   :  { %p12579_p2 = por %p12578_p1, %p12577_p0 }
 0x14c   :  { %p12580_p3 = pnand %p12579_p2, %p12573_p13 }
 0x14e   :  { %12583 = shalt.err (!%p12580_p3)
}
 0x14f   :  { %460 = dma.hbm_to_vmem [thread:$0]  %s13410_s29, 16, %s458_s5, [#allocation36]  }
 0x150   :  { %s12584_s9 = scalar_lea.hbm %s13420_s4, 16 }
 0x151   :  { %p12585_p4 = scmp.ne.s32.totalorder %s13420_s4, %s12584_s9  ;;  %p12588_p5 = scmp.lt.u32.totalorder %s12584_s9, %s13420_s4 }
 0x153   :  { %p12590_p6 = pnand %p12588_p5, %p12585_p4 }
 0x155   :  { %12593 = shalt.err (!%p12590_p6)
}
 0x156   :  { %s12594_s19 = scalar_lea.vmem %s478_s30, 16  ;;  %s12598_s26 = scalar_lea.vmem %s478_s30, 32 }
 0x157   :  { %p12595_p7 = scmp.ne.s32.totalorder %s478_s30, %s12594_s19  ;;  %p12599_p8 = scmp.lt.s32.totalorder %s478_s30, %s478_s30 }
 0x158   :  { %p12600_p9 = scmp.lt.s32.totalorder %s12598_s26, %s12594_s19 }
 0x15a   :  { %p12601_p10 = por %p12600_p9, %p12599_p8 }
 0x15c   :  { %p12602_p11 = pnand %p12601_p10, %p12595_p7 }
 0x15e   :  { %12605 = shalt.err (!%p12602_p11)
}
 0x15f   :  { %480 = dma.hbm_to_vmem [thread:$0]  %s13420_s4, 16, %s478_s30, [#allocation39]  }
 0x160   :  { %s13071_s17 = smov [#allocation41]   ;;  %s13072_s28 = smov [#allocation2]  }
 0x161   :  { %s497_s29 = sshll.u32 %s13071_s17, 4  ;;  %s183_s1 = sshll.u32 %s13072_s28, 4  ;;  %s498_s29 = int_to_ptr.vmem [resolvable:$true] %s497_s29  ;;  %s184_s1 = int_to_ptr.vmem [resolvable:$true] %s183_s1 }
 0x162   :  { %s12606_s12 = scalar_lea.hbm %s13430_s20, 16 }
 0x163   :  { %p12607_p12 = scmp.ne.s32.totalorder %s13430_s20, %s12606_s12  ;;  %p12610_p13 = scmp.lt.u32.totalorder %s12606_s12, %s13430_s20 }
 0x165   :  { %p12612_p0 = pnand %p12610_p13, %p12607_p12 }
 0x167   :  { %12615 = shalt.err (!%p12612_p0)
}
 0x168   :  { %s12616_s21 = scalar_lea.vmem %s498_s29, 16  ;;  %s12620_s2 = scalar_lea.vmem %s498_s29, 32 }
 0x169   :  { %p12617_p1 = scmp.ne.s32.totalorder %s498_s29, %s12616_s21  ;;  %p12621_p2 = scmp.lt.s32.totalorder %s498_s29, %s498_s29 }
 0x16a   :  { %p12622_p3 = scmp.lt.s32.totalorder %s12620_s2, %s12616_s21 }
 0x16c   :  { %p12623_p4 = por %p12622_p3, %p12621_p2 }
 0x16e   :  { %p12624_p5 = pnand %p12623_p4, %p12617_p1 }
 0x170   :  { %12627 = shalt.err (!%p12624_p5)
}
 0x171   :  { %500 = dma.hbm_to_vmem [thread:$0]  %s13430_s20, 16, %s498_s29, [#allocation42]  }
 0x172   :  { %s12628_s4 = scalar_lea.hbm %s13145_s3, 16 }
 0x173   :  { %p12629_p6 = scmp.ne.s32.totalorder %s13145_s3, %s12628_s4  ;;  %p12632_p7 = scmp.lt.u32.totalorder %s12628_s4, %s13145_s3 }
 0x175   :  { %p12634_p8 = pnand %p12632_p7, %p12629_p6 }
 0x177   :  { %12637 = shalt.err (!%p12634_p8)
}
 0x178   :  { %s12638_s7 = scalar_lea.vmem %s184_s1, 16  ;;  %s12642_s10 = scalar_lea.vmem %s184_s1, 32 }
 0x179   :  { %p12639_p9 = scmp.ne.s32.totalorder %s184_s1, %s12638_s7  ;;  %p12643_p10 = scmp.lt.s32.totalorder %s184_s1, %s184_s1 }
 0x17a   :  { %p12644_p11 = scmp.lt.s32.totalorder %s12642_s10, %s12638_s7 }
 0x17c   :  { %p12645_p12 = por %p12644_p11, %p12643_p10 }
 0x17e   :  { %p12646_p13 = pnand %p12645_p12, %p12639_p9 }
 0x180   :  { %12649 = shalt.err (!%p12646_p13)
}
 0x181   :  { %s14640_s11 = sld [smem:[#allocation67_spill]]  ;;  %s13073_s15 = smov [#allocation7]  }
 0x182   :  { %186 = dma.hbm_to_vmem [thread:$0]  %s13145_s3, 16, %s184_s1, [#allocation3]  }
 0x183   :  { %s203_s20 = sshll.u32 %s13073_s15, 4  ;;  %s13074_s13 = smov [#allocation10]   ;;  %s204_s20 = int_to_ptr.vmem [resolvable:$true] %s203_s20 }
 0x184   :  { %s227_s27 = sshll.u32 %s13074_s13, 4  ;;  %s228_s27 = int_to_ptr.vmem [resolvable:$true] %s227_s27 }
 0x187   :  { %s12650_s8 = scalar_lea.hbm %s14640_s11, 16 }
 0x188   :  { %p12651_p0 = scmp.ne.s32.totalorder %s14640_s11, %s12650_s8  ;;  %p12654_p1 = scmp.lt.u32.totalorder %s12650_s8, %s14640_s11 }
 0x18a   :  { %p12656_p2 = pnand %p12654_p1, %p12651_p0 }
 0x18c   :  { %12659 = shalt.err (!%p12656_p2)
}
 0x18d   :  { %s12660_s16 = scalar_lea.vmem %s204_s20, 16  ;;  %s12664_s5 = scalar_lea.vmem %s204_s20, 32 }
 0x18e   :  { %p12661_p3 = scmp.ne.s32.totalorder %s204_s20, %s12660_s16  ;;  %p12665_p4 = scmp.lt.s32.totalorder %s204_s20, %s204_s20 }
 0x18f   :  { %p12666_p5 = scmp.lt.s32.totalorder %s12664_s5, %s12660_s16 }
 0x191   :  { %p12667_p6 = por %p12666_p5, %p12665_p4 }
 0x193   :  { %p12668_p7 = pnand %p12667_p6, %p12661_p3 }
 0x195   :  { %12671 = shalt.err (!%p12668_p7)
}
 0x196   :  { %s14641_s3 = sld [smem:[#allocation70_spill]] }
 0x197   :  { %206 = dma.hbm_to_vmem [thread:$0]  %s14640_s11, 16, %s204_s20, [#allocation6]  }
 0x19c   :  { %s12672_s18 = scalar_lea.hbm %s14641_s3, 16 }
 0x19d   :  { %p12673_p8 = scmp.ne.s32.totalorder %s14641_s3, %s12672_s18  ;;  %p12676_p9 = scmp.lt.u32.totalorder %s12672_s18, %s14641_s3 }
 0x19f   :  { %p12678_p10 = pnand %p12676_p9, %p12673_p8 }
 0x1a1   :  { %12681 = shalt.err (!%p12678_p10)
}
 0x1a2   :  { %s12682_s30 = scalar_lea.vmem %s228_s27, 16  ;;  %s12686_s0 = scalar_lea.vmem %s228_s27, 32 }
 0x1a3   :  { %p12683_p11 = scmp.ne.s32.totalorder %s228_s27, %s12682_s30  ;;  %p12687_p12 = scmp.lt.s32.totalorder %s228_s27, %s228_s27 }
 0x1a4   :  { %p12688_p13 = scmp.lt.s32.totalorder %s12686_s0, %s12682_s30 }
 0x1a6   :  { %p12689_p0 = por %p12688_p13, %p12687_p12 }
 0x1a8   :  { %p12690_p1 = pnand %p12689_p0, %p12683_p11 }
 0x1aa   :  { %12693 = shalt.err (!%p12690_p1)
}
 0x1ab   :  { %s14642_s22 = sld [smem:[#allocation71_spill]]  ;;  %s13075_s23 = smov [#allocation13]  }
 0x1ac   :  { %230 = dma.hbm_to_vmem [thread:$0]  %s14641_s3, 16, %s228_s27, [#allocation9]  }
 0x1ad   :  { %s247_s9 = sshll.u32 %s13075_s23, 4  ;;  %s13076_s19 = smov [#allocation16]   ;;  %s248_s9 = int_to_ptr.vmem [resolvable:$true] %s247_s9 }
 0x1ae   :  { %s267_s26 = sshll.u32 %s13076_s19, 4  ;;  %s268_s26 = int_to_ptr.vmem [resolvable:$true] %s267_s26 }
 0x1b1   :  { %s12694_s17 = scalar_lea.hbm %s14642_s22, 16 }
 0x1b2   :  { %p12695_p2 = scmp.ne.s32.totalorder %s14642_s22, %s12694_s17  ;;  %p12698_p3 = scmp.lt.u32.totalorder %s12694_s17, %s14642_s22 }
 0x1b4   :  { %p12700_p4 = pnand %p12698_p3, %p12695_p2 }
 0x1b6   :  { %12703 = shalt.err (!%p12700_p4)
}
 0x1b7   :  { %s12704_s29 = scalar_lea.vmem %s248_s9, 16  ;;  %s12708_s28 = scalar_lea.vmem %s248_s9, 32 }
 0x1b8   :  { %p12705_p5 = scmp.ne.s32.totalorder %s248_s9, %s12704_s29  ;;  %p12709_p6 = scmp.lt.s32.totalorder %s248_s9, %s248_s9 }
 0x1b9   :  { %p12710_p7 = scmp.lt.s32.totalorder %s12708_s28, %s12704_s29 }
 0x1bb   :  { %p12711_p8 = por %p12710_p7, %p12709_p6 }
 0x1bd   :  { %p12712_p9 = pnand %p12711_p8, %p12705_p5 }
 0x1bf   :  { %12715 = shalt.err (!%p12712_p9)
}
 0x1c0   :  { %s14643_s1 = sld [smem:[#allocation72_spill]] }
 0x1c1   :  { %250 = dma.hbm_to_vmem [thread:$0]  %s14642_s22, 16, %s248_s9, [#allocation12]  }
 0x1c6   :  { %s12716_s12 = scalar_lea.hbm %s14643_s1, 16 }
 0x1c7   :  { %p12717_p10 = scmp.ne.s32.totalorder %s14643_s1, %s12716_s12  ;;  %p12720_p11 = scmp.lt.u32.totalorder %s12716_s12, %s14643_s1 }
 0x1c9   :  { %p12722_p12 = pnand %p12720_p11, %p12717_p10 }
 0x1cb   :  { %12725 = shalt.err (!%p12722_p12)
}
 0x1cc   :  { %s12726_s21 = scalar_lea.vmem %s268_s26, 16  ;;  %s12730_s2 = scalar_lea.vmem %s268_s26, 32 }
 0x1cd   :  { %p12727_p13 = scmp.ne.s32.totalorder %s268_s26, %s12726_s21  ;;  %p12731_p0 = scmp.lt.s32.totalorder %s268_s26, %s268_s26 }
 0x1ce   :  { %p12732_p1 = scmp.lt.s32.totalorder %s12730_s2, %s12726_s21 }
 0x1d0   :  { %p12733_p2 = por %p12732_p1, %p12731_p0 }
 0x1d2   :  { %p12734_p3 = pnand %p12733_p2, %p12727_p13 }
 0x1d4   :  { %12737 = shalt.err (!%p12734_p3)
}
 0x1d5   :  { %s14644_s4 = sld [smem:[#allocation73_spill]]  ;;  %s13077_s7 = smov [#allocation19]  }
 0x1d6   :  { %270 = dma.hbm_to_vmem [thread:$0]  %s14643_s1, 16, %s268_s26, [#allocation15]  }
 0x1d7   :  { %s287_s10 = sshll.u32 %s13077_s7, 4  ;;  %s13078_s11 = smov [#allocation22]   ;;  %s288_s10 = int_to_ptr.vmem [resolvable:$true] %s287_s10 }
 0x1d8   :  { %s359_s15 = sshll.u32 %s13078_s11, 4  ;;  %s360_s15 = int_to_ptr.vmem [resolvable:$true] %s359_s15 }
 0x1db   :  { %s12738_s20 = scalar_lea.hbm %s14644_s4, 16 }
 0x1dc   :  { %p12739_p4 = scmp.ne.s32.totalorder %s14644_s4, %s12738_s20  ;;  %p12742_p5 = scmp.lt.u32.totalorder %s12738_s20, %s14644_s4 }
 0x1de   :  { %p12744_p6 = pnand %p12742_p5, %p12739_p4 }
 0x1e0   :  { %12747 = shalt.err (!%p12744_p6)
}
 0x1e1   :  { %s12748_s13 = scalar_lea.vmem %s288_s10, 16  ;;  %s12752_s27 = scalar_lea.vmem %s288_s10, 32 }
 0x1e2   :  { %p12749_p7 = scmp.ne.s32.totalorder %s288_s10, %s12748_s13  ;;  %p12753_p8 = scmp.lt.s32.totalorder %s288_s10, %s288_s10 }
 0x1e3   :  { %p12754_p9 = scmp.lt.s32.totalorder %s12752_s27, %s12748_s13 }
 0x1e5   :  { %p12755_p10 = por %p12754_p9, %p12753_p8 }
 0x1e7   :  { %p12756_p11 = pnand %p12755_p10, %p12749_p7 }
 0x1e9   :  { %12759 = shalt.err (!%p12756_p11)
}
 0x1ea   :  { %s14645_s8 = sld [smem:[#allocation100_spill]] }
 0x1eb   :  { %290 = dma.hbm_to_vmem [thread:$0]  %s14644_s4, 16, %s288_s10, [#allocation18]  }
 0x1f0   :  { %s12760_s16 = scalar_lea.hbm %s14645_s8, 16 }
 0x1f1   :  { %p12761_p12 = scmp.ne.s32.totalorder %s14645_s8, %s12760_s16  ;;  %p12764_p13 = scmp.lt.u32.totalorder %s12760_s16, %s14645_s8 }
 0x1f3   :  { %p12766_p0 = pnand %p12764_p13, %p12761_p12 }
 0x1f5   :  { %12769 = shalt.err (!%p12766_p0)
}
 0x1f6   :  { %s12770_s5 = scalar_lea.vmem %s360_s15, 16  ;;  %s12774_s3 = scalar_lea.vmem %s360_s15, 32 }
 0x1f7   :  { %p12771_p1 = scmp.ne.s32.totalorder %s360_s15, %s12770_s5  ;;  %p12775_p2 = scmp.lt.s32.totalorder %s360_s15, %s360_s15 }
 0x1f8   :  { %p12776_p3 = scmp.lt.s32.totalorder %s12774_s3, %s12770_s5 }
 0x1fa   :  { %p12777_p4 = por %p12776_p3, %p12775_p2 }
 0x1fc   :  { %p12778_p5 = pnand %p12777_p4, %p12771_p1 }
 0x1fe   :  { %12781 = shalt.err (!%p12778_p5)
}
 0x1ff   :  { %s14646_s18 = sld [smem:[#allocation101_spill]]  ;;  %s13079_s30 = smov [#allocation25]  }
 0x200   :  { %362 = dma.hbm_to_vmem [thread:$0]  %s14645_s8, 16, %s360_s15, [#allocation21]  }
 0x201   :  { %s379_s0 = sshll.u32 %s13079_s30, 4  ;;  %s13080_s22 = smov [#allocation28]   ;;  %s380_s0 = int_to_ptr.vmem [resolvable:$true] %s379_s0 }
 0x202   :  { %s399_s23 = sshll.u32 %s13080_s22, 4  ;;  %s400_s23 = int_to_ptr.vmem [resolvable:$true] %s399_s23 }
 0x205   :  { %s12782_s9 = scalar_lea.hbm %s14646_s18, 16 }
 0x206   :  { %p12783_p6 = scmp.ne.s32.totalorder %s14646_s18, %s12782_s9  ;;  %p12786_p7 = scmp.lt.u32.totalorder %s12782_s9, %s14646_s18 }
 0x208   :  { %p12788_p8 = pnand %p12786_p7, %p12783_p6 }
 0x20a   :  { %12791 = shalt.err (!%p12788_p8)
}
 0x20b   :  { %s12792_s19 = scalar_lea.vmem %s380_s0, 16  ;;  %s12796_s26 = scalar_lea.vmem %s380_s0, 32 }
 0x20c   :  { %p12793_p9 = scmp.ne.s32.totalorder %s380_s0, %s12792_s19  ;;  %p12797_p10 = scmp.lt.s32.totalorder %s380_s0, %s380_s0 }
 0x20d   :  { %p12798_p11 = scmp.lt.s32.totalorder %s12796_s26, %s12792_s19 }
 0x20f   :  { %p12799_p12 = por %p12798_p11, %p12797_p10 }
 0x211   :  { %p12800_p13 = pnand %p12799_p12, %p12793_p9 }
 0x213   :  { %12803 = shalt.err (!%p12800_p13)
}
 0x214   :  { %s14647_s17 = sld [smem:[#allocation102_spill]] }
 0x215   :  { %382 = dma.hbm_to_vmem [thread:$0]  %s14646_s18, 16, %s380_s0, [#allocation24]  }
 0x21a   :  { %s12804_s29 = scalar_lea.hbm %s14647_s17, 16 }
 0x21b   :  { %p12805_p0 = scmp.ne.s32.totalorder %s14647_s17, %s12804_s29  ;;  %p12808_p1 = scmp.lt.u32.totalorder %s12804_s29, %s14647_s17 }
 0x21d   :  { %p12810_p2 = pnand %p12808_p1, %p12805_p0 }
 0x21f   :  { %12813 = shalt.err (!%p12810_p2)
}
 0x220   :  { %s12814_s28 = scalar_lea.vmem %s400_s23, 16  ;;  %s12818_s1 = scalar_lea.vmem %s400_s23, 32 }
 0x221   :  { %p12815_p3 = scmp.ne.s32.totalorder %s400_s23, %s12814_s28  ;;  %p12819_p4 = scmp.lt.s32.totalorder %s400_s23, %s400_s23 }
 0x222   :  { %p12820_p5 = scmp.lt.s32.totalorder %s12818_s1, %s12814_s28 }
 0x224   :  { %p12821_p6 = por %p12820_p5, %p12819_p4 }
 0x226   :  { %p12822_p7 = pnand %p12821_p6, %p12815_p3 }
 0x228   :  { %12825 = shalt.err (!%p12822_p7)
}
 0x229   :  { %s14648_s12 = sld [smem:[#allocation107_spill]]  ;;  %s13081_s21 = smov [#allocation31]  }
 0x22a   :  { %402 = dma.hbm_to_vmem [thread:$0]  %s14647_s17, 16, %s400_s23, [#allocation27]  }
 0x22b   :  { %s427_s2 = sshll.u32 %s13081_s21, 4  ;;  %s13082_s4 = smov [#allocation34]   ;;  %s428_s2 = int_to_ptr.vmem [resolvable:$true] %s427_s2 }
 0x22c   :  { %s447_s7 = sshll.u32 %s13082_s4, 4  ;;  %s448_s7 = int_to_ptr.vmem [resolvable:$true] %s447_s7 }
 0x22f   :  { %s12826_s10 = scalar_lea.hbm %s14648_s12, 16 }
 0x230   :  { %p12827_p8 = scmp.ne.s32.totalorder %s14648_s12, %s12826_s10  ;;  %p12830_p9 = scmp.lt.u32.totalorder %s12826_s10, %s14648_s12 }
 0x232   :  { %p12832_p10 = pnand %p12830_p9, %p12827_p8 }
 0x234   :  { %12835 = shalt.err (!%p12832_p10)
}
 0x235   :  { %s12836_s11 = scalar_lea.vmem %s428_s2, 16  ;;  %s12840_s15 = scalar_lea.vmem %s428_s2, 32 }
 0x236   :  { %p12837_p11 = scmp.ne.s32.totalorder %s428_s2, %s12836_s11  ;;  %p12841_p12 = scmp.lt.s32.totalorder %s428_s2, %s428_s2 }
 0x237   :  { %p12842_p13 = scmp.lt.s32.totalorder %s12840_s15, %s12836_s11 }
 0x239   :  { %p12843_p0 = por %p12842_p13, %p12841_p12 }
 0x23b   :  { %p12844_p1 = pnand %p12843_p0, %p12837_p11 }
 0x23d   :  { %12847 = shalt.err (!%p12844_p1)
}
 0x23e   :  { %s14649_s20 = sld [smem:[#allocation108_spill]] }
 0x23f   :  { %430 = dma.hbm_to_vmem [thread:$0]  %s14648_s12, 16, %s428_s2, [#allocation30]  }
 0x244   :  { %s12848_s13 = scalar_lea.hbm %s14649_s20, 16 }
 0x245   :  { %p12849_p2 = scmp.ne.s32.totalorder %s14649_s20, %s12848_s13  ;;  %p12852_p3 = scmp.lt.u32.totalorder %s12848_s13, %s14649_s20 }
 0x247   :  { %p12854_p4 = pnand %p12852_p3, %p12849_p2 }
 0x249   :  { %12857 = shalt.err (!%p12854_p4)
}
 0x24a   :  { %s12858_s27 = scalar_lea.vmem %s448_s7, 16  ;;  %s12862_s8 = scalar_lea.vmem %s448_s7, 32 }
 0x24b   :  { %p12859_p5 = scmp.ne.s32.totalorder %s448_s7, %s12858_s27  ;;  %p12863_p6 = scmp.lt.s32.totalorder %s448_s7, %s448_s7 }
 0x24c   :  { %p12864_p7 = scmp.lt.s32.totalorder %s12862_s8, %s12858_s27 }
 0x24e   :  { %p12865_p8 = por %p12864_p7, %p12863_p6 }
 0x250   :  { %p12866_p9 = pnand %p12865_p8, %p12859_p5 }
 0x252   :  { %12869 = shalt.err (!%p12866_p9)
}
 0x253   :  { %s14650_s16 = sld [smem:[#allocation109_spill]]  ;;  %s13083_s5 = smov [#allocation37]  }
 0x254   :  { %450 = dma.hbm_to_vmem [thread:$0]  %s14649_s20, 16, %s448_s7, [#allocation33]  }
 0x255   :  { %s467_s3 = sshll.u32 %s13083_s5, 4  ;;  %s13084_s18 = smov [#allocation40]   ;;  %s468_s3 = int_to_ptr.vmem [resolvable:$true] %s467_s3 }
 0x256   :  { %s487_s30 = sshll.u32 %s13084_s18, 4  ;;  %s488_s30 = int_to_ptr.vmem [resolvable:$true] %s487_s30 }
 0x259   :  { %s12870_s0 = scalar_lea.hbm %s14650_s16, 16 }
 0x25a   :  { %p12871_p10 = scmp.ne.s32.totalorder %s14650_s16, %s12870_s0  ;;  %p12874_p11 = scmp.lt.u32.totalorder %s12870_s0, %s14650_s16 }
 0x25c   :  { %p12876_p12 = pnand %p12874_p11, %p12871_p10 }
 0x25e   :  { %12879 = shalt.err (!%p12876_p12)
}
 0x25f   :  { %s12880_s22 = scalar_lea.vmem %s468_s3, 16  ;;  %s12884_s23 = scalar_lea.vmem %s468_s3, 32 }
 0x260   :  { %p12881_p13 = scmp.ne.s32.totalorder %s468_s3, %s12880_s22  ;;  %p12885_p0 = scmp.lt.s32.totalorder %s468_s3, %s468_s3 }
 0x261   :  { %p12886_p1 = scmp.lt.s32.totalorder %s12884_s23, %s12880_s22 }
 0x263   :  { %p12887_p2 = por %p12886_p1, %p12885_p0 }
 0x265   :  { %p12888_p3 = pnand %p12887_p2, %p12881_p13 }
 0x267   :  { %12891 = shalt.err (!%p12888_p3)
}
 0x268   :  { %s14651_s9 = sld [smem:[#allocation110_spill]] }
 0x269   :  { %470 = dma.hbm_to_vmem [thread:$0]  %s14650_s16, 16, %s468_s3, [#allocation36]  }
 0x26e   :  { %s12892_s19 = scalar_lea.hbm %s14651_s9, 16 }
 0x26f   :  { %p12893_p4 = scmp.ne.s32.totalorder %s14651_s9, %s12892_s19  ;;  %p12896_p5 = scmp.lt.u32.totalorder %s12892_s19, %s14651_s9 }
 0x271   :  { %p12898_p6 = pnand %p12896_p5, %p12893_p4 }
 0x273   :  { %12901 = shalt.err (!%p12898_p6)
}
 0x274   :  { %s12902_s26 = scalar_lea.vmem %s488_s30, 16  ;;  %s12906_s17 = scalar_lea.vmem %s488_s30, 32 }
 0x275   :  { %p12903_p7 = scmp.ne.s32.totalorder %s488_s30, %s12902_s26  ;;  %p12907_p8 = scmp.lt.s32.totalorder %s488_s30, %s488_s30 }
 0x276   :  { %p12908_p9 = scmp.lt.s32.totalorder %s12906_s17, %s12902_s26 }
 0x278   :  { %p12909_p10 = por %p12908_p9, %p12907_p8 }
 0x27a   :  { %p12910_p11 = pnand %p12909_p10, %p12903_p7 }
 0x27c   :  { %12913 = shalt.err (!%p12910_p11)
}
 0x27d   :  { %490 = dma.hbm_to_vmem [thread:$0]  %s14651_s9, 16, %s488_s30, [#allocation39]  }
 0x27e   :  { %s13085_s29 = smov [#allocation43]   ;;  %s12914_s1 = scalar_lea.hbm %s13455_s25, 16 }
 0x27f   :  { %s515_s28 = sshll.u32 %s13085_s29, 4  ;;  %p12915_p12 = scmp.ne.s32.totalorder %s13455_s25, %s12914_s1  ;;  %s516_s28 = int_to_ptr.vmem [resolvable:$true] %s515_s28 }
 0x280   :  { %p12918_p13 = scmp.lt.u32.totalorder %s12914_s1, %s13455_s25 }
 0x282   :  { %p12920_p0 = pnand %p12918_p13, %p12915_p12 }
 0x284   :  { %12923 = shalt.err (!%p12920_p0)
}
 0x285   :  { %s12924_s12 = scalar_lea.vmem %s516_s28, 16  ;;  %s12928_s21 = scalar_lea.vmem %s516_s28, 32 }
 0x286   :  { %p12925_p1 = scmp.ne.s32.totalorder %s516_s28, %s12924_s12  ;;  %p12929_p2 = scmp.lt.s32.totalorder %s516_s28, %s516_s28 }
 0x287   :  { %p12930_p3 = scmp.lt.s32.totalorder %s12928_s21, %s12924_s12 }
 0x289   :  { %p12931_p4 = por %p12930_p3, %p12929_p2 }
 0x28b   :  { %p12932_p5 = pnand %p12931_p4, %p12925_p1 }
 0x28d   :  { %12935 = shalt.err (!%p12932_p5)
}
 0x28e   :  { %518 = dma.hbm_to_vmem [thread:$0]  %s13455_s25, 16, %s516_s28, [#allocation42]  }
 0x28f   :  { %12958 = dma.done.wait [#allocation3], 16  }
 0x290   :  { %12959 = vsyncadd [#allocation3], 4294967280 }
 0x291   :  { %12960 = dma.done.wait [#allocation6], 32  }
 0x292   :  { %12961 = vsyncadd [#allocation6], 4294967264 }
 0x293   :  { %12962 = dma.done.wait [#allocation9], 32  }
 0x294   :  { %12963 = vsyncadd [#allocation9], 4294967264 }
 0x295   :  { %12964 = dma.done.wait [#allocation12], 32  }
 0x296   :  { %12965 = vsyncadd [#allocation12], 4294967264 }
 0x297   :  { %12966 = dma.done.wait [#allocation15], 32  }
 0x298   :  { %12967 = vsyncadd [#allocation15], 4294967264 }
 0x299   :  { %12968 = dma.done.wait [#allocation18], 32  }
 0x29a   :  { %12969 = vsyncadd [#allocation18], 4294967264 }
 0x29b   :  { %12970 = dma.done.wait [#allocation21], 32  }
 0x29c   :  { %12971 = vsyncadd [#allocation21], 4294967264 }
 0x29d   :  { %12972 = dma.done.wait [#allocation24], 32  }
 0x29e   :  { %12973 = vsyncadd [#allocation24], 4294967264 }
 0x29f   :  { %12974 = dma.done.wait [#allocation27], 32  }
 0x2a0   :  { %12975 = vsyncadd [#allocation27], 4294967264 }
 0x2a1   :  { %12976 = dma.done.wait [#allocation30], 32  }
 0x2a2   :  { %12977 = vsyncadd [#allocation30], 4294967264 }
 0x2a3   :  { %12978 = dma.done.wait [#allocation33], 32  }
 0x2a4   :  { %12979 = vsyncadd [#allocation33], 4294967264 }
 0x2a5   :  { %12980 = dma.done.wait [#allocation36], 32  }
 0x2a6   :  { %12981 = vsyncadd [#allocation36], 4294967264 }
 0x2a7   :  { %12982 = dma.done.wait [#allocation39], 32  }
 0x2a8   :  { %12983 = vsyncadd [#allocation39], 4294967264 }
 0x2a9   :  { %12984 = dma.done.wait [#allocation42], 32  }
 0x2aa   :  { %12985 = vsyncadd [#allocation42], 4294967264  ;;  %s14652_s25 = sld [smem:[#allocation60_spill]]  ;;  %s14653_s2 = sld [smem:[#allocation98_spill]]  ;;  %v13086_v0 = vmov 0   ;;  %v761_v12 = vlaneseq  ;;  %vm775_vm0 = vcmask 261120  }
 0x2ab   :  { %s14654_s4 = sld [smem:[#allocation105_spill]]  ;;  %11852 = vset.pattern.permute.xlu0 %v13086_v0  ;;  %11933 = vset.pattern.permute.xlu1 %v13086_v0  ;;  %s14655_s7 = sld [smem:[#allocation62_spill]]  ;;  %v13087_v15 = vmov 0.0   ;;  %v9916_v30 = vld [vmem:[#allocation22] ss:$0 sm:$0xff]  ;;  %vm954_vm3 = vcmask 64512  }
 0x2ac   :  { %v13583_v13 = vand.u32 127, %v761_v12  ;;  %s14656_s10 = sld [smem:[#allocation64_spill]]  ;;  %s13088_s11 = smov 96   ;;  %vm13617_vm4 = vmpackc.low %vm954_vm3, %vm954_vm3  ;;  %vm1042_vm5 = vcmask 130048   ;;  %vm2240_vm6 = vcmask 523264  }
 0x2ad   :  { %s13089_s15 = smov 88   ;;  %s13090_s20 = smov 120  }
 0x2ae   :  { %s13091_s13 = smov 64   ;;  %s13092_s27 = smov 80  }
 0x2af   :  { %s13093_s8 = smov 112   ;;  %s13094_s16 = smov 56  }
 0x2b0   :  { %v757_v1 = vld [vmem:[%s14652_s25] sm:$0xff]  ;;  %v687_v3 = vld [vmem:[%s14653_s2 + $0x8] sm:$0xff]  ;;  %v688_v4 = vld [vmem:[%s14653_s2 + $0x10] sm:$0xff]  ;;  %s13095_s5 = smov 72   ;;  %s13096_s3 = smov 104  }
 0x2b1   :  { %v686_v2 = vld [vmem:[%s14653_s2] sm:$0xff]  ;;  %764 = vperm.xlu0 %11852, %v757_v1   ;;  %v689_v5 = vld [vmem:[%s14653_s2 + $0x18] sm:$0xff]  ;;  %v758_v6 = vld [vmem:[%s14652_s25 + $0x8] sm:$0xff]  ;;  %s14659_s18 = sld [smem:[#allocation106_spill]]  ;;  %s13097_s30 = smov 48  }
 0x2b2   :  { %v11278_v7 = vpack.c.bf16 %v687_v3, %v686_v2  ;;  %v11282_v8 = vpack.c.bf16 %v689_v5, %v688_v4  ;;  %v710_v9 = vld [vmem:[%s14654_s4] sm:$0xff]  ;;  %v711_v10 = vld [vmem:[%s14654_s4 + $0x8] sm:$0xff]  ;;  %v712_v19 = vld [vmem:[%s14654_s4 + $0x10] sm:$0xff]  ;;  %s13098_s0 = smov 40   ;;  %s14660_s22 = sld [smem:[#allocation103_spill]] }
 0x2b3   :  { %v11286_v11 = vpack.c.bf16 %v711_v10, %v710_v9  ;;  %v713_v20 = vld [vmem:[%s14654_s4 + $0x18] sm:$0xff]  ;;  %v759_v25 = vld [vmem:[%s14655_s7] sm:$0xff]  ;;  %v760_v26 = vld [vmem:[%s14655_s7 + $0x8] sm:$0xff]  ;;  %s14661_s23 = sld [smem:[#allocation104_spill]]  ;;  %s14662_s9 = sld [smem:[#allocation99_spill]] }
 0x2b4   :  { %11279 = vmatprep.subr.bf16.mxu0 %v11278_v7  ;;  %v11290_v21 = vpack.c.bf16 %v713_v20, %v712_v19  ;;  %v13628_v42 = vld [vmem:[%s14656_s10 + $0x8] sm:$0xff]  ;;  %v13631_v45 = vld [vmem:[%s14656_s10] sm:$0xff]  ;;  %s14663_s19 = sld [smem:[#allocation113_spill]]  ;;  %s14664_s26 = sld [smem:[#allocation61_spill]] }
 0x2b5   :  { %767 = vperm.xlu0 %11852, %v758_v6   ;;  %11281 = vmatpush3.bf16.msra.mxu0 %v11278_v7  ;;  %s14666_s17 = sld [smem:[#allocation97_spill]]  ;;  %s14667_s29 = sld [smem:[#allocation112_spill]] }
 0x2b6   :  { %11283 = vmatprep.subr.bf16.mxu0 %v11282_v8  ;;  %11287 = vmatprep.subr.bf16.mxu1 %v11286_v11  ;;  %s14668_s28 = sld [smem:[#allocation75_spill]]  ;;  %s14669_s1 = sld [smem:[#allocation63_spill]] }
 0x2b7   :  { %11289 = vmatpush3.bf16.msra.mxu1 %v11286_v11  ;;  %s14670_s12 = sld [smem:[#allocation65_spill]]  ;;  %s14671_s21 = sld [smem:[#allocation76_spill]] }
 0x2b8   :  { %11291 = vmatprep.subr.bf16.mxu1 %v11290_v21  ;;  %s14672_s25 = sld [smem:[#allocation74_spill]]  ;;  %s14673_s2 = sld [smem:[#allocation68_spill]] }
 0x2b9   :  { %11285 = vmatpush3.bf16.msra.mxu0 %v11282_v8  ;;  %s14674_s4 = sld [smem:[#allocation66_spill]]  ;;  %s14675_s7 = sld [smem:[#allocation69_spill]] }
 0x2bb   :  { %11293 = vmatpush3.bf16.msra.mxu1 %v11290_v21 }
 0x330   :  { %v765_v14 = vpop.permute.xlu0 %764 }
 0x331   :  { %vm769_vm1 = vcmp.eq.s32.totalorder %v765_v14, %v13583_v13 }
 0x332   :  { %v9912_v16 = vsel %vm769_vm1, 1.0, %v13087_v15 }
 0x333   :  { %10589 = vmatprep.mubr.msk.f32.mxu0 %vm775_vm0, %v9912_v16 }
 0x334   :  { %v768_v17 = vpop.permute.xlu0 %767 }
 0x335   :  { %vm770_vm2 = vcmp.eq.s32.totalorder %v768_v17, %v13583_v13 }
 0x336   :  { %v9913_v18 = vsel %vm770_vm2, 1.0, %v13087_v15 }
 0x337   :  { %10590 = vmatmul.mubr.msk.f32.vlgmr.msra.gmra.mrb[0].mxu0 %vm775_vm0, %v9913_v18 }
 0x40a   :  { %v10591_v22 = vpop.f32.mrb[0].mxu0 }
 0x40b   :  { %v858_v23 = vmul.f32 5.656854, %v10591_v22  ;;  %v848_v24 = vpop.f32.mrb[1].mxu0 }
 0x40c   :  { %v857_v27 = vmul.f32 5.656854, %v848_v24 }
 0x40d   :  { %v13597_v29 = vadd.f32 %v858_v23, %v760_v26 }
 0x40e   :  { %v13595_v28 = vadd.f32 %v857_v27, %v759_v25 }
 0x410   :  { %10600 = vmatprep.mubr.msk.f32.mxu1 %vm775_vm0, %v13595_v28 }
 0x411   :  { %10601 = vmatmul.mubr.msk.f32.vlgmr.msra.gmra.mrb[0].mxu1 %vm775_vm0, %v13597_v29 }
 0x4e4   :  { %v10602_v31 = vpop.f32.mrb[0].mxu1 }
 0x4e5   :  { %v13603_v32 = vadd.f32 %v10602_v31, %v9916_v30  ;;  %v939_v33 = vpop.f32.mrb[1].mxu1 }
 0x4e6   :  { %v13605_v34 = vadd.f32 %v9916_v30, %v939_v33 }
 0x4e8   :  { %10607 = vmatprep.mubr.msk.f32.mxu0 %vm954_vm3, %v13605_v34  ;;  %v13611_v35 = vpack.i.bf16 %v13603_v32, %v13605_v34 }
 0x4ea   :  { %11854 = vrot.lane.b32.xlu1 %v13611_v35, %s13088_s11 }
 0x55c   :  { %v11855_v36 = vpop.permute.xlu1 %11854 }
 0x55d   :  { %v11857_v37 = vunpack.i.h.bf16 %v11855_v36  ;;  %v11856_v38 = vunpack.i.l.bf16 %v11855_v36 }
 0x55f   :  { %v11294_v40 = vpack.c.bf16 %v11857_v37, %v11856_v38 }
 0x561   :  { %11296 = vmatprep.subr.msk.bf16.mxu0 %vm13617_vm4, %v11294_v40 }
 0x562   :  { %11299 = vmatpush3.bf16.xpose.msk.msra.mxu0 %vm13617_vm4, %v11294_v40 }
 0x569   :  { %10608 = vmatmul.mubr.msk.f32.vlgmr.msra.gmra.mrb[2].mxu0 %vm954_vm3, %v13603_v32 }
 0x63c   :  { %v10609_v41 = vpop.f32.mrb[2].mxu0 }
 0x63d   :  { %v1039_v43 = vmul.f32 0.35355338, %v10609_v41  ;;  %v1029_v44 = vpop.f32.mrb[3].mxu0 }
 0x63e   :  { %v1038_v46 = vmul.f32 0.35355338, %v1029_v44 }
 0x63f   :  { %v1041_v47 = vadd.f32 %v1039_v43, %v13628_v42 }
 0x640   :  { %v1040_v48 = vadd.f32 %v1038_v46, %v13631_v45 }
 0x641   :  { %v1046_v49 = vsel %vm1042_vm5, %v1041_v47, -inf }
 0x642   :  { %1047 = vmax.xlane.f32.xlu0 %v1046_v49  ;;  %v1043_v50 = vsel %vm1042_vm5, %v1040_v48, -inf }
 0x643   :  { %1044 = vmax.xlane.f32.xlu1 %v1043_v50 }
 0x6cf   :  { %v1048_v51 = vpop.xlane.xlu0 %1047 }
 0x6d0   :  { %v1050_v52 = vsub.f32 %v1041_v47, %v1048_v51  ;;  %v1045_v53 = vpop.xlane.xlu1 %1044 }
 0x6d1   :  { %v1049_v54 = vsub.f32 %v1040_v48, %v1045_v53 }
 0x6d2   :  { %v1053_v55 = vmul.f32 1.442695, %v1050_v52 }
 0x6d3   :  { %v1051_v56 = vmul.f32 1.442695, %v1049_v54 }
 0x6d4   :  { %12104 = vpow2.f32 %v1053_v55 }
 0x6d5   :  { %12106 = vpow2.f32 %v1051_v56 }
 0x6de   :  { %v12105_v57 = vpop.eup %12104 }
 0x6df   :  { %v12107_v58 = vpop.eup %12106  ;;  %v1058_v59 = vsel %vm1042_vm5, %v12105_v57, 0.0 }
 0x6e0   :  { %1059 = vadd.xlane.f32.xlu1 %v1058_v59  ;;  %v1055_v60 = vsel %vm1042_vm5, %v12107_v58, 0.0 }
 0x6e1   :  { %1056 = vadd.xlane.f32.xlu0 %v1055_v60 }
 0x6f1   :  { %11864 = vrot.lane.b32.xlu1 %v13611_v35, %s13089_s15 }
 0x6f5   :  { %1152 = vrot.lane.b32.xlu1 %v13605_v34, %s13090_s20 }
 0x6f7   :  { %11859 = vrot.lane.b32.xlu0 %v13611_v35, %s13091_s13 }
 0x6fb   :  { %1154 = vrot.lane.b32.xlu0 %v13603_v32, %s13090_s20 }
 0x76d   :  { %v1060_v61 = vpop.xlane.xlu1 %1059 }
 0x76e   :  { %12108 = vrcp.f32 %v1060_v61  ;;  %v1057_v62 = vpop.xlane.xlu0 %1056 }
 0x76f   :  { %12110 = vrcp.f32 %v1057_v62 }
 0x771   :  { %v11865_v63 = vpop.permute.xlu1 %11864 }
 0x772   :  { %v11860_v0 = vpop.permute.xlu0 %11859  ;;  %v11867_v1 = vunpack.i.h.bf16 %v11865_v63  ;;  %v11866_v2 = vunpack.i.l.bf16 %v11865_v63  ;;  %v715_v63 = vld [vmem:[%s14659_s18 + $0x8] sm:$0xff] }
 0x773   :  { %v11862_v3 = vunpack.i.h.bf16 %v11860_v0  ;;  %v11861_v4 = vunpack.i.l.bf16 %v11860_v0  ;;  %10631 = vmatprep.subr.mxu0 %v715_v63  ;;  %v714_v0 = vld [vmem:[%s14659_s18] sm:$0xff] }
 0x774   :  { %v11304_v6 = vpack.c.bf16 %v11867_v1, %v11866_v2  ;;  %10632 = vmatpush3.msra.mxu0 %v715_v63 }
 0x775   :  { %v11300_v5 = vpack.c.bf16 %v11862_v3, %v11861_v4  ;;  %v1153_v11 = vpop.permute.xlu1 %1152  ;;  %10636 = vmatprep.subr.mxu0 %v714_v0 }
 0x776   :  { %v1155_v12 = vpop.permute.xlu0 %1154 }
 0x777   :  { %11301 = vmatprep.subr.bf16.mxu1 %v11300_v5 }
 0x778   :  { %v12109_v7 = vpop.eup %12108  ;;  %11303 = vmatpush3.bf16.msra.mxu1 %v11300_v5 }
 0x779   :  { %v12111_v8 = vpop.eup %12110  ;;  %11306 = vmatprep.subr.msk.bf16.mxu1 %vm13617_vm4, %v11304_v6  ;;  %v1064_v10 = vmul.f32 %v12109_v7, %v12105_v57 }
 0x77a   :  { %v1063_v9 = vmul.f32 %v12111_v8, %v12107_v58 }
 0x77c   :  { %10614 = vmatprep.mubr.msk.f32.mxu1 %vm1042_vm5, %v1063_v9 }
 0x77d   :  { %10615 = vmatmul.mubr.msk.f32.vlgmr.msra.gmra.mrb[2].mxu1 %vm1042_vm5, %v1064_v10 }
 0x77e   :  { %10621 = vmatprep.mubr.msk.f32.mxu1 %vm954_vm3, %v1153_v11 }
 0x781   :  { %11309 = vmatpush3.bf16.xpose.msk.msra.mxu1 %vm13617_vm4, %v11304_v6 }
 0x788   :  { %10622 = vmatmul.mubr.msk.f32.vlgmr.msra.gmra.mrb[4].mxu1 %vm954_vm3, %v1155_v12 }
 0x850   :  { %v13655_v14 = vpop.f32.mrb[2].mxu1 }
 0x851   :  { %v13657_v16 = vpop.f32.mrb[3].mxu1 }
 0x85b   :  { %v10623_v17 = vpop.f32.mrb[4].mxu1 }
 0x85c   :  { %v1244_v18 = vmul.f32 0.35355338, %v10623_v17  ;;  %v1234_v19 = vpop.f32.mrb[5].mxu1 }
 0x85d   :  { %v1243_v20 = vmul.f32 0.35355338, %v1234_v19 }
 0x85e   :  { %v1246_v21 = vadd.f32 %v1244_v18, %v13628_v42 }
 0x85f   :  { %v1245_v22 = vadd.f32 %v1243_v20, %v13631_v45 }
 0x860   :  { %v1250_v23 = vsel %vm1042_vm5, %v1246_v21, -inf }
 0x861   :  { %1251 = vmax.xlane.f32.xlu0 %v1250_v23  ;;  %v1247_v24 = vsel %vm1042_vm5, %v1245_v22, -inf }
 0x862   :  { %1248 = vmax.xlane.f32.xlu1 %v1247_v24 }
 0x8ee   :  { %v1252_v25 = vpop.xlane.xlu0 %1251 }
 0x8ef   :  { %v1254_v26 = vsub.f32 %v1246_v21, %v1252_v25  ;;  %v1249_v27 = vpop.xlane.xlu1 %1248 }
 0x8f0   :  { %v1253_v30 = vsub.f32 %v1245_v22, %v1249_v27 }
 0x8f1   :  { %v1257_v31 = vmul.f32 1.442695, %v1254_v26 }
 0x8f2   :  { %v1255_v33 = vmul.f32 1.442695, %v1253_v30 }
 0x8f3   :  { %12112 = vpow2.f32 %v1257_v31 }
 0x8f4   :  { %12114 = vpow2.f32 %v1255_v33 }
 0x8fd   :  { %v12113_v36 = vpop.eup %12112 }
 0x8fe   :  { %v12115_v37 = vpop.eup %12114  ;;  %v1262_v38 = vsel %vm1042_vm5, %v12113_v36, 0.0 }
 0x8ff   :  { %1263 = vadd.xlane.f32.xlu1 %v1262_v38  ;;  %v1259_v40 = vsel %vm1042_vm5, %v12115_v37, 0.0 }
 0x900   :  { %1260 = vadd.xlane.f32.xlu0 %v1259_v40  ;;  %v716_v40 = vld [vmem:[%s14659_s18 + $0x10] sm:$0xff] }
 0x910   :  { %11874 = vrot.lane.b32.xlu1 %v13611_v35, %s13092_s27 }
 0x914   :  { %1518 = vrot.lane.b32.xlu1 %v13605_v34, %s13093_s8 }
 0x916   :  { %11869 = vrot.lane.b32.xlu0 %v13611_v35, %s13094_s16 }
 0x918   :  { %11879 = vrot.lane.b32.xlu1 %v13611_v35, %s13095_s5 }
 0x91a   :  { %1520 = vrot.lane.b32.xlu0 %v13603_v32, %s13093_s8 }
 0x91c   :  { %1807 = vrot.lane.b32.xlu1 %v13603_v32, %s13096_s3 }
 0x91e   :  { %1805 = vrot.lane.b32.xlu0 %v13605_v34, %s13096_s3 }
 0x98c   :  { %v1264_v41 = vpop.xlane.xlu1 %1263 }
 0x98d   :  { %12116 = vrcp.f32 %v1264_v41  ;;  %v1261_v43 = vpop.xlane.xlu0 %1260 }
 0x98e   :  { %12118 = vrcp.f32 %v1261_v43 }
 0x990   :  { %v11875_v44 = vpop.permute.xlu1 %11874 }
 0x991   :  { %v11870_v46 = vpop.permute.xlu0 %11869  ;;  %v11877_v47 = vunpack.i.h.bf16 %v11875_v44  ;;  %v11876_v48 = vunpack.i.l.bf16 %v11875_v44 }
 0x992   :  { %v11872_v49 = vunpack.i.h.bf16 %v11870_v46  ;;  %v11871_v50 = vunpack.i.l.bf16 %v11870_v46 }
 0x993   :  { %v11314_v53 = vpack.c.bf16 %v11877_v47, %v11876_v48 }
 0x994   :  { %v1519_v51 = vpop.permute.xlu1 %1518  ;;  %v11310_v52 = vpack.c.bf16 %v11872_v49, %v11871_v50 }
 0x995   :  { %v1521_v60 = vpop.permute.xlu0 %1520 }
 0x996   :  { %11311 = vmatprep.subr.bf16.mxu1 %v11310_v52 }
 0x997   :  { %v12117_v54 = vpop.eup %12116  ;;  %11313 = vmatpush3.bf16.msra.mxu1 %v11310_v52 }
 0x998   :  { %v12119_v32 = vpop.eup %12118  ;;  %v11880_v55 = vpop.permute.xlu1 %11879  ;;  %11316 = vmatprep.subr.msk.bf16.mxu1 %vm13617_vm4, %v11314_v53  ;;  %v1268_v56 = vmul.f32 %v12117_v54, %v12113_v36 }
 0x999   :  { %v1267_v34 = vmul.f32 %v12119_v32, %v12115_v37  ;;  %v11882_v57 = vunpack.i.h.bf16 %v11880_v55  ;;  %v11881_v58 = vunpack.i.l.bf16 %v11880_v55  ;;  %v1806_v61 = vpop.permute.xlu0 %1805 }
 0x99b   :  { %10628 = vmatprep.mubr.msk.f32.mxu1 %vm1042_vm5, %v1267_v34  ;;  %v11324_v59 = vpack.c.bf16 %v11882_v57, %v11881_v58 }
 0x99c   :  { %10629 = vmatmul.mubr.msk.f32.vlgmr.msra.gmra.mrb[6].mxu1 %vm1042_vm5, %v1268_v56  ;;  %v1808_v62 = vpop.permute.xlu1 %1807 }
 0x99d   :  { %10645 = vmatprep.mubr.msk.f32.mxu1 %vm954_vm3, %v1519_v51 }
 0x9a0   :  { %11319 = vmatpush3.bf16.xpose.msk.msra.mxu1 %vm13617_vm4, %v11314_v53 }
 0x9a1   :  { %11326 = vmatprep.subr.msk.bf16.mxu1 %vm13617_vm4, %v11324_v59 }
 0x9a7   :  { %10646 = vmatmul.mubr.msk.f32.vlgmr.msra.gmra.mrb[8].mxu1 %vm954_vm3, %v1521_v60 }
 0x9a8   :  { %11329 = vmatpush3.bf16.xpose.msk.msra.mxu1 %vm13617_vm4, %v11324_v59  ;;  %10664 = vmatprep.mubr.msk.f32.mxu1 %vm954_vm3, %v1806_v61 }
 0x9af   :  { %10665 = vmatmul.mubr.msk.f32.vlgmr.msra.gmra.mrb[10].mxu1 %vm954_vm3, %v1808_v62 }
 0xa6f   :  { %v10630_v1 = vpop.f32.mrb[6].mxu1 }
 0xa70   :  { %v1347_v2 = vpop.f32.mrb[7].mxu1 }
 0xa71   :  { %10633 = vmatprep.mubr.msk.f32.mxu0 %vm954_vm3, %v1347_v2 }
 0xa72   :  { %10634 = vmatmul.mubr.msk.f32.vlgmr.msra.gmra.mrb[4].mxu0 %vm954_vm3, %v10630_v1 }
 0xa73   :  { %10638 = vmatprep.mubr.msk.f32.mxu0 %vm954_vm3, %v13657_v16  ;;  %10637 = vmatpush3.msra.mxu0 %v714_v0 }
 0xa7a   :  { %10639 = vmatmul.mubr.msk.f32.vlgmr.msra.gmra.mrb[4].mxu0 %vm954_vm3, %v13655_v14  ;;  %v10647_v3 = vpop.f32.mrb[8].mxu1 }
 0xa7b   :  { %v1610_v4 = vmul.f32 0.35355338, %v10647_v3  ;;  %v1600_v5 = vpop.f32.mrb[9].mxu1 }
 0xa7c   :  { %v1609_v6 = vmul.f32 0.35355338, %v1600_v5 }
 0xa7d   :  { %v1612_v7 = vadd.f32 %v1610_v4, %v13628_v42  ;;  %v717_v4 = vld [vmem:[%s14659_s18 + $0x18] sm:$0xff]  ;;  %s14677_s18 = sld [smem:[#allocation78_spill]] }
 0xa7e   :  { %v1611_v8 = vadd.f32 %v1609_v6, %v13631_v45 }
 0xa7f   :  { %v1616_v9 = vsel %vm1042_vm5, %v1612_v7, -inf }
 0xa80   :  { %1617 = vmax.xlane.f32.xlu1 %v1616_v9  ;;  %v1613_v10 = vsel %vm1042_vm5, %v1611_v8, -inf }
 0xa81   :  { %1614 = vmax.xlane.f32.xlu0 %v1613_v10 }
 0xa82   :  { %v10666_v11 = vpop.f32.mrb[10].mxu1 }
 0xa83   :  { %v1887_v12 = vpop.f32.mrb[11].mxu1  ;;  %v1897_v30 = vmul.f32 0.35355338, %v10666_v11 }
 0xa84   :  { %v1896_v26 = vmul.f32 0.35355338, %v1887_v12 }
 0xa85   :  { %v1899_v37 = vadd.f32 %v1897_v30, %v13628_v42  ;;  %v700_v30 = vld [vmem:[%s14660_s22 + $0x10] sm:$0xff] }
 0xa86   :  { %v1898_v33 = vadd.f32 %v1896_v26, %v13631_v45 }
 0xa87   :  { %v1903_v38 = vsel %vm1042_vm5, %v1899_v37, -inf }
 0xa88   :  { %v1900_v36 = vsel %vm1042_vm5, %v1898_v33, -inf }
 0xa91   :  { %11884 = vrot.lane.b32.xlu1 %v13611_v35, %s13097_s30 }
 0xa95   :  { %11889 = vrot.lane.b32.xlu1 %v13611_v35, %s13098_s0 }
 0xb0d   :  { %v1618_v14 = vpop.xlane.xlu1 %1617 }
 0xb0e   :  { %v1620_v16 = vsub.f32 %v1612_v7, %v1618_v14  ;;  %v1615_v17 = vpop.xlane.xlu0 %1614 }
 0xb0f   :  { %v1619_v18 = vsub.f32 %v1611_v8, %v1615_v17  ;;  %v9951_v8 = vld [vmem:[#allocation23] ss:$0 sm:$0xff] }
 0xb10   :  { %v1623_v19 = vmul.f32 1.442695, %v1620_v16 }
 0xb11   :  { %v1621_v20 = vmul.f32 1.442695, %v1619_v18  ;;  %v11885_v21 = vpop.permute.xlu1 %11884 }
 0xb12   :  { %v11887_v22 = vunpack.i.h.bf16 %v11885_v21  ;;  %v11886_v23 = vunpack.i.l.bf16 %v11885_v21 }
 0xb13   :  { %12120 = vpow2.f32 %v1621_v20 }
 0xb14   :  { %v11320_v24 = vpack.c.bf16 %v11887_v22, %v11886_v23  ;;  %12122 = vpow2.f32 %v1623_v19 }
 0xb15   :  { %v11890_v48 = vpop.permute.xlu1 %11889 }
 0xb16   :  { %11321 = vmatprep.subr.bf16.mxu0 %v11320_v24  ;;  %v11892_v53 = vunpack.i.h.bf16 %v11890_v48  ;;  %v11891_v54 = vunpack.i.l.bf16 %v11890_v48 }
 0xb17   :  { %11323 = vmatpush3.bf16.msra.mxu0 %v11320_v24 }
 0xb18   :  { %10655 = vmatprep.subr.mxu0 %v716_v40  ;;  %v11330_v56 = vpack.c.bf16 %v11892_v53, %v11891_v54 }
 0xb1d   :  { %v12121_v25 = vpop.eup %12120 }
 0xb1e   :  { %v1625_v27 = vsel %vm1042_vm5, %v12121_v25, 0.0  ;;  %v12123_v35 = vpop.eup %12122 }
 0xb1f   :  { %1626 = vadd.xlane.f32.xlu0 %v1625_v27  ;;  %v1628_v31 = vsel %vm1042_vm5, %v12123_v35, 0.0  ;;  %v698_v27 = vld [vmem:[%s14660_s22] sm:$0xff] }
 0xb23   :  { %1629 = vadd.xlane.f32.xlu0 %v1628_v31 }
 0xb27   :  { %1901 = vmax.xlane.f32.xlu0 %v1900_v36 }
 0xb2b   :  { %1904 = vmax.xlane.f32.xlu0 %v1903_v38  ;;  %v703_v38 = vld [vmem:[%s14661_s23 + $0x8] sm:$0xff] }
 0xbac   :  { %v1627_v41 = vpop.xlane.xlu0 %1626 }
 0xbad   :  { %12124 = vrcp.f32 %v1627_v41 }
 0xbb0   :  { %v1630_v43 = vpop.xlane.xlu0 %1629 }
 0xbb1   :  { %12126 = vrcp.f32 %v1630_v43  ;;  %v705_v43 = vld [vmem:[%s14661_s23 + $0x18] sm:$0xff] }
 0xbb4   :  { %v1902_v44 = vpop.xlane.xlu0 %1901 }
 0xbb5   :  { %v1906_v46 = vsub.f32 %v1898_v33, %v1902_v44  ;;  %v701_v33 = vld [vmem:[%s14660_s22 + $0x18] sm:$0xff] }
 0xbb6   :  { %v11338_v36 = vpack.c.bf16 %v701_v33, %v700_v30  ;;  %v739_v30 = vld [vmem:[%s14663_s19 + $0x8] sm:$0xff] }
 0xbb7   :  { %v12125_v47 = vpop.eup %12124  ;;  %v1908_v49 = vmul.f32 1.442695, %v1906_v46  ;;  %v706_v46 = vld [vmem:[%s14661_s23 + $0x20] sm:$0xff] }
 0xbb8   :  { %v1905_v50 = vpop.xlane.xlu0 %1904  ;;  %v1633_v51 = vmul.f32 %v12125_v47, %v12121_v25  ;;  %v707_v47 = vld [vmem:[%s14661_s23 + $0x28] sm:$0xff] }
 0xbb9   :  { %12128 = vpow2.f32 %v1908_v49  ;;  %v1907_v52 = vsub.f32 %v1899_v37, %v1905_v50  ;;  %v702_v37 = vld [vmem:[%s14661_s23] sm:$0xff]  ;;  %v11350_v48 = vpack.c.bf16 %v707_v47, %v706_v46 }
 0xbba   :  { %10652 = vmatprep.mubr.msk.f32.mxu0 %vm1042_vm5, %v1633_v51  ;;  %v11342_v41 = vpack.c.bf16 %v703_v38, %v702_v37 }
 0xbbb   :  { %v12127_v32 = vpop.eup %12126  ;;  %v1910_v55 = vmul.f32 1.442695, %v1907_v52 }
 0xbbc   :  { %v1634_v34 = vmul.f32 %v12127_v32, %v12123_v35  ;;  %v699_v35 = vld [vmem:[%s14660_s22 + $0x8] sm:$0xff]  ;;  %s14678_s22 = sld [smem:[#allocation93_spill]] }
 0xbbd   :  { %12130 = vpow2.f32 %v1910_v55  ;;  %v11334_v31 = vpack.c.bf16 %v699_v35, %v698_v27  ;;  %v9952_v55 = vld [vmem:[#allocation26] ss:$0 sm:$0xff]  ;;  %v738_v35 = vld [vmem:[%s14663_s19] sm:$0xff] }
 0xbbe   :  { %10653 = vmatmul.mubr.msk.f32.vlgmr.msra.gmra.mrb[6].mxu0 %vm1042_vm5, %v1634_v34  ;;  %v11358_v33 = vpack.c.bf16 %v739_v30, %v738_v35 }
 0xbbf   :  { %10656 = vmatpush3.msra.mxu0 %v716_v40  ;;  %11335 = vmatprep.subr.bf16.mxu1 %v11334_v31  ;;  %v704_v40 = vld [vmem:[%s14661_s23 + $0x10] sm:$0xff] }
 0xbc0   :  { %11331 = vmatprep.subr.bf16.mxu0 %v11330_v56  ;;  %11337 = vmatpush3.bf16.msra.mxu1 %v11334_v31  ;;  %v11346_v44 = vpack.c.bf16 %v705_v43, %v704_v40  ;;  %v740_v31 = vld [vmem:[%s14663_s19 + $0x10] sm:$0xff] }
 0xbc1   :  { %11339 = vmatprep.subr.bf16.mxu1 %v11338_v36 }
 0xbc3   :  { %v12129_v57 = vpop.eup %12128 }
 0xbc4   :  { %v1912_v58 = vsel %vm1042_vm5, %v12129_v57, 0.0  ;;  %11341 = vmatpush3.bf16.msra.mxu1 %v11338_v36  ;;  %v741_v36 = vld [vmem:[%s14663_s19 + $0x18] sm:$0xff]  ;;  %s14685_s19 = sld [smem:[#allocation85_spill]] }
 0xbc5   :  { %1913 = vadd.xlane.f32.xlu0 %v1912_v58  ;;  %v11362_v37 = vpack.c.bf16 %v741_v36, %v740_v31  ;;  %11359 = vmatprep.subr.bf16.mxu1 %v11358_v33 }
 0xbc7   :  { %v12131_v59 = vpop.eup %12130 }
 0xbc8   :  { %v1915_v60 = vsel %vm1042_vm5, %v12131_v59, 0.0 }
 0xbc9   :  { %1916 = vadd.xlane.f32.xlu0 %v1915_v60 }
 0xc52   :  { %v1914_v61 = vpop.xlane.xlu0 %1913 }
 0xc53   :  { %12132 = vrcp.f32 %v1914_v61 }
 0xc56   :  { %v1917_v62 = vpop.xlane.xlu0 %1916 }
 0xc57   :  { %12134 = vrcp.f32 %v1917_v62 }
 0xc5d   :  { %v12133_v63 = vpop.eup %12132 }
 0xc5e   :  { %v1920_v3 = vmul.f32 %v12133_v63, %v12129_v57  ;;  %v708_v63 = vld [vmem:[%s14661_s23 + $0x30] sm:$0xff] }
 0xc61   :  { %v12135_v2 = vpop.eup %12134 }
 0xc62   :  { %v1921_v5 = vmul.f32 %v12135_v2, %v12131_v59  ;;  %v9954_v2 = vld [vmem:[%s14662_s9] ss:$0 sm:$0xff]  ;;  %s14684_s9 = sld [smem:[#allocation86_spill]] }
 0xc91   :  { %v10654_v0 = vpop.f32.mrb[6].mxu0 }
 0xc92   :  { %v1713_v1 = vpop.f32.mrb[7].mxu0 }
 0xc93   :  { %10657 = vmatprep.mubr.msk.f32.mxu0 %vm954_vm3, %v1713_v1 }
 0xc94   :  { %10658 = vmatmul.mubr.msk.f32.vlgmr.msra.gmra.mrb[4].mxu0 %vm954_vm3, %v10654_v0  ;;  %v709_v0 = vld [vmem:[%s14661_s23 + $0x38] sm:$0xff]  ;;  %s14679_s23 = sld [smem:[#allocation91_spill]] }
 0xc95   :  { %11333 = vmatpush3.bf16.msra.mxu0 %v11330_v56  ;;  %10671 = vmatprep.mubr.msk.f32.mxu0 %vm1042_vm5, %v1920_v3  ;;  %v9953_v56 = vld [vmem:[#allocation25] ss:$0 sm:$0xff]  ;;  %v11354_v1 = vpack.c.bf16 %v709_v0, %v708_v63 }
 0xc96   :  { %10674 = vmatprep.subr.mxu0 %v717_v4 }
 0xc98   :  { %10672 = vmatmul.mubr.msk.f32.vlgmr.msra.gmra.mrb[8].mxu0 %vm1042_vm5, %v1921_v5 }
 0xc99   :  { %10675 = vmatpush3.msra.mxu0 %v717_v4 }
 0xc9a   :  { %11343 = vmatprep.subr.bf16.mxu0 %v11342_v41 }
 0xd6b   :  { %v10673_v6 = vpop.f32.mrb[8].mxu0 }
 0xd6c   :  { %v2000_v7 = vpop.f32.mrb[9].mxu0 }
 0xd6d   :  { %10676 = vmatprep.mubr.msk.f32.mxu0 %vm954_vm3, %v2000_v7 }
 0xd6e   :  { %10677 = vmatmul.mubr.msk.f32.vlgmr.msra.gmra.mrb[4].mxu0 %vm954_vm3, %v10673_v6 }
 0xd6f   :  { %11345 = vmatpush3.bf16.msra.mxu0 %v11342_v41 }
 0xd70   :  { %11347 = vmatprep.subr.bf16.mxu0 %v11346_v44 }
 0xd73   :  { %11349 = vmatpush3.bf16.msra.mxu0 %v11346_v44 }
 0xd74   :  { %11351 = vmatprep.subr.bf16.mxu0 %v11350_v48 }
 0xd77   :  { %11353 = vmatpush3.bf16.msra.mxu0 %v11350_v48  ;;  %v9960_v48 = vld [vmem:[#allocation29] ss:$0 sm:$0xff] }
 0xd78   :  { %11355 = vmatprep.subr.bf16.mxu0 %v11354_v1 }
 0xd7b   :  { %11357 = vmatpush3.bf16.msra.mxu0 %v11354_v1 }
 0xe41   :  { %v10678_v9 = vpop.f32.mrb[4].mxu0 }
 0xe42   :  { %v2099_v10 = vadd.f32 %v10678_v9, %v9951_v8  ;;  %v2081_v11 = vpop.f32.mrb[5].mxu0  ;;  %v9957_v9 = vld [vmem:[#allocation20] ss:$0 sm:$0xff] }
 0xe43   :  { %v2098_v12 = vadd.f32 %v9951_v8, %v2081_v11 }
 0xe44   :  { %v2101_v14 = vadd.f32 %v2099_v10, %v13597_v29 }
 0xe45   :  { %v2100_v16 = vadd.f32 %v2098_v12, %v13595_v28 }
 0xe46   :  { %v2105_v17 = vsel %vm775_vm0, %v2101_v14, 0.0 }
 0xe47   :  { %2106 = vadd.xlane.f32.xlu1 %v2105_v17  ;;  %v2102_v18 = vsel %vm775_vm0, %v2100_v16, 0.0 }
 0xe48   :  { %2103 = vadd.xlane.f32.xlu0 %v2102_v18 }
 0xed4   :  { %v2107_v19 = vpop.xlane.xlu1 %2106 }
 0xed5   :  { %v2110_v20 = vmul.f32 0.03125, %v2107_v19  ;;  %v2104_v21 = vpop.xlane.xlu0 %2103 }
 0xed6   :  { %v2109_v22 = vmul.f32 0.03125, %v2104_v21 }
 0xed7   :  { %v2112_v23 = vsub.f32 %v2101_v14, %v2110_v20 }
 0xed8   :  { %v2111_v24 = vsub.f32 %v2100_v16, %v2109_v22 }
 0xed9   :  { %v2114_v29 = vmul.f32 %v2112_v23, %v2112_v23 }
 0xeda   :  { %v2113_v25 = vmul.f32 %v2111_v24, %v2111_v24 }
 0xedb   :  { %v2118_v26 = vsel %vm775_vm0, %v2114_v29, 0.0 }
 0xedc   :  { %v2115_v28 = vsel %vm775_vm0, %v2113_v25, 0.0 }
 0xedd   :  { %2116 = vadd.xlane.f32.xlu0 %v2115_v28 }
 0xee1   :  { %2119 = vadd.xlane.f32.xlu0 %v2118_v26 }
 0xf6a   :  { %v2117_v49 = vpop.xlane.xlu0 %2116 }
 0xf6b   :  { %v2121_v50 = vmul.f32 0.03125, %v2117_v49 }
 0xf6d   :  { %v2123_v51 = vadd.f32 1e-05, %v2121_v50  ;;  %v9961_v50 = vld [vmem:[#allocation28] ss:$0 sm:$0xff] }
 0xf6e   :  { %v2120_v52 = vpop.xlane.xlu0 %2119 }
 0xf6f   :  { %12136 = vrsqrt.f32 %v2123_v51  ;;  %v2122_v53 = vmul.f32 0.03125, %v2120_v52 }
 0xf71   :  { %v2124_v54 = vadd.f32 1e-05, %v2122_v53 }
 0xf73   :  { %12138 = vrsqrt.f32 %v2124_v54 }
 0xf79   :  { %v12137_v32 = vpop.eup %12136 }
 0xf7a   :  { %v2127_v34 = vmul.f32 %v12137_v32, %v2111_v24 }
 0xf7c   :  { %v2135_v57 = vmul.f32 %v9952_v55, %v2127_v34  ;;  %v9962_v34 = vld [vmem:[#allocation34] ss:$0 sm:$0xff] }
 0xf7d   :  { %v12139_v58 = vpop.eup %12138 }
 0xf7e   :  { %v2128_v59 = vmul.f32 %v12139_v58, %v2112_v23  ;;  %v2143_v60 = vadd.f32 %v9953_v56, %v2135_v57 }
 0xf80   :  { %v2136_v61 = vmul.f32 %v9952_v55, %v2128_v59  ;;  %10687 = vmatprep.mubr.msk.f32.mxu1 %vm775_vm0, %v2143_v60 }
 0xf82   :  { %v2144_v62 = vadd.f32 %v9953_v56, %v2136_v61 }
 0xf84   :  { %10688 = vmatmul.mubr.msk.f32.vlgmr.msra.gmra.mrb[12].mxu1 %vm775_vm0, %v2144_v62 }
 0xf85   :  { %11361 = vmatpush3.bf16.msra.mxu1 %v11358_v33 }
 0xf86   :  { %11363 = vmatprep.subr.bf16.mxu1 %v11362_v37 }
 0xf89   :  { %11365 = vmatpush3.bf16.msra.mxu1 %v11362_v37 }
0x1057   :  { %v10689_v3 = vpop.f32.mrb[12].mxu1 }
0x1058   :  { %v2229_v4 = vadd.f32 %v10689_v3, %v9954_v2  ;;  %v2223_v5 = vpop.f32.mrb[13].mxu1 }
0x1059   :  { %v2224_v6 = vadd.f32 %v9954_v2, %v2223_v5 }
0x105a   :  { %v2233_v8 = vmax.f32 %v2229_v4, 0.0 }
0x105b   :  { %v2232_v7 = vmax.f32 %v2224_v6, 0.0 }
0x105d   :  { %10706 = vmatprep.mubr.msk.f32.mxu0 %vm2240_vm6, %v2232_v7 }
0x105e   :  { %10707 = vmatmul.mubr.msk.f32.vlgmr.msra.gmra.mrb[10].mxu0 %vm2240_vm6, %v2233_v8 }
0x1131   :  { %v10708_v10 = vpop.f32.mrb[10].mxu0 }
0x1132   :  { %v2313_v11 = vpop.f32.mrb[11].mxu0  ;;  %v2319_v12 = vadd.f32 %v10708_v10, %v9957_v9 }
0x1133   :  { %v2314_v14 = vadd.f32 %v9957_v9, %v2313_v11 }
0x1134   :  { %v2323_v18 = vadd.f32 %v2319_v12, %v2144_v62 }
0x1135   :  { %v2322_v16 = vadd.f32 %v2314_v14, %v2143_v60 }
0x1136   :  { %v2327_v19 = vsel %vm775_vm0, %v2323_v18, 0.0 }
0x1137   :  { %v2324_v17 = vsel %vm775_vm0, %v2322_v16, 0.0 }
0x1138   :  { %2325 = vadd.xlane.f32.xlu0 %v2324_v17 }
0x113c   :  { %2328 = vadd.xlane.f32.xlu0 %v2327_v19 }
0x11c5   :  { %v2326_v20 = vpop.xlane.xlu0 %2325 }
0x11c6   :  { %v2330_v21 = vmul.f32 0.03125, %v2326_v20 }
0x11c8   :  { %v2332_v22 = vsub.f32 %v2322_v16, %v2330_v21 }
0x11c9   :  { %v2329_v23 = vpop.xlane.xlu0 %2328 }
0x11ca   :  { %v2331_v24 = vmul.f32 0.03125, %v2329_v23  ;;  %v2334_v25 = vmul.f32 %v2332_v22, %v2332_v22 }
0x11cc   :  { %v2333_v28 = vsub.f32 %v2323_v18, %v2331_v24  ;;  %v2336_v29 = vsel %vm775_vm0, %v2334_v25, 0.0 }
0x11cd   :  { %2337 = vadd.xlane.f32.xlu0 %v2336_v29 }
0x11ce   :  { %v2335_v26 = vmul.f32 %v2333_v28, %v2333_v28 }
0x11d0   :  { %v2339_v27 = vsel %vm775_vm0, %v2335_v26, 0.0 }
0x11d1   :  { %2340 = vadd.xlane.f32.xlu0 %v2339_v27 }
0x125a   :  { %v2338_v38 = vpop.xlane.xlu0 %2337 }
0x125b   :  { %v2342_v40 = vmul.f32 0.03125, %v2338_v38 }
0x125d   :  { %v2344_v41 = vadd.f32 1e-05, %v2342_v40 }
0x125e   :  { %v2341_v43 = vpop.xlane.xlu0 %2340 }
0x125f   :  { %12140 = vrsqrt.f32 %v2344_v41  ;;  %v2343_v44 = vmul.f32 0.03125, %v2341_v43 }
0x1261   :  { %v2345_v46 = vadd.f32 1e-05, %v2343_v44 }
0x1263   :  { %12142 = vrsqrt.f32 %v2345_v46 }
0x1269   :  { %v12141_v47 = vpop.eup %12140 }
0x126a   :  { %v2348_v49 = vmul.f32 %v12141_v47, %v2332_v22 }
0x126c   :  { %v2356_v51 = vmul.f32 %v9960_v48, %v2348_v49 }
0x126d   :  { %v12143_v52 = vpop.eup %12142 }
0x126e   :  { %v2349_v53 = vmul.f32 %v12143_v52, %v2333_v28  ;;  %v13758_v54 = vadd.f32 %v9961_v50, %v2356_v51 }
0x1270   :  { %v2357_v32 = vmul.f32 %v9960_v48, %v2349_v53  ;;  %10717 = vmatprep.mubr.msk.f32.mxu1 %vm775_vm0, %v13758_v54 }
0x1272   :  { %v13762_v55 = vadd.f32 %v9961_v50, %v2357_v32 }
0x1274   :  { %10718 = vmatmul.mubr.msk.f32.vlgmr.msra.gmra.mrb[14].mxu1 %vm775_vm0, %v13762_v55 }
0x1347   :  { %v10719_v56 = vpop.f32.mrb[14].mxu1 }
0x1348   :  { %v13766_v57 = vadd.f32 %v10719_v56, %v9962_v34  ;;  %v2444_v58 = vpop.f32.mrb[15].mxu1 }
0x1349   :  { %v13768_v59 = vadd.f32 %v9962_v34, %v2444_v58 }
0x134b   :  { %10724 = vmatprep.mubr.msk.f32.mxu1 %vm954_vm3, %v13768_v59  ;;  %v13774_v60 = vpack.i.bf16 %v13766_v57, %v13768_v59 }
0x134d   :  { %11899 = vrot.lane.b32.xlu1 %v13774_v60, %s13089_s15  ;;  %11894 = vrot.lane.b32.xlu0 %v13774_v60, %s13088_s11 }
0x1351   :  { %11904 = vrot.lane.b32.xlu1 %v13774_v60, %s13092_s27  ;;  %2655 = vrot.lane.b32.xlu0 %v13768_v59, %s13090_s20 }
0x1355   :  { %3023 = vrot.lane.b32.xlu1 %v13766_v57, %s13093_s8  ;;  %2657 = vrot.lane.b32.xlu0 %v13766_v57, %s13090_s20 }
0x1359   :  { %3021 = vrot.lane.b32.xlu0 %v13768_v59, %s13093_s8 }
0x13bf   :  { %v11900_v61 = vpop.permute.xlu1 %11899  ;;  %v11895_v62 = vpop.permute.xlu0 %11894 }
0x13c0   :  { %v11902_v63 = vunpack.i.h.bf16 %v11900_v61  ;;  %v11901_v0 = vunpack.i.l.bf16 %v11900_v61  ;;  %v11897_v1 = vunpack.i.h.bf16 %v11895_v62  ;;  %v11896_v2 = vunpack.i.l.bf16 %v11895_v62 }
0x13c2   :  { %v11366_v3 = vpack.c.bf16 %v11897_v1, %v11896_v2  ;;  %v11376_v4 = vpack.c.bf16 %v11902_v63, %v11901_v0 }
0x13c3   :  { %v11905_v5 = vpop.permute.xlu1 %11904  ;;  %v2656_v8 = vpop.permute.xlu0 %2655 }
0x13c4   :  { %11368 = vmatprep.subr.msk.bf16.mxu1 %vm13617_vm4, %v11366_v3  ;;  %v11907_v6 = vunpack.i.h.bf16 %v11905_v5  ;;  %v11906_v7 = vunpack.i.l.bf16 %v11905_v5 }
0x13c5   :  { %11371 = vmatpush3.bf16.xpose.msk.msra.mxu1 %vm13617_vm4, %v11366_v3 }
0x13c6   :  { %11378 = vmatprep.subr.msk.bf16.mxu1 %vm13617_vm4, %v11376_v4  ;;  %v11386_v9 = vpack.c.bf16 %v11907_v6, %v11906_v7 }
0x13c7   :  { %v2658_v10 = vpop.permute.xlu0 %2657  ;;  %v3024_v12 = vpop.permute.xlu1 %3023 }
0x13cb   :  { %v3022_v11 = vpop.permute.xlu0 %3021 }
0x13cc   :  { %10725 = vmatmul.mubr.msk.f32.vlgmr.msra.gmra.mrb[16].mxu1 %vm954_vm3, %v13766_v57 }
0x13cd   :  { %11381 = vmatpush3.bf16.xpose.msk.msra.mxu1 %vm13617_vm4, %v11376_v4  ;;  %10738 = vmatprep.mubr.msk.f32.mxu1 %vm954_vm3, %v2656_v8 }
0x13ce   :  { %11388 = vmatprep.subr.msk.bf16.mxu1 %vm13617_vm4, %v11386_v9 }
0x13d4   :  { %10739 = vmatmul.mubr.msk.f32.vlgmr.msra.gmra.mrb[18].mxu1 %vm954_vm3, %v2658_v10 }
0x13d5   :  { %11391 = vmatpush3.bf16.xpose.msk.msra.mxu1 %vm13617_vm4, %v11386_v9  ;;  %10762 = vmatprep.mubr.msk.f32.mxu1 %vm954_vm3, %v3022_v11 }
0x13dc   :  { %10763 = vmatmul.mubr.msk.f32.vlgmr.msra.gmra.mrb[20].mxu1 %vm954_vm3, %v3024_v12 }
0x149f   :  { %v10726_v14 = vpop.f32.mrb[16].mxu1 }
0x14a0   :  { %v2543_v16 = vmul.f32 0.35355338, %v10726_v14  ;;  %v2533_v17 = vpop.f32.mrb[17].mxu1 }
0x14a1   :  { %v2542_v18 = vmul.f32 0.35355338, %v2533_v17 }
0x14a2   :  { %v2545_v19 = vadd.f32 %v2543_v16, %v13628_v42 }
0x14a3   :  { %v2544_v20 = vadd.f32 %v2542_v18, %v13631_v45 }
0x14a4   :  { %v2549_v21 = vsel %vm1042_vm5, %v2545_v19, -inf }
0x14a5   :  { %2550 = vmax.xlane.f32.xlu1 %v2549_v21  ;;  %v2546_v22 = vsel %vm1042_vm5, %v2544_v20, -inf }
0x14a6   :  { %2547 = vmax.xlane.f32.xlu0 %v2546_v22 }
0x14a7   :  { %v10740_v23 = vpop.f32.mrb[18].mxu1 }
0x14a8   :  { %v2737_v24 = vpop.f32.mrb[19].mxu1  ;;  %v2747_v25 = vmul.f32 0.35355338, %v10740_v23 }
0x14a9   :  { %v2746_v28 = vmul.f32 0.35355338, %v2737_v24 }
0x14aa   :  { %v2749_v27 = vadd.f32 %v2747_v25, %v13628_v42 }
0x14ab   :  { %v2748_v29 = vadd.f32 %v2746_v28, %v13631_v45 }
0x14ac   :  { %v2753_v31 = vsel %vm1042_vm5, %v2749_v27, -inf }
0x14ad   :  { %v2750_v26 = vsel %vm1042_vm5, %v2748_v29, -inf }
0x14ae   :  { %2751 = vmax.xlane.f32.xlu0 %v2750_v26 }
0x14af   :  { %v10764_v35 = vpop.f32.mrb[20].mxu1 }
0x14b0   :  { %v3103_v30 = vpop.f32.mrb[21].mxu1  ;;  %v3113_v61 = vmul.f32 0.35355338, %v10764_v35 }
0x14b1   :  { %v3112_v62 = vmul.f32 0.35355338, %v3103_v30 }
0x14b2   :  { %2754 = vmax.xlane.f32.xlu0 %v2753_v31  ;;  %v3115_v0 = vadd.f32 %v3113_v61, %v13628_v42 }
0x14b3   :  { %v3114_v63 = vadd.f32 %v3112_v62, %v13631_v45  ;;  %v12336_v62 = vld [vmem:[%s14656_s10] sm:$0xff] }
0x14b4   :  { %v3119_v2 = vsel %vm1042_vm5, %v3115_v0, -inf }
0x14b5   :  { %v3116_v1 = vsel %vm1042_vm5, %v3114_v63, -inf }
0x1532   :  { %v2551_v33 = vpop.xlane.xlu1 %2550 }
0x1533   :  { %v2553_v36 = vsub.f32 %v2545_v19, %v2551_v33  ;;  %v2548_v37 = vpop.xlane.xlu0 %2547 }
0x1534   :  { %v2552_v38 = vsub.f32 %v2544_v20, %v2548_v37 }
0x1535   :  { %v2556_v40 = vmul.f32 1.442695, %v2553_v36 }
0x1536   :  { %v2554_v41 = vmul.f32 1.442695, %v2552_v38 }
0x1537   :  { %12144 = vpow2.f32 %v2556_v40  ;;  %v743_v40 = vld [vmem:[%s13450_s14 + $0x8] sm:$0xff] }
0x1538   :  { %12146 = vpow2.f32 %v2554_v41  ;;  %v742_v41 = vld [vmem:[%s13450_s14] sm:$0xff] }
0x153b   :  { %v2752_v43 = vpop.xlane.xlu0 %2751 }
0x153c   :  { %v2756_v44 = vsub.f32 %v2748_v29, %v2752_v43 }
0x153e   :  { %v2758_v46 = vmul.f32 1.442695, %v2756_v44 }
0x153f   :  { %v2755_v47 = vpop.xlane.xlu0 %2754 }
0x1540   :  { %12148 = vpow2.f32 %v2758_v46  ;;  %v2757_v48 = vsub.f32 %v2749_v27, %v2755_v47 }
0x1541   :  { %v12145_v49 = vpop.eup %12144 }
0x1542   :  { %v12147_v50 = vpop.eup %12146  ;;  %v2760_v51 = vmul.f32 1.442695, %v2757_v48  ;;  %v2561_v52 = vsel %vm1042_vm5, %v12145_v49, 0.0 }
0x1543   :  { %2562 = vadd.xlane.f32.xlu0 %v2561_v52  ;;  %v2558_v53 = vsel %vm1042_vm5, %v12147_v50, 0.0 }
0x1544   :  { %12150 = vpow2.f32 %v2760_v51  ;;  %2559 = vadd.xlane.f32.xlu1 %v2558_v53 }
0x154a   :  { %v12149_v32 = vpop.eup %12148 }
0x154b   :  { %v2762_v34 = vsel %vm1042_vm5, %v12149_v32, 0.0 }
0x154c   :  { %2763 = vadd.xlane.f32.xlu1 %v2762_v34 }
0x154e   :  { %v12151_v56 = vpop.eup %12150 }
0x154f   :  { %v2765_v58 = vsel %vm1042_vm5, %v12151_v56, 0.0 }
0x1550   :  { %2766 = vadd.xlane.f32.xlu0 %v2765_v58 }
0x155d   :  { %11909 = vrot.lane.b32.xlu1 %v13774_v60, %s13091_s13 }
0x1561   :  { %11919 = vrot.lane.b32.xlu1 %v13774_v60, %s13095_s5 }
0x1565   :  { %3308 = vrot.lane.b32.xlu1 %v13768_v59, %s13096_s3 }
0x1566   :  { %11914 = vrot.lane.b32.xlu0 %v13774_v60, %s13094_s16 }
0x156a   :  { %3310 = vrot.lane.b32.xlu0 %v13766_v57, %s13096_s3 }
0x1589   :  { %3117 = vmax.xlane.f32.xlu1 %v3116_v1  ;;  %3120 = vmax.xlane.f32.xlu0 %v3119_v2 }
0x15d0   :  { %v2563_v59 = vpop.xlane.xlu0 %2562 }
0x15d1   :  { %v2560_v3 = vpop.xlane.xlu1 %2559 }
0x15d2   :  { %12152 = vrcp.f32 %v2560_v3  ;;  %v12337_v3 = vld [vmem:[%s14656_s10 + $0x8] sm:$0xff]  ;;  %s14676_s10 = sld [smem:[#allocation77_spill]] }
0x15d3   :  { %12154 = vrcp.f32 %v2563_v59 }
0x15d9   :  { %v2764_v4 = vpop.xlane.xlu1 %2763 }
0x15da   :  { %12156 = vrcp.f32 %v2764_v4 }
0x15dc   :  { %v12153_v5 = vpop.eup %12152 }
0x15dd   :  { %v11910_v57 = vpop.permute.xlu1 %11909  ;;  %v2767_v6 = vpop.xlane.xlu0 %2766  ;;  %v2566_v7 = vmul.f32 %v12153_v5, %v12147_v50 }
0x15de   :  { %v11912_v8 = vunpack.i.h.bf16 %v11910_v57  ;;  %v11911_v45 = vunpack.i.l.bf16 %v11910_v57  ;;  %12158 = vrcp.f32 %v2767_v6  ;;  %v12155_v9 = vpop.eup %12154  ;;  %v744_v57 = vld [vmem:[%s13450_s14 + $0x10] sm:$0xff] }
0x15df   :  { %10731 = vmatprep.mubr.msk.f32.mxu0 %vm1042_vm5, %v2566_v7  ;;  %v2567_v20 = vmul.f32 %v12155_v9, %v12145_v49 }
0x15e0   :  { %v11372_v42 = vpack.c.bf16 %v11912_v8, %v11911_v45 }
0x15e1   :  { %v11920_v10 = vpop.permute.xlu1 %11919  ;;  %v11915_v11 = vpop.permute.xlu0 %11914 }
0x15e2   :  { %v11922_v12 = vunpack.i.h.bf16 %v11920_v10  ;;  %v11921_v14 = vunpack.i.l.bf16 %v11920_v10  ;;  %v11917_v16 = vunpack.i.h.bf16 %v11915_v11  ;;  %v11916_v17 = vunpack.i.l.bf16 %v11915_v11  ;;  %11373 = vmatprep.subr.bf16.mxu0 %v11372_v42 }
0x15e3   :  { %11375 = vmatpush3.bf16.msra.mxu0 %v11372_v42 }
0x15e4   :  { %v12157_v18 = vpop.eup %12156  ;;  %v11396_v19 = vpack.c.bf16 %v11922_v12, %v11921_v14  ;;  %v11382_v21 = vpack.c.bf16 %v11917_v16, %v11916_v17 }
0x15e5   :  { %v3309_v22 = vpop.permute.xlu1 %3308  ;;  %v2770_v23 = vmul.f32 %v12157_v18, %v12149_v32  ;;  %v3311_v28 = vpop.permute.xlu0 %3310 }
0x15e6   :  { %10732 = vmatmul.mubr.msk.f32.vlgmr.msra.gmra.mrb[12].mxu0 %vm1042_vm5, %v2567_v20  ;;  %11383 = vmatprep.subr.bf16.mxu0 %v11382_v21 }
0x15e7   :  { %11398 = vmatprep.subr.msk.bf16.mxu1 %vm13617_vm4, %v11396_v19  ;;  %10781 = vmatprep.mubr.msk.f32.mxu1 %vm954_vm3, %v3309_v22 }
0x15e8   :  { %v12159_v24 = vpop.eup %12158  ;;  %11385 = vmatpush3.bf16.msra.mxu0 %v11382_v21  ;;  %10745 = vmatprep.mubr.msk.f32.mxu0 %vm1042_vm5, %v2770_v23 }
0x15e9   :  { %11401 = vmatpush3.bf16.xpose.msk.msra.mxu1 %vm13617_vm4, %v11396_v19  ;;  %v2771_v25 = vmul.f32 %v12159_v24, %v12151_v56  ;;  %10748 = vmatprep.subr.mxu0 %v743_v40  ;;  %v745_v24 = vld [vmem:[%s13450_s14 + $0x18] sm:$0xff]  ;;  %s14665_s14 = sld [smem:[#allocation111_spill]] }
0x15eb   :  { %10746 = vmatmul.mubr.msk.f32.vlgmr.msra.gmra.mrb[14].mxu0 %vm1042_vm5, %v2771_v25 }
0x15ec   :  { %10749 = vmatpush3.msra.mxu0 %v743_v40 }
0x15ed   :  { %10753 = vmatprep.subr.mxu0 %v742_v41 }
0x15f0   :  { %10782 = vmatmul.mubr.msk.f32.vlgmr.msra.gmra.mrb[22].mxu1 %vm954_vm3, %v3311_v28 }
0x1616   :  { %v3118_v29 = vpop.xlane.xlu1 %3117  ;;  %v3121_v26 = vpop.xlane.xlu0 %3120 }
0x1617   :  { %v3122_v27 = vsub.f32 %v3114_v63, %v3118_v29  ;;  %v3123_v35 = vsub.f32 %v3115_v0, %v3121_v26 }
0x1619   :  { %v3124_v30 = vmul.f32 1.442695, %v3122_v27  ;;  %v3126_v31 = vmul.f32 1.442695, %v3123_v35  ;;  %v9997_v35 = vld [vmem:[#allocation35] ss:$0 sm:$0xff] }
0x161b   :  { %12160 = vpow2.f32 %v3124_v30 }
0x161c   :  { %12162 = vpow2.f32 %v3126_v31 }
0x1625   :  { %v12161_v33 = vpop.eup %12160 }
0x1626   :  { %v12163_v36 = vpop.eup %12162  ;;  %v3128_v37 = vsel %vm1042_vm5, %v12161_v33, 0.0 }
0x1627   :  { %3129 = vadd.xlane.f32.xlu0 %v3128_v37  ;;  %v3131_v38 = vsel %vm1042_vm5, %v12163_v36, 0.0 }
0x1628   :  { %3132 = vadd.xlane.f32.xlu1 %v3131_v38 }
0x163d   :  { %11924 = vrot.lane.b32.xlu0 %v13774_v60, %s13097_s30 }
0x16b4   :  { %v3130_v43 = vpop.xlane.xlu0 %3129 }
0x16b5   :  { %v3133_v48 = vpop.xlane.xlu1 %3132  ;;  %12164 = vrcp.f32 %v3130_v43  ;;  %v3868_v43 = vld [vmem:[%s14664_s26 + $0x8] sm:$0xff] }
0x16b6   :  { %12166 = vrcp.f32 %v3133_v48 }
0x16b8   :  { %v11925_v46 = vpop.permute.xlu0 %11924 }
0x16b9   :  { %v10733_v44 = vpop.f32.mrb[12].mxu0  ;;  %v11927_v49 = vunpack.i.h.bf16 %v11925_v46  ;;  %v11926_v50 = vunpack.i.l.bf16 %v11925_v46 }
0x16ba   :  { %v2646_v47 = vpop.f32.mrb[13].mxu0 }
0x16bb   :  { %v11392_v53 = vpack.c.bf16 %v11927_v49, %v11926_v50 }
0x16be   :  { %v10747_v51 = vpop.f32.mrb[14].mxu0 }
0x16bf   :  { %v2850_v52 = vpop.f32.mrb[15].mxu0  ;;  %v12165_v61 = vpop.eup %12164 }
0x16c0   :  { %10750 = vmatprep.mubr.msk.f32.mxu0 %vm954_vm3, %v2850_v52  ;;  %v12167_v0 = vpop.eup %12166  ;;  %v3136_v2 = vmul.f32 %v12165_v61, %v12161_v33  ;;  %v729_v61 = vld [vmem:[%s14665_s14 + $0x18] sm:$0xff] }
0x16c1   :  { %10751 = vmatmul.mubr.msk.f32.vlgmr.msra.gmra.mrb[16].mxu0 %vm954_vm3, %v10747_v51  ;;  %v3137_v4 = vmul.f32 %v12167_v0, %v12163_v36  ;;  %v683_v0 = vld [vmem:[%s14666_s17 + $0x8] sm:$0xff] }
0x16c2   :  { %10754 = vmatpush3.msra.mxu0 %v742_v41  ;;  %10755 = vmatprep.mubr.msk.f32.mxu0 %vm954_vm3, %v2646_v47 }
0x16c3   :  { %v10783_v32 = vpop.f32.mrb[22].mxu1  ;;  %11393 = vmatprep.subr.bf16.mxu0 %v11392_v53 }
0x16c4   :  { %v3390_v34 = vpop.f32.mrb[23].mxu1  ;;  %v3400_v56 = vmul.f32 0.35355338, %v10783_v32  ;;  %v726_v32 = vld [vmem:[%s14665_s14] sm:$0xff] }
0x16c5   :  { %v3399_v58 = vmul.f32 0.35355338, %v3390_v34  ;;  %v727_v34 = vld [vmem:[%s14665_s14 + $0x8] sm:$0xff] }
0x16c6   :  { %v3402_v59 = vadd.f32 %v12337_v3, %v3400_v56  ;;  %v728_v56 = vld [vmem:[%s14665_s14 + $0x10] sm:$0xff]  ;;  %v731_v3 = vld [vmem:[%s14667_s29 + $0x8] sm:$0xff]  ;;  %s14694_s14 = sld [smem:[#allocation90_spill]] }
0x16c7   :  { %v3401_v63 = vadd.f32 %v12336_v62, %v3399_v58  ;;  %v11406_v58 = vpack.c.bf16 %v727_v34, %v726_v32  ;;  %v11410_v62 = vpack.c.bf16 %v729_v61, %v728_v56  ;;  %v13926_v56 = vld [vmem:[#allocation32] ss:$0 sm:$0xff] }
0x16c8   :  { %v3406_v5 = vsel %vm1042_vm5, %v3402_v59, -inf }
0x16c9   :  { %v3403_v1 = vsel %vm1042_vm5, %v3401_v63, -inf  ;;  %10756 = vmatmul.mubr.msk.f32.vlgmr.msra.gmra.mrb[16].mxu0 %vm954_vm3, %v10733_v44  ;;  %11407 = vmatprep.subr.bf16.mxu1 %v11406_v58 }
0x16ca   :  { %3404 = vmax.xlane.f32.xlu1 %v3403_v1  ;;  %11395 = vmatpush3.bf16.msra.mxu0 %v11392_v53  ;;  %v3867_v53 = vld [vmem:[%s14664_s26] sm:$0xff]  ;;  %s14693_s26 = sld [smem:[#allocation80_spill]] }
0x16cb   :  { %10769 = vmatprep.mubr.msk.f32.mxu0 %vm1042_vm5, %v3136_v2  ;;  %10772 = vmatprep.subr.mxu0 %v744_v57  ;;  %v730_v2 = vld [vmem:[%s14667_s29] sm:$0xff] }
0x16cc   :  { %11409 = vmatpush3.bf16.msra.mxu1 %v11406_v58 }
0x16cd   :  { %10770 = vmatmul.mubr.msk.f32.vlgmr.msra.gmra.mrb[18].mxu0 %vm1042_vm5, %v3137_v4  ;;  %11411 = vmatprep.subr.bf16.mxu1 %v11410_v62  ;;  %v11414_v4 = vpack.c.bf16 %v731_v3, %v730_v2 }
0x16ce   :  { %3407 = vmax.xlane.f32.xlu1 %v3406_v5  ;;  %10773 = vmatpush3.msra.mxu0 %v744_v57  ;;  %v733_v5 = vld [vmem:[%s14667_s29 + $0x18] sm:$0xff] }
0x16d0   :  { %11413 = vmatpush3.bf16.msra.mxu1 %v11410_v62 }
0x1757   :  { %v3405_v6 = vpop.xlane.xlu1 %3404 }
0x1758   :  { %v3409_v7 = vsub.f32 %v3401_v63, %v3405_v6  ;;  %v682_v63 = vld [vmem:[%s14666_s17] sm:$0xff] }
0x1759   :  { %v11430_v1 = vpack.c.bf16 %v683_v0, %v682_v63  ;;  %v734_v6 = vld [vmem:[%s14667_s29 + $0x20] sm:$0xff]  ;;  %v10012_v63 = vld [vmem:[#allocation19] ss:$0 sm:$0xff] }
0x175a   :  { %v3411_v42 = vmul.f32 1.442695, %v3409_v7  ;;  %v735_v7 = vld [vmem:[%s14667_s29 + $0x28] sm:$0xff] }
0x175b   :  { %v3408_v8 = vpop.xlane.xlu1 %3407  ;;  %11431 = vmatprep.subr.bf16.mxu1 %v11430_v1 }
0x175c   :  { %v3410_v45 = vsub.f32 %v3402_v59, %v3408_v8  ;;  %v732_v59 = vld [vmem:[%s14667_s29 + $0x10] sm:$0xff]  ;;  %v11422_v8 = vpack.c.bf16 %v735_v7, %v734_v6 }
0x175d   :  { %v11418_v57 = vpack.c.bf16 %v733_v5, %v732_v59 }
0x175e   :  { %v3413_v9 = vmul.f32 1.442695, %v3410_v45 }
0x1760   :  { %12168 = vpow2.f32 %v3413_v9 }
0x1761   :  { %12170 = vpow2.f32 %v3411_v42 }
0x176a   :  { %v12169_v10 = vpop.eup %12168 }
0x176b   :  { %v3418_v11 = vsel %vm1042_vm5, %v12169_v10, 0.0  ;;  %v12171_v12 = vpop.eup %12170 }
0x176c   :  { %3419 = vadd.xlane.f32.xlu1 %v3418_v11  ;;  %v3415_v14 = vsel %vm1042_vm5, %v12171_v12, 0.0 }
0x1770   :  { %3416 = vadd.xlane.f32.xlu1 %v3415_v14 }
0x1781   :  { %11929 = vrot.lane.b32.xlu1 %v13774_v60, %s13098_s0 }
0x17a0   :  { %v10771_v16 = vpop.f32.mrb[18].mxu0 }
0x17a1   :  { %v3216_v17 = vpop.f32.mrb[19].mxu0 }
0x17a2   :  { %10774 = vmatprep.mubr.msk.f32.mxu0 %vm954_vm3, %v3216_v17 }
0x17a3   :  { %10775 = vmatmul.mubr.msk.f32.vlgmr.msra.gmra.mrb[16].mxu0 %vm954_vm3, %v10771_v16  ;;  %v9998_v16 = vld [vmem:[#allocation38] ss:$0 sm:$0xff] }
0x17f9   :  { %v3420_v18 = vpop.xlane.xlu1 %3419 }
0x17fa   :  { %12172 = vrcp.f32 %v3420_v18  ;;  %v9999_v18 = vld [vmem:[#allocation37] ss:$0 sm:$0xff] }
0x17fd   :  { %v3417_v19 = vpop.xlane.xlu1 %3416 }
0x17fe   :  { %12174 = vrcp.f32 %v3417_v19 }
0x1801   :  { %v11930_v20 = vpop.permute.xlu1 %11929 }
0x1802   :  { %v11932_v21 = vunpack.i.h.bf16 %v11930_v20  ;;  %v11931_v22 = vunpack.i.l.bf16 %v11930_v20 }
0x1804   :  { %v11402_v23 = vpack.c.bf16 %v11932_v21, %v11931_v22  ;;  %v12173_v25 = vpop.eup %12172 }
0x1805   :  { %v3424_v29 = vmul.f32 %v12173_v25, %v12169_v10  ;;  %v685_v25 = vld [vmem:[%s14666_s17 + $0x18] sm:$0xff] }
0x1806   :  { %11403 = vmatprep.subr.bf16.mxu0 %v11402_v23 }
0x1807   :  { %11405 = vmatpush3.bf16.msra.mxu0 %v11402_v23 }
0x1808   :  { %v12175_v28 = vpop.eup %12174  ;;  %10791 = vmatprep.subr.mxu0 %v745_v24 }
0x1809   :  { %v3423_v60 = vmul.f32 %v12175_v28, %v12171_v12 }
0x180b   :  { %10788 = vmatprep.mubr.msk.f32.mxu0 %vm1042_vm5, %v3423_v60 }
0x180c   :  { %10789 = vmatmul.mubr.msk.f32.vlgmr.msra.gmra.mrb[20].mxu0 %vm1042_vm5, %v3424_v29 }
0x180d   :  { %10792 = vmatpush3.msra.mxu0 %v745_v24  ;;  %v684_v24 = vld [vmem:[%s14666_s17 + $0x10] sm:$0xff]  ;;  %s14695_s17 = sld [smem:[#allocation89_spill]] }
0x180e   :  { %11415 = vmatprep.subr.bf16.mxu0 %v11414_v4  ;;  %v11434_v29 = vpack.c.bf16 %v685_v25, %v684_v24 }
0x18df   :  { %v10790_v26 = vpop.f32.mrb[20].mxu0 }
0x18e0   :  { %v3503_v27 = vpop.f32.mrb[21].mxu0 }
0x18e1   :  { %10793 = vmatprep.mubr.msk.f32.mxu0 %vm954_vm3, %v3503_v27 }
0x18e2   :  { %10794 = vmatmul.mubr.msk.f32.vlgmr.msra.gmra.mrb[16].mxu0 %vm954_vm3, %v10790_v26 }
0x18e3   :  { %11417 = vmatpush3.bf16.msra.mxu0 %v11414_v4 }
0x18e4   :  { %11419 = vmatprep.subr.bf16.mxu0 %v11418_v57 }
0x18e7   :  { %11421 = vmatpush3.bf16.msra.mxu0 %v11418_v57 }
0x18e8   :  { %11423 = vmatprep.subr.bf16.mxu0 %v11422_v8 }
0x18eb   :  { %11425 = vmatpush3.bf16.msra.mxu0 %v11422_v8  ;;  %v13952_v8 = vld [vmem:[%s14670_s12 + $0x8] sm:$0xff] }
0x19b5   :  { %v10795_v30 = vpop.f32.mrb[16].mxu0 }
0x19b6   :  { %v3602_v31 = vadd.f32 %v10795_v30, %v9997_v35  ;;  %v3584_v33 = vpop.f32.mrb[17].mxu0  ;;  %v736_v30 = vld [vmem:[%s14667_s29 + $0x30] sm:$0xff] }
0x19b7   :  { %v3601_v36 = vadd.f32 %v9997_v35, %v3584_v33 }
0x19b8   :  { %v3604_v37 = vadd.f32 %v3602_v31, %v13762_v55  ;;  %v737_v31 = vld [vmem:[%s14667_s29 + $0x38] sm:$0xff] }
0x19b9   :  { %v3603_v38 = vadd.f32 %v3601_v36, %v13758_v54  ;;  %v11426_v33 = vpack.c.bf16 %v737_v31, %v736_v30  ;;  %v622_v36 = vld [vmem:[%s14668_s28] sm:$0xff] }
0x19ba   :  { %v3608_v40 = vsel %vm775_vm0, %v3604_v37, 0.0 }
0x19bb   :  { %3609 = vadd.xlane.f32.xlu1 %v3608_v40  ;;  %v3605_v41 = vsel %vm775_vm0, %v3603_v38, 0.0  ;;  %11427 = vmatprep.subr.bf16.mxu0 %v11426_v33  ;;  %v624_v40 = vld [vmem:[%s14668_s28 + $0x10] sm:$0xff] }
0x19bc   :  { %3606 = vadd.xlane.f32.xlu0 %v3605_v41  ;;  %11429 = vmatpush3.bf16.msra.mxu0 %v11426_v33  ;;  %v625_v41 = vld [vmem:[%s14668_s28 + $0x18] sm:$0xff] }
0x19cc   :  { %3875 = vperm.xlu1 %11933, %v3868_v43   ;;  %v11442_v43 = vpack.c.bf16 %v625_v41, %v624_v40 }
0x1a48   :  { %v3610_v44 = vpop.xlane.xlu1 %3609 }
0x1a49   :  { %v3612_v46 = vmul.f32 0.03125, %v3610_v44  ;;  %v3607_v47 = vpop.xlane.xlu0 %3606 }
0x1a4a   :  { %v3611_v48 = vmul.f32 0.03125, %v3607_v47 }
0x1a4b   :  { %v3614_v55 = vsub.f32 %v3604_v37, %v3612_v46  ;;  %v623_v37 = vld [vmem:[%s14668_s28 + $0x8] sm:$0xff] }
0x1a4c   :  { %v3613_v49 = vsub.f32 %v3603_v38, %v3611_v48  ;;  %v3876_v26 = vpop.permute.xlu1 %3875  ;;  %v11438_v38 = vpack.c.bf16 %v623_v37, %v622_v36 }
0x1a4d   :  { %v3616_v51 = vmul.f32 %v3614_v55, %v3614_v55  ;;  %vm3878_vm8 = vcmp.eq.s32.totalorder %v3876_v26, %v13583_v13 }
0x1a4e   :  { %v3615_v54 = vmul.f32 %v3613_v49, %v3613_v49  ;;  %v10009_v35 = vsel %vm3878_vm8, 1.0, %v13087_v15 }
0x1a4f   :  { %v3620_v52 = vsel %vm775_vm0, %v3616_v51, 0.0 }
0x1a50   :  { %v3617_v50 = vsel %vm775_vm0, %v3615_v54, 0.0 }
0x1a51   :  { %3618 = vadd.xlane.f32.xlu0 %v3617_v50  ;;  %v3869_v50 = vld [vmem:[%s14669_s1] sm:$0xff] }
0x1a55   :  { %3621 = vadd.xlane.f32.xlu0 %v3620_v52  ;;  %v3870_v52 = vld [vmem:[%s14669_s1 + $0x8] sm:$0xff] }
0x1a6b   :  { %3872 = vperm.xlu0 %11852, %v3867_v53  }
0x1ade   :  { %v3619_v45 = vpop.xlane.xlu0 %3618 }
0x1adf   :  { %v3623_v42 = vmul.f32 0.03125, %v3619_v45 }
0x1ae1   :  { %v3625_v9 = vadd.f32 1e-05, %v3623_v42 }
0x1ae2   :  { %v3622_v10 = vpop.xlane.xlu0 %3621 }
0x1ae3   :  { %12176 = vrsqrt.f32 %v3625_v9  ;;  %v3624_v11 = vmul.f32 0.03125, %v3622_v10  ;;  %v13955_v9 = vld [vmem:[%s14670_s12] sm:$0xff] }
0x1ae5   :  { %v3626_v12 = vadd.f32 1e-05, %v3624_v11 }
0x1ae7   :  { %12178 = vrsqrt.f32 %v3626_v12 }
0x1aea   :  { %v3873_v21 = vpop.permute.xlu0 %3872 }
0x1aeb   :  { %vm3877_vm7 = vcmp.eq.s32.totalorder %v3873_v21, %v13583_v13  ;;  %v10000_v13 = vld [vmem:[#allocation31] ss:$0 sm:$0xff] }
0x1aec   :  { %v10008_v27 = vsel %vm3877_vm7, 1.0, %v13087_v15 }
0x1aed   :  { %v12177_v14 = vpop.eup %12176 }
0x1aee   :  { %v3629_v17 = vmul.f32 %v12177_v14, %v3613_v49 }
0x1af0   :  { %v3637_v19 = vmul.f32 %v9998_v16, %v3629_v17 }
0x1af1   :  { %v12179_v20 = vpop.eup %12178 }
0x1af2   :  { %v3630_v22 = vmul.f32 %v12179_v20, %v3614_v55  ;;  %v13892_v23 = vadd.f32 %v9999_v18, %v3637_v19 }
0x1af4   :  { %v3638_v28 = vmul.f32 %v9998_v16, %v3630_v22  ;;  %10804 = vmatprep.mubr.msk.f32.mxu1 %vm775_vm0, %v13892_v23 }
0x1af6   :  { %v13899_v60 = vadd.f32 %v9999_v18, %v3638_v28 }
0x1af8   :  { %10805 = vmatmul.mubr.msk.f32.vlgmr.msra.gmra.mrb[24].mxu1 %vm775_vm0, %v13899_v60 }
0x1af9   :  { %11433 = vmatpush3.bf16.msra.mxu1 %v11430_v1  ;;  %10834 = vmatprep.mubr.msk.f32.mxu1 %vm775_vm0, %v10008_v27 }
0x1afa   :  { %11435 = vmatprep.subr.bf16.mxu1 %v11434_v29 }
0x1afd   :  { %11437 = vmatpush3.bf16.msra.mxu1 %v11434_v29 }
0x1afe   :  { %11439 = vmatprep.subr.bf16.mxu1 %v11438_v38 }
0x1b00   :  { %10835 = vmatmul.mubr.msk.f32.vlgmr.msra.gmra.mrb[26].mxu1 %vm775_vm0, %v10009_v35 }
0x1b01   :  { %11441 = vmatpush3.bf16.msra.mxu1 %v11438_v38 }
0x1b02   :  { %11443 = vmatprep.subr.bf16.mxu1 %v11442_v43 }
0x1b05   :  { %11445 = vmatpush3.bf16.msra.mxu1 %v11442_v43 }
0x1bcb   :  { %v10806_v15 = vpop.f32.mrb[24].mxu1 }
0x1bcc   :  { %v3731_v44 = vadd.f32 %v10806_v15, %v10000_v13  ;;  %v3725_v46 = vpop.f32.mrb[25].mxu1 }
0x1bcd   :  { %v3726_v47 = vadd.f32 %v10000_v13, %v3725_v46 }
0x1bce   :  { %v3735_v55 = vmax.f32 %v3731_v44, 0.0 }
0x1bcf   :  { %v3734_v48 = vmax.f32 %v3726_v47, 0.0 }
0x1bd1   :  { %10823 = vmatprep.mubr.msk.f32.mxu0 %vm2240_vm6, %v3734_v48 }
0x1bd2   :  { %10824 = vmatmul.mubr.msk.f32.vlgmr.msra.gmra.mrb[22].mxu0 %vm2240_vm6, %v3735_v55 }
0x1bd3   :  { %v10836_v49 = vpop.f32.mrb[26].mxu1 }
0x1bd4   :  { %v3965_v54 = vmul.f32 5.656854, %v10836_v49  ;;  %v3955_v51 = vpop.f32.mrb[27].mxu1 }
0x1bd5   :  { %v3964_v53 = vmul.f32 5.656854, %v3955_v51 }
0x1bd6   :  { %v13920_v34 = vadd.f32 %v3965_v54, %v3870_v52 }
0x1bd7   :  { %v13918_v32 = vadd.f32 %v3964_v53, %v3869_v50 }
0x1bd9   :  { %10845 = vmatprep.mubr.msk.f32.mxu1 %vm775_vm0, %v13918_v32 }
0x1bda   :  { %10846 = vmatmul.mubr.msk.f32.vlgmr.msra.gmra.mrb[28].mxu1 %vm775_vm0, %v13920_v34 }
0x1ca5   :  { %v10825_v58 = vpop.f32.mrb[22].mxu0 }
0x1ca6   :  { %v13929_v61 = vadd.f32 %v10825_v58, %v13926_v56  ;;  %v13931_v62 = vpop.f32.mrb[23].mxu0 }
0x1cad   :  { %v10847_v0 = vpop.f32.mrb[28].mxu1 }
0x1cae   :  { %v13933_v1 = vadd.f32 %v10847_v0, %v10012_v63  ;;  %v4046_v2 = vpop.f32.mrb[29].mxu1 }
0x1caf   :  { %v13935_v3 = vadd.f32 %v10012_v63, %v4046_v2 }
0x1cb1   :  { %10852 = vmatprep.mubr.msk.f32.mxu0 %vm954_vm3, %v13935_v3  ;;  %v13941_v59 = vpack.i.bf16 %v13933_v1, %v13935_v3 }
0x1cb3   :  { %11935 = vrot.lane.b32.xlu0 %v13941_v59, %s13088_s11 }
0x1d25   :  { %v11936_v4 = vpop.permute.xlu0 %11935 }
0x1d26   :  { %v11938_v5 = vunpack.i.h.bf16 %v11936_v4  ;;  %v11937_v57 = vunpack.i.l.bf16 %v11936_v4 }
0x1d28   :  { %v11446_v6 = vpack.c.bf16 %v11938_v5, %v11937_v57 }
0x1d2a   :  { %11448 = vmatprep.subr.msk.bf16.mxu0 %vm13617_vm4, %v11446_v6 }
0x1d2b   :  { %11451 = vmatpush3.bf16.xpose.msk.msra.mxu0 %vm13617_vm4, %v11446_v6 }
0x1d32   :  { %10853 = vmatmul.mubr.msk.f32.vlgmr.msra.gmra.mrb[24].mxu0 %vm954_vm3, %v13933_v1 }
0x1e05   :  { %v10854_v7 = vpop.f32.mrb[24].mxu0 }
0x1e06   :  { %v4145_v45 = vmul.f32 0.35355338, %v10854_v7  ;;  %v4135_v42 = vpop.f32.mrb[25].mxu0 }
0x1e07   :  { %v4144_v10 = vmul.f32 0.35355338, %v4135_v42 }
0x1e08   :  { %v4147_v11 = vadd.f32 %v4145_v45, %v13952_v8 }
0x1e09   :  { %v4146_v12 = vadd.f32 %v4144_v10, %v13955_v9 }
0x1e0a   :  { %v4151_v14 = vsel %vm1042_vm5, %v4147_v11, -inf }
0x1e0b   :  { %4152 = vmax.xlane.f32.xlu1 %v4151_v14  ;;  %v4148_v16 = vsel %vm1042_vm5, %v4146_v12, -inf }
0x1e0c   :  { %4149 = vmax.xlane.f32.xlu0 %v4148_v16 }
0x1e1c   :  { %11940 = vrot.lane.b32.xlu1 %v13941_v59, %s13091_s13 }
0x1e20   :  { %4257 = vrot.lane.b32.xlu1 %v13935_v3, %s13090_s20 }
0x1e24   :  { %4259 = vrot.lane.b32.xlu1 %v13933_v1, %s13090_s20 }
0x1e28   :  { %4623 = vrot.lane.b32.xlu1 %v13935_v3, %s13093_s8 }
0x1e98   :  { %v4153_v17 = vpop.xlane.xlu1 %4152 }
0x1e99   :  { %v4155_v18 = vsub.f32 %v4147_v11, %v4153_v17  ;;  %v4150_v19 = vpop.xlane.xlu0 %4149 }
0x1e9a   :  { %v4154_v20 = vsub.f32 %v4146_v12, %v4150_v19 }
0x1e9b   :  { %v4158_v21 = vmul.f32 1.442695, %v4155_v18 }
0x1e9c   :  { %v4156_v22 = vmul.f32 1.442695, %v4154_v20  ;;  %v11941_v24 = vpop.permute.xlu1 %11940 }
0x1e9d   :  { %12180 = vpow2.f32 %v4158_v21  ;;  %v11943_v25 = vunpack.i.h.bf16 %v11941_v24  ;;  %v11942_v28 = vunpack.i.l.bf16 %v11941_v24 }
0x1e9e   :  { %12182 = vpow2.f32 %v4156_v22 }
0x1e9f   :  { %v11452_v29 = vpack.c.bf16 %v11943_v25, %v11942_v28 }
0x1ea0   :  { %v4258_v15 = vpop.permute.xlu1 %4257 }
0x1ea1   :  { %11453 = vmatprep.subr.bf16.mxu1 %v11452_v29 }
0x1ea2   :  { %11455 = vmatpush3.bf16.msra.mxu1 %v11452_v29 }
0x1ea4   :  { %v4260_v49 = vpop.permute.xlu1 %4259 }
0x1ea7   :  { %v12181_v26 = vpop.eup %12180 }
0x1ea8   :  { %v4163_v27 = vsel %vm1042_vm5, %v12181_v26, 0.0  ;;  %v12183_v35 = vpop.eup %12182  ;;  %v4624_v54 = vpop.permute.xlu1 %4623 }
0x1ea9   :  { %4164 = vadd.xlane.f32.xlu0 %v4163_v27  ;;  %v4160_v30 = vsel %vm1042_vm5, %v12183_v35, 0.0 }
0x1ead   :  { %4161 = vadd.xlane.f32.xlu0 %v4160_v30 }
0x1ec3   :  { %11945 = vrot.lane.b32.xlu0 %v13941_v59, %s13089_s15 }
0x1ec7   :  { %11950 = vrot.lane.b32.xlu0 %v13941_v59, %s13092_s27 }
0x1ecb   :  { %4625 = vrot.lane.b32.xlu0 %v13933_v1, %s13093_s8 }
0x1f36   :  { %v4165_v31 = vpop.xlane.xlu0 %4164 }
0x1f37   :  { %12184 = vrcp.f32 %v4165_v31 }
0x1f3a   :  { %v4162_v33 = vpop.xlane.xlu0 %4161 }
0x1f3b   :  { %12186 = vrcp.f32 %v4162_v33 }
0x1f3e   :  { %v11946_v36 = vpop.permute.xlu0 %11945 }
0x1f3f   :  { %v11948_v37 = vunpack.i.h.bf16 %v11946_v36  ;;  %v11947_v38 = vunpack.i.l.bf16 %v11946_v36 }
0x1f41   :  { %v11456_v40 = vpack.c.bf16 %v11948_v37, %v11947_v38  ;;  %v12185_v43 = vpop.eup %12184 }
0x1f42   :  { %v11951_v41 = vpop.permute.xlu0 %11950  ;;  %v4169_v48 = vmul.f32 %v12185_v43, %v12181_v26 }
0x1f43   :  { %11458 = vmatprep.subr.msk.bf16.mxu1 %vm13617_vm4, %v11456_v40  ;;  %v11953_v44 = vunpack.i.h.bf16 %v11951_v41  ;;  %v11952_v46 = vunpack.i.l.bf16 %v11951_v41 }
0x1f45   :  { %v12187_v13 = vpop.eup %12186  ;;  %v11466_v55 = vpack.c.bf16 %v11953_v44, %v11952_v46 }
0x1f46   :  { %v4168_v47 = vmul.f32 %v12187_v13, %v12183_v35  ;;  %v4626_v50 = vpop.permute.xlu0 %4625 }
0x1f48   :  { %10859 = vmatprep.mubr.msk.f32.mxu1 %vm1042_vm5, %v4168_v47 }
0x1f49   :  { %10860 = vmatmul.mubr.msk.f32.vlgmr.msra.gmra.mrb[30].mxu1 %vm1042_vm5, %v4169_v48 }
0x1f4a   :  { %11461 = vmatpush3.bf16.xpose.msk.msra.mxu1 %vm13617_vm4, %v11456_v40  ;;  %10866 = vmatprep.mubr.msk.f32.mxu1 %vm954_vm3, %v4258_v15 }
0x1f4b   :  { %11468 = vmatprep.subr.msk.bf16.mxu1 %vm13617_vm4, %v11466_v55 }
0x1f51   :  { %10867 = vmatmul.mubr.msk.f32.vlgmr.msra.gmra.mrb[32].mxu1 %vm954_vm3, %v4260_v49 }
0x1f52   :  { %11471 = vmatpush3.bf16.xpose.msk.msra.mxu1 %vm13617_vm4, %v11466_v55  ;;  %10890 = vmatprep.mubr.msk.f32.mxu1 %vm954_vm3, %v4624_v54 }
0x1f59   :  { %10891 = vmatmul.mubr.msk.f32.vlgmr.msra.gmra.mrb[34].mxu1 %vm954_vm3, %v4626_v50 }
0x201c   :  { %v13991_v51 = vpop.f32.mrb[30].mxu1 }
0x201d   :  { %v13993_v52 = vpop.f32.mrb[31].mxu1 }
0x2024   :  { %v10868_v53 = vpop.f32.mrb[32].mxu1 }
0x2025   :  { %v4349_v58 = vmul.f32 0.35355338, %v10868_v53  ;;  %v4339_v63 = vpop.f32.mrb[33].mxu1 }
0x2026   :  { %v4348_v0 = vmul.f32 0.35355338, %v4339_v63  ;;  %v626_v63 = vld [vmem:[%s14671_s21] sm:$0xff] }
0x2027   :  { %v4351_v2 = vadd.f32 %v4349_v58, %v13952_v8  ;;  %v627_v58 = vld [vmem:[%s14671_s21 + $0x8] sm:$0xff] }
0x2028   :  { %v4350_v4 = vadd.f32 %v4348_v0, %v13955_v9  ;;  %v3815_v0 = vadd.f32 %v13926_v56, %v13931_v62 }
0x2029   :  { %v4355_v5 = vsel %vm1042_vm5, %v4351_v2, -inf }
0x202a   :  { %4356 = vmax.xlane.f32.xlu0 %v4355_v5  ;;  %v4352_v57 = vsel %vm1042_vm5, %v4350_v4, -inf }
0x202b   :  { %4353 = vmax.xlane.f32.xlu1 %v4352_v57 }
0x202c   :  { %v10892_v6 = vpop.f32.mrb[34].mxu1 }
0x202d   :  { %v4705_v7 = vpop.f32.mrb[35].mxu1  ;;  %v4715_v21 = vmul.f32 0.35355338, %v10892_v6 }
0x202e   :  { %v4714_v20 = vmul.f32 0.35355338, %v4705_v7 }
0x202f   :  { %v4717_v24 = vadd.f32 %v4715_v21, %v13952_v8 }
0x2030   :  { %v4716_v22 = vadd.f32 %v4714_v20, %v13955_v9 }
0x2031   :  { %v4721_v28 = vsel %vm1042_vm5, %v4717_v24, -inf }
0x2032   :  { %v4718_v25 = vsel %vm1042_vm5, %v4716_v22, -inf }
0x20b7   :  { %v4357_v45 = vpop.xlane.xlu0 %4356 }
0x20b8   :  { %v4359_v42 = vsub.f32 %v4351_v2, %v4357_v45  ;;  %v4354_v10 = vpop.xlane.xlu1 %4353  ;;  %v14030_v2 = vadd.f32 %v3815_v0, %v13892_v23 }
0x20b9   :  { %v4358_v11 = vsub.f32 %v4350_v4, %v4354_v10 }
0x20ba   :  { %v4362_v12 = vmul.f32 1.442695, %v4359_v42  ;;  %v3825_v4 = vsel %vm775_vm0, %v14030_v2, 0.0 }
0x20bb   :  { %v4360_v14 = vmul.f32 1.442695, %v4358_v11 }
0x20bc   :  { %12188 = vpow2.f32 %v4362_v12 }
0x20bd   :  { %12190 = vpow2.f32 %v4360_v14 }
0x20c6   :  { %v12189_v16 = vpop.eup %12188 }
0x20c7   :  { %v12191_v17 = vpop.eup %12190  ;;  %v4367_v18 = vsel %vm1042_vm5, %v12189_v16, 0.0 }
0x20c8   :  { %4368 = vadd.xlane.f32.xlu1 %v4367_v18  ;;  %v4364_v19 = vsel %vm1042_vm5, %v12191_v17, 0.0 }
0x20c9   :  { %4365 = vadd.xlane.f32.xlu0 %v4364_v19 }
0x20d9   :  { %11960 = vrot.lane.b32.xlu1 %v13941_v59, %s13095_s5 }
0x20dd   :  { %4910 = vrot.lane.b32.xlu1 %v13935_v3, %s13096_s3 }
0x20df   :  { %11955 = vrot.lane.b32.xlu0 %v13941_v59, %s13094_s16 }
0x20e3   :  { %4912 = vrot.lane.b32.xlu0 %v13933_v1, %s13096_s3 }
0x2101   :  { %4719 = vmax.xlane.f32.xlu1 %v4718_v25 }
0x2102   :  { %4722 = vmax.xlane.f32.xlu0 %v4721_v28 }
0x2155   :  { %v4369_v29 = vpop.xlane.xlu1 %4368 }
0x2156   :  { %12192 = vrcp.f32 %v4369_v29  ;;  %v4366_v3 = vpop.xlane.xlu0 %4365 }
0x2157   :  { %12194 = vrcp.f32 %v4366_v3 }
0x2159   :  { %v11961_v26 = vpop.permute.xlu1 %11960 }
0x215a   :  { %v11963_v27 = vunpack.i.h.bf16 %v11961_v26  ;;  %v11962_v35 = vunpack.i.l.bf16 %v11961_v26  ;;  %v11956_v1 = vpop.permute.xlu0 %11955 }
0x215b   :  { %v11958_v30 = vunpack.i.h.bf16 %v11956_v1  ;;  %v11957_v31 = vunpack.i.l.bf16 %v11956_v1 }
0x215c   :  { %v11476_v33 = vpack.c.bf16 %v11963_v27, %v11962_v35  ;;  %v3824_v35 = vadd.f32 %v13929_v61, %v13899_v60 }
0x215d   :  { %v4911_v36 = vpop.permute.xlu1 %4910  ;;  %v11462_v37 = vpack.c.bf16 %v11958_v30, %v11957_v31 }
0x215e   :  { %11478 = vmatprep.subr.msk.bf16.mxu1 %vm13617_vm4, %v11476_v33  ;;  %10909 = vmatprep.mubr.msk.f32.mxu1 %vm954_vm3, %v4911_v36  ;;  %v4913_v13 = vpop.permute.xlu0 %4912  ;;  %v3828_v31 = vsel %vm775_vm0, %v3824_v35, 0.0 }
0x215f   :  { %11463 = vmatprep.subr.bf16.mxu0 %v11462_v37  ;;  %11481 = vmatpush3.bf16.xpose.msk.msra.mxu1 %vm13617_vm4, %v11476_v33 }
0x2160   :  { %v12193_v38 = vpop.eup %12192  ;;  %11465 = vmatpush3.bf16.msra.mxu0 %v11462_v37 }
0x2161   :  { %v12195_v40 = vpop.eup %12194  ;;  %v4373_v43 = vmul.f32 %v12193_v38, %v12189_v16  ;;  %10876 = vmatprep.subr.mxu0 %v627_v58 }
0x2162   :  { %v4372_v41 = vmul.f32 %v12195_v40, %v12191_v17 }
0x2164   :  { %10873 = vmatprep.mubr.msk.f32.mxu0 %vm1042_vm5, %v4372_v41  ;;  %v629_v41 = vld [vmem:[%s14671_s21 + $0x18] sm:$0xff] }
0x2165   :  { %10874 = vmatmul.mubr.msk.f32.vlgmr.msra.gmra.mrb[26].mxu0 %vm1042_vm5, %v4373_v43 }
0x2166   :  { %10910 = vmatmul.mubr.msk.f32.vlgmr.msra.gmra.mrb[36].mxu1 %vm954_vm3, %v4913_v13  ;;  %10877 = vmatpush3.msra.mxu0 %v627_v58 }
0x2167   :  { %10881 = vmatprep.subr.mxu0 %v626_v63 }
0x218e   :  { %v4720_v15 = vpop.xlane.xlu1 %4719 }
0x218f   :  { %v4724_v44 = vsub.f32 %v4716_v22, %v4720_v15  ;;  %v4723_v46 = vpop.xlane.xlu0 %4722 }
0x2190   :  { %v4725_v47 = vsub.f32 %v4717_v24, %v4723_v46 }
0x2191   :  { %v4726_v48 = vmul.f32 1.442695, %v4724_v44 }
0x2192   :  { %v4728_v55 = vmul.f32 1.442695, %v4725_v47  ;;  %v10047_v47 = vld [vmem:[%s14672_s25] ss:$0 sm:$0xff] }
0x2193   :  { %12196 = vpow2.f32 %v4726_v48 }
0x2194   :  { %12198 = vpow2.f32 %v4728_v55 }
0x219d   :  { %v12197_v49 = vpop.eup %12196 }
0x219e   :  { %v12199_v54 = vpop.eup %12198  ;;  %v4730_v50 = vsel %vm1042_vm5, %v12197_v49, 0.0 }
0x219f   :  { %4731 = vadd.xlane.f32.xlu0 %v4730_v50  ;;  %v4733_v53 = vsel %vm1042_vm5, %v12199_v54, 0.0 }
0x21a0   :  { %4734 = vadd.xlane.f32.xlu1 %v4733_v53 }
0x21b5   :  { %11965 = vrot.lane.b32.xlu0 %v13941_v59, %s13097_s30 }
0x21d4   :  { %3826 = vadd.xlane.f32.xlu0 %v3825_v4 }
0x222c   :  { %v4732_v5 = vpop.xlane.xlu0 %4731 }
0x222d   :  { %12200 = vrcp.f32 %v4732_v5  ;;  %v4735_v6 = vpop.xlane.xlu1 %4734 }
0x222e   :  { %12202 = vrcp.f32 %v4735_v6 }
0x2230   :  { %v11966_v57 = vpop.permute.xlu0 %11965 }
0x2231   :  { %v11968_v7 = vunpack.i.h.bf16 %v11966_v57  ;;  %v11967_v45 = vunpack.i.l.bf16 %v11966_v57 }
0x2233   :  { %v11472_v23 = vpack.c.bf16 %v11968_v7, %v11967_v45 }
0x2237   :  { %v12201_v16 = vpop.eup %12200 }
0x2238   :  { %v10875_v42 = vpop.f32.mrb[26].mxu0  ;;  %v12203_v19 = vpop.eup %12202  ;;  %v4738_v20 = vmul.f32 %v12201_v16, %v12197_v49 }
0x2239   :  { %v4452_v10 = vpop.f32.mrb[27].mxu0  ;;  %v10911_v11 = vpop.f32.mrb[36].mxu1  ;;  %v4739_v21 = vmul.f32 %v12203_v19, %v12199_v54 }
0x223a   :  { %10878 = vmatprep.mubr.msk.f32.mxu0 %vm954_vm3, %v4452_v10  ;;  %v4992_v56 = vpop.f32.mrb[37].mxu1  ;;  %v5002_v12 = vmul.f32 0.35355338, %v10911_v11 }
0x223b   :  { %v5001_v62 = vmul.f32 0.35355338, %v4992_v56  ;;  %10879 = vmatmul.mubr.msk.f32.vlgmr.msra.gmra.mrb[28].mxu0 %vm954_vm3, %v10875_v42 }
0x223c   :  { %10882 = vmatpush3.msra.mxu0 %v626_v63  ;;  %10883 = vmatprep.mubr.msk.f32.mxu0 %vm954_vm3, %v13993_v52  ;;  %v5004_v18 = vadd.f32 %v5002_v12, %v13952_v8 }
0x223d   :  { %11473 = vmatprep.subr.bf16.mxu0 %v11472_v23  ;;  %v5003_v14 = vadd.f32 %v5001_v62, %v13955_v9  ;;  %v628_v9 = vld [vmem:[%s14671_s21 + $0x10] sm:$0xff] }
0x223e   :  { %v5008_v52 = vsel %vm1042_vm5, %v5004_v18, -inf }
0x223f   :  { %v5005_v17 = vsel %vm1042_vm5, %v5003_v14, -inf }
0x2240   :  { %5006 = vmax.xlane.f32.xlu1 %v5005_v17 }
0x2243   :  { %10884 = vmatmul.mubr.msk.f32.vlgmr.msra.gmra.mrb[28].mxu0 %vm954_vm3, %v13991_v51 }
0x2244   :  { %11475 = vmatpush3.bf16.msra.mxu0 %v11472_v23  ;;  %10897 = vmatprep.mubr.msk.f32.mxu0 %vm1042_vm5, %v4738_v20 }
0x2245   :  { %5009 = vmax.xlane.f32.xlu1 %v5008_v52  ;;  %10900 = vmatprep.subr.mxu0 %v628_v9 }
0x2247   :  { %10898 = vmatmul.mubr.msk.f32.vlgmr.msra.gmra.mrb[30].mxu0 %vm1042_vm5, %v4739_v21 }
0x2248   :  { %10901 = vmatpush3.msra.mxu0 %v628_v9  ;;  %v608_v9 = vld [vmem:[%s14673_s2 + $0x10] sm:$0xff] }
0x2261   :  { %v3827_v46 = vpop.xlane.xlu0 %3826 }
0x2262   :  { %v3831_v49 = vmul.f32 0.03125, %v3827_v46 }
0x2264   :  { %v3833_v63 = vsub.f32 %v14030_v2, %v3831_v49 }
0x2266   :  { %v3835_v7 = vmul.f32 %v3833_v63, %v3833_v63 }
0x2268   :  { %v3837_v45 = vsel %vm775_vm0, %v3835_v7, 0.0 }
0x22cd   :  { %v5007_v22 = vpop.xlane.xlu1 %5006 }
0x22ce   :  { %v5011_v24 = vsub.f32 %v5003_v14, %v5007_v22  ;;  %v609_v22 = vld [vmem:[%s14673_s2 + $0x18] sm:$0xff] }
0x22d0   :  { %v5013_v28 = vmul.f32 1.442695, %v5011_v24 }
0x22d2   :  { %v5010_v8 = vpop.xlane.xlu1 %5009 }
0x22d3   :  { %v5012_v25 = vsub.f32 %v5004_v18, %v5010_v8  ;;  %v10006_v8 = vld [vmem:[#allocation41] ss:$0 sm:$0xff] }
0x22d5   :  { %v5015_v29 = vmul.f32 1.442695, %v5012_v25  ;;  %v606_v25 = vld [vmem:[%s14673_s2] sm:$0xff] }
0x22d7   :  { %12204 = vpow2.f32 %v5015_v29 }
0x22d8   :  { %12206 = vpow2.f32 %v5013_v28  ;;  %v607_v28 = vld [vmem:[%s14673_s2 + $0x8] sm:$0xff] }
0x22e1   :  { %v12205_v51 = vpop.eup %12204 }
0x22e2   :  { %v5020_v3 = vsel %vm1042_vm5, %v12205_v51, 0.0  ;;  %v12207_v26 = vpop.eup %12206 }
0x22e3   :  { %5021 = vadd.xlane.f32.xlu1 %v5020_v3  ;;  %v5017_v27 = vsel %vm1042_vm5, %v12207_v26, 0.0  ;;  %v11979_v3 = vpack.i.bf16 %v609_v22, %v608_v9 }
0x22e7   :  { %5018 = vadd.xlane.f32.xlu1 %v5017_v27  ;;  %v11974_v27 = vpack.i.bf16 %v607_v28, %v606_v25 }
0x22f8   :  { %11970 = vrot.lane.b32.xlu1 %v13941_v59, %s13098_s0 }
0x231a   :  { %v10899_v1 = vpop.f32.mrb[30].mxu0 }
0x231b   :  { %v4818_v30 = vpop.f32.mrb[31].mxu0 }
0x231c   :  { %3829 = vadd.xlane.f32.xlu1 %v3828_v31  ;;  %10902 = vmatprep.mubr.msk.f32.mxu0 %vm954_vm3, %v4818_v30 }
0x231d   :  { %10903 = vmatmul.mubr.msk.f32.vlgmr.msra.gmra.mrb[28].mxu0 %vm954_vm3, %v10899_v1 }
0x2370   :  { %v5022_v33 = vpop.xlane.xlu1 %5021 }
0x2371   :  { %12208 = vrcp.f32 %v5022_v33 }
0x2374   :  { %v5019_v36 = vpop.xlane.xlu1 %5018 }
0x2375   :  { %12210 = vrcp.f32 %v5019_v36  ;;  %v11486_v36 = vpack.c.bf16 %v607_v28, %v606_v25 }
0x2377   :  { %11487 = vmatprep.subr.bf16.mxu1 %v11486_v36 }
0x2378   :  { %v11971_v37 = vpop.permute.xlu1 %11970  ;;  %11489 = vmatpush3.bf16.msra.mxu1 %v11486_v36 }
0x2379   :  { %v11973_v38 = vunpack.i.h.bf16 %v11971_v37  ;;  %v11972_v59 = vunpack.i.l.bf16 %v11971_v37  ;;  %v11490_v37 = vpack.c.bf16 %v609_v22, %v608_v9 }
0x237b   :  { %v11482_v40 = vpack.c.bf16 %v11973_v38, %v11972_v59  ;;  %v12209_v60 = vpop.eup %12208  ;;  %11491 = vmatprep.subr.bf16.mxu1 %v11490_v37  ;;  %v10050_v38 = vld [vmem:[#allocation7] ss:$0 sm:$0xff] }
0x237c   :  { %v5026_v13 = vmul.f32 %v12209_v60, %v12205_v51  ;;  %v10007_v51 = vld [vmem:[#allocation40] ss:$0 sm:$0xff]  ;;  %11493 = vmatpush3.bf16.msra.mxu1 %v11490_v37 }
0x237d   :  { %11483 = vmatprep.subr.bf16.mxu0 %v11482_v40 }
0x237e   :  { %11485 = vmatpush3.bf16.msra.mxu0 %v11482_v40 }
0x237f   :  { %v12211_v61 = vpop.eup %12210  ;;  %10919 = vmatprep.subr.mxu0 %v629_v41 }
0x2380   :  { %v5025_v43 = vmul.f32 %v12211_v61, %v12207_v26 }
0x2382   :  { %10916 = vmatprep.mubr.msk.f32.mxu0 %vm1042_vm5, %v5025_v43 }
0x2383   :  { %10917 = vmatmul.mubr.msk.f32.vlgmr.msra.gmra.mrb[32].mxu0 %vm1042_vm5, %v5026_v13 }
0x2384   :  { %10920 = vmatpush3.msra.mxu0 %v629_v41 }
0x23a9   :  { %v3830_v53 = vpop.xlane.xlu1 %3829 }
0x23aa   :  { %v3832_v0 = vmul.f32 0.03125, %v3830_v53 }
0x23ac   :  { %v3834_v57 = vsub.f32 %v3824_v35, %v3832_v0 }
0x23ae   :  { %v3836_v42 = vmul.f32 %v3834_v57, %v3834_v57 }
0x23b0   :  { %v3840_v10 = vsel %vm775_vm0, %v3836_v42, 0.0 }
0x2456   :  { %v10918_v15 = vpop.f32.mrb[32].mxu0 }
0x2457   :  { %v5105_v44 = vpop.f32.mrb[33].mxu0 }
0x2458   :  { %10921 = vmatprep.mubr.msk.f32.mxu0 %vm954_vm3, %v5105_v44 }
0x2459   :  { %10922 = vmatmul.mubr.msk.f32.vlgmr.msra.gmra.mrb[28].mxu0 %vm954_vm3, %v10918_v15 }
0x252c   :  { %v10923_v48 = vpop.f32.mrb[28].mxu0 }
0x252d   :  { %v5186_v55 = vpop.f32.mrb[29].mxu0  ;;  %v5204_v54 = vadd.f32 %v10923_v48, %v10047_v47 }
0x252e   :  { %v5203_v50 = vadd.f32 %v10047_v47, %v5186_v55 }
0x252f   :  { %v5206_v4 = vadd.f32 %v5204_v54, %v13920_v34 }
0x2530   :  { %v5205_v58 = vadd.f32 %v5203_v50, %v13918_v32  ;;  %v10048_v50 = vld [vmem:[#allocation11] ss:$0 sm:$0xff] }
0x2531   :  { %v5210_v6 = vsel %vm775_vm0, %v5206_v4, 0.0 }
0x2532   :  { %v5207_v5 = vsel %vm775_vm0, %v5205_v58, 0.0 }
0x2533   :  { %5208 = vadd.xlane.f32.xlu0 %v5207_v5 }
0x2537   :  { %5211 = vadd.xlane.f32.xlu0 %v5210_v6 }
0x253b   :  { %3838 = vadd.xlane.f32.xlu0 %v3837_v45 }
0x253f   :  { %3841 = vadd.xlane.f32.xlu0 %v3840_v10 }
0x25c0   :  { %v5209_v32 = vpop.xlane.xlu0 %5208 }
0x25c1   :  { %v5213_v2 = vmul.f32 0.03125, %v5209_v32 }
0x25c3   :  { %v14069_v11 = vsub.f32 %v5205_v58, %v5213_v2  ;;  %v10049_v58 = vld [vmem:[#allocation10] ss:$0 sm:$0xff] }
0x25c4   :  { %v5212_v34 = vpop.xlane.xlu0 %5211 }
0x25c5   :  { %v5214_v56 = vmul.f32 0.03125, %v5212_v34  ;;  %v5217_v62 = vmul.f32 %v14069_v11, %v14069_v11 }
0x25c7   :  { %v14073_v23 = vsub.f32 %v5206_v4, %v5214_v56  ;;  %v5219_v12 = vsel %vm775_vm0, %v5217_v62, 0.0 }
0x25c8   :  { %5220 = vadd.xlane.f32.xlu0 %v5219_v12  ;;  %v3839_v14 = vpop.xlane.xlu0 %3838 }
0x25c9   :  { %v3843_v16 = vmul.f32 0.03125, %v3839_v14  ;;  %v5218_v17 = vmul.f32 %v14073_v23, %v14073_v23 }
0x25cb   :  { %v3845_v18 = vadd.f32 1e-05, %v3843_v16  ;;  %v5222_v19 = vsel %vm775_vm0, %v5218_v17, 0.0 }
0x25cc   :  { %5223 = vadd.xlane.f32.xlu1 %v5222_v19  ;;  %v3842_v20 = vpop.xlane.xlu0 %3841 }
0x25cd   :  { %12212 = vrsqrt.f32 %v3845_v18  ;;  %v3844_v52 = vmul.f32 0.03125, %v3842_v20 }
0x25cf   :  { %v3846_v21 = vadd.f32 1e-05, %v3844_v52 }
0x25d1   :  { %12214 = vrsqrt.f32 %v3846_v21 }
0x25d7   :  { %v12213_v24 = vpop.eup %12212 }
0x25d8   :  { %v3849_v29 = vmul.f32 %v12213_v24, %v3833_v63 }
0x25da   :  { %v3857_v26 = vmul.f32 %v10006_v8, %v3849_v29  ;;  %v14146_v29 = vld [vmem:[%s14674_s4] sm:$0xff] }
0x25db   :  { %v12215_v35 = vpop.eup %12214 }
0x25dc   :  { %v3850_v1 = vmul.f32 %v12215_v35, %v3834_v57  ;;  %v14083_v30 = vadd.f32 %v10007_v51, %v3857_v26 }
0x25dd   :  { %11980 = vrot.lane.b32.xlu1 %v11979_v3, %s13088_s11 }
0x25de   :  { %v3858_v31 = vmul.f32 %v10006_v8, %v3850_v1  ;;  %10943 = vmatprep.mubr.msk.f32.mxu0 %vm775_vm0, %v14083_v30  ;;  %11975 = vrot.lane.b32.xlu0 %v11974_v27, %s13088_s11  ;;  %v14143_v8 = vld [vmem:[%s14674_s4 + $0x8] sm:$0xff] }
0x25e0   :  { %v14089_v33 = vadd.f32 %v10007_v51, %v3858_v31 }
0x25e1   :  { %5352 = vrot.lane.b32.xlu1 %v10050_v38, %s13088_s11 }
0x2655   :  { %v5221_v59 = vpop.xlane.xlu0 %5220 }
0x2656   :  { %v5225_v40 = vmul.f32 0.03125, %v5221_v59 }
0x2658   :  { %v5227_v41 = vadd.f32 1e-05, %v5225_v40 }
0x2659   :  { %v5224_v60 = vpop.xlane.xlu1 %5223  ;;  %v11976_v61 = vpop.permute.xlu0 %11975 }
0x265a   :  { %12216 = vrsqrt.f32 %v5227_v41  ;;  %v5226_v43 = vmul.f32 0.03125, %v5224_v60  ;;  %v11978_v13 = vunpack.i.h.bf16 %v11976_v61  ;;  %v11977_v15 = vunpack.i.l.bf16 %v11976_v61 }
0x265c   :  { %v5228_v44 = vadd.f32 1e-05, %v5226_v43  ;;  %v11494_v46 = vpack.c.bf16 %v11978_v13, %v11977_v15 }
0x265d   :  { %v11981_v47 = vpop.permute.xlu1 %11980 }
0x265e   :  { %12218 = vrsqrt.f32 %v5228_v44  ;;  %v11983_v48 = vunpack.i.h.bf16 %v11981_v47  ;;  %v11982_v55 = vunpack.i.l.bf16 %v11981_v47  ;;  %11495 = vmatprep.subr.bf16.mxu0 %v11494_v46 }
0x265f   :  { %11497 = vmatpush3.bf16.msra.mxu0 %v11494_v46 }
0x2660   :  { %v11498_v49 = vpack.c.bf16 %v11983_v48, %v11982_v55 }
0x2661   :  { %v5353_v7 = vpop.permute.xlu1 %5352 }
0x2662   :  { %11499 = vmatprep.subr.bf16.mxu0 %v11498_v49 }
0x2663   :  { %11501 = vmatpush3.bf16.msra.mxu0 %v11498_v49 }
0x2664   :  { %v12217_v54 = vpop.eup %12216 }
0x2665   :  { %v5231_v53 = vmul.f32 %v12217_v54, %v14069_v11 }
0x2666   :  { %10944 = vmatmul.mubr.msk.f32.vlgmr.msra.gmra.mrb[34].mxu0 %vm775_vm0, %v14089_v33 }
0x2667   :  { %v5239_v63 = vmul.f32 %v10048_v50, %v5231_v53 }
0x2668   :  { %v12219_v0 = vpop.eup %12218 }
0x2669   :  { %v5232_v4 = vmul.f32 %v12219_v0, %v14073_v23  ;;  %v14096_v5 = vadd.f32 %v10049_v58, %v5239_v63 }
0x266b   :  { %v5240_v57 = vmul.f32 %v10048_v50, %v5232_v4  ;;  %10932 = vmatprep.mubr.msk.f32.mxu1 %vm775_vm0, %v14096_v5 }
0x266d   :  { %v14100_v6 = vadd.f32 %v10049_v58, %v5240_v57 }
0x266f   :  { %10933 = vmatmul.mubr.msk.f32.vlgmr.msra.gmra.mrb[38].mxu1 %vm775_vm0, %v14100_v6 }
0x2739   :  { %v10945_v45 = vpop.f32.mrb[34].mxu0 }
0x273a   :  { %v5433_v42 = vadd.f32 %v10945_v45, %v5353_v7  ;;  %v5427_v10 = vpop.f32.mrb[35].mxu0 }
0x273b   :  { %v5428_v32 = vadd.f32 %v5427_v10, %v5353_v7 }
0x273d   :  { %v14104_v2 = vpack.i.bf16 %v5433_v42, %v5428_v32  ;;  %v11502_v11 = vpack.c.bf16 %v5433_v42, %v5428_v32 }
0x273f   :  { %11985 = vrot.lane.b32.xlu0 %v14104_v2, %s13090_s20  ;;  %11504 = vmatprep.subr.msk.bf16.mxu1 %vm13617_vm4, %v11502_v11 }
0x2740   :  { %11507 = vmatpush3.bf16.xpose.msk.msra.mxu1 %vm13617_vm4, %v11502_v11 }
0x2742   :  { %v10934_v34 = vpop.f32.mrb[38].mxu1 }
0x2743   :  { %v14112_v56 = vadd.f32 %v10934_v34, %v10050_v38  ;;  %v5327_v62 = vpop.f32.mrb[39].mxu1 }
0x2744   :  { %v14114_v23 = vadd.f32 %v10050_v38, %v5327_v62 }
0x2745   :  { %5638 = vrot.lane.b32.xlu0 %v14112_v56, %s13090_s20 }
0x2746   :  { %5636 = vrot.lane.b32.xlu1 %v14114_v23, %s13090_s20  ;;  %10950 = vmatprep.mubr.msk.f32.mxu1 %vm954_vm3, %v14114_v23 }
0x2747   :  { %10951 = vmatmul.mubr.msk.f32.vlgmr.msra.gmra.mrb[40].mxu1 %vm954_vm3, %v14112_v56 }
0x2749   :  { %6002 = vrot.lane.b32.xlu0 %v14114_v23, %s13093_s8 }
0x274a   :  { %11990 = vrot.lane.b32.xlu1 %v14104_v2, %s13093_s8 }
0x274e   :  { %6004 = vrot.lane.b32.xlu1 %v14112_v56, %s13093_s8 }
0x27b1   :  { %v11986_v12 = vpop.permute.xlu0 %11985 }
0x27b2   :  { %v11988_v14 = vunpack.i.h.bf16 %v11986_v12  ;;  %v11987_v16 = vunpack.i.l.bf16 %v11986_v12 }
0x27b4   :  { %v11512_v17 = vpack.c.bf16 %v11988_v14, %v11987_v16 }
0x27b6   :  { %11514 = vmatprep.subr.msk.bf16.mxu1 %vm13617_vm4, %v11512_v17 }
0x27b7   :  { %11517 = vmatpush3.bf16.xpose.msk.msra.mxu1 %vm13617_vm4, %v11512_v17  ;;  %v5639_v18 = vpop.permute.xlu0 %5638 }
0x27b8   :  { %v5637_v19 = vpop.permute.xlu1 %5636 }
0x27b9   :  { %10964 = vmatprep.mubr.msk.f32.mxu1 %vm954_vm3, %v5637_v19 }
0x27bb   :  { %v6003_v9 = vpop.permute.xlu0 %6002 }
0x27bc   :  { %v11991_v20 = vpop.permute.xlu1 %11990 }
0x27bd   :  { %v11993_v52 = vunpack.i.h.bf16 %v11991_v20  ;;  %v11992_v21 = vunpack.i.l.bf16 %v11991_v20 }
0x27be   :  { %10965 = vmatmul.mubr.msk.f32.vlgmr.msra.gmra.mrb[42].mxu1 %vm954_vm3, %v5639_v18 }
0x27bf   :  { %v11522_v22 = vpack.c.bf16 %v11993_v52, %v11992_v21  ;;  %10988 = vmatprep.mubr.msk.f32.mxu1 %vm954_vm3, %v6003_v9 }
0x27c0   :  { %v6005_v24 = vpop.permute.xlu1 %6004 }
0x27c1   :  { %11524 = vmatprep.subr.msk.bf16.mxu1 %vm13617_vm4, %v11522_v22 }
0x27c2   :  { %11527 = vmatpush3.bf16.xpose.msk.msra.mxu1 %vm13617_vm4, %v11522_v22 }
0x27c9   :  { %10989 = vmatmul.mubr.msk.f32.vlgmr.msra.gmra.mrb[44].mxu1 %vm954_vm3, %v6005_v24 }
0x281a   :  { %v10952_v25 = vpop.f32.mrb[40].mxu1 }
0x281b   :  { %v5524_v28 = vmul.f32 0.35355338, %v10952_v25  ;;  %v5514_v51 = vpop.f32.mrb[41].mxu1 }
0x281c   :  { %v5523_v3 = vmul.f32 0.35355338, %v5514_v51 }
0x281d   :  { %v5526_v26 = vadd.f32 %v5524_v28, %v14143_v8 }
0x281e   :  { %v5525_v27 = vadd.f32 %v5523_v3, %v14146_v29 }
0x281f   :  { %v5530_v35 = vsel %vm1042_vm5, %v5526_v26, -inf }
0x2820   :  { %5531 = vmax.xlane.f32.xlu1 %v5530_v35  ;;  %v5527_v1 = vsel %vm1042_vm5, %v5525_v27, -inf }
0x2821   :  { %5528 = vmax.xlane.f32.xlu0 %v5527_v1 }
0x2891   :  { %v10966_v31 = vpop.f32.mrb[42].mxu1 }
0x2892   :  { %v5718_v36 = vpop.f32.mrb[43].mxu1  ;;  %v5728_v37 = vmul.f32 0.35355338, %v10966_v31 }
0x2893   :  { %v5727_v38 = vmul.f32 0.35355338, %v5718_v36 }
0x2894   :  { %v5730_v40 = vadd.f32 %v5728_v37, %v14143_v8 }
0x2895   :  { %v5729_v59 = vadd.f32 %v5727_v38, %v14146_v29 }
0x2896   :  { %v5734_v60 = vsel %vm1042_vm5, %v5730_v40, -inf }
0x2897   :  { %v5731_v41 = vsel %vm1042_vm5, %v5729_v59, -inf }
0x2898   :  { %5732 = vmax.xlane.f32.xlu0 %v5731_v41 }
0x289c   :  { %v10990_v61 = vpop.f32.mrb[44].mxu1  ;;  %5735 = vmax.xlane.f32.xlu0 %v5734_v60 }
0x289d   :  { %v6084_v43 = vpop.f32.mrb[45].mxu1  ;;  %v6094_v62 = vmul.f32 0.35355338, %v10990_v61 }
0x289e   :  { %v6093_v12 = vmul.f32 0.35355338, %v6084_v43 }
0x289f   :  { %v6096_v14 = vadd.f32 %v6094_v62, %v14143_v8 }
0x28a0   :  { %v6095_v16 = vadd.f32 %v6093_v12, %v14146_v29 }
0x28a2   :  { %v6097_v17 = vsel %vm1042_vm5, %v6095_v16, -inf }
0x28ad   :  { %v5532_v13 = vpop.xlane.xlu1 %5531 }
0x28ae   :  { %v5534_v15 = vsub.f32 %v5526_v26, %v5532_v13  ;;  %v5529_v44 = vpop.xlane.xlu0 %5528 }
0x28af   :  { %v5533_v46 = vsub.f32 %v5525_v27, %v5529_v44 }
0x28b0   :  { %v5537_v47 = vmul.f32 1.442695, %v5534_v15 }
0x28b1   :  { %v5535_v48 = vmul.f32 1.442695, %v5533_v46 }
0x28b2   :  { %12220 = vpow2.f32 %v5537_v47 }
0x28b3   :  { %12222 = vpow2.f32 %v5535_v48 }
0x28bc   :  { %v12221_v55 = vpop.eup %12220 }
0x28bd   :  { %v12223_v49 = vpop.eup %12222  ;;  %v5542_v54 = vsel %vm1042_vm5, %v12221_v55, 0.0 }
0x28be   :  { %5543 = vadd.xlane.f32.xlu0 %v5542_v54  ;;  %v5539_v50 = vsel %vm1042_vm5, %v12223_v49, 0.0 }
0x28bf   :  { %5540 = vadd.xlane.f32.xlu1 %v5539_v50 }
0x2925   :  { %v5733_v53 = vpop.xlane.xlu0 %5732 }
0x2926   :  { %v5737_v58 = vsub.f32 %v5729_v59, %v5733_v53 }
0x2928   :  { %v5739_v63 = vmul.f32 1.442695, %v5737_v58 }
0x2929   :  { %v5736_v0 = vpop.xlane.xlu0 %5735 }
0x292a   :  { %12224 = vpow2.f32 %v5739_v63  ;;  %v5738_v4 = vsub.f32 %v5730_v40, %v5736_v0 }
0x292c   :  { %v5741_v57 = vmul.f32 1.442695, %v5738_v4 }
0x292e   :  { %12226 = vpow2.f32 %v5741_v57 }
0x2934   :  { %v12225_v7 = vpop.eup %12224 }
0x2935   :  { %v5743_v45 = vsel %vm1042_vm5, %v12225_v7, 0.0 }
0x2936   :  { %5744 = vadd.xlane.f32.xlu1 %v5743_v45 }
0x2938   :  { %v12227_v42 = vpop.eup %12226 }
0x2939   :  { %v5746_v10 = vsel %vm1042_vm5, %v12227_v42, 0.0 }
0x293a   :  { %5747 = vadd.xlane.f32.xlu0 %v5746_v10 }
0x2947   :  { %11995 = vrot.lane.b32.xlu1 %v14104_v2, %s13088_s11 }
0x294b   :  { %12005 = vrot.lane.b32.xlu1 %v14104_v2, %s13096_s3  ;;  %v5544_v18 = vpop.xlane.xlu0 %5543 }
0x294c   :  { %v5541_v32 = vpop.xlane.xlu1 %5540 }
0x294d   :  { %12228 = vrcp.f32 %v5541_v32 }
0x294e   :  { %12230 = vrcp.f32 %v5544_v18 }
0x294f   :  { %6289 = vrot.lane.b32.xlu1 %v14114_v23, %s13096_s3  ;;  %v6100_v23 = vsel %vm1042_vm5, %v6096_v14, -inf }
0x2950   :  { %12000 = vrot.lane.b32.xlu0 %v14104_v2, %s13089_s15 }
0x2954   :  { %6291 = vrot.lane.b32.xlu0 %v14112_v56, %s13096_s3 }
0x2957   :  { %v12229_v11 = vpop.eup %12228 }
0x2958   :  { %v5547_v34 = vmul.f32 %v12229_v11, %v12223_v49  ;;  %v12231_v22 = vpop.eup %12230  ;;  %v610_v49 = vld [vmem:[%s14675_s7] sm:$0xff] }
0x2959   :  { %v5548_v31 = vmul.f32 %v12231_v22, %v12221_v55  ;;  %v611_v55 = vld [vmem:[%s14675_s7 + $0x8] sm:$0xff] }
0x295a   :  { %10957 = vmatprep.mubr.msk.f32.mxu0 %vm1042_vm5, %v5547_v34 }
0x2973   :  { %6098 = vmax.xlane.f32.xlu1 %v6097_v17  ;;  %6101 = vmax.xlane.f32.xlu0 %v6100_v23 }
0x29c3   :  { %v5745_v19 = vpop.xlane.xlu1 %5744 }
0x29c4   :  { %12232 = vrcp.f32 %v5745_v19  ;;  %v612_v19 = vld [vmem:[%s14675_s7 + $0x10] sm:$0xff] }
0x29c7   :  { %v11996_v56 = vpop.permute.xlu1 %11995  ;;  %v5748_v20 = vpop.xlane.xlu0 %5747 }
0x29c8   :  { %v11998_v52 = vunpack.i.h.bf16 %v11996_v56  ;;  %v11997_v21 = vunpack.i.l.bf16 %v11996_v56  ;;  %12234 = vrcp.f32 %v5748_v20 }
0x29ca   :  { %v11508_v9 = vpack.c.bf16 %v11998_v52, %v11997_v21 }
0x29cb   :  { %v12006_v24 = vpop.permute.xlu1 %12005  ;;  %v12001_v25 = vpop.permute.xlu0 %12000 }
0x29cc   :  { %v12008_v28 = vunpack.i.h.bf16 %v12006_v24  ;;  %v12007_v51 = vunpack.i.l.bf16 %v12006_v24  ;;  %v12003_v3 = vunpack.i.h.bf16 %v12001_v25  ;;  %v12002_v26 = vunpack.i.l.bf16 %v12001_v25  ;;  %11509 = vmatprep.subr.bf16.mxu0 %v11508_v9 }
0x29cd   :  { %11511 = vmatpush3.bf16.msra.mxu0 %v11508_v9 }
0x29ce   :  { %v12233_v27 = vpop.eup %12232  ;;  %v11532_v35 = vpack.c.bf16 %v12008_v28, %v12007_v51  ;;  %v11518_v1 = vpack.c.bf16 %v12003_v3, %v12002_v26 }
0x29cf   :  { %v6290_v36 = vpop.permute.xlu1 %6289  ;;  %v5751_v37 = vmul.f32 %v12233_v27, %v12225_v7  ;;  %v6292_v40 = vpop.permute.xlu0 %6291 }
0x29d0   :  { %10958 = vmatmul.mubr.msk.f32.vlgmr.msra.gmra.mrb[36].mxu0 %vm1042_vm5, %v5548_v31  ;;  %11519 = vmatprep.subr.bf16.mxu0 %v11518_v1 }
0x29d1   :  { %11534 = vmatprep.subr.msk.bf16.mxu1 %vm13617_vm4, %v11532_v35  ;;  %11007 = vmatprep.mubr.msk.f32.mxu1 %vm954_vm3, %v6290_v36  ;;  %v613_v36 = vld [vmem:[%s14675_s7 + $0x18] sm:$0xff] }
0x29d2   :  { %v12235_v38 = vpop.eup %12234  ;;  %11521 = vmatpush3.bf16.msra.mxu0 %v11518_v1  ;;  %10971 = vmatprep.mubr.msk.f32.mxu0 %vm1042_vm5, %v5751_v37 }
0x29d3   :  { %v5752_v59 = vmul.f32 %v12235_v38, %v12227_v42  ;;  %11537 = vmatpush3.bf16.xpose.msk.msra.mxu1 %vm13617_vm4, %v11532_v35  ;;  %10974 = vmatprep.subr.mxu0 %v611_v55 }
0x29d5   :  { %10972 = vmatmul.mubr.msk.f32.vlgmr.msra.gmra.mrb[38].mxu0 %vm1042_vm5, %v5752_v59 }
0x29d6   :  { %10975 = vmatpush3.msra.mxu0 %v611_v55 }
0x29d7   :  { %10979 = vmatprep.subr.mxu0 %v610_v49 }
0x29da   :  { %11008 = vmatmul.mubr.msk.f32.vlgmr.msra.gmra.mrb[46].mxu1 %vm954_vm3, %v6292_v40 }
0x2a00   :  { %v6099_v41 = vpop.xlane.xlu1 %6098  ;;  %v6102_v60 = vpop.xlane.xlu0 %6101 }
0x2a01   :  { %v6103_v61 = vsub.f32 %v6095_v16, %v6099_v41  ;;  %v6104_v43 = vsub.f32 %v6096_v14, %v6102_v60  ;;  %v10087_v60 = vld [vmem:[#allocation8] ss:$0 sm:$0xff] }
0x2a03   :  { %v6105_v13 = vmul.f32 1.442695, %v6103_v61  ;;  %v6107_v15 = vmul.f32 1.442695, %v6104_v43 }
0x2a05   :  { %12236 = vpow2.f32 %v6105_v13 }
0x2a06   :  { %12238 = vpow2.f32 %v6107_v15 }
0x2a0f   :  { %v12237_v44 = vpop.eup %12236 }
0x2a10   :  { %v12239_v46 = vpop.eup %12238  ;;  %v6109_v47 = vsel %vm1042_vm5, %v12237_v44, 0.0 }
0x2a11   :  { %6110 = vadd.xlane.f32.xlu0 %v6109_v47  ;;  %v6112_v48 = vsel %vm1042_vm5, %v12239_v46, 0.0 }
0x2a12   :  { %6113 = vadd.xlane.f32.xlu1 %v6112_v48 }
0x2a27   :  { %12010 = vrot.lane.b32.xlu0 %v14104_v2, %s13092_s27 }
0x2a9e   :  { %v6111_v54 = vpop.xlane.xlu0 %6110 }
0x2a9f   :  { %v6114_v63 = vpop.xlane.xlu1 %6113  ;;  %12240 = vrcp.f32 %v6111_v54 }
0x2aa0   :  { %12242 = vrcp.f32 %v6114_v63 }
0x2aa2   :  { %v12011_v53 = vpop.permute.xlu0 %12010 }
0x2aa3   :  { %v10959_v50 = vpop.f32.mrb[36].mxu0  ;;  %v12013_v0 = vunpack.i.h.bf16 %v12011_v53  ;;  %v12012_v4 = vunpack.i.l.bf16 %v12011_v53 }
0x2aa4   :  { %v5627_v58 = vpop.f32.mrb[37].mxu0 }
0x2aa5   :  { %v11528_v45 = vpack.c.bf16 %v12013_v0, %v12012_v4  ;;  %v630_v4 = vld [vmem:[%s14676_s10] sm:$0xff] }
0x2aa8   :  { %v10973_v57 = vpop.f32.mrb[38].mxu0 }
0x2aa9   :  { %v5831_v7 = vpop.f32.mrb[39].mxu0  ;;  %v12241_v34 = vpop.eup %12240 }
0x2aaa   :  { %10976 = vmatprep.mubr.msk.f32.mxu0 %vm954_vm3, %v5831_v7  ;;  %v12243_v12 = vpop.eup %12242  ;;  %v6117_v17 = vmul.f32 %v12241_v34, %v12237_v44  ;;  %v636_v34 = vld [vmem:[%s14677_s18 + $0x10] sm:$0xff] }
0x2aab   :  { %10977 = vmatmul.mubr.msk.f32.vlgmr.msra.gmra.mrb[40].mxu0 %vm954_vm3, %v10973_v57  ;;  %v6118_v23 = vmul.f32 %v12243_v12, %v12239_v46  ;;  %v631_v57 = vld [vmem:[%s14676_s10 + $0x8] sm:$0xff]  ;;  %v637_v12 = vld [vmem:[%s14677_s18 + $0x18] sm:$0xff] }
0x2aac   :  { %10980 = vmatpush3.msra.mxu0 %v610_v49  ;;  %10981 = vmatprep.mubr.msk.f32.mxu0 %vm954_vm3, %v5627_v58  ;;  %v11542_v7 = vpack.c.bf16 %v631_v57, %v630_v4  ;;  %v663_v4 = vld [vmem:[%s14678_s22 + $0x8] sm:$0xff] }
0x2aad   :  { %v11009_v42 = vpop.f32.mrb[46].mxu1  ;;  %11529 = vmatprep.subr.bf16.mxu0 %v11528_v45 }
0x2aae   :  { %v6371_v10 = vpop.f32.mrb[47].mxu1  ;;  %v6381_v32 = vmul.f32 0.35355338, %v11009_v42  ;;  %11543 = vmatprep.subr.bf16.mxu1 %v11542_v7  ;;  %v633_v42 = vld [vmem:[%s14676_s10 + $0x18] sm:$0xff] }
0x2aaf   :  { %v6380_v11 = vmul.f32 0.35355338, %v6371_v10  ;;  %11545 = vmatpush3.bf16.msra.mxu1 %v11542_v7  ;;  %v664_v7 = vld [vmem:[%s14678_s22 + $0x10] sm:$0xff] }
0x2ab0   :  { %v6383_v14 = vadd.f32 %v6381_v32, %v14143_v8  ;;  %v634_v32 = vld [vmem:[%s14677_s18] sm:$0xff] }
0x2ab1   :  { %v6382_v62 = vadd.f32 %v6380_v11, %v14146_v29  ;;  %v635_v11 = vld [vmem:[%s14677_s18 + $0x8] sm:$0xff] }
0x2ab2   :  { %v6387_v18 = vsel %vm1042_vm5, %v6383_v14, -inf }
0x2ab3   :  { %v6384_v16 = vsel %vm1042_vm5, %v6382_v62, -inf  ;;  %10982 = vmatmul.mubr.msk.f32.vlgmr.msra.gmra.mrb[40].mxu0 %vm954_vm3, %v10959_v50 }
0x2ab4   :  { %6385 = vmax.xlane.f32.xlu1 %v6384_v16  ;;  %11531 = vmatpush3.bf16.msra.mxu0 %v11528_v45  ;;  %v632_v45 = vld [vmem:[%s14676_s10 + $0x10] sm:$0xff]  ;;  %v638_v16 = vld [vmem:[%s14677_s18 + $0x20] sm:$0xff] }
0x2ab5   :  { %10995 = vmatprep.mubr.msk.f32.mxu0 %vm1042_vm5, %v6117_v17  ;;  %10998 = vmatprep.subr.mxu0 %v612_v19  ;;  %v11546_v10 = vpack.c.bf16 %v633_v42, %v632_v45  ;;  %v639_v17 = vld [vmem:[%s14677_s18 + $0x28] sm:$0xff]  ;;  %v665_v45 = vld [vmem:[%s14678_s22 + $0x18] sm:$0xff] }
0x2ab6   :  { %v11570_v42 = vpack.c.bf16 %v665_v45, %v664_v7 }
0x2ab7   :  { %10996 = vmatmul.mubr.msk.f32.vlgmr.msra.gmra.mrb[42].mxu0 %vm1042_vm5, %v6118_v23  ;;  %11547 = vmatprep.subr.bf16.mxu1 %v11546_v10  ;;  %v11558_v23 = vpack.c.bf16 %v639_v17, %v638_v16  ;;  %v10096_v16 = vld [vmem:[#allocation17] ss:$0 sm:$0xff] }
0x2ab8   :  { %6388 = vmax.xlane.f32.xlu1 %v6387_v18  ;;  %10999 = vmatpush3.msra.mxu0 %v612_v19 }
0x2ab9   :  { %11549 = vmatpush3.bf16.msra.mxu1 %v11546_v10 }
0x2b41   :  { %v6386_v29 = vpop.xlane.xlu1 %6385 }
0x2b42   :  { %v6390_v8 = vsub.f32 %v6382_v62, %v6386_v29  ;;  %v11550_v62 = vpack.c.bf16 %v635_v11, %v634_v32 }
0x2b44   :  { %v6392_v52 = vmul.f32 1.442695, %v6390_v8 }
0x2b45   :  { %v6389_v56 = vpop.xlane.xlu1 %6388 }
0x2b46   :  { %v6391_v20 = vsub.f32 %v6383_v14, %v6389_v56  ;;  %v11554_v14 = vpack.c.bf16 %v637_v12, %v636_v34 }
0x2b48   :  { %v6394_v21 = vmul.f32 1.442695, %v6391_v20 }
0x2b4a   :  { %12244 = vpow2.f32 %v6394_v21  ;;  %v10088_v21 = vld [vmem:[#allocation14] ss:$0 sm:$0xff] }
0x2b4b   :  { %12246 = vpow2.f32 %v6392_v52 }
0x2b54   :  { %v12245_v9 = vpop.eup %12244 }
0x2b55   :  { %v6399_v22 = vsel %vm1042_vm5, %v12245_v9, 0.0  ;;  %v12247_v24 = vpop.eup %12246 }
0x2b56   :  { %6400 = vadd.xlane.f32.xlu1 %v6399_v22  ;;  %v6396_v25 = vsel %vm1042_vm5, %v12247_v24, 0.0  ;;  %v10089_v22 = vld [vmem:[#allocation13] ss:$0 sm:$0xff] }
0x2b5a   :  { %6397 = vadd.xlane.f32.xlu1 %v6396_v25 }
0x2b6b   :  { %12015 = vrot.lane.b32.xlu1 %v14104_v2, %s13095_s5 }
0x2b8a   :  { %v10997_v28 = vpop.f32.mrb[42].mxu0 }
0x2b8b   :  { %v6197_v51 = vpop.f32.mrb[43].mxu0 }
0x2b8c   :  { %11000 = vmatprep.mubr.msk.f32.mxu0 %vm954_vm3, %v6197_v51 }
0x2b8d   :  { %11001 = vmatmul.mubr.msk.f32.vlgmr.msra.gmra.mrb[40].mxu0 %vm954_vm3, %v10997_v28 }
0x2be3   :  { %v6401_v3 = vpop.xlane.xlu1 %6400 }
0x2be4   :  { %12248 = vrcp.f32 %v6401_v3 }
0x2be7   :  { %v6398_v26 = vpop.xlane.xlu1 %6397 }
0x2be8   :  { %12250 = vrcp.f32 %v6398_v26 }
0x2beb   :  { %v12016_v27 = vpop.permute.xlu1 %12015 }
0x2bec   :  { %v12018_v35 = vunpack.i.h.bf16 %v12016_v27  ;;  %v12017_v1 = vunpack.i.l.bf16 %v12016_v27  ;;  %v640_v27 = vld [vmem:[%s14677_s18 + $0x30] sm:$0xff] }
0x2bee   :  { %v11538_v31 = vpack.c.bf16 %v12018_v35, %v12017_v1  ;;  %v12249_v37 = vpop.eup %12248  ;;  %v641_v35 = vld [vmem:[%s14677_s18 + $0x38] sm:$0xff] }
0x2bef   :  { %v6405_v59 = vmul.f32 %v12249_v37, %v12245_v9  ;;  %v11562_v1 = vpack.c.bf16 %v641_v35, %v640_v27 }
0x2bf0   :  { %11539 = vmatprep.subr.bf16.mxu0 %v11538_v31 }
0x2bf1   :  { %11541 = vmatpush3.bf16.msra.mxu0 %v11538_v31  ;;  %v10090_v31 = vld [vmem:[#allocation2] ss:$0 sm:$0xff] }
0x2bf2   :  { %v12251_v38 = vpop.eup %12250  ;;  %11017 = vmatprep.subr.mxu0 %v613_v36 }
0x2bf3   :  { %v6404_v2 = vmul.f32 %v12251_v38, %v12247_v24 }
0x2bf5   :  { %11014 = vmatprep.mubr.msk.f32.mxu0 %vm1042_vm5, %v6404_v2 }
0x2bf6   :  { %11015 = vmatmul.mubr.msk.f32.vlgmr.msra.gmra.mrb[44].mxu0 %vm1042_vm5, %v6405_v59 }
0x2bf7   :  { %11018 = vmatpush3.msra.mxu0 %v613_v36 }
0x2bf8   :  { %11551 = vmatprep.subr.bf16.mxu0 %v11550_v62 }
0x2cc9   :  { %v11016_v40 = vpop.f32.mrb[44].mxu0 }
0x2cca   :  { %v6484_v41 = vpop.f32.mrb[45].mxu0 }
0x2ccb   :  { %11019 = vmatprep.mubr.msk.f32.mxu0 %vm954_vm3, %v6484_v41  ;;  %v10093_v41 = vld [vmem:[#allocation5] ss:$0 sm:$0xff] }
0x2ccc   :  { %11020 = vmatmul.mubr.msk.f32.vlgmr.msra.gmra.mrb[40].mxu0 %vm954_vm3, %v11016_v40 }
0x2ccd   :  { %11553 = vmatpush3.bf16.msra.mxu0 %v11550_v62 }
0x2cce   :  { %11555 = vmatprep.subr.bf16.mxu0 %v11554_v14 }
0x2cd1   :  { %11557 = vmatpush3.bf16.msra.mxu0 %v11554_v14 }
0x2cd2   :  { %11559 = vmatprep.subr.bf16.mxu0 %v11558_v23 }
0x2cd5   :  { %11561 = vmatpush3.bf16.msra.mxu0 %v11558_v23  ;;  %v10097_v23 = vld [vmem:[#allocation16] ss:$0 sm:$0xff] }
0x2cd6   :  { %11563 = vmatprep.subr.bf16.mxu0 %v11562_v1 }
0x2cd9   :  { %11565 = vmatpush3.bf16.msra.mxu0 %v11562_v1 }
0x2d9f   :  { %v11021_v61 = vpop.f32.mrb[40].mxu0 }
0x2da0   :  { %v6583_v43 = vadd.f32 %v11021_v61, %v10087_v60  ;;  %v6565_v13 = vpop.f32.mrb[41].mxu0 }
0x2da1   :  { %v6582_v15 = vadd.f32 %v10087_v60, %v6565_v13 }
0x2da2   :  { %v6585_v44 = vadd.f32 %v6583_v43, %v14100_v6 }
0x2da3   :  { %v6584_v46 = vadd.f32 %v6582_v15, %v14096_v5 }
0x2da4   :  { %v6589_v47 = vsel %vm775_vm0, %v6585_v44, 0.0 }
0x2da5   :  { %6590 = vadd.xlane.f32.xlu1 %v6589_v47  ;;  %v6586_v48 = vsel %vm775_vm0, %v6584_v46, 0.0 }
0x2da6   :  { %6587 = vadd.xlane.f32.xlu0 %v6586_v48 }
0x2e32   :  { %v6591_v55 = vpop.xlane.xlu1 %6590 }
0x2e33   :  { %v6593_v49 = vmul.f32 0.03125, %v6591_v55  ;;  %v6588_v54 = vpop.xlane.xlu0 %6587 }
0x2e34   :  { %v6592_v50 = vmul.f32 0.03125, %v6588_v54 }
0x2e35   :  { %v6595_v53 = vsub.f32 %v6585_v44, %v6593_v49 }
0x2e36   :  { %v6594_v58 = vsub.f32 %v6584_v46, %v6592_v50 }
0x2e37   :  { %v6597_v6 = vmul.f32 %v6595_v53, %v6595_v53 }
0x2e38   :  { %v6596_v63 = vmul.f32 %v6594_v58, %v6594_v58 }
0x2e39   :  { %v6601_v0 = vsel %vm775_vm0, %v6597_v6, 0.0 }
0x2e3a   :  { %v6598_v5 = vsel %vm775_vm0, %v6596_v63, 0.0 }
0x2e3b   :  { %6599 = vadd.xlane.f32.xlu0 %v6598_v5 }
0x2e3f   :  { %6602 = vadd.xlane.f32.xlu0 %v6601_v0  ;;  %v662_v0 = vld [vmem:[%s14678_s22] sm:$0xff] }
0x2e40   :  { %v11566_v57 = vpack.c.bf16 %v663_v4, %v662_v0 }
0x2e42   :  { %11567 = vmatprep.subr.bf16.mxu1 %v11566_v57 }
0x2ec8   :  { %v6600_v18 = vpop.xlane.xlu0 %6599 }
0x2ec9   :  { %v6604_v19 = vmul.f32 0.03125, %v6600_v18 }
0x2ecb   :  { %v6606_v29 = vadd.f32 1e-05, %v6604_v19 }
0x2ecc   :  { %v6603_v8 = vpop.xlane.xlu0 %6602 }
0x2ecd   :  { %12252 = vrsqrt.f32 %v6606_v29  ;;  %v6605_v56 = vmul.f32 0.03125, %v6603_v8 }
0x2ecf   :  { %v6607_v20 = vadd.f32 1e-05, %v6605_v56 }
0x2ed1   :  { %12254 = vrsqrt.f32 %v6607_v20 }
0x2ed7   :  { %v12253_v52 = vpop.eup %12252 }
0x2ed8   :  { %v6610_v9 = vmul.f32 %v12253_v52, %v6594_v58  ;;  %v10098_v52 = vld [vmem:[%s14679_s23] ss:$0 sm:$0xff] }
0x2eda   :  { %v6618_v24 = vmul.f32 %v10088_v21, %v6610_v9 }
0x2edb   :  { %v12255_v25 = vpop.eup %12254 }
0x2edc   :  { %v6611_v28 = vmul.f32 %v12255_v25, %v6595_v53  ;;  %v6626_v51 = vadd.f32 %v10089_v22, %v6618_v24 }
0x2ede   :  { %v6619_v3 = vmul.f32 %v10088_v21, %v6611_v28  ;;  %11030 = vmatprep.mubr.msk.f32.mxu1 %vm775_vm0, %v6626_v51 }
0x2ee0   :  { %v6627_v26 = vadd.f32 %v10089_v22, %v6619_v3 }
0x2ee2   :  { %11031 = vmatmul.mubr.msk.f32.vlgmr.msra.gmra.mrb[48].mxu1 %vm775_vm0, %v6627_v26 }
0x2ee3   :  { %11569 = vmatpush3.bf16.msra.mxu1 %v11566_v57 }
0x2ee4   :  { %11571 = vmatprep.subr.bf16.mxu1 %v11570_v42 }
0x2ee7   :  { %11573 = vmatpush3.bf16.msra.mxu1 %v11570_v42 }
0x2fb5   :  { %v11032_v36 = vpop.f32.mrb[48].mxu1 }
0x2fb6   :  { %v6712_v37 = vadd.f32 %v11032_v36, %v10090_v31  ;;  %v6706_v38 = vpop.f32.mrb[49].mxu1 }
0x2fb7   :  { %v6707_v2 = vadd.f32 %v10090_v31, %v6706_v38 }
0x2fb8   :  { %v6716_v40 = vmax.f32 %v6712_v37, 0.0 }
0x2fb9   :  { %v6715_v59 = vmax.f32 %v6707_v2, 0.0 }
0x2fbb   :  { %11049 = vmatprep.mubr.msk.f32.mxu0 %vm2240_vm6, %v6715_v59 }
0x2fbc   :  { %11050 = vmatmul.mubr.msk.f32.vlgmr.msra.gmra.mrb[46].mxu0 %vm2240_vm6, %v6716_v40 }
0x308f   :  { %v11051_v60 = vpop.f32.mrb[46].mxu0 }
0x3090   :  { %v6795_v61 = vpop.f32.mrb[47].mxu0  ;;  %v6801_v43 = vadd.f32 %v11051_v60, %v10093_v41 }
0x3091   :  { %v6796_v13 = vadd.f32 %v10093_v41, %v6795_v61 }
0x3092   :  { %v6805_v44 = vadd.f32 %v6801_v43, %v6627_v26 }
0x3093   :  { %v6804_v15 = vadd.f32 %v6796_v13, %v6626_v51 }
0x3094   :  { %v6809_v47 = vsel %vm775_vm0, %v6805_v44, 0.0 }
0x3095   :  { %v6806_v46 = vsel %vm775_vm0, %v6804_v15, 0.0 }
0x3096   :  { %6807 = vadd.xlane.f32.xlu0 %v6806_v46 }
0x309a   :  { %6810 = vadd.xlane.f32.xlu0 %v6809_v47  ;;  %v14298_v47 = vld [vmem:[%s14670_s12] sm:$0xff] }
0x3123   :  { %v6808_v48 = vpop.xlane.xlu0 %6807 }
0x3124   :  { %v6812_v55 = vmul.f32 0.03125, %v6808_v48 }
0x3126   :  { %v6814_v49 = vsub.f32 %v6804_v15, %v6812_v55 }
0x3127   :  { %v6811_v54 = vpop.xlane.xlu0 %6810 }
0x3128   :  { %v6813_v50 = vmul.f32 0.03125, %v6811_v54  ;;  %v6816_v53 = vmul.f32 %v6814_v49, %v6814_v49 }
0x312a   :  { %v6815_v58 = vsub.f32 %v6805_v44, %v6813_v50  ;;  %v6818_v63 = vsel %vm775_vm0, %v6816_v53, 0.0  ;;  %v14294_v44 = vld [vmem:[%s14670_s12 + $0x8] sm:$0xff] }
0x312b   :  { %6819 = vadd.xlane.f32.xlu0 %v6818_v63 }
0x312c   :  { %v6817_v5 = vmul.f32 %v6815_v58, %v6815_v58 }
0x312e   :  { %v6821_v6 = vsel %vm775_vm0, %v6817_v5, 0.0 }
0x312f   :  { %6822 = vadd.xlane.f32.xlu1 %v6821_v6 }
0x31b8   :  { %v6820_v10 = vpop.xlane.xlu0 %6819 }
0x31b9   :  { %v6824_v32 = vmul.f32 0.03125, %v6820_v10 }
0x31bb   :  { %v6826_v11 = vadd.f32 1e-05, %v6824_v32 }
0x31bc   :  { %v6823_v34 = vpop.xlane.xlu1 %6822 }
0x31bd   :  { %12256 = vrsqrt.f32 %v6826_v11  ;;  %v6825_v62 = vmul.f32 0.03125, %v6823_v34 }
0x31bf   :  { %v6827_v12 = vadd.f32 1e-05, %v6825_v62 }
0x31c1   :  { %12258 = vrsqrt.f32 %v6827_v12 }
0x31c7   :  { %v12257_v14 = vpop.eup %12256 }
0x31c8   :  { %v6830_v17 = vmul.f32 %v12257_v14, %v6814_v49 }
0x31ca   :  { %v6838_v18 = vmul.f32 %v10096_v16, %v6830_v17 }
0x31cb   :  { %v12259_v19 = vpop.eup %12258 }
0x31cc   :  { %v6831_v29 = vmul.f32 %v12259_v19, %v6815_v58  ;;  %v14242_v8 = vadd.f32 %v10097_v23, %v6838_v18 }
0x31ce   :  { %v6839_v56 = vmul.f32 %v10096_v16, %v6831_v29  ;;  %11060 = vmatprep.mubr.msk.f32.mxu1 %vm775_vm0, %v14242_v8 }
0x31d0   :  { %v14246_v20 = vadd.f32 %v10097_v23, %v6839_v56 }
0x31d2   :  { %11061 = vmatmul.mubr.msk.f32.vlgmr.msra.gmra.mrb[50].mxu1 %vm775_vm0, %v14246_v20 }
0x32a5   :  { %v11062_v21 = vpop.f32.mrb[50].mxu1 }
0x32a6   :  { %v14251_v9 = vadd.f32 %v11062_v21, %v10098_v52  ;;  %v6926_v22 = vpop.f32.mrb[51].mxu1 }
0x32a7   :  { %v14253_v24 = vadd.f32 %v10098_v52, %v6926_v22 }
0x32a9   :  { %11067 = vmatprep.mubr.msk.f32.mxu1 %vm954_vm3, %v14253_v24  ;;  %v14259_v25 = vpack.i.bf16 %v14251_v9, %v14253_v24 }
0x32ab   :  { %12025 = vrot.lane.b32.xlu1 %v14259_v25, %s13089_s15  ;;  %12020 = vrot.lane.b32.xlu0 %v14259_v25, %s13088_s11 }
0x32af   :  { %7137 = vrot.lane.b32.xlu1 %v14253_v24, %s13090_s20  ;;  %7139 = vrot.lane.b32.xlu0 %v14251_v9, %s13090_s20 }
0x32b3   :  { %12030 = vrot.lane.b32.xlu1 %v14259_v25, %s13092_s27  ;;  %7503 = vrot.lane.b32.xlu0 %v14253_v24, %s13093_s8 }
0x32b7   :  { %7505 = vrot.lane.b32.xlu1 %v14251_v9, %s13093_s8 }
0x331d   :  { %v12026_v28 = vpop.permute.xlu1 %12025  ;;  %v12021_v51 = vpop.permute.xlu0 %12020 }
0x331e   :  { %v12028_v3 = vunpack.i.h.bf16 %v12026_v28  ;;  %v12027_v26 = vunpack.i.l.bf16 %v12026_v28  ;;  %v12023_v27 = vunpack.i.h.bf16 %v12021_v51  ;;  %v12022_v35 = vunpack.i.l.bf16 %v12021_v51 }
0x3320   :  { %v11574_v1 = vpack.c.bf16 %v12023_v27, %v12022_v35  ;;  %v11584_v36 = vpack.c.bf16 %v12028_v3, %v12027_v26 }
0x3321   :  { %v7138_v31 = vpop.permute.xlu1 %7137  ;;  %v7140_v40 = vpop.permute.xlu0 %7139 }
0x3322   :  { %11576 = vmatprep.subr.msk.bf16.mxu1 %vm13617_vm4, %v11574_v1 }
0x3323   :  { %11579 = vmatpush3.bf16.xpose.msk.msra.mxu1 %vm13617_vm4, %v11574_v1 }
0x3324   :  { %11586 = vmatprep.subr.msk.bf16.mxu1 %vm13617_vm4, %v11584_v36 }
0x3325   :  { %v12031_v37 = vpop.permute.xlu1 %12030  ;;  %v7504_v41 = vpop.permute.xlu0 %7503 }
0x3326   :  { %v12033_v38 = vunpack.i.h.bf16 %v12031_v37  ;;  %v12032_v2 = vunpack.i.l.bf16 %v12031_v37 }
0x3328   :  { %v11594_v59 = vpack.c.bf16 %v12033_v38, %v12032_v2 }
0x3329   :  { %v7506_v60 = vpop.permute.xlu1 %7505 }
0x332a   :  { %11068 = vmatmul.mubr.msk.f32.vlgmr.msra.gmra.mrb[52].mxu1 %vm954_vm3, %v14251_v9 }
0x332b   :  { %11589 = vmatpush3.bf16.xpose.msk.msra.mxu1 %vm13617_vm4, %v11584_v36  ;;  %11081 = vmatprep.mubr.msk.f32.mxu1 %vm954_vm3, %v7138_v31 }
0x332c   :  { %11596 = vmatprep.subr.msk.bf16.mxu1 %vm13617_vm4, %v11594_v59 }
0x3332   :  { %11082 = vmatmul.mubr.msk.f32.vlgmr.msra.gmra.mrb[54].mxu1 %vm954_vm3, %v7140_v40 }
0x3333   :  { %11599 = vmatpush3.bf16.xpose.msk.msra.mxu1 %vm13617_vm4, %v11594_v59  ;;  %11105 = vmatprep.mubr.msk.f32.mxu1 %vm954_vm3, %v7504_v41 }
0x333a   :  { %11106 = vmatmul.mubr.msk.f32.vlgmr.msra.gmra.mrb[56].mxu1 %vm954_vm3, %v7506_v60 }
0x33fd   :  { %v11069_v61 = vpop.f32.mrb[52].mxu1 }
0x33fe   :  { %v7025_v43 = vmul.f32 0.35355338, %v11069_v61  ;;  %v7015_v13 = vpop.f32.mrb[53].mxu1 }
0x33ff   :  { %v7024_v15 = vmul.f32 0.35355338, %v7015_v13 }
0x3400   :  { %v7027_v46 = vadd.f32 %v14294_v44, %v7025_v43 }
0x3401   :  { %v7026_v48 = vadd.f32 %v14298_v47, %v7024_v15 }
0x3402   :  { %v7031_v55 = vsel %vm1042_vm5, %v7027_v46, -inf }
0x3403   :  { %7032 = vmax.xlane.f32.xlu1 %v7031_v55  ;;  %v7028_v49 = vsel %vm1042_vm5, %v7026_v48, -inf }
0x3404   :  { %7029 = vmax.xlane.f32.xlu0 %v7028_v49 }
0x3405   :  { %v11083_v54 = vpop.f32.mrb[54].mxu1 }
0x3406   :  { %v7219_v50 = vpop.f32.mrb[55].mxu1  ;;  %v7229_v53 = vmul.f32 0.35355338, %v11083_v54 }
0x3407   :  { %v7228_v58 = vmul.f32 0.35355338, %v7219_v50 }
0x3408   :  { %v7231_v5 = vadd.f32 %v14294_v44, %v7229_v53 }
0x3409   :  { %v7230_v63 = vadd.f32 %v14298_v47, %v7228_v58 }
0x340a   :  { %v7235_v57 = vsel %vm1042_vm5, %v7231_v5, -inf }
0x340b   :  { %v7232_v6 = vsel %vm1042_vm5, %v7230_v63, -inf }
0x340c   :  { %7233 = vmax.xlane.f32.xlu0 %v7232_v6 }
0x340d   :  { %v11107_v0 = vpop.f32.mrb[56].mxu1 }
0x340e   :  { %v7585_v4 = vpop.f32.mrb[57].mxu1  ;;  %v7595_v28 = vmul.f32 0.35355338, %v11107_v0 }
0x340f   :  { %v7594_v51 = vmul.f32 0.35355338, %v7585_v4 }
0x3410   :  { %7236 = vmax.xlane.f32.xlu0 %v7235_v57  ;;  %v7597_v3 = vadd.f32 %v14294_v44, %v7595_v28 }
0x3411   :  { %v7596_v26 = vadd.f32 %v14298_v47, %v7594_v51 }
0x3412   :  { %v7601_v35 = vsel %vm1042_vm5, %v7597_v3, -inf }
0x3413   :  { %v7598_v27 = vsel %vm1042_vm5, %v7596_v26, -inf }
0x3490   :  { %v7033_v7 = vpop.xlane.xlu1 %7032 }
0x3491   :  { %v7035_v45 = vsub.f32 %v7027_v46, %v7033_v7  ;;  %v7030_v42 = vpop.xlane.xlu0 %7029 }
0x3492   :  { %v7034_v10 = vsub.f32 %v7026_v48, %v7030_v42 }
0x3493   :  { %v7038_v32 = vmul.f32 1.442695, %v7035_v45 }
0x3494   :  { %v7036_v11 = vmul.f32 1.442695, %v7034_v10 }
0x3495   :  { %12260 = vpow2.f32 %v7038_v32 }
0x3496   :  { %12262 = vpow2.f32 %v7036_v11 }
0x3499   :  { %v7234_v34 = vpop.xlane.xlu0 %7233 }
0x349a   :  { %v7238_v62 = vsub.f32 %v7230_v63, %v7234_v34 }
0x349c   :  { %v7240_v12 = vmul.f32 1.442695, %v7238_v62 }
0x349d   :  { %v7237_v14 = vpop.xlane.xlu0 %7236 }
0x349e   :  { %12264 = vpow2.f32 %v7240_v12  ;;  %v7239_v16 = vsub.f32 %v7231_v5, %v7237_v14 }
0x349f   :  { %v12261_v17 = vpop.eup %12260 }
0x34a0   :  { %v12263_v23 = vpop.eup %12262  ;;  %v7242_v18 = vmul.f32 1.442695, %v7239_v16  ;;  %v7043_v19 = vsel %vm1042_vm5, %v12261_v17, 0.0 }
0x34a1   :  { %7044 = vadd.xlane.f32.xlu0 %v7043_v19  ;;  %v7040_v29 = vsel %vm1042_vm5, %v12263_v23, 0.0 }
0x34a2   :  { %12266 = vpow2.f32 %v7242_v18  ;;  %7041 = vadd.xlane.f32.xlu1 %v7040_v29 }
0x34a8   :  { %v12265_v56 = vpop.eup %12264 }
0x34a9   :  { %v7244_v52 = vsel %vm1042_vm5, %v12265_v56, 0.0 }
0x34aa   :  { %7245 = vadd.xlane.f32.xlu1 %v7244_v52 }
0x34ac   :  { %v12267_v21 = vpop.eup %12266 }
0x34ad   :  { %v7247_v22 = vsel %vm1042_vm5, %v12267_v21, 0.0 }
0x34ae   :  { %7248 = vadd.xlane.f32.xlu0 %v7247_v22 }
0x34bb   :  { %12035 = vrot.lane.b32.xlu1 %v14259_v25, %s13091_s13  ;;  %s14680_s13 = sld [smem:[#allocation94_spill]] }
0x34bf   :  { %12045 = vrot.lane.b32.xlu1 %v14259_v25, %s13095_s5 }
0x34c1   :  { %v667_v34 = vld [vmem:[%s14680_s13 + $0x8] sm:$0xff]  ;;  %v666_v62 = vld [vmem:[%s14680_s13] sm:$0xff] }
0x34c3   :  { %7790 = vrot.lane.b32.xlu1 %v14253_v24, %s13096_s3 }
0x34c4   :  { %12040 = vrot.lane.b32.xlu0 %v14259_v25, %s13094_s16  ;;  %s14681_s16 = sld [smem:[#allocation92_spill]] }
0x34c8   :  { %7792 = vrot.lane.b32.xlu0 %v14251_v9, %s13096_s3 }
0x34e7   :  { %7599 = vmax.xlane.f32.xlu1 %v7598_v27  ;;  %7602 = vmax.xlane.f32.xlu0 %v7601_v35 }
0x352e   :  { %v7045_v24 = vpop.xlane.xlu0 %7044 }
0x352f   :  { %v7042_v1 = vpop.xlane.xlu1 %7041 }
0x3530   :  { %12268 = vrcp.f32 %v7042_v1 }
0x3531   :  { %12270 = vrcp.f32 %v7045_v24 }
0x3537   :  { %v7246_v31 = vpop.xlane.xlu1 %7245 }
0x3538   :  { %12272 = vrcp.f32 %v7246_v31 }
0x353a   :  { %v12269_v36 = vpop.eup %12268 }
0x353b   :  { %v12036_v9 = vpop.permute.xlu1 %12035  ;;  %v7249_v37 = vpop.xlane.xlu0 %7248  ;;  %v7048_v38 = vmul.f32 %v12269_v36, %v12263_v23 }
0x353c   :  { %v12038_v2 = vunpack.i.h.bf16 %v12036_v9  ;;  %v12037_v59 = vunpack.i.l.bf16 %v12036_v9  ;;  %12274 = vrcp.f32 %v7249_v37  ;;  %v12271_v41 = vpop.eup %12270  ;;  %v668_v9 = vld [vmem:[%s14680_s13 + $0x10] sm:$0xff] }
0x353d   :  { %11074 = vmatprep.mubr.msk.f32.mxu0 %vm1042_vm5, %v7048_v38  ;;  %v7049_v55 = vmul.f32 %v12271_v41, %v12261_v17 }
0x353e   :  { %v11580_v40 = vpack.c.bf16 %v12038_v2, %v12037_v59 }
0x353f   :  { %v12046_v60 = vpop.permute.xlu1 %12045  ;;  %v12041_v61 = vpop.permute.xlu0 %12040 }
0x3540   :  { %v12048_v43 = vunpack.i.h.bf16 %v12046_v60  ;;  %v12047_v13 = vunpack.i.l.bf16 %v12046_v60  ;;  %v12043_v15 = vunpack.i.h.bf16 %v12041_v61  ;;  %v12042_v46 = vunpack.i.l.bf16 %v12041_v61  ;;  %11581 = vmatprep.subr.bf16.mxu0 %v11580_v40 }
0x3541   :  { %11583 = vmatpush3.bf16.msra.mxu0 %v11580_v40 }
0x3542   :  { %v12273_v48 = vpop.eup %12272  ;;  %v11604_v49 = vpack.c.bf16 %v12048_v43, %v12047_v13  ;;  %v11590_v54 = vpack.c.bf16 %v12043_v15, %v12042_v46 }
0x3543   :  { %v7791_v50 = vpop.permute.xlu1 %7790  ;;  %v7252_v53 = vmul.f32 %v12273_v48, %v12265_v56  ;;  %v7793_v5 = vpop.permute.xlu0 %7792 }
0x3544   :  { %11075 = vmatmul.mubr.msk.f32.vlgmr.msra.gmra.mrb[48].mxu0 %vm1042_vm5, %v7049_v55  ;;  %11591 = vmatprep.subr.bf16.mxu0 %v11590_v54 }
0x3545   :  { %11606 = vmatprep.subr.msk.bf16.mxu1 %vm13617_vm4, %v11604_v49  ;;  %11124 = vmatprep.mubr.msk.f32.mxu1 %vm954_vm3, %v7791_v50  ;;  %v669_v50 = vld [vmem:[%s14680_s13 + $0x18] sm:$0xff] }
0x3546   :  { %v12275_v58 = vpop.eup %12274  ;;  %11593 = vmatpush3.bf16.msra.mxu0 %v11590_v54  ;;  %11088 = vmatprep.mubr.msk.f32.mxu0 %vm1042_vm5, %v7252_v53 }
0x3547   :  { %v7253_v63 = vmul.f32 %v12275_v58, %v12267_v21  ;;  %11609 = vmatpush3.bf16.xpose.msk.msra.mxu1 %vm13617_vm4, %v11604_v49  ;;  %11091 = vmatprep.subr.mxu0 %v667_v34 }
0x3549   :  { %11089 = vmatmul.mubr.msk.f32.vlgmr.msra.gmra.mrb[50].mxu0 %vm1042_vm5, %v7253_v63 }
0x354a   :  { %11092 = vmatpush3.msra.mxu0 %v667_v34 }
0x354b   :  { %11096 = vmatprep.subr.mxu0 %v666_v62 }
0x354e   :  { %11125 = vmatmul.mubr.msk.f32.vlgmr.msra.gmra.mrb[58].mxu1 %vm954_vm3, %v7793_v5 }
0x3574   :  { %v7600_v6 = vpop.xlane.xlu1 %7599  ;;  %v7603_v0 = vpop.xlane.xlu0 %7602 }
0x3575   :  { %v7604_v4 = vsub.f32 %v7596_v26, %v7600_v6  ;;  %v7605_v57 = vsub.f32 %v7597_v3, %v7603_v0  ;;  %v10133_v0 = vld [vmem:[%s14681_s16] ss:$0 sm:$0xff] }
0x3577   :  { %v7606_v7 = vmul.f32 1.442695, %v7604_v4  ;;  %v7608_v45 = vmul.f32 1.442695, %v7605_v57 }
0x3579   :  { %12276 = vpow2.f32 %v7606_v7 }
0x357a   :  { %12278 = vpow2.f32 %v7608_v45 }
0x3583   :  { %v12277_v42 = vpop.eup %12276 }
0x3584   :  { %v12279_v10 = vpop.eup %12278  ;;  %v7610_v32 = vsel %vm1042_vm5, %v12277_v42, 0.0 }
0x3585   :  { %7611 = vadd.xlane.f32.xlu0 %v7610_v32  ;;  %v7613_v11 = vsel %vm1042_vm5, %v12279_v10, 0.0 }
0x3586   :  { %7614 = vadd.xlane.f32.xlu1 %v7613_v11 }
0x359b   :  { %12050 = vrot.lane.b32.xlu0 %v14259_v25, %s13097_s30  ;;  %s14682_s30 = sld [smem:[#allocation83_spill]] }
0x35a1   :  { %v648_v34 = vld [vmem:[%s14682_s30 + $0x10] sm:$0xff] }
0x3612   :  { %v7612_v12 = vpop.xlane.xlu0 %7611 }
0x3613   :  { %v7615_v23 = vpop.xlane.xlu1 %7614  ;;  %12280 = vrcp.f32 %v7612_v12 }
0x3614   :  { %12282 = vrcp.f32 %v7615_v23 }
0x3616   :  { %v12051_v16 = vpop.permute.xlu0 %12050 }
0x3617   :  { %v11076_v14 = vpop.f32.mrb[48].mxu0  ;;  %v12053_v18 = vunpack.i.h.bf16 %v12051_v16  ;;  %v12052_v19 = vunpack.i.l.bf16 %v12051_v16 }
0x3618   :  { %v7128_v17 = vpop.f32.mrb[49].mxu0 }
0x3619   :  { %v11600_v52 = vpack.c.bf16 %v12053_v18, %v12052_v19 }
0x361c   :  { %v11090_v29 = vpop.f32.mrb[50].mxu0 }
0x361d   :  { %v7332_v56 = vpop.f32.mrb[51].mxu0  ;;  %v12281_v3 = vpop.eup %12280 }
0x361e   :  { %11093 = vmatprep.mubr.msk.f32.mxu0 %vm954_vm3, %v7332_v56  ;;  %v12283_v27 = vpop.eup %12282  ;;  %v7618_v24 = vmul.f32 %v12281_v3, %v12277_v42  ;;  %v646_v56 = vld [vmem:[%s14682_s30] sm:$0xff] }
0x361f   :  { %11094 = vmatmul.mubr.msk.f32.vlgmr.msra.gmra.mrb[52].mxu0 %vm954_vm3, %v11090_v29  ;;  %v7619_v31 = vmul.f32 %v12283_v27, %v12279_v10 }
0x3620   :  { %11097 = vmatpush3.msra.mxu0 %v666_v62  ;;  %11098 = vmatprep.mubr.msk.f32.mxu0 %vm954_vm3, %v7128_v17  ;;  %v649_v62 = vld [vmem:[%s14682_s30 + $0x18] sm:$0xff] }
0x3621   :  { %v11126_v21 = vpop.f32.mrb[58].mxu1  ;;  %11601 = vmatprep.subr.bf16.mxu0 %v11600_v52 }
0x3622   :  { %v7872_v22 = vpop.f32.mrb[59].mxu1  ;;  %v7882_v28 = vmul.f32 0.35355338, %v11126_v21 }
0x3623   :  { %v7881_v51 = vmul.f32 0.35355338, %v7872_v22 }
0x3624   :  { %v7884_v35 = vadd.f32 %v14294_v44, %v7882_v28  ;;  %v11618_v28 = vpack.c.bf16 %v649_v62, %v648_v34 }
0x3625   :  { %v7883_v26 = vadd.f32 %v14298_v47, %v7881_v51 }
0x3626   :  { %v7888_v36 = vsel %vm1042_vm5, %v7884_v35, -inf }
0x3627   :  { %v7885_v1 = vsel %vm1042_vm5, %v7883_v26, -inf  ;;  %11099 = vmatmul.mubr.msk.f32.vlgmr.msra.gmra.mrb[52].mxu0 %vm954_vm3, %v11076_v14 }
0x3628   :  { %7886 = vmax.xlane.f32.xlu1 %v7885_v1  ;;  %11603 = vmatpush3.bf16.msra.mxu0 %v11600_v52  ;;  %v647_v52 = vld [vmem:[%s14682_s30 + $0x8] sm:$0xff] }
0x3629   :  { %11112 = vmatprep.mubr.msk.f32.mxu0 %vm1042_vm5, %v7618_v24  ;;  %11115 = vmatprep.subr.mxu0 %v668_v9  ;;  %v12059_v21 = vpack.i.bf16 %v647_v52, %v646_v56  ;;  %v11614_v22 = vpack.c.bf16 %v647_v52, %v646_v56 }
0x362b   :  { %11113 = vmatmul.mubr.msk.f32.vlgmr.msra.gmra.mrb[54].mxu0 %vm1042_vm5, %v7619_v31  ;;  %11615 = vmatprep.subr.bf16.mxu1 %v11614_v22 }
0x362c   :  { %7889 = vmax.xlane.f32.xlu1 %v7888_v36  ;;  %11116 = vmatpush3.msra.mxu0 %v668_v9 }
0x362d   :  { %11617 = vmatpush3.bf16.msra.mxu1 %v11614_v22 }
0x362e   :  { %11619 = vmatprep.subr.bf16.mxu1 %v11618_v28 }
0x3631   :  { %11621 = vmatpush3.bf16.msra.mxu1 %v11618_v28 }
0x36b5   :  { %v7887_v47 = vpop.xlane.xlu1 %7886 }
0x36b6   :  { %v7891_v44 = vsub.f32 %v7883_v26, %v7887_v47 }
0x36b8   :  { %v7893_v2 = vmul.f32 1.442695, %v7891_v44 }
0x36b9   :  { %v7890_v37 = vpop.xlane.xlu1 %7889 }
0x36ba   :  { %v7892_v38 = vsub.f32 %v7884_v35, %v7890_v37 }
0x36bc   :  { %v7895_v59 = vmul.f32 1.442695, %v7892_v38 }
0x36be   :  { %12284 = vpow2.f32 %v7895_v59 }
0x36bf   :  { %12286 = vpow2.f32 %v7893_v2 }
0x36c8   :  { %v12285_v40 = vpop.eup %12284 }
0x36c9   :  { %v7900_v41 = vsel %vm1042_vm5, %v12285_v40, 0.0  ;;  %v12287_v60 = vpop.eup %12286 }
0x36ca   :  { %7901 = vadd.xlane.f32.xlu1 %v7900_v41  ;;  %v7897_v61 = vsel %vm1042_vm5, %v12287_v60, 0.0  ;;  %v10134_v41 = vld [vmem:[%s14684_s9] ss:$0 sm:$0xff] }
0x36ce   :  { %7898 = vadd.xlane.f32.xlu1 %v7897_v61 }
0x36df   :  { %12055 = vrot.lane.b32.xlu1 %v14259_v25, %s13098_s0  ;;  %s14683_s0 = sld [smem:[#allocation81_spill]] }
0x36e5   :  { %v10136_v51 = vld [vmem:[%s14683_s0] ss:$0 sm:$0xff] }
0x36fe   :  { %v11114_v43 = vpop.f32.mrb[54].mxu0 }
0x36ff   :  { %v7698_v13 = vpop.f32.mrb[55].mxu0 }
0x3700   :  { %11117 = vmatprep.mubr.msk.f32.mxu0 %vm954_vm3, %v7698_v13  ;;  %v10135_v13 = vld [vmem:[%s14685_s19] ss:$0 sm:$0xff] }
0x3701   :  { %11118 = vmatmul.mubr.msk.f32.vlgmr.msra.gmra.mrb[52].mxu0 %vm954_vm3, %v11114_v43 }
0x3757   :  { %v7902_v15 = vpop.xlane.xlu1 %7901 }
0x3758   :  { %12288 = vrcp.f32 %v7902_v15 }
0x375b   :  { %v7899_v46 = vpop.xlane.xlu1 %7898 }
0x375c   :  { %12290 = vrcp.f32 %v7899_v46 }
0x375f   :  { %v12056_v48 = vpop.permute.xlu1 %12055 }
0x3760   :  { %v12058_v55 = vunpack.i.h.bf16 %v12056_v48  ;;  %v12057_v49 = vunpack.i.l.bf16 %v12056_v48 }
0x3762   :  { %v11610_v54 = vpack.c.bf16 %v12058_v55, %v12057_v49  ;;  %v12289_v53 = vpop.eup %12288 }
0x3763   :  { %v7906_v63 = vmul.f32 %v12289_v53, %v12285_v40 }
0x3764   :  { %11611 = vmatprep.subr.bf16.mxu0 %v11610_v54 }
0x3765   :  { %11613 = vmatpush3.bf16.msra.mxu0 %v11610_v54 }
0x3766   :  { %v12291_v25 = vpop.eup %12290  ;;  %11134 = vmatprep.subr.mxu0 %v669_v50 }
0x3767   :  { %v7905_v58 = vmul.f32 %v12291_v25, %v12287_v60 }
0x3769   :  { %11131 = vmatprep.mubr.msk.f32.mxu0 %vm1042_vm5, %v7905_v58 }
0x376a   :  { %11132 = vmatmul.mubr.msk.f32.vlgmr.msra.gmra.mrb[56].mxu0 %vm1042_vm5, %v7906_v63 }
0x376b   :  { %11135 = vmatpush3.msra.mxu0 %v669_v50 }
0x383d   :  { %v11133_v5 = vpop.f32.mrb[56].mxu0 }
0x383e   :  { %v7985_v6 = vpop.f32.mrb[57].mxu0 }
0x383f   :  { %11136 = vmatprep.mubr.msk.f32.mxu0 %vm954_vm3, %v7985_v6 }
0x3840   :  { %11137 = vmatmul.mubr.msk.f32.vlgmr.msra.gmra.mrb[52].mxu0 %vm954_vm3, %v11133_v5 }
0x3841   :  { %11158 = vmatprep.mubr.msk.f32.mxu0 %vm775_vm0, %v14083_v30  ;;  %v12064_v30 = vpack.i.bf16 %v649_v62, %v648_v34 }
0x3913   :  { %v11138_v4 = vpop.f32.mrb[52].mxu0 }
0x3914   :  { %v8084_v57 = vadd.f32 %v11138_v4, %v10133_v0  ;;  %v8066_v7 = vpop.f32.mrb[53].mxu0 }
0x3915   :  { %v8083_v45 = vadd.f32 %v10133_v0, %v8066_v7 }
0x3916   :  { %v8086_v42 = vadd.f32 %v8084_v57, %v14246_v20 }
0x3917   :  { %v8085_v10 = vadd.f32 %v8083_v45, %v14242_v8 }
0x3918   :  { %v8090_v32 = vsel %vm775_vm0, %v8086_v42, 0.0 }
0x3919   :  { %8091 = vadd.xlane.f32.xlu1 %v8090_v32  ;;  %v8087_v11 = vsel %vm775_vm0, %v8085_v10, 0.0 }
0x391a   :  { %8088 = vadd.xlane.f32.xlu0 %v8087_v11 }
0x392a   :  { %12065 = vrot.lane.b32.xlu1 %v12064_v30, %s13088_s11 }
0x39a6   :  { %v8092_v12 = vpop.xlane.xlu1 %8091 }
0x39a7   :  { %v8094_v14 = vmul.f32 0.03125, %v8092_v12  ;;  %v8089_v16 = vpop.xlane.xlu0 %8088 }
0x39a8   :  { %v8093_v17 = vmul.f32 0.03125, %v8089_v16 }
0x39a9   :  { %v8096_v20 = vsub.f32 %v8086_v42, %v8094_v14 }
0x39aa   :  { %v8095_v23 = vsub.f32 %v8085_v10, %v8093_v17  ;;  %v12066_v1 = vpop.permute.xlu1 %12065 }
0x39ab   :  { %v8098_v8 = vmul.f32 %v8096_v20, %v8096_v20  ;;  %v12068_v36 = vunpack.i.h.bf16 %v12066_v1  ;;  %v12067_v9 = vunpack.i.l.bf16 %v12066_v1 }
0x39ac   :  { %v8097_v19 = vmul.f32 %v8095_v23, %v8095_v23 }
0x39ad   :  { %v8102_v18 = vsel %vm775_vm0, %v8098_v8, 0.0  ;;  %v11626_v2 = vpack.c.bf16 %v12068_v36, %v12067_v9  ;;  %v14435_v8 = vld [vmem:[%s14674_s4] sm:$0xff] }
0x39ae   :  { %8103 = vadd.xlane.f32.xlu0 %v8102_v18  ;;  %v8099_v29 = vsel %vm775_vm0, %v8097_v19, 0.0 }
0x39b2   :  { %8100 = vadd.xlane.f32.xlu0 %v8099_v29 }
0x39c8   :  { %12060 = vrot.lane.b32.xlu0 %v12059_v21, %s13088_s11 }
0x39cc   :  { %8232 = vrot.lane.b32.xlu0 %v10136_v51, %s13088_s11 }
0x3a3b   :  { %v8104_v3 = vpop.xlane.xlu0 %8103 }
0x3a3c   :  { %v8106_v26 = vmul.f32 0.03125, %v8104_v3 }
0x3a3e   :  { %v8108_v27 = vadd.f32 1e-05, %v8106_v26 }
0x3a3f   :  { %v8101_v35 = vpop.xlane.xlu0 %8100 }
0x3a40   :  { %12292 = vrsqrt.f32 %v8108_v27  ;;  %v8105_v24 = vmul.f32 0.03125, %v8101_v35 }
0x3a42   :  { %v8107_v31 = vadd.f32 1e-05, %v8105_v24 }
0x3a43   :  { %v12061_v47 = vpop.permute.xlu0 %12060 }
0x3a44   :  { %12294 = vrsqrt.f32 %v8107_v31  ;;  %v12063_v44 = vunpack.i.h.bf16 %v12061_v47  ;;  %v12062_v37 = vunpack.i.l.bf16 %v12061_v47 }
0x3a46   :  { %v11622_v38 = vpack.c.bf16 %v12063_v44, %v12062_v37 }
0x3a47   :  { %v8233_v55 = vpop.permute.xlu0 %8232 }
0x3a48   :  { %11623 = vmatprep.subr.bf16.mxu0 %v11622_v38 }
0x3a49   :  { %11625 = vmatpush3.bf16.msra.mxu0 %v11622_v38 }
0x3a4a   :  { %v12293_v59 = vpop.eup %12292  ;;  %11627 = vmatprep.subr.bf16.mxu0 %v11626_v2 }
0x3a4b   :  { %v8112_v40 = vmul.f32 %v12293_v59, %v8096_v20  ;;  %v14431_v20 = vld [vmem:[%s14674_s4 + $0x8] sm:$0xff] }
0x3a4d   :  { %11629 = vmatpush3.bf16.msra.mxu0 %v11626_v2  ;;  %v8120_v43 = vmul.f32 %v10134_v41, %v8112_v40 }
0x3a4e   :  { %v12295_v60 = vpop.eup %12294 }
0x3a4f   :  { %v8111_v61 = vmul.f32 %v12295_v60, %v8095_v23  ;;  %v14386_v48 = vadd.f32 %v10135_v13, %v8120_v43 }
0x3a50   :  { %11159 = vmatmul.mubr.msk.f32.vlgmr.msra.gmra.mrb[58].mxu0 %vm775_vm0, %v14089_v33 }
0x3a51   :  { %v8119_v15 = vmul.f32 %v10134_v41, %v8111_v61 }
0x3a53   :  { %v14384_v46 = vadd.f32 %v10135_v13, %v8119_v15 }
0x3a55   :  { %11147 = vmatprep.mubr.msk.f32.mxu1 %vm775_vm0, %v14384_v46 }
0x3a56   :  { %11148 = vmatmul.mubr.msk.f32.vlgmr.msra.gmra.mrb[60].mxu1 %vm775_vm0, %v14386_v48 }
0x3b23   :  { %v11160_v49 = vpop.f32.mrb[58].mxu0 }
0x3b24   :  { %v8307_v54 = vadd.f32 %v11160_v49, %v8233_v55  ;;  %v8301_v50 = vpop.f32.mrb[59].mxu0 }
0x3b25   :  { %v8302_v53 = vadd.f32 %v8301_v50, %v8233_v55 }
0x3b27   :  { %v14392_v25 = vpack.i.bf16 %v8307_v54, %v8302_v53  ;;  %v11630_v33 = vpack.c.bf16 %v8307_v54, %v8302_v53 }
0x3b29   :  { %v11149_v58 = vpop.f32.mrb[60].mxu1  ;;  %12070 = vrot.lane.b32.xlu0 %v14392_v25, %s13090_s20  ;;  %11632 = vmatprep.subr.msk.bf16.mxu1 %vm13617_vm4, %v11630_v33 }
0x3b2a   :  { %v14398_v63 = vadd.f32 %v11149_v58, %v10136_v51  ;;  %v8207_v5 = vpop.f32.mrb[61].mxu1  ;;  %11635 = vmatpush3.bf16.xpose.msk.msra.mxu1 %vm13617_vm4, %v11630_v33 }
0x3b2b   :  { %v14402_v6 = vadd.f32 %v10136_v51, %v8207_v5 }
0x3b2d   :  { %8510 = vrot.lane.b32.xlu1 %v14402_v6, %s13090_s20  ;;  %11165 = vmatprep.mubr.msk.f32.mxu1 %vm954_vm3, %v14402_v6 }
0x3b2e   :  { %8512 = vrot.lane.b32.xlu0 %v14398_v63, %s13090_s20  ;;  %s14688_s20 = sld [smem:[#allocation95_spill]] }
0x3b31   :  { %12075 = vrot.lane.b32.xlu1 %v14392_v25, %s13093_s8  ;;  %11166 = vmatmul.mubr.msk.f32.vlgmr.msra.gmra.mrb[62].mxu1 %vm954_vm3, %v14398_v63 }
0x3b32   :  { %8876 = vrot.lane.b32.xlu0 %v14402_v6, %s13093_s8 }
0x3b35   :  { %8878 = vrot.lane.b32.xlu1 %v14398_v63, %s13093_s8  ;;  %s14690_s8 = sld [smem:[#allocation88_spill]] }
0x3b9b   :  { %v12071_v0 = vpop.permute.xlu0 %12070 }
0x3b9c   :  { %v12073_v4 = vunpack.i.h.bf16 %v12071_v0  ;;  %v12072_v57 = vunpack.i.l.bf16 %v12071_v0 }
0x3b9e   :  { %v11640_v7 = vpack.c.bf16 %v12073_v4, %v12072_v57 }
0x3b9f   :  { %v8511_v45 = vpop.permute.xlu1 %8510 }
0x3ba0   :  { %11642 = vmatprep.subr.msk.bf16.mxu1 %vm13617_vm4, %v11640_v7  ;;  %11179 = vmatprep.mubr.msk.f32.mxu1 %vm954_vm3, %v8511_v45  ;;  %v8513_v42 = vpop.permute.xlu0 %8512 }
0x3ba1   :  { %11645 = vmatpush3.bf16.xpose.msk.msra.mxu1 %vm13617_vm4, %v11640_v7 }
0x3ba3   :  { %v12076_v10 = vpop.permute.xlu1 %12075 }
0x3ba4   :  { %v12078_v32 = vunpack.i.h.bf16 %v12076_v10  ;;  %v12077_v11 = vunpack.i.l.bf16 %v12076_v10  ;;  %v8877_v62 = vpop.permute.xlu0 %8876 }
0x3ba6   :  { %v11650_v34 = vpack.c.bf16 %v12078_v32, %v12077_v11 }
0x3ba7   :  { %v8879_v30 = vpop.permute.xlu1 %8878 }
0x3ba8   :  { %11180 = vmatmul.mubr.msk.f32.vlgmr.msra.gmra.mrb[64].mxu1 %vm954_vm3, %v8513_v42  ;;  %11652 = vmatprep.subr.msk.bf16.mxu1 %vm13617_vm4, %v11650_v34 }
0x3ba9   :  { %11655 = vmatpush3.bf16.xpose.msk.msra.mxu1 %vm13617_vm4, %v11650_v34  ;;  %11203 = vmatprep.mubr.msk.f32.mxu1 %vm954_vm3, %v8877_v62 }
0x3bb0   :  { %11204 = vmatmul.mubr.msk.f32.vlgmr.msra.gmra.mrb[66].mxu1 %vm954_vm3, %v8879_v30 }
0x3c04   :  { %v11167_v12 = vpop.f32.mrb[62].mxu1 }
0x3c05   :  { %v8398_v14 = vmul.f32 0.35355338, %v11167_v12  ;;  %v8388_v16 = vpop.f32.mrb[63].mxu1 }
0x3c06   :  { %v8397_v17 = vmul.f32 0.35355338, %v8388_v16 }
0x3c07   :  { %v8400_v23 = vadd.f32 %v14431_v20, %v8398_v14 }
0x3c08   :  { %v8399_v18 = vadd.f32 %v14435_v8, %v8397_v17 }
0x3c09   :  { %v8404_v19 = vsel %vm1042_vm5, %v8400_v23, -inf }
0x3c0a   :  { %8405 = vmax.xlane.f32.xlu1 %v8404_v19  ;;  %v8401_v29 = vsel %vm1042_vm5, %v8399_v18, -inf }
0x3c0b   :  { %8402 = vmax.xlane.f32.xlu0 %v8401_v29 }
0x3c7b   :  { %v11181_v56 = vpop.f32.mrb[64].mxu1 }
0x3c7c   :  { %v8592_v52 = vpop.f32.mrb[65].mxu1  ;;  %v8602_v21 = vmul.f32 0.35355338, %v11181_v56 }
0x3c7d   :  { %v8601_v22 = vmul.f32 0.35355338, %v8592_v52 }
0x3c7e   :  { %v8604_v51 = vadd.f32 %v14431_v20, %v8602_v21 }
0x3c7f   :  { %v8603_v28 = vadd.f32 %v14435_v8, %v8601_v22 }
0x3c80   :  { %v8608_v35 = vsel %vm1042_vm5, %v8604_v51, -inf }
0x3c81   :  { %v8605_v3 = vsel %vm1042_vm5, %v8603_v28, -inf }
0x3c82   :  { %8606 = vmax.xlane.f32.xlu0 %v8605_v3 }
0x3c83   :  { %v11205_v26 = vpop.f32.mrb[66].mxu1 }
0x3c84   :  { %v8958_v27 = vpop.f32.mrb[67].mxu1  ;;  %v8968_v33 = vmul.f32 0.35355338, %v11205_v26 }
0x3c85   :  { %v8967_v58 = vmul.f32 0.35355338, %v8958_v27 }
0x3c86   :  { %8609 = vmax.xlane.f32.xlu0 %v8608_v35  ;;  %v8970_v5 = vadd.f32 %v14431_v20, %v8968_v33 }
0x3c87   :  { %v8969_v0 = vadd.f32 %v14435_v8, %v8967_v58 }
0x3c89   :  { %v8971_v4 = vsel %vm1042_vm5, %v8969_v0, -inf }
0x3c97   :  { %v8406_v1 = vpop.xlane.xlu1 %8405 }
0x3c98   :  { %v8408_v24 = vsub.f32 %v8400_v23, %v8406_v1  ;;  %v8403_v31 = vpop.xlane.xlu0 %8402 }
0x3c99   :  { %v8407_v36 = vsub.f32 %v8399_v18, %v8403_v31 }
0x3c9a   :  { %v8411_v9 = vmul.f32 1.442695, %v8408_v24 }
0x3c9b   :  { %v8409_v47 = vmul.f32 1.442695, %v8407_v36 }
0x3c9c   :  { %12296 = vpow2.f32 %v8411_v9 }
0x3c9d   :  { %12298 = vpow2.f32 %v8409_v47 }
0x3ca6   :  { %v12297_v44 = vpop.eup %12296 }
0x3ca7   :  { %v12299_v37 = vpop.eup %12298  ;;  %v8416_v38 = vsel %vm1042_vm5, %v12297_v44, 0.0 }
0x3ca8   :  { %8417 = vadd.xlane.f32.xlu0 %v8416_v38  ;;  %v8413_v2 = vsel %vm1042_vm5, %v12299_v37, 0.0 }
0x3ca9   :  { %8414 = vadd.xlane.f32.xlu1 %v8413_v2 }
0x3d0f   :  { %v8607_v59 = vpop.xlane.xlu0 %8606 }
0x3d10   :  { %v8611_v40 = vsub.f32 %v8603_v28, %v8607_v59 }
0x3d12   :  { %v8613_v41 = vmul.f32 1.442695, %v8611_v40 }
0x3d13   :  { %v8610_v60 = vpop.xlane.xlu0 %8609 }
0x3d14   :  { %12300 = vpow2.f32 %v8613_v41  ;;  %v8612_v61 = vsub.f32 %v8604_v51, %v8610_v60 }
0x3d16   :  { %v8615_v43 = vmul.f32 1.442695, %v8612_v61 }
0x3d18   :  { %12302 = vpow2.f32 %v8615_v43 }
0x3d1e   :  { %v12301_v13 = vpop.eup %12300 }
0x3d1f   :  { %v8617_v15 = vsel %vm1042_vm5, %v12301_v13, 0.0 }
0x3d20   :  { %8618 = vadd.xlane.f32.xlu1 %v8617_v15 }
0x3d22   :  { %v12303_v55 = vpop.eup %12302 }
0x3d23   :  { %v8620_v49 = vsel %vm1042_vm5, %v12303_v55, 0.0 }
0x3d24   :  { %8621 = vadd.xlane.f32.xlu0 %v8620_v49 }
0x3d31   :  { %12080 = vrot.lane.b32.xlu1 %v14392_v25, %s13088_s11  ;;  %s14686_s11 = sld [smem:[#allocation84_spill]] }
0x3d35   :  { %12090 = vrot.lane.b32.xlu1 %v14392_v25, %s13096_s3  ;;  %v8418_v57 = vpop.xlane.xlu0 %8417 }
0x3d36   :  { %v8415_v54 = vpop.xlane.xlu1 %8414 }
0x3d37   :  { %12304 = vrcp.f32 %v8415_v54  ;;  %v651_v36 = vld [vmem:[%s14686_s11 + $0x8] sm:$0xff]  ;;  %v650_v9 = vld [vmem:[%s14686_s11] sm:$0xff] }
0x3d38   :  { %12306 = vrcp.f32 %v8418_v57 }
0x3d39   :  { %9163 = vrot.lane.b32.xlu1 %v14402_v6, %s13096_s3  ;;  %v8974_v6 = vsel %vm1042_vm5, %v8970_v5, -inf }
0x3d3a   :  { %12085 = vrot.lane.b32.xlu0 %v14392_v25, %s13089_s15  ;;  %s14687_s15 = sld [smem:[#allocation82_spill]] }
0x3d3e   :  { %9165 = vrot.lane.b32.xlu0 %v14398_v63, %s13096_s3  ;;  %s14692_s3 = sld [smem:[#allocation79_spill]] }
0x3d41   :  { %v12305_v50 = vpop.eup %12304 }
0x3d42   :  { %v8421_v53 = vmul.f32 %v12305_v50, %v12299_v37  ;;  %v12307_v11 = vpop.eup %12306 }
0x3d43   :  { %v8422_v23 = vmul.f32 %v12307_v11, %v12297_v44 }
0x3d44   :  { %11172 = vmatprep.mubr.msk.f32.mxu0 %vm1042_vm5, %v8421_v53 }
0x3d5d   :  { %8972 = vmax.xlane.f32.xlu1 %v8971_v4  ;;  %8975 = vmax.xlane.f32.xlu0 %v8974_v6  ;;  %v652_v4 = vld [vmem:[%s14686_s11 + $0x10] sm:$0xff] }
0x3dad   :  { %v8619_v7 = vpop.xlane.xlu1 %8618 }
0x3dae   :  { %12308 = vrcp.f32 %v8619_v7 }
0x3db1   :  { %v12081_v63 = vpop.permute.xlu1 %12080  ;;  %v8622_v45 = vpop.xlane.xlu0 %8621 }
0x3db2   :  { %v12083_v42 = vunpack.i.h.bf16 %v12081_v63  ;;  %v12082_v10 = vunpack.i.l.bf16 %v12081_v63  ;;  %12310 = vrcp.f32 %v8622_v45 }
0x3db4   :  { %v11636_v32 = vpack.c.bf16 %v12083_v42, %v12082_v10 }
0x3db5   :  { %v12091_v34 = vpop.permute.xlu1 %12090  ;;  %v12086_v62 = vpop.permute.xlu0 %12085 }
0x3db6   :  { %v12093_v30 = vunpack.i.h.bf16 %v12091_v34  ;;  %v12092_v12 = vunpack.i.l.bf16 %v12091_v34  ;;  %v12088_v14 = vunpack.i.h.bf16 %v12086_v62  ;;  %v12087_v16 = vunpack.i.l.bf16 %v12086_v62  ;;  %11637 = vmatprep.subr.bf16.mxu0 %v11636_v32 }
0x3db7   :  { %11639 = vmatpush3.bf16.msra.mxu0 %v11636_v32 }
0x3db8   :  { %v12309_v17 = vpop.eup %12308  ;;  %v11660_v18 = vpack.c.bf16 %v12093_v30, %v12092_v12  ;;  %v11646_v19 = vpack.c.bf16 %v12088_v14, %v12087_v16 }
0x3db9   :  { %v9164_v29 = vpop.permute.xlu1 %9163  ;;  %v8625_v56 = vmul.f32 %v12309_v17, %v12301_v13  ;;  %v9166_v22 = vpop.permute.xlu0 %9165 }
0x3dba   :  { %11173 = vmatmul.mubr.msk.f32.vlgmr.msra.gmra.mrb[60].mxu0 %vm1042_vm5, %v8422_v23  ;;  %11647 = vmatprep.subr.bf16.mxu0 %v11646_v19  ;;  %v653_v23 = vld [vmem:[%s14686_s11 + $0x18] sm:$0xff] }
0x3dbb   :  { %11662 = vmatprep.subr.msk.bf16.mxu1 %vm13617_vm4, %v11660_v18  ;;  %11222 = vmatprep.mubr.msk.f32.mxu1 %vm954_vm3, %v9164_v29 }
0x3dbc   :  { %v12311_v52 = vpop.eup %12310  ;;  %11649 = vmatpush3.bf16.msra.mxu0 %v11646_v19  ;;  %11186 = vmatprep.mubr.msk.f32.mxu0 %vm1042_vm5, %v8625_v56 }
0x3dbd   :  { %v8626_v21 = vmul.f32 %v12311_v52, %v12303_v55  ;;  %11665 = vmatpush3.bf16.xpose.msk.msra.mxu1 %vm13617_vm4, %v11660_v18  ;;  %11189 = vmatprep.subr.mxu0 %v651_v36 }
0x3dbf   :  { %11187 = vmatmul.mubr.msk.f32.vlgmr.msra.gmra.mrb[62].mxu0 %vm1042_vm5, %v8626_v21  ;;  %v10173_v21 = vld [vmem:[%s14687_s15] ss:$0 sm:$0xff] }
0x3dc0   :  { %11190 = vmatpush3.msra.mxu0 %v651_v36 }
0x3dc1   :  { %11194 = vmatprep.subr.mxu0 %v650_v9 }
0x3dc4   :  { %11223 = vmatmul.mubr.msk.f32.vlgmr.msra.gmra.mrb[68].mxu1 %vm954_vm3, %v9166_v22 }
0x3dea   :  { %v8973_v28 = vpop.xlane.xlu1 %8972  ;;  %v8976_v51 = vpop.xlane.xlu0 %8975 }
0x3deb   :  { %v8977_v3 = vsub.f32 %v8969_v0, %v8973_v28  ;;  %v8978_v26 = vsub.f32 %v8970_v5, %v8976_v51 }
0x3ded   :  { %v8979_v27 = vmul.f32 1.442695, %v8977_v3  ;;  %v8981_v35 = vmul.f32 1.442695, %v8978_v26 }
0x3def   :  { %12312 = vpow2.f32 %v8979_v27 }
0x3df0   :  { %12314 = vpow2.f32 %v8981_v35 }
0x3df9   :  { %v12313_v1 = vpop.eup %12312 }
0x3dfa   :  { %v12315_v24 = vpop.eup %12314  ;;  %v8983_v39 = vsel %vm1042_vm5, %v12313_v1, 0.0 }
0x3dfb   :  { %8984 = vadd.xlane.f32.xlu0 %v8983_v39  ;;  %v8986_v31 = vsel %vm1042_vm5, %v12315_v24, 0.0 }
0x3dfc   :  { %8987 = vadd.xlane.f32.xlu1 %v8986_v31 }
0x3e11   :  { %12095 = vrot.lane.b32.xlu0 %v14392_v25, %s13092_s27  ;;  %s14689_s27 = sld [smem:[#allocation96_spill]] }
0x3e88   :  { %v8985_v47 = vpop.xlane.xlu0 %8984 }
0x3e89   :  { %v8988_v2 = vpop.xlane.xlu1 %8987  ;;  %12316 = vrcp.f32 %v8985_v47 }
0x3e8a   :  { %12318 = vrcp.f32 %v8988_v2  ;;  %v671_v2 = vld [vmem:[%s14688_s20 + $0x8] sm:$0xff] }
0x3e8c   :  { %v12096_v37 = vpop.permute.xlu0 %12095 }
0x3e8d   :  { %v11174_v44 = vpop.f32.mrb[60].mxu0  ;;  %v12098_v59 = vunpack.i.h.bf16 %v12096_v37  ;;  %v12097_v40 = vunpack.i.l.bf16 %v12096_v37 }
0x3e8e   :  { %v8501_v38 = vpop.f32.mrb[61].mxu0 }
0x3e8f   :  { %v11656_v61 = vpack.c.bf16 %v12098_v59, %v12097_v40  ;;  %v672_v40 = vld [vmem:[%s14688_s20 + $0x10] sm:$0xff] }
0x3e92   :  { %v11188_v41 = vpop.f32.mrb[62].mxu0 }
0x3e93   :  { %v8705_v60 = vpop.f32.mrb[63].mxu0  ;;  %v12317_v49 = vpop.eup %12316 }
0x3e94   :  { %11191 = vmatprep.mubr.msk.f32.mxu0 %vm954_vm3, %v8705_v60  ;;  %v12319_v50 = vpop.eup %12318  ;;  %v8991_v58 = vmul.f32 %v12317_v49, %v12313_v1 }
0x3e95   :  { %11192 = vmatmul.mubr.msk.f32.vlgmr.msra.gmra.mrb[64].mxu0 %vm954_vm3, %v11188_v41  ;;  %v8992_v5 = vmul.f32 %v12319_v50, %v12315_v24  ;;  %v673_v41 = vld [vmem:[%s14688_s20 + $0x18] sm:$0xff]  ;;  %v679_v50 = vld [vmem:[%s14689_s27 + $0x28] sm:$0xff] }
0x3e96   :  { %11195 = vmatpush3.msra.mxu0 %v650_v9  ;;  %11196 = vmatprep.mubr.msk.f32.mxu0 %vm954_vm3, %v8501_v38  ;;  %v670_v38 = vld [vmem:[%s14688_s20] sm:$0xff]  ;;  %v11674_v60 = vpack.c.bf16 %v673_v41, %v672_v40 }
0x3e97   :  { %v11224_v43 = vpop.f32.mrb[68].mxu1  ;;  %11657 = vmatprep.subr.bf16.mxu0 %v11656_v61  ;;  %v11670_v59 = vpack.c.bf16 %v671_v2, %v670_v38  ;;  %v750_v38 = vld [vmem:[%s13460_s6 + $0x18] sm:$0xff] }
0x3e98   :  { %v9245_v13 = vpop.f32.mrb[69].mxu1  ;;  %v9255_v15 = vmul.f32 0.35355338, %v11224_v43  ;;  %v675_v43 = vld [vmem:[%s14689_s27 + $0x8] sm:$0xff] }
0x3e99   :  { %v9254_v55 = vmul.f32 0.35355338, %v9245_v13  ;;  %11671 = vmatprep.subr.bf16.mxu1 %v11670_v59  ;;  %v676_v13 = vld [vmem:[%s14689_s27 + $0x10] sm:$0xff] }
0x3e9a   :  { %v9257_v53 = vadd.f32 %v14431_v20, %v9255_v15  ;;  %11673 = vmatpush3.bf16.msra.mxu1 %v11670_v59 }
0x3e9b   :  { %v9256_v54 = vadd.f32 %v14435_v8, %v9254_v55  ;;  %11675 = vmatprep.subr.bf16.mxu1 %v11674_v60  ;;  %v677_v55 = vld [vmem:[%s14689_s27 + $0x18] sm:$0xff] }
0x3e9c   :  { %v9261_v0 = vsel %vm1042_vm5, %v9257_v53, -inf  ;;  %v11682_v49 = vpack.c.bf16 %v677_v55, %v676_v13 }
0x3e9d   :  { %v9258_v33 = vsel %vm1042_vm5, %v9256_v54, -inf  ;;  %11197 = vmatmul.mubr.msk.f32.vlgmr.msra.gmra.mrb[64].mxu0 %vm954_vm3, %v11174_v44 }
0x3e9e   :  { %9259 = vmax.xlane.f32.xlu1 %v9258_v33  ;;  %11659 = vmatpush3.bf16.msra.mxu0 %v11656_v61  ;;  %v674_v61 = vld [vmem:[%s14689_s27] sm:$0xff] }
0x3e9f   :  { %11210 = vmatprep.mubr.msk.f32.mxu0 %vm1042_vm5, %v8991_v58  ;;  %11213 = vmatprep.subr.mxu0 %v652_v4  ;;  %v11678_v15 = vpack.c.bf16 %v675_v43, %v674_v61 }
0x3ea0   :  { %11677 = vmatpush3.bf16.msra.mxu1 %v11674_v60 }
0x3ea1   :  { %11211 = vmatmul.mubr.msk.f32.vlgmr.msra.gmra.mrb[66].mxu0 %vm1042_vm5, %v8992_v5 }
0x3ea2   :  { %9262 = vmax.xlane.f32.xlu1 %v9261_v0  ;;  %11214 = vmatpush3.msra.mxu0 %v652_v4 }
0x3f2b   :  { %v9260_v8 = vpop.xlane.xlu1 %9259 }
0x3f2c   :  { %v9264_v20 = vsub.f32 %v9256_v54, %v9260_v8  ;;  %v678_v54 = vld [vmem:[%s14689_s27 + $0x20] sm:$0xff] }
0x3f2e   :  { %v9266_v7 = vmul.f32 1.442695, %v9264_v20 }
0x3f2f   :  { %v9263_v6 = vpop.xlane.xlu1 %9262 }
0x3f30   :  { %v9265_v57 = vsub.f32 %v9257_v53, %v9263_v6  ;;  %v11686_v53 = vpack.c.bf16 %v679_v50, %v678_v54  ;;  %v10174_v6 = vld [vmem:[%s14690_s8] ss:$0 sm:$0xff] }
0x3f32   :  { %v9268_v63 = vmul.f32 1.442695, %v9265_v57 }
0x3f34   :  { %12320 = vpow2.f32 %v9268_v63 }
0x3f35   :  { %12322 = vpow2.f32 %v9266_v7 }
0x3f3e   :  { %v12321_v45 = vpop.eup %12320 }
0x3f3f   :  { %v9273_v42 = vsel %vm1042_vm5, %v12321_v45, 0.0  ;;  %v12323_v10 = vpop.eup %12322 }
0x3f40   :  { %9274 = vadd.xlane.f32.xlu1 %v9273_v42  ;;  %v9270_v32 = vsel %vm1042_vm5, %v12323_v10, 0.0 }
0x3f44   :  { %9271 = vadd.xlane.f32.xlu1 %v9270_v32 }
0x3f55   :  { %12100 = vrot.lane.b32.xlu1 %v14392_v25, %s13095_s5  ;;  %s14691_s5 = sld [smem:[#allocation87_spill]] }
0x3f5b   :  { %v10175_v7 = vld [vmem:[%s14691_s5] ss:$0 sm:$0xff] }
0x3f74   :  { %v11212_v11 = vpop.f32.mrb[66].mxu0 }
0x3f75   :  { %v9071_v34 = vpop.f32.mrb[67].mxu0 }
0x3f76   :  { %11215 = vmatprep.mubr.msk.f32.mxu0 %vm954_vm3, %v9071_v34  ;;  %v680_v34 = vld [vmem:[%s14689_s27 + $0x30] sm:$0xff] }
0x3f77   :  { %11216 = vmatmul.mubr.msk.f32.vlgmr.msra.gmra.mrb[64].mxu0 %vm954_vm3, %v11212_v11 }
0x3fcd   :  { %v9275_v62 = vpop.xlane.xlu1 %9274 }
0x3fce   :  { %12324 = vrcp.f32 %v9275_v62  ;;  %v681_v62 = vld [vmem:[%s14689_s27 + $0x38] sm:$0xff] }
0x3fd1   :  { %v9272_v30 = vpop.xlane.xlu1 %9271 }
0x3fd2   :  { %12326 = vrcp.f32 %v9272_v30  ;;  %v11690_v30 = vpack.c.bf16 %v681_v62, %v680_v34 }
0x3fd5   :  { %v12101_v12 = vpop.permute.xlu1 %12100 }
0x3fd6   :  { %v12103_v14 = vunpack.i.h.bf16 %v12101_v12  ;;  %v12102_v16 = vunpack.i.l.bf16 %v12101_v12  ;;  %v10176_v12 = vld [vmem:[%s14692_s3] ss:$0 sm:$0xff] }
0x3fd8   :  { %v11666_v17 = vpack.c.bf16 %v12103_v14, %v12102_v16  ;;  %v12325_v18 = vpop.eup %12324 }
0x3fd9   :  { %v9279_v29 = vmul.f32 %v12325_v18, %v12321_v45 }
0x3fda   :  { %11667 = vmatprep.subr.bf16.mxu0 %v11666_v17 }
0x3fdb   :  { %11669 = vmatpush3.bf16.msra.mxu0 %v11666_v17 }
0x3fdc   :  { %v12327_v25 = vpop.eup %12326  ;;  %11232 = vmatprep.subr.mxu0 %v653_v23 }
0x3fdd   :  { %v9278_v19 = vmul.f32 %v12327_v25, %v12323_v10 }
0x3fdf   :  { %11229 = vmatprep.mubr.msk.f32.mxu0 %vm1042_vm5, %v9278_v19  ;;  %v10179_v19 = vld [vmem:[%s14693_s26] ss:$0 sm:$0xff] }
0x3fe0   :  { %11230 = vmatmul.mubr.msk.f32.vlgmr.msra.gmra.mrb[68].mxu0 %vm1042_vm5, %v9279_v29 }
0x3fe1   :  { %11233 = vmatpush3.msra.mxu0 %v653_v23 }
0x3fe2   :  { %11679 = vmatprep.subr.bf16.mxu0 %v11678_v15 }
0x40b3   :  { %v11231_v56 = vpop.f32.mrb[68].mxu0 }
0x40b4   :  { %v9358_v52 = vpop.f32.mrb[69].mxu0 }
0x40b5   :  { %11234 = vmatprep.mubr.msk.f32.mxu0 %vm954_vm3, %v9358_v52 }
0x40b6   :  { %11235 = vmatmul.mubr.msk.f32.vlgmr.msra.gmra.mrb[64].mxu0 %vm954_vm3, %v11231_v56 }
0x40b7   :  { %11681 = vmatpush3.bf16.msra.mxu0 %v11678_v15  ;;  %v10182_v15 = vld [vmem:[%s14694_s14] ss:$0 sm:$0xff] }
0x40b8   :  { %11683 = vmatprep.subr.bf16.mxu0 %v11682_v49 }
0x40bb   :  { %11685 = vmatpush3.bf16.msra.mxu0 %v11682_v49  ;;  %v10183_v49 = vld [vmem:[%s14695_s17] ss:$0 sm:$0xff] }
0x40bc   :  { %11687 = vmatprep.subr.bf16.mxu0 %v11686_v53 }
0x40bf   :  { %11689 = vmatpush3.bf16.msra.mxu0 %v11686_v53 }
0x40c0   :  { %11691 = vmatprep.subr.bf16.mxu0 %v11690_v30 }
0x40c3   :  { %11693 = vmatpush3.bf16.msra.mxu0 %v11690_v30 }
0x4189   :  { %v11236_v22 = vpop.f32.mrb[64].mxu0 }
0x418a   :  { %v9457_v28 = vadd.f32 %v11236_v22, %v10173_v21  ;;  %v9439_v51 = vpop.f32.mrb[65].mxu0 }
0x418b   :  { %v9456_v3 = vadd.f32 %v10173_v21, %v9439_v51 }
0x418c   :  { %v9459_v26 = vadd.f32 %v9457_v28, %v14386_v48 }
0x418d   :  { %v9458_v27 = vadd.f32 %v9456_v3, %v14384_v46 }
0x418e   :  { %v9463_v35 = vsel %vm775_vm0, %v9459_v26, 0.0 }
0x418f   :  { %9464 = vadd.xlane.f32.xlu1 %v9463_v35  ;;  %v9460_v1 = vsel %vm775_vm0, %v9458_v27, 0.0 }
0x4190   :  { %9461 = vadd.xlane.f32.xlu0 %v9460_v1 }
0x421c   :  { %v9465_v24 = vpop.xlane.xlu1 %9464 }
0x421d   :  { %v9467_v39 = vmul.f32 0.03125, %v9465_v24  ;;  %v9462_v31 = vpop.xlane.xlu0 %9461 }
0x421e   :  { %v9466_v36 = vmul.f32 0.03125, %v9462_v31 }
0x421f   :  { %v9469_v9 = vsub.f32 %v9459_v26, %v9467_v39 }
0x4220   :  { %v9468_v47 = vsub.f32 %v9458_v27, %v9466_v36 }
0x4221   :  { %v9471_v48 = vmul.f32 %v9469_v9, %v9469_v9 }
0x4222   :  { %v9470_v44 = vmul.f32 %v9468_v47, %v9468_v47 }
0x4223   :  { %v9475_v37 = vsel %vm775_vm0, %v9471_v48, 0.0 }
0x4224   :  { %v9472_v46 = vsel %vm775_vm0, %v9470_v44, 0.0  ;;  %v747_v44 = vld [vmem:[%s13460_s6] sm:$0xff] }
0x4225   :  { %9473 = vadd.xlane.f32.xlu0 %v9472_v46  ;;  %v748_v46 = vld [vmem:[%s13460_s6 + $0x8] sm:$0xff] }
0x4226   :  { %v11694_v48 = vpack.c.bf16 %v748_v46, %v747_v44 }
0x4228   :  { %11695 = vmatprep.subr.bf16.mxu1 %v11694_v48 }
0x4229   :  { %9476 = vadd.xlane.f32.xlu0 %v9475_v37  ;;  %v749_v37 = vld [vmem:[%s13460_s6 + $0x10] sm:$0xff]  ;;  %s13099_s6 = smov [#allocation44]  }
0x422a   :  { %v11698_v2 = vpack.c.bf16 %v750_v38, %v749_v37  ;;  %s9816_s29 = sshll.u32 %s13099_s6, 4  ;;  %s9817_s29 = int_to_ptr.vmem [resolvable:$true] %s9816_s29 }
0x422b   :  { %s12936_s28 = scalar_lea.vmem %s9817_s29, 256  ;;  %p12941_p7 = scmp.lt.s32.totalorder %s9817_s29, %s9817_s29 }
0x422c   :  { %p12937_p6 = scmp.ne.s32.totalorder %s9817_s29, %s12936_s28  ;;  %p12942_p8 = scmp.lt.s32.totalorder %s12936_s28, %s12936_s28 }
0x422e   :  { %p12943_p9 = por %p12942_p8, %p12941_p7 }
0x4230   :  { %p12944_p10 = pnand %p12943_p9, %p12937_p6 }
0x42b2   :  { %v9474_v33 = vpop.xlane.xlu0 %9473 }
0x42b3   :  { %v9478_v58 = vmul.f32 0.03125, %v9474_v33 }
0x42b5   :  { %v9480_v5 = vadd.f32 1e-05, %v9478_v58 }
0x42b6   :  { %v9477_v0 = vpop.xlane.xlu0 %9476 }
0x42b7   :  { %12328 = vrsqrt.f32 %v9480_v5  ;;  %v9479_v4 = vmul.f32 0.03125, %v9477_v0  ;;  %v10184_v0 = vld [vmem:[#allocation43] ss:$0 sm:$0xff] }
0x42b9   :  { %v9481_v8 = vadd.f32 1e-05, %v9479_v4 }
0x42bb   :  { %12330 = vrsqrt.f32 %v9481_v8 }
0x42c1   :  { %v12329_v20 = vpop.eup %12328 }
0x42c2   :  { %v9484_v57 = vmul.f32 %v12329_v20, %v9468_v47 }
0x42c4   :  { %v9492_v63 = vmul.f32 %v10174_v6, %v9484_v57 }
0x42c5   :  { %v12331_v45 = vpop.eup %12330 }
0x42c6   :  { %v9485_v42 = vmul.f32 %v12331_v45, %v9469_v9  ;;  %v9500_v10 = vadd.f32 %v10175_v7, %v9492_v63 }
0x42c8   :  { %v9493_v32 = vmul.f32 %v10174_v6, %v9485_v42  ;;  %11245 = vmatprep.mubr.msk.f32.mxu1 %vm775_vm0, %v9500_v10 }
0x42ca   :  { %v9501_v11 = vadd.f32 %v10175_v7, %v9493_v32 }
0x42cc   :  { %11246 = vmatmul.mubr.msk.f32.vlgmr.msra.gmra.mrb[70].mxu1 %vm775_vm0, %v9501_v11 }
0x42cd   :  { %11697 = vmatpush3.bf16.msra.mxu1 %v11694_v48 }
0x42ce   :  { %11699 = vmatprep.subr.bf16.mxu1 %v11698_v2 }
0x42d1   :  { %11701 = vmatpush3.bf16.msra.mxu1 %v11698_v2 }
0x439f   :  { %v11247_v14 = vpop.f32.mrb[70].mxu1 }
0x43a0   :  { %v9586_v16 = vadd.f32 %v11247_v14, %v10176_v12  ;;  %v9580_v17 = vpop.f32.mrb[71].mxu1 }
0x43a1   :  { %v9581_v23 = vadd.f32 %v10176_v12, %v9580_v17 }
0x43a2   :  { %v9590_v25 = vmax.f32 %v9586_v16, 0.0 }
0x43a3   :  { %v9589_v18 = vmax.f32 %v9581_v23, 0.0 }
0x43a5   :  { %11264 = vmatprep.mubr.msk.f32.mxu0 %vm2240_vm6, %v9589_v18 }
0x43a6   :  { %11265 = vmatmul.mubr.msk.f32.vlgmr.msra.gmra.mrb[70].mxu0 %vm2240_vm6, %v9590_v25 }
0x4479   :  { %v11266_v29 = vpop.f32.mrb[70].mxu0 }
0x447a   :  { %v9669_v56 = vpop.f32.mrb[71].mxu0  ;;  %v9675_v52 = vadd.f32 %v11266_v29, %v10179_v19 }
0x447b   :  { %v9670_v21 = vadd.f32 %v10179_v19, %v9669_v56 }
0x447c   :  { %v9679_v28 = vadd.f32 %v9675_v52, %v9501_v11 }
0x447d   :  { %v9678_v22 = vadd.f32 %v9670_v21, %v9500_v10 }
0x447e   :  { %v9683_v3 = vsel %vm775_vm0, %v9679_v28, 0.0 }
0x447f   :  { %v9680_v51 = vsel %vm775_vm0, %v9678_v22, 0.0 }
0x4480   :  { %9681 = vadd.xlane.f32.xlu0 %v9680_v51 }
0x4484   :  { %9684 = vadd.xlane.f32.xlu0 %v9683_v3 }
0x450d   :  { %v9682_v26 = vpop.xlane.xlu0 %9681 }
0x450e   :  { %v9686_v27 = vmul.f32 0.03125, %v9682_v26 }
0x4510   :  { %v9688_v35 = vsub.f32 %v9678_v22, %v9686_v27 }
0x4511   :  { %v9685_v1 = vpop.xlane.xlu0 %9684 }
0x4512   :  { %v9687_v24 = vmul.f32 0.03125, %v9685_v1  ;;  %v9690_v39 = vmul.f32 %v9688_v35, %v9688_v35 }
0x4514   :  { %v9689_v31 = vsub.f32 %v9679_v28, %v9687_v24  ;;  %v9692_v36 = vsel %vm775_vm0, %v9690_v39, 0.0 }
0x4515   :  { %9693 = vadd.xlane.f32.xlu0 %v9692_v36 }
0x4516   :  { %v9691_v9 = vmul.f32 %v9689_v31, %v9689_v31 }
0x4518   :  { %v9695_v47 = vsel %vm775_vm0, %v9691_v9, 0.0 }
0x4519   :  { %9696 = vadd.xlane.f32.xlu1 %v9695_v47 }
0x45a2   :  { %v9694_v59 = vpop.xlane.xlu0 %9693 }
0x45a3   :  { %v9698_v40 = vmul.f32 0.03125, %v9694_v59 }
0x45a5   :  { %v9700_v41 = vadd.f32 1e-05, %v9698_v40 }
0x45a6   :  { %v9697_v60 = vpop.xlane.xlu1 %9696 }
0x45a7   :  { %12332 = vrsqrt.f32 %v9700_v41  ;;  %v9699_v61 = vmul.f32 0.03125, %v9697_v60 }
0x45a9   :  { %v9701_v43 = vadd.f32 1e-05, %v9699_v61 }
0x45ab   :  { %12334 = vrsqrt.f32 %v9701_v43 }
0x45b1   :  { %v12333_v13 = vpop.eup %12332 }
0x45b2   :  { %v9704_v55 = vmul.f32 %v12333_v13, %v9688_v35 }
0x45b4   :  { %v9712_v54 = vmul.f32 %v10182_v15, %v9704_v55 }
0x45b5   :  { %v12335_v50 = vpop.eup %12334 }
0x45b6   :  { %v9705_v53 = vmul.f32 %v12335_v50, %v9689_v31  ;;  %v9720_v33 = vadd.f32 %v10183_v49, %v9712_v54 }
0x45b8   :  { %v9713_v58 = vmul.f32 %v10182_v15, %v9705_v53  ;;  %11275 = vmatprep.mubr.msk.f32.mxu1 %vm775_vm0, %v9720_v33 }
0x45ba   :  { %v9721_v5 = vadd.f32 %v10183_v49, %v9713_v58 }
0x45bc   :  { %11276 = vmatmul.mubr.msk.f32.vlgmr.msra.gmra.mrb[72].mxu1 %vm775_vm0, %v9721_v5 }
0x468f   :  { %v11277_v4 = vpop.f32.mrb[72].mxu1 }
0x4690   :  { %v9806_v8 = vadd.f32 %v11277_v4, %v10184_v0  ;;  %v9800_v20 = vpop.f32.mrb[73].mxu1 }
0x4691   :  { %v9801_v6 = vadd.f32 %v10184_v0, %v9800_v20 }
0x4692   :  { %9810 = vst.msk [vmem:[#allocation44 + $0x8] sm:$0xff] %vm775_vm0, %v9806_v8 }
0x4693   :  { %9809 = vst.msk [vmem:[#allocation44] sm:$0xff] %vm775_vm0, %v9801_v6 }
0x4694   :  { %12947 = shalt.err (!%p12944_p10)
}
0x4695   :  { %s12948_s1 = scalar_lea.hbm %s13465_s24, 256 }
0x4696   :  { %p12949_p11 = scmp.ne.s32.totalorder %s13465_s24, %s12948_s1  ;;  %p12952_p12 = scmp.lt.u32.totalorder %s12948_s1, %s13465_s24 }
0x4698   :  { %p12954_p13 = pnand %p12952_p12, %p12949_p11 }
0x469a   :  { %12957 = shalt.err (!%p12954_p13)
}
0x469b   :  { %s13100_s12 = smov 128   ;;  %s13101_s21 = smov 8  }
0x469c   :  { %9822 = dma.vmem_to_hbm [thread:$0]  %s9817_s29, 256, %s13465_s24, [#allocation4], %s13100_s12, %s13100_s12, %s13101_s21  }
0x469d   :  { %12986 = dma.done.wait [#allocation4], 256  }
0x469e   :  { %12987 = vsyncadd [#allocation4], 4294967040 }
0x469f   :  { %9826 = vsyncpa [#allocation3], 1 }
0x46a0   :  { %9827 = vsyncpa [#allocation6], 1 }
0x46a1   :  { %9828 = vsyncpa [#allocation9], 1 }
0x46a2   :  { %9829 = vsyncpa [#allocation12], 1 }
0x46a3   :  { %9830 = vsyncpa [#allocation15], 1 }
0x46a4   :  { %9831 = vsyncpa [#allocation18], 1 }
0x46a5   :  { %9832 = vsyncpa [#allocation21], 1 }
0x46a6   :  { %9833 = vsyncpa [#allocation24], 1 }
0x46a7   :  { %9834 = vsyncpa [#allocation27], 1 }
0x46a8   :  { %9835 = vsyncpa [#allocation30], 1 }
0x46a9   :  { %9836 = vsyncpa [#allocation33], 1 }
0x46aa   :  { %9837 = vsyncpa [#allocation36], 1 }
0x46ab   :  { %9838 = vsyncpa [#allocation39], 1 }
0x46ac   :  { %9839 = vsyncpa [#allocation42], 1 }
0x46ad   :  { %9840 = vsyncpa [#allocation4], 1 }

</bundles_post_ra>
